<compile_context>
chip_gen: v6e
topology: v6e:2x2x1
jax: 0.10.0
libtpu: 0.0.40
codegen_flags: <defaults>
</compile_context>

<pallas_src>
import math

import jax
import jax.numpy as jnp
from jax.experimental import pallas as pl
from jax.experimental.pallas import tpu as pltpu


# -----------------------------------------------------------------------------
# Pallas kernel:  K[h, l] = 2 * Re( sum_n C'[h, n] * exp(dA[h, n])**l )
# -----------------------------------------------------------------------------
def _s4d_kernel(log_dt_ref, log_A_real_ref, A_imag_ref, c_re_ref, c_im_ref,
                k_ref,
                p_re, p_im, d_re, d_im, zl_re, zl_im):
    block_l = int(k_ref.shape[-1])      # static, power of two, multiple of 128
    n_bits = block_l.bit_length() - 1

    # ---- prologue: once per H block (first L tile only) ---------------------
    @pl.when(pl.program_id(1) == 0)
    def _():
        dt = jnp.exp(log_dt_ref[...])                     # (bh, 1)
        a_re = -jnp.exp(log_A_real_ref[...])              # (bh, N)
        a_im = A_imag_ref[...]

        da_re = a_re * dt
        da_im = a_im * dt

        # z = exp(dA): the only transcendentals, on (bh, N)-sized data.
        mag = jnp.exp(da_re)
        z_re = mag * jnp.cos(da_im)
        z_im = mag * jnp.sin(da_im)

        # B = (z - 1) / A, with a single reciprocal.
        inv = pl.reciprocal(a_re * a_re + a_im * a_im)
        num_re = z_re - 1.0
        num_im = z_im
        b_re = (num_re * a_re + num_im * a_im) * inv
        b_im = (num_im * a_re - num_re * a_im) * inv

        # D = 2 * (C * B)  -- fold the trailing 2x into the coefficients.
        c_re = c_re_ref[...]
        c_im = c_im_ref[...]
        d_re[...] = 2.0 * (c_re * b_re - c_im * b_im)
        d_im[...] = 2.0 * (c_re * b_im + c_im * b_re)

        # Local Vandermonde z^m for m in [0, block_l) by binary exponentiation:
        # pure VPU complex multiplies + selects, no per-element transcendentals.
        m = jax.lax.broadcasted_iota(jnp.int32, (1, 1, block_l), 2)
        zk_re, zk_im = z_re, z_im                         # z^(2^0)
        bit = (m & 1) == 1
        pr = jnp.where(bit, zk_re[:, :, None], 1.0)
        pi = jnp.where(bit, zk_im[:, :, None], 0.0)
        for b in range(1, n_bits):
            zk_re, zk_im = (zk_re * zk_re - zk_im * zk_im,
                            2.0 * zk_re * zk_im)          # z^(2^b)
            bit = ((m >> b) & 1) == 1
            f_re = jnp.where(bit, zk_re[:, :, None], 1.0)
            f_im = jnp.where(bit, zk_im[:, :, None], 0.0)
            pr, pi = pr * f_re - pi * f_im, pr * f_im + pi * f_re
        p_re[...] = pr
        p_im[...] = pi
        # One more squaring gives the per-L-tile carry factor z^block_l.
        zl_re[...] = zk_re * zk_re - zk_im * zk_im
        zl_im[...] = 2.0 * zk_re * zk_im

    # ---- hot path: lane-dense, VPU-only ------------------------------------
    dr = d_re[...][:, :, None]                            # (bh, N, 1)
    di = d_im[...][:, :, None]
    k_ref[...] = jnp.sum(dr * p_re[...] - di * p_im[...], axis=1
                         ).astype(k_ref.dtype)            # (bh, block_l)

    # Carry D <- D * z^block_l for the next L tile of this H block.
    cur_re = d_re[...]
    cur_im = d_im[...]
    zr = zl_re[...]
    zi = zl_im[...]
    d_re[...] = cur_re * zr - cur_im * zi
    d_im[...] = cur_re * zi + cur_im * zr


def s4d_conv_kernel(log_dt, log_A_real, A_imag, C_re, C_im, L,
                    block_h=8, block_l=None):
    """Pallas S4D kernel generation. Returns K of shape (H, L), float32."""
    H, N = log_A_real.shape
    assert H % block_h == 0, (H, block_h)

    L_pad = ((L + 127) // 128) * 128
    if block_l is None:
        block_l = 128
        for cand in (2048, 1024, 512, 256):
            if L_pad % cand == 0:
                block_l = cand
                break
    assert L_pad % block_l == 0 and (block_l & (block_l - 1)) == 0

    f32 = jnp.float32
    log_dt2 = log_dt.reshape(H, 1).astype(f32)

    # Rough VMEM budget: Vandermonde scratch + hot-path temporaries + I/O
    # double buffers; clamp so tile sweeps stay inside v7x's 64 MiB VMEM.
    elems_hnl = block_h * N * block_l
    vmem_need = 4 * (5 * elems_hnl + 8 * block_h * N
                     + 2 * block_h * block_l + 2 * block_h)
    vmem_limit = int(min(64 * 1024 * 1024,
                         max(16 * 1024 * 1024, 2 * vmem_need)))

    hn_spec = pl.BlockSpec((block_h, N), lambda i, j: (i, 0))
    k_pad = pl.pallas_call(
        _s4d_kernel,
        out_shape=jax.ShapeDtypeStruct((H, L_pad), f32),
        grid_spec=pltpu.PrefetchScalarGridSpec(
            num_scalar_prefetch=0,
            grid=(H // block_h, L_pad // block_l),
            in_specs=[pl.BlockSpec((block_h, 1), lambda i, j: (i, 0)),
                      hn_spec, hn_spec, hn_spec, hn_spec],
            out_specs=pl.BlockSpec((block_h, block_l), lambda i, j: (i, j)),
            scratch_shapes=[pltpu.VMEM((block_h, N, block_l), f32),
                            pltpu.VMEM((block_h, N, block_l), f32),
                            pltpu.VMEM((block_h, N), f32),
                            pltpu.VMEM((block_h, N), f32),
                            pltpu.VMEM((block_h, N), f32),
                            pltpu.VMEM((block_h, N), f32)]),
        compiler_params=pltpu.CompilerParams(
            # H blocks are independent (megacore-parallel on v7x); the L axis
            # carries scratch state so it must stay sequential.
            dimension_semantics=("parallel", "arbitrary"),
            vmem_limit_bytes=vmem_limit),
    )(log_dt2, log_A_real.astype(f32), A_imag.astype(f32),
      C_re.astype(f32), C_im.astype(f32))
    return k_pad[:, :L]


# -----------------------------------------------------------------------------
# S4DLayer / S4Encoder forward (eval mode) in JAX, using the Pallas kernel for
# the S4D conv-kernel generation.
# TODO(synk): the FFT long-convolution, GELU/GLU, 1x1 conv and LayerNorm have
# no clean Pallas equivalent (no Pallas FFT primitive) and are left to XLA.
# -----------------------------------------------------------------------------
def _layer_norm(x, scale, bias, eps=1e-5):
    mu = jnp.mean(x, axis=-1, keepdims=True)
    var = jnp.mean(jnp.square(x - mu), axis=-1, keepdims=True)
    return (x - mu) * jax.lax.rsqrt(var + eps) * scale + bias


def s4d_layer_forward(p, x):
    # x: (B, L, H) -> (B, L, H)
    u = jnp.transpose(x, (0, 2, 1))                       # (B, H, L)
    L = u.shape[-1]
    k = s4d_conv_kernel(p["log_dt"], p["log_A_real"], p["A_imag"],
                        p["C_re"], p["C_im"], L)          # (H, L)
    k_f = jnp.fft.rfft(k, n=2 * L)                        # (H, L+1)
    u_f = jnp.fft.rfft(u, n=2 * L)                        # (B, H, L+1)
    y = jnp.fft.irfft(u_f * k_f[None], n=2 * L)[..., :L]  # (B, H, L)
    y = y + u * p["D"][None, :, None]
    y = jax.nn.gelu(y, approximate=False)
    z = jnp.einsum("oh,bhl->bol", p["W_out"], y) + p["b_out"][None, :, None]
    a, b = jnp.split(z, 2, axis=1)                        # GLU over channel dim
    y = a * jax.nn.sigmoid(b)
    return jnp.transpose(y, (0, 2, 1))                    # (B, L, H)


def s4_encoder_forward(layers, x):
    for p in layers:
        z = s4d_layer_forward(p, x)
        x = _layer_norm(z + x, p["ln_scale"], p["ln_bias"])
    return x


def init_s4_encoder(key, hidden_dim, d_state, num_layers,
                    dt_min=0.001, dt_max=0.1):
    N = d_state // 2
    layers = []
    for _ in range(num_layers):
        key, k_dt, k_cr, k_ci, k_d, k_w = jax.random.split(key, 6)
        log_dt = (jax.random.uniform(k_dt, (hidden_dim,), dtype=jnp.float32)
                  * (math.log(dt_max) - math.log(dt_min)) + math.log(dt_min))
        A_imag = math.pi * jnp.broadcast_to(
            jnp.arange(N, dtype=jnp.float32), (hidden_dim, N))
        log_A_real = jnp.log(0.5 * jnp.ones((hidden_dim, N), jnp.float32))
        # torch.randn(cfloat): real/imag each ~ N(0, 1/2)
        C_re = jax.random.normal(k_cr, (hidden_dim, N), jnp.float32) / math.sqrt(2.0)
        C_im = jax.random.normal(k_ci, (hidden_dim, N), jnp.float32) / math.sqrt(2.0)
        D = jax.random.normal(k_d, (hidden_dim,), jnp.float32)
        W_out = (jax.random.normal(k_w, (2 * hidden_dim, hidden_dim), jnp.float32)
                 / math.sqrt(hidden_dim))
        b_out = jnp.zeros((2 * hidden_dim,), jnp.float32)
        layers.append(dict(log_dt=log_dt, log_A_real=log_A_real, A_imag=A_imag,
                           C_re=C_re, C_im=C_im, D=D, W_out=W_out, b_out=b_out,
                           ln_scale=jnp.ones((hidden_dim,), jnp.float32),
                           ln_bias=jnp.zeros((hidden_dim,), jnp.float32)))
    return layers


def _k_reference(p, L):
    """Pure-JAX complex reference of S4DKernel.forward(L)."""
    dt = jnp.exp(p["log_dt"])
    C = (p["C_re"] + 1j * p["C_im"]).astype(jnp.complex64)
    A = (-jnp.exp(p["log_A_real"]) + 1j * p["A_imag"]).astype(jnp.complex64)
    dA = A * dt[:, None]
    K_exp = dA[:, :, None] * jnp.arange(L)
    C_mod = C * (jnp.exp(dA) - 1.0) / A
    return 2.0 * jnp.einsum("hn,hnl->hl", C_mod, jnp.exp(K_exp)).real


if __name__ == "__main__":
    hidden_dim, d_state, num_layers = 32, 64, 2
    batch, seq_len = 2, 16

    key = jax.random.PRNGKey(0)
    key, k_x = jax.random.split(key)
    layers = init_s4_encoder(key, hidden_dim, d_state, num_layers)
    p0 = layers[0]

    # --- correctness of the Pallas S4D kernel (single L tile, L=16 -> pad 128)
    K = jax.block_until_ready(
        s4d_conv_kernel(p0["log_dt"], p0["log_A_real"], p0["A_imag"],
                        p0["C_re"], p0["C_im"], seq_len))
    K_ref = _k_reference(p0, seq_len)
    assert K.shape == (hidden_dim, seq_len)
    assert jnp.allclose(K, K_ref, atol=1e-4, rtol=1e-4), \
        float(jnp.max(jnp.abs(K - K_ref)))

    # --- correctness of the multi-L-tile path (L=300 -> 3 tiles of 128) -----
    L_long = 300
    K2 = jax.block_until_ready(
        s4d_conv_kernel(p0["log_dt"], p0["log_A_real"], p0["A_imag"],
                        p0["C_re"], p0["C_im"], L_long))
    K2_ref = _k_reference(p0, L_long)
    assert K2.shape == (hidden_dim, L_long)
    assert jnp.allclose(K2, K2_ref, atol=1e-4, rtol=1e-4), \
        float(jnp.max(jnp.abs(K2 - K2_ref)))

    # --- full encoder forward (eval mode: dropout = identity) ---------------
    x = jax.random.normal(k_x, (batch, seq_len, hidden_dim), jnp.float32)
    y = jax.block_until_ready(s4_encoder_forward(layers, x))
    assert y.shape == (batch, seq_len, hidden_dim)
    assert bool(jnp.all(jnp.isfinite(y)))

    print("KERNEL_OK")
</pallas_src>

<mosaic_0001>
module attributes {stable_mosaic.version = 11 : i64} {
  func.func @_s4d_kernel(%arg0: i32, %arg1: i32, %arg2: memref<8x1xf32, #tpu.memory_space<vmem>>, %arg3: memref<8x32xf32, #tpu.memory_space<vmem>>, %arg4: memref<8x32xf32, #tpu.memory_space<vmem>>, %arg5: memref<8x32xf32, #tpu.memory_space<vmem>>, %arg6: memref<8x32xf32, #tpu.memory_space<vmem>>, %arg7: memref<8x128xf32, #tpu.memory_space<vmem>>, %arg8: memref<8x32x128xf32, #tpu.memory_space<vmem>>, %arg9: memref<8x32x128xf32, #tpu.memory_space<vmem>>, %arg10: memref<8x32xf32, #tpu.memory_space<vmem>>, %arg11: memref<8x32xf32, #tpu.memory_space<vmem>>, %arg12: memref<8x32xf32, #tpu.memory_space<vmem>>, %arg13: memref<8x32xf32, #tpu.memory_space<vmem>>) attributes {dimension_semantics = [#tpu.dimension_semantics<parallel>, #tpu.dimension_semantics<arbitrary>], iteration_bounds = array<i64: 4, 1>, scalar_prefetch = 0 : i64, scratch_operands = 6 : i64, tpu.core_type = #tpu.core_type<tc>, window_params = [{transform_indices = @transform_0, window_bounds = array<i64: 8, 1>}, {transform_indices = @transform_1, window_bounds = array<i64: 8, 32>}, {transform_indices = @transform_2, window_bounds = array<i64: 8, 32>}, {transform_indices = @transform_3, window_bounds = array<i64: 8, 32>}, {transform_indices = @transform_4, window_bounds = array<i64: 8, 32>}, {transform_indices = @transform_5, window_bounds = array<i64: 8, 128>}]} {
    %c0_i32 = arith.constant 0 : i32
    %0 = arith.cmpi eq, %arg1, %c0_i32 : i32
    %1 = arith.extui %0 : i1 to i32
    %c0_i32_0 = arith.constant 0 : i32
    %2 = arith.cmpi ne, %1, %c0_i32_0 : i32
    scf.if %2 {
      %c0_24 = arith.constant 0 : index
      %c0_25 = arith.constant 0 : index
      %28 = vector.load %arg2[%c0_24, %c0_25] : memref<8x1xf32, #tpu.memory_space<vmem>>, vector<8x1xf32>
      %29 = math.exp %28 : vector<8x1xf32>
      %c0_26 = arith.constant 0 : index
      %c0_27 = arith.constant 0 : index
      %30 = vector.load %arg3[%c0_26, %c0_27] : memref<8x32xf32, #tpu.memory_space<vmem>>, vector<8x32xf32>
      %31 = math.exp %30 : vector<8x32xf32>
      %cst_28 = arith.constant 0.000000e+00 : f32
      %32 = vector.broadcast %cst_28 : f32 to vector<8x32xf32>
      %33 = arith.subf %32, %31 : vector<8x32xf32>
      %c0_29 = arith.constant 0 : index
      %c0_30 = arith.constant 0 : index
      %34 = vector.load %arg4[%c0_29, %c0_30] : memref<8x32xf32, #tpu.memory_space<vmem>>, vector<8x32xf32>
      %35 = vector.broadcast %29 : vector<8x1xf32> to vector<8x32xf32>
      %36 = arith.mulf %33, %35 : vector<8x32xf32>
      %37 = vector.broadcast %29 : vector<8x1xf32> to vector<8x32xf32>
      %38 = arith.mulf %34, %37 : vector<8x32xf32>
      %39 = math.exp %36 : vector<8x32xf32>
      %40 = math.cos %38 : vector<8x32xf32>
      %41 = arith.mulf %39, %40 : vector<8x32xf32>
      %42 = math.sin %38 : vector<8x32xf32>
      %43 = arith.mulf %39, %42 : vector<8x32xf32>
      %44 = arith.mulf %33, %33 : vector<8x32xf32>
      %45 = arith.mulf %34, %34 : vector<8x32xf32>
      %46 = arith.addf %44, %45 : vector<8x32xf32>
      %47 = tpu.reciprocal %46 : vector<8x32xf32> -> vector<8x32xf32>
      %cst_31 = arith.constant 1.000000e+00 : f32
      %48 = vector.broadcast %cst_31 : f32 to vector<8x32xf32>
      %49 = arith.subf %41, %48 : vector<8x32xf32>
      %50 = arith.mulf %49, %33 : vector<8x32xf32>
      %51 = arith.mulf %43, %34 : vector<8x32xf32>
      %52 = arith.addf %50, %51 : vector<8x32xf32>
      %53 = arith.mulf %52, %47 : vector<8x32xf32>
      %54 = arith.mulf %43, %33 : vector<8x32xf32>
      %55 = arith.mulf %49, %34 : vector<8x32xf32>
      %56 = arith.subf %54, %55 : vector<8x32xf32>
      %57 = arith.mulf %56, %47 : vector<8x32xf32>
      %c0_32 = arith.constant 0 : index
      %c0_33 = arith.constant 0 : index
      %58 = vector.load %arg5[%c0_32, %c0_33] : memref<8x32xf32, #tpu.memory_space<vmem>>, vector<8x32xf32>
      %c0_34 = arith.constant 0 : index
      %c0_35 = arith.constant 0 : index
      %59 = vector.load %arg6[%c0_34, %c0_35] : memref<8x32xf32, #tpu.memory_space<vmem>>, vector<8x32xf32>
      %60 = arith.mulf %58, %53 : vector<8x32xf32>
      %61 = arith.mulf %59, %57 : vector<8x32xf32>
      %62 = arith.subf %60, %61 : vector<8x32xf32>
      %cst_36 = arith.constant 2.000000e+00 : f32
      %63 = vector.broadcast %cst_36 : f32 to vector<8x32xf32>
      %64 = arith.mulf %63, %62 : vector<8x32xf32>
      %c0_37 = arith.constant 0 : index
      %c0_38 = arith.constant 0 : index
      %65 = vector.load %arg10[%c0_37, %c0_38] : memref<8x32xf32, #tpu.memory_space<vmem>>, vector<8x32xf32>
      tpu.vector_store %arg10[%c0_37, %c0_38], %64 {strides = array<i32>} : memref<8x32xf32, #tpu.memory_space<vmem>>, vector<8x32xf32>,
      %66 = arith.mulf %58, %57 : vector<8x32xf32>
      %67 = arith.mulf %59, %53 : vector<8x32xf32>
      %68 = arith.addf %66, %67 : vector<8x32xf32>
      %cst_39 = arith.constant 2.000000e+00 : f32
      %69 = vector.broadcast %cst_39 : f32 to vector<8x32xf32>
      %70 = arith.mulf %69, %68 : vector<8x32xf32>
      %c0_40 = arith.constant 0 : index
      %c0_41 = arith.constant 0 : index
      %71 = vector.load %arg11[%c0_40, %c0_41] : memref<8x32xf32, #tpu.memory_space<vmem>>, vector<8x32xf32>
      tpu.vector_store %arg11[%c0_40, %c0_41], %70 {strides = array<i32>} : memref<8x32xf32, #tpu.memory_space<vmem>>, vector<8x32xf32>,
      %72 = tpu.iota {dimensions = array<i32: 2>} : vector<1x1x128xi32>
      %c1_i32 = arith.constant 1 : i32
      %73 = vector.broadcast %c1_i32 : i32 to vector<1x1x128xi32>
      %74 = arith.andi %72, %73 : vector<1x1x128xi32>
      %c1_i32_42 = arith.constant 1 : i32
      %75 = vector.broadcast %c1_i32_42 : i32 to vector<1x1x128xi32>
      %76 = arith.cmpi eq, %74, %75 : vector<1x1x128xi32>
      %77 = vector.shape_cast %41 : vector<8x32xf32> to vector<8x32x1xf32>
      %cst_43 = arith.constant 1.000000e+00 : f32
      %78 = vector.shape_cast %76 : vector<1x1x128xi1> to vector<1x1x128xi1>
      %79 = vector.broadcast %78 : vector<1x1x128xi1> to vector<8x32x128xi1>
      %80 = vector.shape_cast %77 : vector<8x32x1xf32> to vector<8x32x1xf32>
      %81 = vector.broadcast %80 : vector<8x32x1xf32> to vector<8x32x128xf32>
      %82 = vector.broadcast %cst_43 : f32 to vector<8x32x128xf32>
      %83 = arith.select %79, %81, %82 : vector<8x32x128xi1>, vector<8x32x128xf32>
      %84 = vector.shape_cast %43 : vector<8x32xf32> to vector<8x32x1xf32>
      %cst_44 = arith.constant 0.000000e+00 : f32
      %85 = vector.shape_cast %76 : vector<1x1x128xi1> to vector<1x1x128xi1>
      %86 = vector.broadcast %85 : vector<1x1x128xi1> to vector<8x32x128xi1>
      %87 = vector.shape_cast %84 : vector<8x32x1xf32> to vector<8x32x1xf32>
      %88 = vector.broadcast %87 : vector<8x32x1xf32> to vector<8x32x128xf32>
      %89 = vector.broadcast %cst_44 : f32 to vector<8x32x128xf32>
      %90 = arith.select %86, %88, %89 : vector<8x32x128xi1>, vector<8x32x128xf32>
      %91 = arith.mulf %41, %41 : vector<8x32xf32>
      %92 = arith.mulf %43, %43 : vector<8x32xf32>
      %93 = arith.subf %91, %92 : vector<8x32xf32>
      %cst_45 = arith.constant 2.000000e+00 : f32
      %94 = vector.broadcast %cst_45 : f32 to vector<8x32xf32>
      %95 = arith.mulf %94, %41 : vector<8x32xf32>
      %96 = arith.mulf %95, %43 : vector<8x32xf32>
      %c1_i32_46 = arith.constant 1 : i32
      %97 = vector.broadcast %c1_i32_46 : i32 to vector<1x1x128xi32>
      %98 = arith.shrsi %72, %97 : vector<1x1x128xi32>
      %c1_i32_47 = arith.constant 1 : i32
      %99 = vector.broadcast %c1_i32_47 : i32 to vector<1x1x128xi32>
      %100 = arith.andi %98, %99 : vector<1x1x128xi32>
      %c1_i32_48 = arith.constant 1 : i32
      %101 = vector.broadcast %c1_i32_48 : i32 to vector<1x1x128xi32>
      %102 = arith.cmpi eq, %100, %101 : vector<1x1x128xi32>
      %103 = vector.shape_cast %93 : vector<8x32xf32> to vector<8x32x1xf32>
      %cst_49 = arith.constant 1.000000e+00 : f32
      %104 = vector.shape_cast %102 : vector<1x1x128xi1> to vector<1x1x128xi1>
      %105 = vector.broadcast %104 : vector<1x1x128xi1> to vector<8x32x128xi1>
      %106 = vector.shape_cast %103 : vector<8x32x1xf32> to vector<8x32x1xf32>
      %107 = vector.broadcast %106 : vector<8x32x1xf32> to vector<8x32x128xf32>
      %108 = vector.broadcast %cst_49 : f32 to vector<8x32x128xf32>
      %109 = arith.select %105, %107, %108 : vector<8x32x128xi1>, vector<8x32x128xf32>
      %110 = vector.shape_cast %96 : vector<8x32xf32> to vector<8x32x1xf32>
      %cst_50 = arith.constant 0.000000e+00 : f32
      %111 = vector.shape_cast %102 : vector<1x1x128xi1> to vector<1x1x128xi1>
      %112 = vector.broadcast %111 : vector<1x1x128xi1> to vector<8x32x128xi1>
      %113 = vector.shape_cast %110 : vector<8x32x1xf32> to vector<8x32x1xf32>
      %114 = vector.broadcast %113 : vector<8x32x1xf32> to vector<8x32x128xf32>
      %115 = vector.broadcast %cst_50 : f32 to vector<8x32x128xf32>
      %116 = arith.select %112, %114, %115 : vector<8x32x128xi1>, vector<8x32x128xf32>
      %117 = arith.mulf %83, %109 : vector<8x32x128xf32>
      %118 = arith.mulf %90, %116 : vector<8x32x128xf32>
      %119 = arith.subf %117, %118 : vector<8x32x128xf32>
      %120 = arith.mulf %83, %116 : vector<8x32x128xf32>
      %121 = arith.mulf %90, %109 : vector<8x32x128xf32>
      %122 = arith.addf %120, %121 : vector<8x32x128xf32>
      %123 = arith.mulf %93, %93 : vector<8x32xf32>
      %124 = arith.mulf %96, %96 : vector<8x32xf32>
      %125 = arith.subf %123, %124 : vector<8x32xf32>
      %cst_51 = arith.constant 2.000000e+00 : f32
      %126 = vector.broadcast %cst_51 : f32 to vector<8x32xf32>
      %127 = arith.mulf %126, %93 : vector<8x32xf32>
      %128 = arith.mulf %127, %96 : vector<8x32xf32>
      %c2_i32 = arith.constant 2 : i32
      %129 = vector.broadcast %c2_i32 : i32 to vector<1x1x128xi32>
      %130 = arith.shrsi %72, %129 : vector<1x1x128xi32>
      %c1_i32_52 = arith.constant 1 : i32
      %131 = vector.broadcast %c1_i32_52 : i32 to vector<1x1x128xi32>
      %132 = arith.andi %130, %131 : vector<1x1x128xi32>
      %c1_i32_53 = arith.constant 1 : i32
      %133 = vector.broadcast %c1_i32_53 : i32 to vector<1x1x128xi32>
      %134 = arith.cmpi eq, %132, %133 : vector<1x1x128xi32>
      %135 = vector.shape_cast %125 : vector<8x32xf32> to vector<8x32x1xf32>
      %cst_54 = arith.constant 1.000000e+00 : f32
      %136 = vector.shape_cast %134 : vector<1x1x128xi1> to vector<1x1x128xi1>
      %137 = vector.broadcast %136 : vector<1x1x128xi1> to vector<8x32x128xi1>
      %138 = vector.shape_cast %135 : vector<8x32x1xf32> to vector<8x32x1xf32>
      %139 = vector.broadcast %138 : vector<8x32x1xf32> to vector<8x32x128xf32>
      %140 = vector.broadcast %cst_54 : f32 to vector<8x32x128xf32>
      %141 = arith.select %137, %139, %140 : vector<8x32x128xi1>, vector<8x32x128xf32>
      %142 = vector.shape_cast %128 : vector<8x32xf32> to vector<8x32x1xf32>
      %cst_55 = arith.constant 0.000000e+00 : f32
      %143 = vector.shape_cast %134 : vector<1x1x128xi1> to vector<1x1x128xi1>
      %144 = vector.broadcast %143 : vector<1x1x128xi1> to vector<8x32x128xi1>
      %145 = vector.shape_cast %142 : vector<8x32x1xf32> to vector<8x32x1xf32>
      %146 = vector.broadcast %145 : vector<8x32x1xf32> to vector<8x32x128xf32>
      %147 = vector.broadcast %cst_55 : f32 to vector<8x32x128xf32>
      %148 = arith.select %144, %146, %147 : vector<8x32x128xi1>, vector<8x32x128xf32>
      %149 = arith.mulf %119, %141 : vector<8x32x128xf32>
      %150 = arith.mulf %122, %148 : vector<8x32x128xf32>
      %151 = arith.subf %149, %150 : vector<8x32x128xf32>
      %152 = arith.mulf %119, %148 : vector<8x32x128xf32>
      %153 = arith.mulf %122, %141 : vector<8x32x128xf32>
      %154 = arith.addf %152, %153 : vector<8x32x128xf32>
      %155 = arith.mulf %125, %125 : vector<8x32xf32>
      %156 = arith.mulf %128, %128 : vector<8x32xf32>
      %157 = arith.subf %155, %156 : vector<8x32xf32>
      %cst_56 = arith.constant 2.000000e+00 : f32
      %158 = vector.broadcast %cst_56 : f32 to vector<8x32xf32>
      %159 = arith.mulf %158, %125 : vector<8x32xf32>
      %160 = arith.mulf %159, %128 : vector<8x32xf32>
      %c3_i32 = arith.constant 3 : i32
      %161 = vector.broadcast %c3_i32 : i32 to vector<1x1x128xi32>
      %162 = arith.shrsi %72, %161 : vector<1x1x128xi32>
      %c1_i32_57 = arith.constant 1 : i32
      %163 = vector.broadcast %c1_i32_57 : i32 to vector<1x1x128xi32>
      %164 = arith.andi %162, %163 : vector<1x1x128xi32>
      %c1_i32_58 = arith.constant 1 : i32
      %165 = vector.broadcast %c1_i32_58 : i32 to vector<1x1x128xi32>
      %166 = arith.cmpi eq, %164, %165 : vector<1x1x128xi32>
      %167 = vector.shape_cast %157 : vector<8x32xf32> to vector<8x32x1xf32>
      %cst_59 = arith.constant 1.000000e+00 : f32
      %168 = vector.shape_cast %166 : vector<1x1x128xi1> to vector<1x1x128xi1>
      %169 = vector.broadcast %168 : vector<1x1x128xi1> to vector<8x32x128xi1>
      %170 = vector.shape_cast %167 : vector<8x32x1xf32> to vector<8x32x1xf32>
      %171 = vector.broadcast %170 : vector<8x32x1xf32> to vector<8x32x128xf32>
      %172 = vector.broadcast %cst_59 : f32 to vector<8x32x128xf32>
      %173 = arith.select %169, %171, %172 : vector<8x32x128xi1>, vector<8x32x128xf32>
      %174 = vector.shape_cast %160 : vector<8x32xf32> to vector<8x32x1xf32>
      %cst_60 = arith.constant 0.000000e+00 : f32
      %175 = vector.shape_cast %166 : vector<1x1x128xi1> to vector<1x1x128xi1>
      %176 = vector.broadcast %175 : vector<1x1x128xi1> to vector<8x32x128xi1>
      %177 = vector.shape_cast %174 : vector<8x32x1xf32> to vector<8x32x1xf32>
      %178 = vector.broadcast %177 : vector<8x32x1xf32> to vector<8x32x128xf32>
      %179 = vector.broadcast %cst_60 : f32 to vector<8x32x128xf32>
      %180 = arith.select %176, %178, %179 : vector<8x32x128xi1>, vector<8x32x128xf32>
      %181 = arith.mulf %151, %173 : vector<8x32x128xf32>
      %182 = arith.mulf %154, %180 : vector<8x32x128xf32>
      %183 = arith.subf %181, %182 : vector<8x32x128xf32>
      %184 = arith.mulf %151, %180 : vector<8x32x128xf32>
      %185 = arith.mulf %154, %173 : vector<8x32x128xf32>
      %186 = arith.addf %184, %185 : vector<8x32x128xf32>
      %187 = arith.mulf %157, %157 : vector<8x32xf32>
      %188 = arith.mulf %160, %160 : vector<8x32xf32>
      %189 = arith.subf %187, %188 : vector<8x32xf32>
      %cst_61 = arith.constant 2.000000e+00 : f32
      %190 = vector.broadcast %cst_61 : f32 to vector<8x32xf32>
      %191 = arith.mulf %190, %157 : vector<8x32xf32>
      %192 = arith.mulf %191, %160 : vector<8x32xf32>
      %c4_i32 = arith.constant 4 : i32
      %193 = vector.broadcast %c4_i32 : i32 to vector<1x1x128xi32>
      %194 = arith.shrsi %72, %193 : vector<1x1x128xi32>
      %c1_i32_62 = arith.constant 1 : i32
      %195 = vector.broadcast %c1_i32_62 : i32 to vector<1x1x128xi32>
      %196 = arith.andi %194, %195 : vector<1x1x128xi32>
      %c1_i32_63 = arith.constant 1 : i32
      %197 = vector.broadcast %c1_i32_63 : i32 to vector<1x1x128xi32>
      %198 = arith.cmpi eq, %196, %197 : vector<1x1x128xi32>
      %199 = vector.shape_cast %189 : vector<8x32xf32> to vector<8x32x1xf32>
      %cst_64 = arith.constant 1.000000e+00 : f32
      %200 = vector.shape_cast %198 : vector<1x1x128xi1> to vector<1x1x128xi1>
      %201 = vector.broadcast %200 : vector<1x1x128xi1> to vector<8x32x128xi1>
      %202 = vector.shape_cast %199 : vector<8x32x1xf32> to vector<8x32x1xf32>
      %203 = vector.broadcast %202 : vector<8x32x1xf32> to vector<8x32x128xf32>
      %204 = vector.broadcast %cst_64 : f32 to vector<8x32x128xf32>
      %205 = arith.select %201, %203, %204 : vector<8x32x128xi1>, vector<8x32x128xf32>
      %206 = vector.shape_cast %192 : vector<8x32xf32> to vector<8x32x1xf32>
      %cst_65 = arith.constant 0.000000e+00 : f32
      %207 = vector.shape_cast %198 : vector<1x1x128xi1> to vector<1x1x128xi1>
      %208 = vector.broadcast %207 : vector<1x1x128xi1> to vector<8x32x128xi1>
      %209 = vector.shape_cast %206 : vector<8x32x1xf32> to vector<8x32x1xf32>
      %210 = vector.broadcast %209 : vector<8x32x1xf32> to vector<8x32x128xf32>
      %211 = vector.broadcast %cst_65 : f32 to vector<8x32x128xf32>
      %212 = arith.select %208, %210, %211 : vector<8x32x128xi1>, vector<8x32x128xf32>
      %213 = arith.mulf %183, %205 : vector<8x32x128xf32>
      %214 = arith.mulf %186, %212 : vector<8x32x128xf32>
      %215 = arith.subf %213, %214 : vector<8x32x128xf32>
      %216 = arith.mulf %183, %212 : vector<8x32x128xf32>
      %217 = arith.mulf %186, %205 : vector<8x32x128xf32>
      %218 = arith.addf %216, %217 : vector<8x32x128xf32>
      %219 = arith.mulf %189, %189 : vector<8x32xf32>
      %220 = arith.mulf %192, %192 : vector<8x32xf32>
      %221 = arith.subf %219, %220 : vector<8x32xf32>
      %cst_66 = arith.constant 2.000000e+00 : f32
      %222 = vector.broadcast %cst_66 : f32 to vector<8x32xf32>
      %223 = arith.mulf %222, %189 : vector<8x32xf32>
      %224 = arith.mulf %223, %192 : vector<8x32xf32>
      %c5_i32 = arith.constant 5 : i32
      %225 = vector.broadcast %c5_i32 : i32 to vector<1x1x128xi32>
      %226 = arith.shrsi %72, %225 : vector<1x1x128xi32>
      %c1_i32_67 = arith.constant 1 : i32
      %227 = vector.broadcast %c1_i32_67 : i32 to vector<1x1x128xi32>
      %228 = arith.andi %226, %227 : vector<1x1x128xi32>
      %c1_i32_68 = arith.constant 1 : i32
      %229 = vector.broadcast %c1_i32_68 : i32 to vector<1x1x128xi32>
      %230 = arith.cmpi eq, %228, %229 : vector<1x1x128xi32>
      %231 = vector.shape_cast %221 : vector<8x32xf32> to vector<8x32x1xf32>
      %cst_69 = arith.constant 1.000000e+00 : f32
      %232 = vector.shape_cast %230 : vector<1x1x128xi1> to vector<1x1x128xi1>
      %233 = vector.broadcast %232 : vector<1x1x128xi1> to vector<8x32x128xi1>
      %234 = vector.shape_cast %231 : vector<8x32x1xf32> to vector<8x32x1xf32>
      %235 = vector.broadcast %234 : vector<8x32x1xf32> to vector<8x32x128xf32>
      %236 = vector.broadcast %cst_69 : f32 to vector<8x32x128xf32>
      %237 = arith.select %233, %235, %236 : vector<8x32x128xi1>, vector<8x32x128xf32>
      %238 = vector.shape_cast %224 : vector<8x32xf32> to vector<8x32x1xf32>
      %cst_70 = arith.constant 0.000000e+00 : f32
      %239 = vector.shape_cast %230 : vector<1x1x128xi1> to vector<1x1x128xi1>
      %240 = vector.broadcast %239 : vector<1x1x128xi1> to vector<8x32x128xi1>
      %241 = vector.shape_cast %238 : vector<8x32x1xf32> to vector<8x32x1xf32>
      %242 = vector.broadcast %241 : vector<8x32x1xf32> to vector<8x32x128xf32>
      %243 = vector.broadcast %cst_70 : f32 to vector<8x32x128xf32>
      %244 = arith.select %240, %242, %243 : vector<8x32x128xi1>, vector<8x32x128xf32>
      %245 = arith.mulf %215, %237 : vector<8x32x128xf32>
      %246 = arith.mulf %218, %244 : vector<8x32x128xf32>
      %247 = arith.subf %245, %246 : vector<8x32x128xf32>
      %248 = arith.mulf %215, %244 : vector<8x32x128xf32>
      %249 = arith.mulf %218, %237 : vector<8x32x128xf32>
      %250 = arith.addf %248, %249 : vector<8x32x128xf32>
      %251 = arith.mulf %221, %221 : vector<8x32xf32>
      %252 = arith.mulf %224, %224 : vector<8x32xf32>
      %253 = arith.subf %251, %252 : vector<8x32xf32>
      %cst_71 = arith.constant 2.000000e+00 : f32
      %254 = vector.broadcast %cst_71 : f32 to vector<8x32xf32>
      %255 = arith.mulf %254, %221 : vector<8x32xf32>
      %256 = arith.mulf %255, %224 : vector<8x32xf32>
      %c6_i32 = arith.constant 6 : i32
      %257 = vector.broadcast %c6_i32 : i32 to vector<1x1x128xi32>
      %258 = arith.shrsi %72, %257 : vector<1x1x128xi32>
      %c1_i32_72 = arith.constant 1 : i32
      %259 = vector.broadcast %c1_i32_72 : i32 to vector<1x1x128xi32>
      %260 = arith.andi %258, %259 : vector<1x1x128xi32>
      %c1_i32_73 = arith.constant 1 : i32
      %261 = vector.broadcast %c1_i32_73 : i32 to vector<1x1x128xi32>
      %262 = arith.cmpi eq, %260, %261 : vector<1x1x128xi32>
      %263 = vector.shape_cast %253 : vector<8x32xf32> to vector<8x32x1xf32>
      %cst_74 = arith.constant 1.000000e+00 : f32
      %264 = vector.shape_cast %262 : vector<1x1x128xi1> to vector<1x1x128xi1>
      %265 = vector.broadcast %264 : vector<1x1x128xi1> to vector<8x32x128xi1>
      %266 = vector.shape_cast %263 : vector<8x32x1xf32> to vector<8x32x1xf32>
      %267 = vector.broadcast %266 : vector<8x32x1xf32> to vector<8x32x128xf32>
      %268 = vector.broadcast %cst_74 : f32 to vector<8x32x128xf32>
      %269 = arith.select %265, %267, %268 : vector<8x32x128xi1>, vector<8x32x128xf32>
      %270 = vector.shape_cast %256 : vector<8x32xf32> to vector<8x32x1xf32>
      %cst_75 = arith.constant 0.000000e+00 : f32
      %271 = vector.shape_cast %262 : vector<1x1x128xi1> to vector<1x1x128xi1>
      %272 = vector.broadcast %271 : vector<1x1x128xi1> to vector<8x32x128xi1>
      %273 = vector.shape_cast %270 : vector<8x32x1xf32> to vector<8x32x1xf32>
      %274 = vector.broadcast %273 : vector<8x32x1xf32> to vector<8x32x128xf32>
      %275 = vector.broadcast %cst_75 : f32 to vector<8x32x128xf32>
      %276 = arith.select %272, %274, %275 : vector<8x32x128xi1>, vector<8x32x128xf32>
      %277 = arith.mulf %247, %269 : vector<8x32x128xf32>
      %278 = arith.mulf %250, %276 : vector<8x32x128xf32>
      %279 = arith.subf %277, %278 : vector<8x32x128xf32>
      %280 = arith.mulf %247, %276 : vector<8x32x128xf32>
      %281 = arith.mulf %250, %269 : vector<8x32x128xf32>
      %282 = arith.addf %280, %281 : vector<8x32x128xf32>
      %c0_76 = arith.constant 0 : index
      %c0_77 = arith.constant 0 : index
      %c0_78 = arith.constant 0 : index
      %283 = vector.load %arg8[%c0_76, %c0_77, %c0_78] : memref<8x32x128xf32, #tpu.memory_space<vmem>>, vector<8x32x128xf32>
      tpu.vector_store %arg8[%c0_76, %c0_77, %c0_78], %279 {strides = array<i32>} : memref<8x32x128xf32, #tpu.memory_space<vmem>>, vector<8x32x128xf32>,
      %c0_79 = arith.constant 0 : index
      %c0_80 = arith.constant 0 : index
      %c0_81 = arith.constant 0 : index
      %284 = vector.load %arg9[%c0_79, %c0_80, %c0_81] : memref<8x32x128xf32, #tpu.memory_space<vmem>>, vector<8x32x128xf32>
      tpu.vector_store %arg9[%c0_79, %c0_80, %c0_81], %282 {strides = array<i32>} : memref<8x32x128xf32, #tpu.memory_space<vmem>>, vector<8x32x128xf32>,
      %285 = arith.mulf %253, %253 : vector<8x32xf32>
      %286 = arith.mulf %256, %256 : vector<8x32xf32>
      %287 = arith.subf %285, %286 : vector<8x32xf32>
      %c0_82 = arith.constant 0 : index
      %c0_83 = arith.constant 0 : index
      %288 = vector.load %arg12[%c0_82, %c0_83] : memref<8x32xf32, #tpu.memory_space<vmem>>, vector<8x32xf32>
      tpu.vector_store %arg12[%c0_82, %c0_83], %287 {strides = array<i32>} : memref<8x32xf32, #tpu.memory_space<vmem>>, vector<8x32xf32>,
      %cst_84 = arith.constant 2.000000e+00 : f32
      %289 = vector.broadcast %cst_84 : f32 to vector<8x32xf32>
      %290 = arith.mulf %289, %253 : vector<8x32xf32>
      %291 = arith.mulf %290, %256 : vector<8x32xf32>
      %c0_85 = arith.constant 0 : index
      %c0_86 = arith.constant 0 : index
      %292 = vector.load %arg13[%c0_85, %c0_86] : memref<8x32xf32, #tpu.memory_space<vmem>>, vector<8x32xf32>
      tpu.vector_store %arg13[%c0_85, %c0_86], %291 {strides = array<i32>} : memref<8x32xf32, #tpu.memory_space<vmem>>, vector<8x32xf32>,
    } else {
    }
    %c0 = arith.constant 0 : index
    %c0_1 = arith.constant 0 : index
    %3 = vector.load %arg10[%c0, %c0_1] : memref<8x32xf32, #tpu.memory_space<vmem>>, vector<8x32xf32>
    %4 = vector.shape_cast %3 : vector<8x32xf32> to vector<8x32x1xf32>
    %c0_2 = arith.constant 0 : index
    %c0_3 = arith.constant 0 : index
    %5 = vector.load %arg11[%c0_2, %c0_3] : memref<8x32xf32, #tpu.memory_space<vmem>>, vector<8x32xf32>
    %6 = vector.shape_cast %5 : vector<8x32xf32> to vector<8x32x1xf32>
    %c0_4 = arith.constant 0 : index
    %c0_5 = arith.constant 0 : index
    %c0_6 = arith.constant 0 : index
    %7 = vector.load %arg8[%c0_4, %c0_5, %c0_6] : memref<8x32x128xf32, #tpu.memory_space<vmem>>, vector<8x32x128xf32>
    %8 = vector.broadcast %4 : vector<8x32x1xf32> to vector<8x32x128xf32>
    %9 = arith.mulf %8, %7 : vector<8x32x128xf32>
    %c0_7 = arith.constant 0 : index
    %c0_8 = arith.constant 0 : index
    %c0_9 = arith.constant 0 : index
    %10 = vector.load %arg9[%c0_7, %c0_8, %c0_9] : memref<8x32x128xf32, #tpu.memory_space<vmem>>, vector<8x32x128xf32>
    %11 = vector.broadcast %6 : vector<8x32x1xf32> to vector<8x32x128xf32>
    %12 = arith.mulf %11, %10 : vector<8x32x128xf32>
    %13 = arith.subf %9, %12 : vector<8x32x128xf32>
    %cst = arith.constant dense<0.000000e+00> : vector<8x128xf32>
    %14 = vector.multi_reduction <add>, %13, %cst [1] : vector<8x32x128xf32> to vector<8x128xf32>
    %c0_10 = arith.constant 0 : index
    %c0_11 = arith.constant 0 : index
    %15 = vector.load %arg7[%c0_10, %c0_11] : memref<8x128xf32, #tpu.memory_space<vmem>>, vector<8x128xf32>
    tpu.vector_store %arg7[%c0_10, %c0_11], %14 {strides = array<i32>} : memref<8x128xf32, #tpu.memory_space<vmem>>, vector<8x128xf32>,
    %c0_12 = arith.constant 0 : index
    %c0_13 = arith.constant 0 : index
    %16 = vector.load %arg10[%c0_12, %c0_13] : memref<8x32xf32, #tpu.memory_space<vmem>>, vector<8x32xf32>
    %c0_14 = arith.constant 0 : index
    %c0_15 = arith.constant 0 : index
    %17 = vector.load %arg11[%c0_14, %c0_15] : memref<8x32xf32, #tpu.memory_space<vmem>>, vector<8x32xf32>
    %c0_16 = arith.constant 0 : index
    %c0_17 = arith.constant 0 : index
    %18 = vector.load %arg12[%c0_16, %c0_17] : memref<8x32xf32, #tpu.memory_space<vmem>>, vector<8x32xf32>
    %c0_18 = arith.constant 0 : index
    %c0_19 = arith.constant 0 : index
    %19 = vector.load %arg13[%c0_18, %c0_19] : memref<8x32xf32, #tpu.memory_space<vmem>>, vector<8x32xf32>
    %20 = arith.mulf %16, %18 : vector<8x32xf32>
    %21 = arith.mulf %17, %19 : vector<8x32xf32>
    %22 = arith.subf %20, %21 : vector<8x32xf32>
    %c0_20 = arith.constant 0 : index
    %c0_21 = arith.constant 0 : index
    %23 = vector.load %arg10[%c0_20, %c0_21] : memref<8x32xf32, #tpu.memory_space<vmem>>, vector<8x32xf32>
    tpu.vector_store %arg10[%c0_20, %c0_21], %22 {strides = array<i32>} : memref<8x32xf32, #tpu.memory_space<vmem>>, vector<8x32xf32>,
    %24 = arith.mulf %16, %19 : vector<8x32xf32>
    %25 = arith.mulf %17, %18 : vector<8x32xf32>
    %26 = arith.addf %24, %25 : vector<8x32xf32>
    %c0_22 = arith.constant 0 : index
    %c0_23 = arith.constant 0 : index
    %27 = vector.load %arg11[%c0_22, %c0_23] : memref<8x32xf32, #tpu.memory_space<vmem>>, vector<8x32xf32>
    tpu.vector_store %arg11[%c0_22, %c0_23], %26 {strides = array<i32>} : memref<8x32xf32, #tpu.memory_space<vmem>>, vector<8x32xf32>,
    return
  }
  func.func @transform_0(%arg0: i32, %arg1: i32) -> (i32, i32) {
    %c0_i32 = arith.constant 0 : i32
    %c0_i32_0 = arith.constant 0 : i32
    return %arg0, %c0_i32 : i32, i32
  }
  func.func @transform_1(%arg0: i32, %arg1: i32) -> (i32, i32) {
    %c0_i32 = arith.constant 0 : i32
    %c0_i32_0 = arith.constant 0 : i32
    return %arg0, %c0_i32 : i32, i32
  }
  func.func @transform_2(%arg0: i32, %arg1: i32) -> (i32, i32) {
    %c0_i32 = arith.constant 0 : i32
    %c0_i32_0 = arith.constant 0 : i32
    return %arg0, %c0_i32 : i32, i32
  }
  func.func @transform_3(%arg0: i32, %arg1: i32) -> (i32, i32) {
    %c0_i32 = arith.constant 0 : i32
    %c0_i32_0 = arith.constant 0 : i32
    return %arg0, %c0_i32 : i32, i32
  }
  func.func @transform_4(%arg0: i32, %arg1: i32) -> (i32, i32) {
    %c0_i32 = arith.constant 0 : i32
    %c0_i32_0 = arith.constant 0 : i32
    return %arg0, %c0_i32 : i32, i32
  }
  func.func @transform_5(%arg0: i32, %arg1: i32) -> (i32, i32) {
    %c0_i32 = arith.constant 0 : i32
    return %arg0, %arg1 : i32, i32
  }
}

</mosaic_0001>

<bundles_post_ra>
// kernel: tpu_custom_call.1
= control target key start
LH: loop header
LB: loop body
LE: loop exit
PB: predicated region body
PF: predicated region fallthrough
CT: control target
= control target key end

     0   :  { %s11960_s0 = inlined_call_operand.vmem [shape: f32[32,1], index: 0, kind: input, shape index: {}]   ;;  %s11961_s1 = inlined_call_operand.vmem [shape: f32[32,32], index: 1, kind: input, shape index: {}]   ;;  %s11962_s2 = inlined_call_operand.hbm [shape: f32[32,32], index: 2, kind: input, shape index: {}]   ;;  %s11963_s3 = inlined_call_operand.hbm [shape: f32[32,32], index: 3, kind: input, shape index: {}]   ;;  %s11964_s4 = inlined_call_operand.hbm [shape: f32[32,32], index: 4, kind: input, shape index: {}]   ;;  %s11965_s5 = inlined_call_operand.hbm [shape: f32[32,128], index: 5, kind: output, shape index: {}]  }
   0x1   :  { %12263 = sst [smem:[#allocation325_spill]] %s11963_s3 }
   0x2   :  { %10 = vsyncpa [#allocation9], 0 }
   0x3   :  { %12 = vsyncpa [#allocation9 + $0x1], 0 }
   0x4   :  { %13 = vsyncpa [#allocation12], 0 }
   0x5   :  { %15 = vsyncpa [#allocation12 + $0x1], 0 }
   0x6   :  { %16 = vsyncpa [#allocation10], 0 }
   0x7   :  { %18 = vsyncpa [#allocation10 + $0x1], 0  ;;  %s5553_s18 = smov 0   ;;  %s5555_s19 = smov 0  }
   0x8   :  { %s5557_s20 = smov 0   ;;  %s5559_s21 = smov 0  }
   0x9   :  { %s5561_s22 = smov 0   ;;  %s5563_s23 = smov 0  }
   0xa LB: > { %12264 = sst [smem:[#allocation18_spill]] %s5506_s22  ;;  %s5584_s24 = sadd.s32 4294967295, %s5510_s23   ;;  %s5510_s23 = sphi %s5563_s23, %s24_s23   ;;  %s5506_s22 = sphi %s5561_s22, %s14336_s22   ;;  %s5502_s21 = sphi %s5559_s21, %s14335_s21   ;;  %s5498_s20 = sphi %s5557_s20, %s14339_s20   ;;  %s5494_s19 = sphi %s5555_s19, %s14338_s19   ;;  %s5490_s18 = sphi %s5553_s18, %s14337_s18  }
   0xb   : > { %s5217_s25 = sadd.s32 4294967294, %s5510_s23   ;;  %s36_s26 = sadd.s32 1, %s5506_s22 }
   0xc   : > { %s95_s27 = sadd.s32 1, %s5498_s20  ;;  %p38_p0 = scmp.ge.s32.totalorder %s36_s26, 4 }
   0xd   : > { %p102_p1 = scmp.ne.s32.totalorder %s5498_s20, %s5494_s19  ;;  %p103_p2 = scmp.eq.s32.totalorder %s5510_s23, 0 }
   0xe   : > { %p108_p3 = scmp.ne.s32.totalorder %s5494_s19, %s5490_s18  ;;  %s14341_s26 = smov (%p38_p0, %s36_s26), 0 }
   0xf   : > { %12265 = sst [smem:[#allocation19_spill]] %s14341_s26  ;;  %p5596_p4 = por %p103_p2, %p102_p1 }
  0x10   : > { %p109_p5 = scmp.eq.s32.totalorder %s5584_s24, 0  ;;  %s92_s29 = ssub.s32 %s5506_s22, %s14341_s26 }
  0x11   : > { %p186_p6 = scmp.eq.s32.totalorder %s5584_s24, 3  ;;  %p93_p7 = scmp.eq.s32.totalorder %s92_s29, 0 }
  0x12   : > { %p5604_p8 = por %p109_p5, %p108_p3  ;;  %p192_p10 = scmp.eq.s32.totalorder %s5217_s25, 3 }
  0x13   : > { %p5608_p9 = por %p186_p6, %p102_p1  ;;  %p5272_p12 = scmp.lt.s32.totalorder %s5510_s23, 4 }
  0x14   : > { %s5613_s7 = scalar_select %p93_p7, %s5498_s20, %s95_s27  }
  0x15   : > { %p5615_p11 = por %p192_p10, %p108_p3  ;;  %s11966_s9 = sand.u32 1, %s5498_s20  }
  0x16   : > { %12269 = sst [smem:[#allocation20_spill]] %s5613_s7  ;;  %s5623_s10 = sshll.u32 %s11966_s9, 3 }
  0x17   : > { %s12270_s8 = scalar_select %p5615_p11, 1, 0 }
  0x18   : > { %s5626_s11 = sshll.u32 %s5506_s22, 7  ;;  %p5630_p13 = pnand %p5272_p12, %p5596_p4 }
  0x19   : > { %12271 = sst [smem:[#allocation21_spill]] %s12270_s8  ;;  %s244_s13 = sand.u32 1, %s5510_s23  }
  0x1a   : > { %s12273_s3 = sld [smem:[#allocation325_spill]]  ;;  %s248_s17 = scalar_lea.vmem [#allocation11], %s5623_s10 }
  0x1b   : > { %s255_s25 = sshll.u32 %s248_s17, 4  ;;  %p5226_p0 = scmp.ge.s32.totalorder %s5510_s23, 1  ;;  %s256_s25 = int_to_ptr.vmem [resolvable:$true] %s255_s25 }
  0x1c   : > { %p278_p1 = scmp.lt.s32.totalorder %s5510_s23, 5  ;;  %s5642_s27 = scalar_lea.sflag [#allocation12], %s244_s13 }
  0x1d   : > { %p5344_p2 = pneg %p5630_p13  ;;  %s5355_s28 = scalar_lea.vmem %s256_s25, 128 }
  0x1e   : > { %p5356_p3 = scmp.ne.s32.totalorder %s256_s25, %s5355_s28  ;;  %s5512_s29 = smov [#allocation11]  }
  0x1f   : > { %s5360_s9 = sshll.u32 %s5512_s29, 4  ;;  %s5361_s9 = int_to_ptr.vmem [resolvable:$false] %s5360_s9 }
  0x20   : > { %s253_s16 = scalar_lea.hbm %s12273_s3, %s5626_s11  ;;  %p5358_p4 = pnand %p5356_p3, %p5344_p2 }
  0x21   : > { %s5362_s14 = scalar_lea.vmem %s5361_s9, 256  ;;  %p5363_p6 = scmp.lt.s32.totalorder %s256_s25, %s5361_s9 }
  0x22   : > { %p5359_p5 = pneg %p5358_p4  ;;  %p5364_p7 = scmp.lt.s32.totalorder %s5362_s14, %s5355_s28 }
  0x24   : > { %p5365_p10 = por %p5364_p7, %p5363_p6 }
  0x26   : > { %p5366_p12 = pnand %p5365_p10, %p5359_p5 }
  0x28   : > { %5369 = shalt.err (!%p5366_p12)
}
  0x29   : > { %5264 = dma.hbm_to_vmem [thread:$0]  (!%p5630_p13), %s253_s16, 128, %s256_s25, %s5642_s27  }
  0x2a   : > { %p5656_p3 = pnand %p5226_p0, %p278_p1  ;;  %s235_s17 = scalar_lea.hbm %s11962_s2, %s5626_s11 }
  0x2b   : > { %s230_s28 = scalar_lea.vmem [#allocation8], %s5623_s10  ;;  %s271_s26 = scalar_lea.hbm %s11964_s4, %s5626_s11 }
  0x2c   : > { %s237_s29 = sshll.u32 %s230_s28, 4  ;;  %s12275_s22 = sand.u32 1, %s5498_s20   ;;  %s238_s29 = int_to_ptr.vmem [resolvable:$true] %s237_s29 }
  0x2d   : > { %s227_s7 = scalar_lea.sflag [#allocation9], %s12275_s22  ;;  %s5383_s16 = scalar_lea.vmem %s238_s29, 128 }
  0x2e   : > { %p5384_p4 = scmp.ne.s32.totalorder %s238_s29, %s5383_s16  ;;  %s5513_s25 = smov [#allocation8]  }
  0x2f   : > { %s5388_s8 = sshll.u32 %s5513_s25, 4  ;;  %s5389_s8 = int_to_ptr.vmem [resolvable:$false] %s5388_s8 }
  0x30   : > { %p5386_p0 = pnand %p5384_p4, %p5344_p2  ;;  %s5390_s9 = scalar_lea.vmem %s5389_s8, 256 }
  0x31   : > { %p5391_p5 = scmp.lt.s32.totalorder %s238_s29, %s5389_s8  ;;  %p5392_p6 = scmp.lt.s32.totalorder %s5390_s9, %s5383_s16 }
  0x32   : > { %p5387_p1 = pneg %p5386_p0 }
  0x33   : > { %p5393_p7 = por %p5392_p6, %p5391_p5 }
  0x35   : > { %p5394_p10 = pnand %p5393_p7, %p5387_p1 }
  0x37   : > { %5397 = shalt.err (!%p5394_p10)
}
  0x38   : > { %5261 = dma.hbm_to_vmem [thread:$0]  (!%p5630_p13), %s235_s17, 128, %s238_s29, %s227_s7  }
  0x39   : > { %s266_s3 = scalar_lea.vmem [#allocation13], %s5623_s10  ;;  %s5514_s28 = smov [#allocation13]  }
  0x3a   : > { %s273_s22 = sshll.u32 %s266_s3, 4  ;;  %s5416_s8 = sshll.u32 %s5514_s28, 4  ;;  %s274_s22 = int_to_ptr.vmem [resolvable:$true] %s273_s22  ;;  %s5417_s8 = int_to_ptr.vmem [resolvable:$false] %s5416_s8 }
  0x3b   : > { %s5411_s15 = scalar_lea.vmem %s274_s22, 128  ;;  %s5418_s14 = scalar_lea.vmem %s5417_s8, 256 }
  0x3c   : > { %p5412_p12 = scmp.ne.s32.totalorder %s274_s22, %s5411_s15  ;;  %p5419_p1 = scmp.lt.s32.totalorder %s274_s22, %s5417_s8 }
  0x3d   : > { %p5420_p5 = scmp.lt.s32.totalorder %s5418_s14, %s5411_s15 }
  0x3e   : > { %p5414_p4 = pnand %p5412_p12, %p5344_p2 }
  0x3f   : > { %p5421_p6 = por %p5420_p5, %p5419_p1 }
  0x40   : > { %p5415_p0 = pneg %p5414_p4 }
  0x42   : > { %p5422_p7 = pnand %p5421_p6, %p5415_p0 }
  0x44   : > { %5425 = shalt.err (!%p5422_p7)
}
  0x45   : > { %5267 = dma.hbm_to_vmem [thread:$0]  (!%p5630_p13), %s271_s26, 128, %s274_s22, %s5642_s27  }
  0x46   : > { %282 = sbr.rel (%p5656_p3) target bundleno = 1598 (0x63e), region = 40 }
  0x4b   : > { %s5691_s17 = sand.u32 1, %s5494_s19  }
  0x4c   : > { %s5694_s29 = sshll.u32 %s5691_s17, 3  ;;  %s285_s12 = scalar_lea.sflag [#allocation9], %s5691_s17 }
  0x4d   : > { %s288_s16 = scalar_lea.vmem [#allocation8], %s5694_s29 }
  0x4e   : > { %5477 = dma.done.wait (%p5604_p8), %s285_s12, 128  }
  0x4f   : > { %5479 = vsyncadd (%p5604_p8), %s285_s12, 4294967168  ;;  %s293_s26 = sand.u32 1, %s5584_s24   ;;  %s297_s27 = scalar_lea.vmem [#allocation11], %s5694_s29 }
  0x50   : > { %s294_s11 = scalar_lea.sflag [#allocation12], %s293_s26 }
  0x51   : > { %5481 = dma.done.wait (%p5604_p8), %s294_s11, 256  }
  0x52   : > { %5483 = vsyncadd (%p5604_p8), %s294_s11, 4294967040  ;;  %p351_p13 = scmp.lt.s32.totalorder %s5502_s21, 3  ;;  %v5515_v0 = vmov 0   ;;  %v5718_v4 = vld [vmem:[%s288_s16] sm:$0xff]  ;;  %v5516_v17 = vmov 683565275  }
  0x53   : > { %5329 = vset.pattern.permute.xlu0 %v5515_v0  ;;  %v5517_v19 = vmov 2475754826   ;;  %v5518_v22 = vmov 2131351028   ;;  %v5519_v25 = vmov 2102212464  }
  0x54   : > { %s5710_s13 = scalar_select %p351_p13, %s5502_s21, 3  ;;  %v5520_v28 = vmov 920167782   ;;  %v5521_v31 = vmov 1326507024  }
  0x55   : > { %s306_s28 = scalar_lea.vmem [#allocation13], %s5694_s29  ;;  %s5243_s8 = sshll.u32 %s5502_s21, 7 }
  0x56   : > { %s5231_s25 = sshll.u32 %s5710_s13, 3  ;;  %s350_s14 = scalar_lea.vmem [#allocation14], %s5694_s29 }
  0x57   : > { %s354_s3 = scalar_lea.vmem %s11960_s0, %s5231_s25  ;;  %s358_s15 = scalar_lea.vmem %s11961_s1, %s5231_s25 }
  0x58   : > { %v363_v1 = vld [vmem:[%s354_s3] sm:$0xff]  ;;  %s5070_s7 = sshll.u32 %s350_s14, 4  ;;  %s11919_s16 = scalar_lea.hbm %s11965_s5, %s5243_s8  ;;  %s5071_s7 = int_to_ptr.vmem [resolvable:$true] %s5070_s7 }
  0x59   : > { %v364_v2 = vmul.f32 1.442695, %v363_v1  ;;  %v366_v0 = vld [vmem:[%s358_s15] sm:$0xff]  ;;  %s5056_s26 = scalar_lea.sflag [#allocation10], %s5691_s17  ;;  %s5426_s11 = scalar_lea.vmem %s5071_s7, 128 }
  0x5a   : > { %p5427_p8 = scmp.ne.s32.totalorder %s5071_s7, %s5426_s11 }
  0x5b   : > { %5330 = vpow2.f32 %v364_v2  ;;  %v367_v2 = vmul.f32 1.442695, %v366_v0 }
  0x5c   : > { %p5428_p2 = pnand %p5427_p8, %p5608_p9 }
  0x5d   : > { %5332 = vpow2.f32 %v367_v2 }
  0x5e   : > { %p5429_p3 = pneg %p5428_p2 }
  0x68   : > { %v5331_v3 = vpop.eup %5330 }
  0x69   : > { %373 = vperm.xlu0 %5329, %v5331_v3  }
  0xe4   : > { %v5720_v5 = vpop.permute.xlu0 %373 }
  0xe5   : > { %v5724_v6 = vmul.f32 %v5720_v5, %v5718_v4 }
  0xe7   : > { %v383_v7 = vand.u32 2139095040, %v5724_v6  ;;  %v380_v11 = vand.u32 2147483647, %v5724_v6  ;;  %vm382_vm7 = vcmp.lt.s32.totalorder %v5724_v6, 0  ;;  %vm472_vm15 = vweird.f32 %v5724_v6 }
  0xe9   : > { %v384_v8 = vshrl.u32 %v383_v7, 23  ;;  %v387_v14 = vand.u32 8388607, %v380_v11  ;;  %vm381_vm8 = vcmp.le.f32.partialorder %v380_v11, 0.7853982 }
  0xeb   : > { %v5233_v9 = vadd.s32 4294967169, %v384_v8  ;;  %v388_v33 = vor.u32 8388608, %v387_v14 }
  0xed   : > { %v390_v10 = vadd.s32 1, %v5233_v9  ;;  %v428_v47 = vshll.u32 %v388_v33, 8 }
  0xef   : > { %vm391_vm0 = vcmp.gt.s32.totalorder %v390_v10, 0 }
  0xf0   : > { %v392_v12 = vsel %vm391_vm0, %v390_v10, 0  ;;  %vm608_vm0 = vcmask 261120  }
  0xf1   : > { %v394_v13 = vand.u32 31, %v392_v12  ;;  %v393_v16 = vshrl.u32 %v392_v12, 5 }
  0xf3   : > { %v395_v15 = vsub.s32 32, %v394_v13  ;;  %v397_v18 = vshll.u32 %v5516_v17, %v394_v13  ;;  %v400_v20 = vshll.u32 %v5517_v19, %v394_v13  ;;  %v403_v24 = vshll.u32 %v5518_v22, %v394_v13 }
  0xf4   : > { %v406_v27 = vshll.u32 %v5519_v25, %v394_v13  ;;  %v409_v30 = vshll.u32 %v5520_v28, %v394_v13  ;;  %vm412_vm1 = vcmp.lt.s32.totalorder %v393_v16, 1  ;;  %vm415_vm2 = vcmp.lt.s32.totalorder %v393_v16, 4 }
  0xf5   : > { %v398_v21 = vshrl.u32 %v5517_v19, %v395_v15  ;;  %v401_v23 = vshrl.u32 %v5518_v22, %v395_v15  ;;  %v404_v26 = vshrl.u32 %v5519_v25, %v395_v15  ;;  %v407_v29 = vshrl.u32 %v5520_v28, %v395_v15 }
  0xf6   : > { %v410_v32 = vshrl.u32 %v5521_v31, %v395_v15  ;;  %v396_v42 = vshrl.u32 %v5516_v17, %v395_v15  ;;  %vm414_vm3 = vcmp.lt.s32.totalorder %v393_v16, 3  ;;  %vm413_vm4 = vcmp.lt.s32.totalorder %v393_v16, 2 }
  0xf7   : > { %v399_v34 = vor.u32 %v398_v21, %v397_v18  ;;  %v402_v35 = vor.u32 %v401_v23, %v400_v20  ;;  %v405_v36 = vor.u32 %v404_v26, %v403_v24  ;;  %v408_v37 = vor.u32 %v407_v29, %v406_v27  ;;  %v5333_v21 = vpop.eup %5332 }
  0xf8   : > { %v411_v38 = vor.u32 %v410_v32, %v409_v30  ;;  %v369_v24 = vsub.f32 0.0, %v5333_v21 }
  0xf9   : > { %v417_v39 = vsel %vm415_vm2, %v405_v36, 2102212464  ;;  %v420_v40 = vsel %vm412_vm1, %v399_v34, %v402_v35  ;;  %v424_v41 = vsel %vm412_vm1, %v402_v35, %v405_v36  ;;  %v421_v43 = vsel %vm415_vm2, %v408_v37, 920167782 }
  0xfa   : > { %v425_v44 = vsel %vm415_vm2, %v411_v38, 1326507024  ;;  %v422_v45 = vsel %vm414_vm3, %v405_v36, %v421_v43  ;;  %v416_v48 = vsel %vm412_vm1, %v396_v42, %v399_v34  ;;  %v418_v49 = vsel %vm414_vm3, %v402_v35, %v417_v39 }
  0xfb   : > { %v426_v46 = vsel %vm414_vm3, %v408_v37, %v425_v44  ;;  %v423_v50 = vsel %vm413_vm4, %v420_v40, %v422_v45  ;;  %v419_v56 = vsel %vm413_vm4, %v416_v48, %v418_v49  ;;  %v376_v28 = vmul.f32 %v5720_v5, %v369_v24 }
  0xfc   : > { %v427_v51 = vsel %vm413_vm4, %v424_v41, %v426_v46  ;;  %v5733_v54 = vmul.u32.u64.low %v428_v47, %v423_v50  ;;  %v5734_v55 = vmul.u32.u64.high %v428_v47, %v423_v50, %v5733_v54  ;;  %v435_v58 = vmul.u32 %v428_v47, %v419_v56 }
  0xfd   : > { %v5730_v52 = vmul.u32.u64.low %v428_v47, %v427_v51  ;;  %v5731_v53 = vmul.u32.u64.high %v428_v47, %v427_v51, %v5730_v52  ;;  %v378_v32 = vmul.f32 1.442695, %v376_v28  ;;  %v589_v33 = vmul.f32 %v369_v24, %v369_v24 }
  0xfe   : > { %v438_v57 = vadd.s32 1, %v5734_v55  ;;  %v590_v34 = vmul.f32 %v5718_v4, %v5718_v4  ;;  %v11970_v39 = vlaneseq }
  0xff   : > { %vm437_vm5 = vc.u32 %v5731_v53, %v5733_v54  ;;  %v436_v12 = vadd.s32 %v5733_v54, %v5731_v53 }
 0x100   : > { %v439_v59 = vsel %vm437_vm5, %v438_v57, %v5734_v55  ;;  %v591_v37 = vadd.f32 %v590_v34, %v589_v33  ;;  %v620_v43 = vshrl.u32 %v11970_v39, 7 }
 0x101   : > { %v440_v60 = vadd.s32 %v439_v59, %v435_v58 }
 0x102   : > { %v5754_v53 = vsub.s32 0, %v620_v43  ;;  %v5760_v56 = vsub.s32 1, %v620_v43  ;;  %v5762_v57 = vsub.s32 2, %v620_v43  ;;  %v5764_v58 = vsub.s32 3, %v620_v43 }
 0x103   : > { %v441_v61 = vadd.s32 536870912, %v440_v60 }
 0x105   : > { %v442_v62 = vshrl.u32 %v441_v61, 30  ;;  %v5770_v61 = vsub.s32 4, %v620_v43 }
 0x107   : > { %v443_v63 = vshll.u32 %v442_v62, 30  ;;  %v466_v27 = vsub.s32 4, %v442_v62 }
 0x109   : > { %v444_v1 = vsub.s32 %v440_v60, %v443_v63  ;;  %v467_v31 = vsel %vm382_vm7, %v466_v27, %v442_v62 }
 0x10a   : > { %v469_v35 = vsel %vm381_vm8, 0, %v467_v31 }
 0x10b   : > { %v446_v3 = vsub.s32 0, %v444_v1  ;;  %v577_v36 = vadd.s32 3, %v469_v35  ;;  %v473_v38 = vand.u32 3, %v469_v35 }
 0x10d   : > { %v5234_v7 = vmin.u32 %v446_v3, %v444_v1  ;;  %v578_v5 = vand.u32 3, %v577_v36  ;;  %vm478_vm9 = vcmp.eq.s32.totalorder %v473_v38, 2  ;;  %vm475_vm11 = vcmp.eq.s32.totalorder %v473_v38, 0 }
 0x10e   : > { %vm474_vm13 = vcmp.lt.s32.totalorder %v473_v38, 2 }
 0x10f   : > { %v448_v8 = vclz %v5234_v7  ;;  %vm583_vm10 = vcmp.eq.s32.totalorder %v578_v5, 2  ;;  %vm580_vm12 = vcmp.eq.s32.totalorder %v578_v5, 0  ;;  %vm579_vm14 = vcmp.lt.s32.totalorder %v578_v5, 2 }
 0x111   : > { %v5235_v9 = vadd.s32 4294967294, %v448_v8 }
 0x113   : > { %vm5236_vm6 = vcmp.lt.s32.totalorder %v5235_v9, 0 }
 0x114   : > { %v451_v10 = vsel %vm5236_vm6, 0, %v5235_v9 }
 0x115   : > { %v452_v13 = vsub.s32 32, %v451_v10  ;;  %v456_v14 = vsub.s32 4294967266, %v451_v10  ;;  %v453_v15 = vshll.u32 %v444_v1, %v451_v10  ;;  %v5777_v1 = vsub.s32 5, %v620_v43 }
 0x117   : > { %v454_v16 = vshrl.u32 %v436_v12, %v452_v13  ;;  %v457_v17 = vadd.s32 127, %v456_v14  ;;  %v5795_v14 = vsub.s32 6, %v620_v43 }
 0x119   : > { %v455_v18 = vor.u32 %v454_v16, %v453_v15  ;;  %v458_v19 = vshll.u32 %v457_v17, 23 }
 0x11b   : > { %v459_v20 = vor.u32 4788187, %v458_v19  ;;  %v462_v23 = vcvt.s32.f32 %v455_v18  ;;  %v602_v18 = vld [vmem:[%s297_s27] sm:$0xff]  ;;  %v603_v19 = vld [vmem:[%s306_s28] sm:$0xff]  ;;  %s5522_s27 = smov [#allocation14]  }
 0x11c   : > { %s5430_s21 = sshll.u32 %s5522_s27, 4  ;;  %s5431_s21 = int_to_ptr.vmem [resolvable:$false] %s5430_s21 }
 0x11d   : > { %v460_v22 = vand.u32 2147483647, %v459_v20  ;;  %s5432_s29 = scalar_lea.vmem %s5431_s21, 256  ;;  %p5433_p10 = scmp.lt.s32.totalorder %s5071_s7, %s5431_s21 }
 0x11e   : > { %p5434_p12 = scmp.lt.s32.totalorder %s5432_s29, %s5426_s11 }
 0x11f   : > { %v463_v25 = vmul.f32 %v462_v23, %v460_v22 }
 0x120   : > { %p5435_p4 = por %p5434_p12, %p5433_p10 }
 0x121   : > { %v464_v26 = vxor.u32 2147483648, %v463_v25 }
 0x122   : > { %p5436_p0 = pnand %p5435_p4, %p5429_p3 }
 0x123   : > { %v465_v29 = vsel %vm382_vm7, %v464_v26, %v463_v25 }
 0x124   : > { %v468_v30 = vsel %vm381_vm8, %v5724_v6, %v465_v29  ;;  %vm5026_vm8 = vcmask 1041409  }
 0x125   : > { %5334 = vcosq.f32 %v468_v30 }
 0x126   : > { %5336 = vsinq.f32 %v468_v30  ;;  %v5830_v30 = vsub.s32 7, %v620_v43 }
 0x127   : > { %5338 = vpow2.f32 %v378_v32 }
 0x128   : > { %5340 = vrcp.f32 %v591_v37 }
 0x132   : > { %v5335_v11 = vpop.eup %5334 }
 0x133   : > { %v5337_v40 = vpop.eup %5336  ;;  %v479_v41 = vxor.u32 2147483648, %v5335_v11 }
 0x134   : > { %v476_v42 = vxor.u32 2147483648, %v5337_v40  ;;  %v5339_v50 = vpop.eup %5338 }
 0x135   : > { %v480_v44 = vsel %vm478_vm9, %v479_v41, %v5337_v40  ;;  %v585_v45 = vsel %vm583_vm10, %v479_v41, %v5337_v40  ;;  %v5341_v9 = vpop.eup %5340  ;;  %vm5028_vm9 = vcmask 1042434   ;;  %vm5030_vm10 = vcmask 1043459  }
 0x136   : > { %v477_v46 = vsel %vm475_vm11, %v5335_v11, %v476_v42  ;;  %v582_v47 = vsel %vm580_vm12, %v5335_v11, %v476_v42  ;;  %vm5032_vm11 = vcmask 1044484   ;;  %vm5034_vm12 = vcmask 1045509  }
 0x137   : > { %v481_v48 = vsel %vm474_vm13, %v477_v46, %v480_v44  ;;  %v586_v49 = vsel %vm579_vm14, %v582_v47, %v585_v45  ;;  %vm5036_vm13 = vcmask 1046534   ;;  %vm5038_vm14 = vcmask 1047559  }
 0x138   : > { %v482_v51 = vsel %vm472_vm15, nan, %v481_v48  ;;  %v587_v52 = vsel %vm472_vm15, nan, %v586_v49 }
 0x139   : > { %v5756_v54 = vmul.f32 %v5339_v50, %v482_v51  ;;  %v5758_v55 = vmul.f32 %v5339_v50, %v587_v52 }
 0x13b   : > { %v5241_v59 = vadd.f32 -1.0, %v5756_v54  ;;  %v598_v6 = vmul.f32 %v5758_v55, %v369_v24  ;;  %v989_v60 = vmul.f32 %v5756_v54, %v5756_v54  ;;  %v990_v62 = vmul.f32 %v5758_v55, %v5758_v55 }
 0x13c   : > { %v992_v63 = vmul.f32 2.0, %v5756_v54  ;;  %v622_v0 = vrot.slane %v5756_v54, %v5754_v53  ;;  %v595_v3 = vmul.f32 %v5758_v55, %v5718_v4  ;;  %v5784_v8 = vrot.slane %v5756_v54, %v5760_v56 }
 0x13d   : > { %v594_v2 = vmul.f32 %v5241_v59, %v369_v24  ;;  %v599_v7 = vmul.f32 %v5241_v59, %v5718_v4  ;;  %v5786_v10 = vsub.f32 %v989_v60, %v990_v62  ;;  %v5793_v13 = vrot.slane %v5756_v54, %v5762_v57 }
 0x13e   : > { %v5789_v12 = vmul.f32 %v992_v63, %v5758_v55  ;;  %628 = vbcast.lane.b32.xlu1 %v622_v0, 264  ;;  %624 = vbcast.lane.b32.xlu0 %v622_v0, 256  ;;  %v5799_v16 = vrot.slane %v5756_v54, %v5764_v58  ;;  %v5803_v17 = vrot.slane %v5756_v54, %v5770_v61 }
 0x13f   : > { %v596_v15 = vadd.f32 %v595_v3, %v594_v2  ;;  %v600_v4 = vsub.f32 %v598_v6, %v599_v7  ;;  %v1559_v20 = vmul.f32 %v5786_v10, %v5786_v10  ;;  %v1562_v22 = vmul.f32 2.0, %v5786_v10 }
 0x140   : > { %v1560_v21 = vmul.f32 %v5789_v12, %v5789_v12  ;;  %v5815_v23 = vrot.slane %v5756_v54, %v5777_v1  ;;  %v5819_v26 = vrot.slane %v5758_v55, %v5754_v53  ;;  %v5823_v27 = vrot.slane %v5758_v55, %v5760_v56 }
 0x141   : > { %v597_v24 = vmul.f32 %v5341_v9, %v596_v15  ;;  %v601_v25 = vmul.f32 %v5341_v9, %v600_v4  ;;  %v5828_v29 = vmul.f32 %v1562_v22, %v5789_v12  ;;  %v5834_v31 = vrot.slane %v5758_v55, %v5762_v57 }
 0x142   : > { %v5825_v28 = vsub.f32 %v1559_v20, %v1560_v21  ;;  %632 = vbcast.lane.b32.xlu1 %v622_v0, 272  ;;  %636 = vbcast.lane.b32.xlu0 %v622_v0, 280  ;;  %v5843_v5 = vrot.slane %v5758_v55, %v5764_v58  ;;  %v5847_v41 = vrot.slane %v5758_v55, %v5770_v61 }
 0x143   : > { %v604_v32 = vmul.f32 %v602_v18, %v597_v24  ;;  %v605_v33 = vmul.f32 %v603_v19, %v601_v25  ;;  %v610_v34 = vmul.f32 %v602_v18, %v601_v25  ;;  %v611_v35 = vmul.f32 %v603_v19, %v597_v24 }
 0x144   : > { %v2129_v36 = vmul.f32 %v5825_v28, %v5825_v28  ;;  %v2130_v37 = vmul.f32 %v5828_v29, %v5828_v29  ;;  %v2132_v38 = vmul.f32 2.0, %v5825_v28  ;;  %v5851_v42 = vrot.slane %v5758_v55, %v5777_v1 }
 0x145   : > { %v606_v11 = vsub.f32 %v604_v32, %v605_v33  ;;  %v612_v40 = vadd.f32 %v611_v35, %v610_v34  ;;  %v5862_v45 = vrot.slane %v5758_v55, %v5795_v14  ;;  %v5866_v48 = vrot.slane %v5758_v55, %v5830_v30 }
 0x146   : > { %v5853_v43 = vsub.f32 %v2129_v36, %v2130_v37  ;;  %v5856_v44 = vmul.f32 %v2132_v38, %v5828_v29  ;;  %643 = vbcast.lane.b32.xlu1 %v5784_v8, 256  ;;  %647 = vbcast.lane.b32.xlu0 %v5784_v8, 264  ;;  %v5870_v49 = vrot.slane %v5786_v10, %v5754_v53 }
 0x147   : > { %v607_v46 = vmul.f32 2.0, %v606_v11  ;;  %v613_v47 = vmul.f32 2.0, %v612_v40  ;;  %v5879_v59 = vrot.slane %v5786_v10, %v5760_v56  ;;  %v5885_v55 = vrot.slane %v5786_v10, %v5762_v57 }
 0x148   : > { %v2699_v50 = vmul.f32 %v5853_v43, %v5853_v43  ;;  %v2700_v51 = vmul.f32 %v5856_v44, %v5856_v44  ;;  %v2702_v52 = vmul.f32 2.0, %v5853_v43  ;;  %v5889_v6 = vrot.slane %v5786_v10, %v5764_v58 }
 0x149   : > { %609 = vst.msk [vmem:[#allocation4] sm:$0xff] %vm608_vm0, %v607_v46  ;;  %614 = vst.msk [vmem:[#allocation5] sm:$0xff] %vm608_vm0, %v613_v47  ;;  %v5893_v60 = vrot.slane %v5786_v10, %v5770_v61  ;;  %v5897_v62 = vrot.slane %v5786_v10, %v5777_v1  ;;  %v5908_v2 = vrot.slane %v5786_v10, %v5795_v14 }
 0x14a   : > { %v5899_v63 = vsub.f32 %v2699_v50, %v2700_v51  ;;  %v5902_v0 = vmul.f32 %v2702_v52, %v5856_v44  ;;  %651 = vbcast.lane.b32.xlu1 %v5784_v8, 272  ;;  %655 = vbcast.lane.b32.xlu0 %v5784_v8, 280  ;;  %v5912_v3 = vrot.slane %v5786_v10, %v5830_v30 }
 0x14b   : > { %v5916_v7 = vrot.slane %v5789_v12, %v5754_v53  ;;  %v5920_v9 = vrot.slane %v5789_v12, %v5760_v56  ;;  %v5924_v15 = vrot.slane %v5789_v12, %v5762_v57  ;;  %v5933_v18 = vrot.slane %v5789_v12, %v5764_v58 }
 0x14c   : > { %v3269_v8 = vmul.f32 %v5899_v63, %v5899_v63  ;;  %v3270_v4 = vmul.f32 %v5902_v0, %v5902_v0  ;;  %v3272_v10 = vmul.f32 2.0, %v5899_v63  ;;  %v5937_v19 = vrot.slane %v5789_v12, %v5770_v61 }
 0x14d   : > { %v5941_v20 = vrot.slane %v5789_v12, %v5777_v1  ;;  %v5945_v21 = vrot.slane %v5789_v12, %v5795_v14  ;;  %v5949_v22 = vrot.slane %v5789_v12, %v5830_v30  ;;  %v5960_v32 = vrot.slane %v5825_v28, %v5754_v53 }
 0x14e   : > { %v5951_v24 = vsub.f32 %v3269_v8, %v3270_v4  ;;  %v5954_v25 = vmul.f32 %v3272_v10, %v5902_v0  ;;  %662 = vbcast.lane.b32.xlu1 %v5793_v13, 256  ;;  %666 = vbcast.lane.b32.xlu0 %v5793_v13, 264  ;;  %v5964_v33 = vrot.slane %v5825_v28, %v5760_v56 }
 0x14f   : > { %v5968_v12 = vrot.slane %v5825_v28, %v5762_v57  ;;  %v5972_v34 = vrot.slane %v5825_v28, %v5764_v58  ;;  %v5976_v35 = vrot.slane %v5825_v28, %v5770_v61  ;;  %v5985_v11 = vrot.slane %v5825_v28, %v5777_v1 }
 0x150   : > { %v3839_v36 = vmul.f32 %v5951_v24, %v5951_v24  ;;  %v3840_v37 = vmul.f32 %v5954_v25, %v5954_v25  ;;  %v3842_v38 = vmul.f32 2.0, %v5951_v24  ;;  %v5989_v40 = vrot.slane %v5825_v28, %v5795_v14 }
 0x151   : > { %v5993_v46 = vrot.slane %v5825_v28, %v5830_v30  ;;  %v5997_v47 = vrot.slane %v5828_v29, %v5754_v53  ;;  %v6001_v50 = vrot.slane %v5828_v29, %v5760_v56  ;;  %v6012_v28 = vrot.slane %v5828_v29, %v5762_v57 }
 0x152   : > { %v6003_v51 = vsub.f32 %v3839_v36, %v3840_v37  ;;  %v6006_v52 = vmul.f32 %v3842_v38, %v5954_v25  ;;  %670 = vbcast.lane.b32.xlu1 %v5793_v13, 272  ;;  %674 = vbcast.lane.b32.xlu0 %v5793_v13, 280  ;;  %v6016_v8 = vrot.slane %v5828_v29, %v5764_v58 }
 0x153   : > { %12276 = vst [vmem:[#allocation22_spill] sm:$0xff] %v6012_v28  ;;  %v6020_v4 = vrot.slane %v5828_v29, %v5770_v61  ;;  %v6024_v10 = vrot.slane %v5828_v29, %v5777_v1  ;;  %v6028_v36 = vrot.slane %v5828_v29, %v5795_v14  ;;  %v6037_v39 = vrot.slane %v5828_v29, %v5830_v30 }
 0x154   : > { %12277 = vst [vmem:[#allocation23_spill] sm:$0xff] %v6016_v8  ;;  %v4473_v13 = vmul.f32 %v6003_v51, %v6003_v51  ;;  %v4474_v37 = vmul.f32 %v6006_v52, %v6006_v52  ;;  %v4477_v38 = vmul.f32 2.0, %v6003_v51  ;;  %v6053_v8 = vrot.slane %v5853_v43, %v5764_v58 }
 0x155   : > { %12278 = vst [vmem:[#allocation24_spill] sm:$0xff] %v6020_v4  ;;  %12279 = vst [vmem:[#allocation25_spill] sm:$0xff] %v6024_v10  ;;  %v6041_v4 = vrot.slane %v5853_v43, %v5754_v53  ;;  %v6045_v10 = vrot.slane %v5853_v43, %v5760_v56 }
 0x156   : > { %12280 = vst [vmem:[#allocation26_spill] sm:$0xff] %v6028_v36  ;;  %v6049_v36 = vrot.slane %v5853_v43, %v5762_v57  ;;  %12284 = vst [vmem:[#allocation30_spill] sm:$0xff] %v6053_v8  ;;  %v4475_v28 = vsub.f32 %v4473_v13, %v4474_v37  ;;  %v4478_v29 = vmul.f32 %v4477_v38, %v6006_v52  ;;  %681 = vbcast.lane.b32.xlu1 %v5799_v16, 256 }
 0x157   : > { %12281 = vst [vmem:[#allocation27_spill] sm:$0xff] %v6041_v4  ;;  %12282 = vst [vmem:[#allocation28_spill] sm:$0xff] %v6045_v10  ;;  %685 = vbcast.lane.b32.xlu0 %v5799_v16, 264  ;;  %v6060_v4 = vrot.slane %v5853_v43, %v5770_v61  ;;  %v6064_v10 = vrot.slane %v5853_v43, %v5777_v1  ;;  %v6072_v13 = vrot.slane %v5853_v43, %v5830_v30 }
 0x158   : > { %12283 = vst [vmem:[#allocation29_spill] sm:$0xff] %v6049_v36  ;;  %v6068_v36 = vrot.slane %v5853_v43, %v5795_v14  ;;  %v6076_v37 = vrot.slane %v5856_v44, %v5754_v53  ;;  %4476 = vst.msk [vmem:[#allocation6] sm:$0xff] %vm608_vm0, %v4475_v28  ;;  %v6082_v38 = vrot.slane %v5856_v44, %v5760_v56 }
 0x159   : > { %12285 = vst [vmem:[#allocation31_spill] sm:$0xff] %v6060_v4  ;;  %12286 = vst [vmem:[#allocation32_spill] sm:$0xff] %v6064_v10  ;;  %v6086_v10 = vrot.slane %v5856_v44, %v5762_v57  ;;  %v6090_v43 = vrot.slane %v5856_v44, %v5764_v58  ;;  %v6098_v28 = vrot.slane %v5856_v44, %v5777_v1 }
 0x15a   : > { %12287 = vst [vmem:[#allocation33_spill] sm:$0xff] %v6068_v36  ;;  %12288 = vst [vmem:[#allocation34_spill] sm:$0xff] %v6072_v13  ;;  %v6094_v13 = vrot.slane %v5856_v44, %v5770_v61  ;;  %689 = vbcast.lane.b32.xlu1 %v5799_v16, 272  ;;  %v6206_v4 = vrot.slane %v5951_v24, %v5830_v30 }
 0x15b   : > { %12289 = vst [vmem:[#allocation35_spill] sm:$0xff] %v6076_v37  ;;  %4479 = vst.msk [vmem:[#allocation7] sm:$0xff] %vm608_vm0, %v4478_v29  ;;  %v6102_v29 = vrot.slane %v5856_v44, %v5795_v14  ;;  %693 = vbcast.lane.b32.xlu0 %v5799_v16, 280  ;;  %v6136_v16 = vrot.slane %v5899_v63, %v5795_v14 }
 0x15c   : > { %12290 = vst [vmem:[#allocation36_spill] sm:$0xff] %v6082_v38  ;;  %12291 = vst [vmem:[#allocation37_spill] sm:$0xff] %v6086_v10  ;;  %v6106_v38 = vrot.slane %v5856_v44, %v5830_v30  ;;  %v6110_v10 = vrot.slane %v5899_v63, %v5754_v53  ;;  %v6124_v44 = vrot.slane %v5899_v63, %v5764_v58 }
 0x15d   : > { %12292 = vst [vmem:[#allocation38_spill] sm:$0xff] %v6090_v43  ;;  %12293 = vst [vmem:[#allocation39_spill] sm:$0xff] %v6094_v13  ;;  %v6116_v13 = vrot.slane %v5899_v63, %v5760_v56 }
 0x15e   : > { %12294 = vst [vmem:[#allocation40_spill] sm:$0xff] %v6098_v28  ;;  %12295 = vst [vmem:[#allocation41_spill] sm:$0xff] %v6102_v29  ;;  %v6120_v28 = vrot.slane %v5899_v63, %v5762_v57  ;;  %700 = vbcast.lane.b32.xlu1 %v5803_v17, 256  ;;  %v6194_v29 = vrot.slane %v5951_v24, %v5770_v61 }
 0x15f   : > { %12296 = vst [vmem:[#allocation42_spill] sm:$0xff] %v6106_v38  ;;  %12297 = vst [vmem:[#allocation43_spill] sm:$0xff] %v6110_v10  ;;  %v6128_v38 = vrot.slane %v5899_v63, %v5770_v61  ;;  %v6132_v10 = vrot.slane %v5899_v63, %v5777_v1  ;;  %704 = vbcast.lane.b32.xlu0 %v5803_v17, 264 }
 0x160   : > { %12298 = vst [vmem:[#allocation44_spill] sm:$0xff] %v6116_v13  ;;  %12299 = vst [vmem:[#allocation45_spill] sm:$0xff] %v6120_v28  ;;  %v6140_v13 = vrot.slane %v5899_v63, %v5830_v30  ;;  %v6144_v28 = vrot.slane %v5902_v0, %v5754_v53  ;;  %v6160_v63 = vrot.slane %v5902_v0, %v5770_v61 }
 0x161   : > { %12300 = vst [vmem:[#allocation46_spill] sm:$0xff] %v6124_v44  ;;  %12301 = vst [vmem:[#allocation47_spill] sm:$0xff] %v6128_v38  ;;  %v6148_v44 = vrot.slane %v5902_v0, %v5760_v56  ;;  %v6152_v38 = vrot.slane %v5902_v0, %v5762_v57 }
 0x162   : > { %12302 = vst [vmem:[#allocation48_spill] sm:$0xff] %v6132_v10  ;;  %12303 = vst [vmem:[#allocation49_spill] sm:$0xff] %v6136_v16  ;;  %v6156_v10 = vrot.slane %v5902_v0, %v5764_v58  ;;  %v6190_v16 = vrot.slane %v5951_v24, %v5764_v58  ;;  %708 = vbcast.lane.b32.xlu1 %v5803_v17, 272 }
 0x163   : > { %12304 = vst [vmem:[#allocation50_spill] sm:$0xff] %v6140_v13  ;;  %12305 = vst [vmem:[#allocation51_spill] sm:$0xff] %v6144_v28  ;;  %v6164_v13 = vrot.slane %v5902_v0, %v5777_v1  ;;  %v6168_v28 = vrot.slane %v5902_v0, %v5795_v14  ;;  %712 = vbcast.lane.b32.xlu0 %v5803_v17, 280  ;;  %v4480_v17 = vld [vmem:[#allocation4] sm:$0xff] }
 0x164   : > { %12306 = vst [vmem:[#allocation52_spill] sm:$0xff] %v6148_v44  ;;  %12307 = vst [vmem:[#allocation53_spill] sm:$0xff] %v6152_v38  ;;  %v6172_v44 = vrot.slane %v5902_v0, %v5830_v30  ;;  %v5042_v38 = vld [vmem:[#allocation4] sm:$0xff]  ;;  %v5044_v0 = vld [vmem:[#allocation6] sm:$0xff] }
 0x165   : > { %12308 = vst [vmem:[#allocation54_spill] sm:$0xff] %v6156_v10  ;;  %12309 = vst [vmem:[#allocation55_spill] sm:$0xff] %v6160_v63  ;;  %v6178_v63 = vrot.slane %v5951_v24, %v5754_v53  ;;  %v5043_v10 = vld [vmem:[#allocation5] sm:$0xff] }
 0x166   : > { %12310 = vst [vmem:[#allocation56_spill] sm:$0xff] %v6164_v13  ;;  %12311 = vst [vmem:[#allocation57_spill] sm:$0xff] %v6168_v28  ;;  %v6182_v13 = vrot.slane %v5951_v24, %v5760_v56  ;;  %v6186_v28 = vrot.slane %v5951_v24, %v5762_v57  ;;  %v5052_v36 = vmul.f32 %v5044_v0, %v5043_v10  ;;  %719 = vbcast.lane.b32.xlu1 %v5815_v23, 256 }
 0x167   : > { %12312 = vst [vmem:[#allocation58_spill] sm:$0xff] %v6172_v44  ;;  %12313 = vst [vmem:[#allocation59_spill] sm:$0xff] %v6178_v63  ;;  %v5045_v44 = vld [vmem:[#allocation7] sm:$0xff]  ;;  %v6198_v63 = vrot.slane %v5951_v24, %v5777_v1  ;;  %723 = vbcast.lane.b32.xlu0 %v5815_v23, 264 }
 0x168   : > { %12314 = vst [vmem:[#allocation60_spill] sm:$0xff] %v6182_v13  ;;  %12315 = vst [vmem:[#allocation61_spill] sm:$0xff] %v6186_v28  ;;  %v6202_v13 = vrot.slane %v5951_v24, %v5795_v14  ;;  %v5046_v28 = vmul.f32 %v5044_v0, %v5042_v38  ;;  %v5047_v43 = vmul.f32 %v5045_v44, %v5043_v10 }
 0x169   : > { %12316 = vst [vmem:[#allocation62_spill] sm:$0xff] %v6190_v16  ;;  %12317 = vst [vmem:[#allocation63_spill] sm:$0xff] %v6194_v29  ;;  %v5051_v37 = vmul.f32 %v5045_v44, %v5042_v38  ;;  %v6210_v16 = vrot.slane %v5954_v25, %v5754_v53  ;;  %v6214_v29 = vrot.slane %v5954_v25, %v5760_v56 }
 0x16a   : > { %12318 = vst [vmem:[#allocation64_spill] sm:$0xff] %v6198_v63  ;;  %12319 = vst [vmem:[#allocation65_spill] sm:$0xff] %v6202_v13  ;;  %v6218_v63 = vrot.slane %v5954_v25, %v5762_v57  ;;  %v5048_v13 = vsub.f32 %v5046_v28, %v5047_v43  ;;  %v6224_v24 = vrot.slane %v5954_v25, %v5764_v58  ;;  %727 = vbcast.lane.b32.xlu1 %v5815_v23, 272 }
 0x16b   : > { %12320 = vst [vmem:[#allocation66_spill] sm:$0xff] %v6206_v4  ;;  %12321 = vst [vmem:[#allocation67_spill] sm:$0xff] %v6210_v16  ;;  %v5053_v8 = vadd.f32 %v5052_v36, %v5051_v37  ;;  %v6228_v10 = vrot.slane %v5954_v25, %v5770_v61  ;;  %v6232_v38 = vrot.slane %v5954_v25, %v5777_v1  ;;  %v4633_v37 = vld [vmem:[#allocation5] sm:$0xff]  ;;  %731 = vbcast.lane.b32.xlu0 %v5815_v23, 280 }
 0x16c   : > { %12322 = vst [vmem:[#allocation68_spill] sm:$0xff] %v6214_v29  ;;  %12323 = vst [vmem:[#allocation69_spill] sm:$0xff] %v6218_v63  ;;  %v6236_v43 = vrot.slane %v5954_v25, %v5795_v14  ;;  %v6240_v36 = vrot.slane %v5954_v25, %v5830_v30  ;;  %v6244_v28 = vrot.slane %v6003_v51, %v5754_v53 }
 0x16d   : > { %12324 = vst [vmem:[#allocation70_spill] sm:$0xff] %v6224_v24  ;;  %12325 = vst [vmem:[#allocation71_spill] sm:$0xff] %v6228_v10  ;;  %v6248_v44 = vrot.slane %v6003_v51, %v5760_v56  ;;  %v6252_v0 = vrot.slane %v6003_v51, %v5762_v57  ;;  %v6262_v25 = vrot.slane %v6003_v51, %v5770_v61 }
 0x16e   : > { %12326 = vst [vmem:[#allocation72_spill] sm:$0xff] %v6232_v38  ;;  %12327 = vst [vmem:[#allocation73_spill] sm:$0xff] %v6236_v43  ;;  %v6256_v43 = vrot.slane %v6003_v51, %v5764_v58  ;;  %v6352_v23 = vrot.slane %v4633_v37, %v5795_v14 }
 0x16f   : > { %12328 = vst [vmem:[#allocation74_spill] sm:$0xff] %v6240_v36  ;;  %12329 = vst [vmem:[#allocation75_spill] sm:$0xff] %v6244_v28  ;;  %v6266_v28 = vrot.slane %v6003_v51, %v5777_v1 }
 0x170   : > { %12330 = vst [vmem:[#allocation76_spill] sm:$0xff] %v6248_v44  ;;  %12331 = vst [vmem:[#allocation77_spill] sm:$0xff] %v6252_v0  ;;  %v6270_v44 = vrot.slane %v6003_v51, %v5795_v14  ;;  %v6274_v0 = vrot.slane %v6003_v51, %v5830_v30  ;;  %v6292_v51 = vrot.slane %v6006_v52, %v5764_v58 }
 0x171   : > { %12332 = vst [vmem:[#allocation78_spill] sm:$0xff] %v6256_v43  ;;  %5050 = vst.msk [vmem:[#allocation4] sm:$0xff] %vm608_vm0, %v5048_v13  ;;  %v6284_v13 = vrot.slane %v6006_v52, %v5760_v56 }
 0x172   : > { %5054 = vst.msk [vmem:[#allocation5] sm:$0xff] %vm608_vm0, %v5053_v8  ;;  %12333 = vst [vmem:[#allocation79_spill] sm:$0xff] %v6262_v25  ;;  %v6280_v8 = vrot.slane %v6006_v52, %v5754_v53  ;;  %v6320_v25 = vrot.slane %v4480_v17, %v5764_v58 }
 0x173   : > { %12334 = vst [vmem:[#allocation80_spill] sm:$0xff] %v6266_v28  ;;  %12335 = vst [vmem:[#allocation81_spill] sm:$0xff] %v6270_v44  ;;  %v6288_v28 = vrot.slane %v6006_v52, %v5762_v57  ;;  %v6300_v44 = vrot.slane %v6006_v52, %v5777_v1 }
 0x174   : > { %12336 = vst [vmem:[#allocation82_spill] sm:$0xff] %v6274_v0  ;;  %12337 = vst [vmem:[#allocation83_spill] sm:$0xff] %v6280_v8  ;;  %v6296_v0 = vrot.slane %v6006_v52, %v5770_v61  ;;  %v6304_v8 = vrot.slane %v6006_v52, %v5795_v14 }
 0x175   : > { %12338 = vst [vmem:[#allocation84_spill] sm:$0xff] %v6284_v13  ;;  %12339 = vst [vmem:[#allocation85_spill] sm:$0xff] %v6288_v28  ;;  %v6308_v13 = vrot.slane %v6006_v52, %v5830_v30  ;;  %v6311_v28 = vrot.slane %v4480_v17, %v5754_v53  ;;  %v6329_v52 = vrot.slane %v4633_v37, %v5760_v56 }
 0x176   : > { %12340 = vst [vmem:[#allocation86_spill] sm:$0xff] %v6292_v51  ;;  %12341 = vst [vmem:[#allocation87_spill] sm:$0xff] %v6296_v0  ;;  %v6314_v51 = vrot.slane %v4480_v17, %v5760_v56  ;;  %v6317_v0 = vrot.slane %v4480_v17, %v5762_v57  ;;  %v6349_v56 = vrot.slane %v4480_v17, %v5795_v14 }
 0x177   : > { %12342 = vst [vmem:[#allocation88_spill] sm:$0xff] %v6300_v44  ;;  %12343 = vst [vmem:[#allocation89_spill] sm:$0xff] %v6304_v8  ;;  %v6323_v44 = vrot.slane %v4480_v17, %v5770_v61  ;;  %v6326_v8 = vrot.slane %v4633_v37, %v5754_v53  ;;  %v6346_v53 = vrot.slane %v4633_v37, %v5777_v1 }
 0x178   : > { %12344 = vst [vmem:[#allocation90_spill] sm:$0xff] %v6308_v13  ;;  %12345 = vst [vmem:[#allocation91_spill] sm:$0xff] %v6311_v28 }
 0x179   : > { %12346 = vst [vmem:[#allocation92_spill] sm:$0xff] %v6314_v51  ;;  %12347 = vst [vmem:[#allocation93_spill] sm:$0xff] %v6317_v0  ;;  %v6334_v51 = vrot.slane %v4633_v37, %v5762_v57  ;;  %v6337_v0 = vrot.slane %v4633_v37, %v5764_v58  ;;  %v736_v57 = vrot.slane %v5756_v54, %v5795_v14 }
 0x17a   : > { %12348 = vst [vmem:[#allocation94_spill] sm:$0xff] %v6320_v25  ;;  %12349 = vst [vmem:[#allocation95_spill] sm:$0xff] %v6323_v44  ;;  %v6340_v25 = vrot.slane %v4633_v37, %v5770_v61  ;;  %v6343_v44 = vrot.slane %v4480_v17, %v5777_v1  ;;  %v6357_v58 = vrot.slane %v4480_v17, %v5830_v30 }
 0x17b   : > { %12350 = vst [vmem:[#allocation96_spill] sm:$0xff] %v6326_v8  ;;  %12351 = vst [vmem:[#allocation97_spill] sm:$0xff] %v6329_v52  ;;  %v6360_v61 = vrot.slane %v4633_v37, %v5830_v30  ;;  %738 = vbcast.lane.b32.xlu1 %v736_v57, 256  ;;  %742 = vbcast.lane.b32.xlu0 %v736_v57, 264  ;;  %v755_v1 = vrot.slane %v5756_v54, %v5830_v30 }
 0x17c   : > { %12352 = vst [vmem:[#allocation98_spill] sm:$0xff] %v6334_v51  ;;  %12353 = vst [vmem:[#allocation99_spill] sm:$0xff] %v6337_v0 }
 0x17d   : > { %12354 = vst [vmem:[#allocation100_spill] sm:$0xff] %v6340_v25  ;;  %12355 = vst [vmem:[#allocation101_spill] sm:$0xff] %v6343_v44 }
 0x17e   : > { %12356 = vst [vmem:[#allocation102_spill] sm:$0xff] %v6346_v53  ;;  %12357 = vst [vmem:[#allocation103_spill] sm:$0xff] %v6349_v56 }
 0x17f   : > { %12358 = vst [vmem:[#allocation104_spill] sm:$0xff] %v6352_v23  ;;  %12359 = vst [vmem:[#allocation105_spill] sm:$0xff] %v6357_v58  ;;  %746 = vbcast.lane.b32.xlu1 %v736_v57, 272  ;;  %750 = vbcast.lane.b32.xlu0 %v736_v57, 280 }
 0x180   : > { %12360 = vst [vmem:[#allocation106_spill] sm:$0xff] %v6360_v61 }
 0x183   : > { %757 = vbcast.lane.b32.xlu1 %v755_v1, 256  ;;  %761 = vbcast.lane.b32.xlu0 %v755_v1, 264 }
 0x187   : > { %765 = vbcast.lane.b32.xlu1 %v755_v1, 272  ;;  %769 = vbcast.lane.b32.xlu0 %v755_v1, 280 }
 0x18b   : > { %810 = vbcast.lane.b32.xlu1 %v5819_v26, 256  ;;  %814 = vbcast.lane.b32.xlu0 %v5819_v26, 264 }
 0x18f   : > { %818 = vbcast.lane.b32.xlu1 %v5819_v26, 272  ;;  %822 = vbcast.lane.b32.xlu0 %v5819_v26, 280 }
 0x193   : > { %829 = vbcast.lane.b32.xlu1 %v5823_v27, 256  ;;  %833 = vbcast.lane.b32.xlu0 %v5823_v27, 264 }
 0x197   : > { %837 = vbcast.lane.b32.xlu1 %v5823_v27, 272  ;;  %841 = vbcast.lane.b32.xlu0 %v5823_v27, 280 }
 0x19b   : > { %848 = vbcast.lane.b32.xlu1 %v5834_v31, 256  ;;  %852 = vbcast.lane.b32.xlu0 %v5834_v31, 264 }
 0x19f   : > { %856 = vbcast.lane.b32.xlu1 %v5834_v31, 272  ;;  %860 = vbcast.lane.b32.xlu0 %v5834_v31, 280 }
 0x1a3   : > { %867 = vbcast.lane.b32.xlu1 %v5843_v5, 256  ;;  %871 = vbcast.lane.b32.xlu0 %v5843_v5, 264 }
 0x1a7   : > { %875 = vbcast.lane.b32.xlu1 %v5843_v5, 272  ;;  %879 = vbcast.lane.b32.xlu0 %v5843_v5, 280 }
 0x1ab   : > { %886 = vbcast.lane.b32.xlu1 %v5847_v41, 256  ;;  %890 = vbcast.lane.b32.xlu0 %v5847_v41, 264 }
 0x1af   : > { %894 = vbcast.lane.b32.xlu1 %v5847_v41, 272  ;;  %898 = vbcast.lane.b32.xlu0 %v5847_v41, 280 }
 0x1b0   : > { %v6390_v54 = vpop.permute.xlu1 %628  ;;  %v6392_v14 = vpop.permute.xlu0 %624 }
 0x1b3   : > { %905 = vbcast.lane.b32.xlu1 %v5851_v42, 256  ;;  %909 = vbcast.lane.b32.xlu0 %v5851_v42, 264 }
 0x1b4   : > { %v6396_v26 = vpop.permute.xlu1 %632  ;;  %v6398_v27 = vpop.permute.xlu0 %636 }
 0x1b7   : > { %913 = vbcast.lane.b32.xlu1 %v5851_v42, 272  ;;  %917 = vbcast.lane.b32.xlu0 %v5851_v42, 280 }
 0x1b8   : > { %v6402_v30 = vpop.permute.xlu1 %643  ;;  %v6404_v31 = vpop.permute.xlu0 %647 }
 0x1bb   : > { %924 = vbcast.lane.b32.xlu1 %v5862_v45, 256  ;;  %928 = vbcast.lane.b32.xlu0 %v5862_v45, 264 }
 0x1bc   : > { %v6408_v5 = vpop.permute.xlu1 %651  ;;  %v6410_v41 = vpop.permute.xlu0 %655 }
 0x1bf   : > { %932 = vbcast.lane.b32.xlu1 %v5862_v45, 272  ;;  %936 = vbcast.lane.b32.xlu0 %v5862_v45, 280 }
 0x1c0   : > { %v6414_v42 = vpop.permute.xlu1 %662  ;;  %v6416_v45 = vpop.permute.xlu0 %666 }
 0x1c3   : > { %943 = vbcast.lane.b32.xlu1 %v5866_v48, 256  ;;  %947 = vbcast.lane.b32.xlu0 %v5866_v48, 264 }
 0x1c4   : > { %v6420_v17 = vpop.permute.xlu1 %670  ;;  %v6422_v37 = vpop.permute.xlu0 %674 }
 0x1c7   : > { %951 = vbcast.lane.b32.xlu1 %v5866_v48, 272  ;;  %955 = vbcast.lane.b32.xlu0 %v5866_v48, 280 }
 0x1c8   : > { %v6426_v48 = vpop.permute.xlu1 %681 }
 0x1c9   : > { %v6428_v57 = vpop.permute.xlu0 %685 }
 0x1cb   : > { %1002 = vbcast.lane.b32.xlu1 %v5870_v49, 256  ;;  %1006 = vbcast.lane.b32.xlu0 %v5870_v49, 264 }
 0x1cc   : > { %v6432_v1 = vpop.permute.xlu1 %689 }
 0x1cd   : > { %v6434_v61 = vpop.permute.xlu0 %693 }
 0x1cf   : > { %1010 = vbcast.lane.b32.xlu1 %v5870_v49, 272  ;;  %1014 = vbcast.lane.b32.xlu0 %v5870_v49, 280 }
 0x1d0   : > { %v6438_v49 = vpop.permute.xlu1 %700 }
 0x1d1   : > { %v6440_v58 = vpop.permute.xlu0 %704 }
 0x1d3   : > { %1021 = vbcast.lane.b32.xlu1 %v5879_v59, 256  ;;  %1025 = vbcast.lane.b32.xlu0 %v5879_v59, 264 }
 0x1d4   : > { %v6444_v23 = vpop.permute.xlu1 %708 }
 0x1d5   : > { %v6446_v56 = vpop.permute.xlu0 %712 }
 0x1d7   : > { %1029 = vbcast.lane.b32.xlu1 %v5879_v59, 272  ;;  %1033 = vbcast.lane.b32.xlu0 %v5879_v59, 280 }
 0x1d8   : > { %v6450_v59 = vpop.permute.xlu1 %719 }
 0x1d9   : > { %v6452_v53 = vpop.permute.xlu0 %723 }
 0x1db   : > { %1040 = vbcast.lane.b32.xlu1 %v5885_v55, 256  ;;  %1044 = vbcast.lane.b32.xlu0 %v5885_v55, 264 }
 0x1dc   : > { %v6456_v44 = vpop.permute.xlu1 %727 }
 0x1dd   : > { %v6458_v25 = vpop.permute.xlu0 %731 }
 0x1df   : > { %1048 = vbcast.lane.b32.xlu1 %v5885_v55, 272  ;;  %1052 = vbcast.lane.b32.xlu0 %v5885_v55, 280 }
 0x1e3   : > { %1059 = vbcast.lane.b32.xlu1 %v5889_v6, 256  ;;  %1063 = vbcast.lane.b32.xlu0 %v5889_v6, 264 }
 0x1e7   : > { %1067 = vbcast.lane.b32.xlu1 %v5889_v6, 272  ;;  %1071 = vbcast.lane.b32.xlu0 %v5889_v6, 280 }
 0x1eb   : > { %1078 = vbcast.lane.b32.xlu1 %v5893_v60, 256  ;;  %1082 = vbcast.lane.b32.xlu0 %v5893_v60, 264 }
 0x1ed   : > { %v6462_v55 = vpop.permute.xlu1 %738  ;;  %v6464_v0 = vpop.permute.xlu0 %742 }
 0x1ef   : > { %1086 = vbcast.lane.b32.xlu1 %v5893_v60, 272  ;;  %1090 = vbcast.lane.b32.xlu0 %v5893_v60, 280 }
 0x1f1   : > { %v6468_v51 = vpop.permute.xlu1 %746  ;;  %v6470_v52 = vpop.permute.xlu0 %750 }
 0x1f3   : > { %1097 = vbcast.lane.b32.xlu1 %v5897_v62, 256  ;;  %1101 = vbcast.lane.b32.xlu0 %v5897_v62, 264 }
 0x1f5   : > { %v6474_v6 = vpop.permute.xlu1 %757  ;;  %v6476_v8 = vpop.permute.xlu0 %761 }
 0x1f7   : > { %1105 = vbcast.lane.b32.xlu1 %v5897_v62, 272  ;;  %1109 = vbcast.lane.b32.xlu0 %v5897_v62, 280 }
 0x1f9   : > { %v6480_v28 = vpop.permute.xlu1 %765  ;;  %v6482_v13 = vpop.permute.xlu0 %769 }
 0x1fb   : > { %1116 = vbcast.lane.b32.xlu1 %v5908_v2, 256  ;;  %1120 = vbcast.lane.b32.xlu0 %v5908_v2, 264 }
 0x1fd   : > { %v6486_v60 = vpop.permute.xlu1 %810  ;;  %v6488_v43 = vpop.permute.xlu0 %814 }
 0x1ff   : > { %1124 = vbcast.lane.b32.xlu1 %v5908_v2, 272  ;;  %1128 = vbcast.lane.b32.xlu0 %v5908_v2, 280 }
 0x201   : > { %v6492_v36 = vpop.permute.xlu1 %818  ;;  %v6494_v38 = vpop.permute.xlu0 %822 }
 0x203   : > { %1135 = vbcast.lane.b32.xlu1 %v5912_v3, 256  ;;  %1139 = vbcast.lane.b32.xlu0 %v5912_v3, 264 }
 0x205   : > { %v6498_v62 = vpop.permute.xlu1 %829  ;;  %v6500_v10 = vpop.permute.xlu0 %833 }
 0x207   : > { %1143 = vbcast.lane.b32.xlu1 %v5912_v3, 272  ;;  %1147 = vbcast.lane.b32.xlu0 %v5912_v3, 280 }
 0x209   : > { %v6504_v24 = vpop.permute.xlu1 %837  ;;  %v6506_v63 = vpop.permute.xlu0 %841 }
 0x20a   : > { %12361 = vst [vmem:[#allocation107_spill] sm:$0xff] %v6506_v63 }
 0x20b   : > { %1188 = vbcast.lane.b32.xlu1 %v5916_v7, 256  ;;  %1192 = vbcast.lane.b32.xlu0 %v5916_v7, 264 }
 0x20d   : > { %v6510_v2 = vpop.permute.xlu1 %848  ;;  %v6512_v29 = vpop.permute.xlu0 %852 }
 0x20e   : > { %12362 = vst [vmem:[#allocation108_spill] sm:$0xff] %v6510_v2  ;;  %12363 = vst [vmem:[#allocation109_spill] sm:$0xff] %v6512_v29 }
 0x20f   : > { %1196 = vbcast.lane.b32.xlu1 %v5916_v7, 272  ;;  %1200 = vbcast.lane.b32.xlu0 %v5916_v7, 280 }
 0x211   : > { %v6516_v16 = vpop.permute.xlu1 %856  ;;  %v6518_v4 = vpop.permute.xlu0 %860 }
 0x212   : > { %12364 = vst [vmem:[#allocation110_spill] sm:$0xff] %v6518_v4 }
 0x213   : > { %1207 = vbcast.lane.b32.xlu1 %v5920_v9, 256  ;;  %1211 = vbcast.lane.b32.xlu0 %v5920_v9, 264 }
 0x215   : > { %v6522_v3 = vpop.permute.xlu1 %867  ;;  %v6524_v63 = vpop.permute.xlu0 %871 }
 0x216   : > { %12365 = vst [vmem:[#allocation111_spill] sm:$0xff] %v6522_v3  ;;  %12366 = vst [vmem:[#allocation112_spill] sm:$0xff] %v6524_v63 }
 0x217   : > { %1215 = vbcast.lane.b32.xlu1 %v5920_v9, 272  ;;  %1219 = vbcast.lane.b32.xlu0 %v5920_v9, 280 }
 0x219   : > { %v6528_v29 = vpop.permute.xlu1 %875  ;;  %v6530_v2 = vpop.permute.xlu0 %879 }
 0x21a   : > { %12367 = vst [vmem:[#allocation113_spill] sm:$0xff] %v6530_v2 }
 0x21b   : > { %1226 = vbcast.lane.b32.xlu1 %v5924_v15, 256  ;;  %1230 = vbcast.lane.b32.xlu0 %v5924_v15, 264 }
 0x21d   : > { %v6534_v7 = vpop.permute.xlu1 %886  ;;  %v6536_v4 = vpop.permute.xlu0 %890 }
 0x21e   : > { %12368 = vst [vmem:[#allocation114_spill] sm:$0xff] %v6534_v7  ;;  %12369 = vst [vmem:[#allocation115_spill] sm:$0xff] %v6536_v4 }
 0x21f   : > { %1234 = vbcast.lane.b32.xlu1 %v5924_v15, 272  ;;  %1238 = vbcast.lane.b32.xlu0 %v5924_v15, 280 }
 0x221   : > { %v6540_v63 = vpop.permute.xlu1 %894  ;;  %v6542_v3 = vpop.permute.xlu0 %898 }
 0x222   : > { %12370 = vst [vmem:[#allocation116_spill] sm:$0xff] %v6542_v3 }
 0x223   : > { %1245 = vbcast.lane.b32.xlu1 %v5933_v18, 256  ;;  %1249 = vbcast.lane.b32.xlu0 %v5933_v18, 264 }
 0x225   : > { %v6546_v9 = vpop.permute.xlu1 %905  ;;  %v6548_v2 = vpop.permute.xlu0 %909 }
 0x226   : > { %12371 = vst [vmem:[#allocation117_spill] sm:$0xff] %v6546_v9  ;;  %12372 = vst [vmem:[#allocation118_spill] sm:$0xff] %v6548_v2 }
 0x227   : > { %1253 = vbcast.lane.b32.xlu1 %v5933_v18, 272  ;;  %1257 = vbcast.lane.b32.xlu0 %v5933_v18, 280 }
 0x229   : > { %v6552_v4 = vpop.permute.xlu1 %913  ;;  %v6554_v7 = vpop.permute.xlu0 %917 }
 0x22a   : > { %12373 = vst [vmem:[#allocation119_spill] sm:$0xff] %v6554_v7 }
 0x22b   : > { %1264 = vbcast.lane.b32.xlu1 %v5937_v19, 256  ;;  %1268 = vbcast.lane.b32.xlu0 %v5937_v19, 264 }
 0x22d   : > { %v6558_v15 = vpop.permute.xlu1 %924  ;;  %v6560_v3 = vpop.permute.xlu0 %928 }
 0x22e   : > { %12374 = vst [vmem:[#allocation120_spill] sm:$0xff] %v6558_v15  ;;  %12375 = vst [vmem:[#allocation121_spill] sm:$0xff] %v6560_v3 }
 0x22f   : > { %1272 = vbcast.lane.b32.xlu1 %v5937_v19, 272  ;;  %1276 = vbcast.lane.b32.xlu0 %v5937_v19, 280 }
 0x231   : > { %v6564_v2 = vpop.permute.xlu1 %932  ;;  %v6566_v9 = vpop.permute.xlu0 %936 }
 0x232   : > { %12376 = vst [vmem:[#allocation122_spill] sm:$0xff] %v6566_v9 }
 0x233   : > { %1283 = vbcast.lane.b32.xlu1 %v5941_v20, 256  ;;  %1287 = vbcast.lane.b32.xlu0 %v5941_v20, 264 }
 0x235   : > { %v6570_v18 = vpop.permute.xlu1 %943  ;;  %v6572_v7 = vpop.permute.xlu0 %947 }
 0x236   : > { %12377 = vst [vmem:[#allocation123_spill] sm:$0xff] %v6570_v18  ;;  %12378 = vst [vmem:[#allocation124_spill] sm:$0xff] %v6572_v7 }
 0x237   : > { %1291 = vbcast.lane.b32.xlu1 %v5941_v20, 272  ;;  %1295 = vbcast.lane.b32.xlu0 %v5941_v20, 280 }
 0x239   : > { %v6576_v3 = vpop.permute.xlu1 %951  ;;  %v6578_v15 = vpop.permute.xlu0 %955 }
 0x23a   : > { %12379 = vst [vmem:[#allocation125_spill] sm:$0xff] %v6576_v3  ;;  %12380 = vst [vmem:[#allocation126_spill] sm:$0xff] %v6578_v15 }
 0x23b   : > { %1302 = vbcast.lane.b32.xlu1 %v5945_v21, 256  ;;  %1306 = vbcast.lane.b32.xlu0 %v5945_v21, 264 }
 0x23d   : > { %v6582_v19 = vpop.permute.xlu1 %1002  ;;  %v6584_v9 = vpop.permute.xlu0 %1006 }
 0x23e   : > { %12381 = vst [vmem:[#allocation127_spill] sm:$0xff] %v6584_v9 }
 0x23f   : > { %1310 = vbcast.lane.b32.xlu1 %v5945_v21, 272  ;;  %1314 = vbcast.lane.b32.xlu0 %v5945_v21, 280 }
 0x241   : > { %v6588_v7 = vpop.permute.xlu1 %1010  ;;  %v6590_v18 = vpop.permute.xlu0 %1014 }
 0x242   : > { %12382 = vst [vmem:[#allocation128_spill] sm:$0xff] %v6590_v18 }
 0x243   : > { %1321 = vbcast.lane.b32.xlu1 %v5949_v22, 256  ;;  %1325 = vbcast.lane.b32.xlu0 %v5949_v22, 264 }
 0x245   : > { %v6594_v20 = vpop.permute.xlu1 %1021  ;;  %v6596_v15 = vpop.permute.xlu0 %1025 }
 0x246   : > { %12383 = vst [vmem:[#allocation129_spill] sm:$0xff] %v6594_v20  ;;  %12384 = vst [vmem:[#allocation130_spill] sm:$0xff] %v6596_v15 }
 0x247   : > { %1329 = vbcast.lane.b32.xlu1 %v5949_v22, 272  ;;  %1333 = vbcast.lane.b32.xlu0 %v5949_v22, 280 }
 0x249   : > { %v6600_v3 = vpop.permute.xlu1 %1029  ;;  %v6602_v9 = vpop.permute.xlu0 %1033 }
 0x24a   : > { %12385 = vst [vmem:[#allocation131_spill] sm:$0xff] %v6602_v9 }
 0x24b   : > { %1572 = vbcast.lane.b32.xlu1 %v5960_v32, 256  ;;  %1576 = vbcast.lane.b32.xlu0 %v5960_v32, 264 }
 0x24d   : > { %v6606_v21 = vpop.permute.xlu1 %1040  ;;  %v6608_v18 = vpop.permute.xlu0 %1044 }
 0x24e   : > { %12386 = vst [vmem:[#allocation132_spill] sm:$0xff] %v6606_v21  ;;  %12387 = vst [vmem:[#allocation133_spill] sm:$0xff] %v6608_v18 }
 0x24f   : > { %1580 = vbcast.lane.b32.xlu1 %v5960_v32, 272  ;;  %1584 = vbcast.lane.b32.xlu0 %v5960_v32, 280 }
 0x251   : > { %v6612_v15 = vpop.permute.xlu1 %1048  ;;  %v6614_v20 = vpop.permute.xlu0 %1052 }
 0x252   : > { %12388 = vst [vmem:[#allocation134_spill] sm:$0xff] %v6612_v15  ;;  %12389 = vst [vmem:[#allocation135_spill] sm:$0xff] %v6614_v20  ;;  %v12601_v15 = vld [vmem:[#allocation55_spill] sm:$0xff] }
 0x253   : > { %1591 = vbcast.lane.b32.xlu1 %v5964_v33, 256  ;;  %1595 = vbcast.lane.b32.xlu0 %v5964_v33, 264 }
 0x255   : > { %v6618_v22 = vpop.permute.xlu1 %1059  ;;  %v6620_v9 = vpop.permute.xlu0 %1063 }
 0x256   : > { %12390 = vst [vmem:[#allocation136_spill] sm:$0xff] %v6618_v22  ;;  %12391 = vst [vmem:[#allocation137_spill] sm:$0xff] %v6620_v9 }
 0x257   : > { %1599 = vbcast.lane.b32.xlu1 %v5964_v33, 272  ;;  %1603 = vbcast.lane.b32.xlu0 %v5964_v33, 280 }
 0x259   : > { %v6624_v18 = vpop.permute.xlu1 %1067  ;;  %v6626_v21 = vpop.permute.xlu0 %1071 }
 0x25a   : > { %12392 = vst [vmem:[#allocation138_spill] sm:$0xff] %v6624_v18  ;;  %12393 = vst [vmem:[#allocation139_spill] sm:$0xff] %v6626_v21 }
 0x25b   : > { %1610 = vbcast.lane.b32.xlu1 %v5968_v12, 256  ;;  %1614 = vbcast.lane.b32.xlu0 %v5968_v12, 264 }
 0x25d   : > { %v6630_v32 = vpop.permute.xlu1 %1078  ;;  %v6632_v20 = vpop.permute.xlu0 %1082 }
 0x25e   : > { %12394 = vst [vmem:[#allocation140_spill] sm:$0xff] %v6630_v32  ;;  %12395 = vst [vmem:[#allocation141_spill] sm:$0xff] %v6632_v20 }
 0x25f   : > { %1618 = vbcast.lane.b32.xlu1 %v5968_v12, 272  ;;  %1622 = vbcast.lane.b32.xlu0 %v5968_v12, 280 }
 0x261   : > { %v6636_v9 = vpop.permute.xlu1 %1086  ;;  %v6638_v22 = vpop.permute.xlu0 %1090 }
 0x262   : > { %12396 = vst [vmem:[#allocation142_spill] sm:$0xff] %v6636_v9  ;;  %12397 = vst [vmem:[#allocation143_spill] sm:$0xff] %v6638_v22 }
 0x263   : > { %1629 = vbcast.lane.b32.xlu1 %v5972_v34, 256  ;;  %1633 = vbcast.lane.b32.xlu0 %v5972_v34, 264 }
 0x265   : > { %v6642_v33 = vpop.permute.xlu1 %1097  ;;  %v6644_v21 = vpop.permute.xlu0 %1101 }
 0x266   : > { %12398 = vst [vmem:[#allocation144_spill] sm:$0xff] %v6642_v33  ;;  %12399 = vst [vmem:[#allocation145_spill] sm:$0xff] %v6644_v21 }
 0x267   : > { %1637 = vbcast.lane.b32.xlu1 %v5972_v34, 272  ;;  %1641 = vbcast.lane.b32.xlu0 %v5972_v34, 280 }
 0x269   : > { %v6648_v20 = vpop.permute.xlu1 %1105  ;;  %v6650_v32 = vpop.permute.xlu0 %1109 }
 0x26a   : > { %12400 = vst [vmem:[#allocation146_spill] sm:$0xff] %v6648_v20  ;;  %12401 = vst [vmem:[#allocation147_spill] sm:$0xff] %v6650_v32 }
 0x26b   : > { %1648 = vbcast.lane.b32.xlu1 %v5976_v35, 256  ;;  %1652 = vbcast.lane.b32.xlu0 %v5976_v35, 264 }
 0x26d   : > { %v6654_v12 = vpop.permute.xlu1 %1116  ;;  %v6656_v22 = vpop.permute.xlu0 %1120 }
 0x26e   : > { %12402 = vst [vmem:[#allocation148_spill] sm:$0xff] %v6654_v12  ;;  %12403 = vst [vmem:[#allocation149_spill] sm:$0xff] %v6656_v22 }
 0x26f   : > { %1656 = vbcast.lane.b32.xlu1 %v5976_v35, 272  ;;  %1660 = vbcast.lane.b32.xlu0 %v5976_v35, 280 }
 0x271   : > { %v6660_v21 = vpop.permute.xlu1 %1124  ;;  %v6662_v33 = vpop.permute.xlu0 %1128 }
 0x272   : > { %12404 = vst [vmem:[#allocation150_spill] sm:$0xff] %v6660_v21  ;;  %12405 = vst [vmem:[#allocation151_spill] sm:$0xff] %v6662_v33 }
 0x273   : > { %1667 = vbcast.lane.b32.xlu1 %v5985_v11, 256  ;;  %1671 = vbcast.lane.b32.xlu0 %v5985_v11, 264 }
 0x275   : > { %v6666_v34 = vpop.permute.xlu1 %1135  ;;  %v6668_v32 = vpop.permute.xlu0 %1139 }
 0x276   : > { %12406 = vst [vmem:[#allocation152_spill] sm:$0xff] %v6666_v34  ;;  %12407 = vst [vmem:[#allocation153_spill] sm:$0xff] %v6668_v32 }
 0x277   : > { %1675 = vbcast.lane.b32.xlu1 %v5985_v11, 272  ;;  %1679 = vbcast.lane.b32.xlu0 %v5985_v11, 280 }
 0x279   : > { %v6672_v22 = vpop.permute.xlu1 %1143  ;;  %v6674_v12 = vpop.permute.xlu0 %1147 }
 0x27a   : > { %12408 = vst [vmem:[#allocation154_spill] sm:$0xff] %v6672_v22  ;;  %12409 = vst [vmem:[#allocation155_spill] sm:$0xff] %v6674_v12 }
 0x27b   : > { %1686 = vbcast.lane.b32.xlu1 %v5989_v40, 256  ;;  %1690 = vbcast.lane.b32.xlu0 %v5989_v40, 264 }
 0x27d   : > { %v6678_v35 = vpop.permute.xlu1 %1188  ;;  %v6680_v33 = vpop.permute.xlu0 %1192 }
 0x27e   : > { %12410 = vst [vmem:[#allocation156_spill] sm:$0xff] %v6678_v35  ;;  %12411 = vst [vmem:[#allocation157_spill] sm:$0xff] %v6680_v33 }
 0x27f   : > { %1694 = vbcast.lane.b32.xlu1 %v5989_v40, 272  ;;  %1698 = vbcast.lane.b32.xlu0 %v5989_v40, 280 }
 0x281   : > { %v6684_v32 = vpop.permute.xlu1 %1196  ;;  %v6686_v34 = vpop.permute.xlu0 %1200 }
 0x282   : > { %12412 = vst [vmem:[#allocation158_spill] sm:$0xff] %v6684_v32  ;;  %12413 = vst [vmem:[#allocation159_spill] sm:$0xff] %v6686_v34 }
 0x283   : > { %1705 = vbcast.lane.b32.xlu1 %v5993_v46, 256  ;;  %1709 = vbcast.lane.b32.xlu0 %v5993_v46, 264 }
 0x285   : > { %v6690_v11 = vpop.permute.xlu1 %1207  ;;  %v6692_v12 = vpop.permute.xlu0 %1211 }
 0x286   : > { %12414 = vst [vmem:[#allocation160_spill] sm:$0xff] %v6690_v11  ;;  %12415 = vst [vmem:[#allocation161_spill] sm:$0xff] %v6692_v12 }
 0x287   : > { %1713 = vbcast.lane.b32.xlu1 %v5993_v46, 272  ;;  %1717 = vbcast.lane.b32.xlu0 %v5993_v46, 280 }
 0x289   : > { %v6696_v22 = vpop.permute.xlu1 %1215  ;;  %v6698_v33 = vpop.permute.xlu0 %1219 }
 0x28a   : > { %12416 = vst [vmem:[#allocation162_spill] sm:$0xff] %v6696_v22  ;;  %12417 = vst [vmem:[#allocation163_spill] sm:$0xff] %v6698_v33 }
 0x28b   : > { %1758 = vbcast.lane.b32.xlu1 %v5997_v47, 256  ;;  %1762 = vbcast.lane.b32.xlu0 %v5997_v47, 264 }
 0x28d   : > { %v6702_v40 = vpop.permute.xlu1 %1226  ;;  %v6704_v34 = vpop.permute.xlu0 %1230 }
 0x28e   : > { %12418 = vst [vmem:[#allocation164_spill] sm:$0xff] %v6702_v40  ;;  %12419 = vst [vmem:[#allocation165_spill] sm:$0xff] %v6704_v34 }
 0x28f   : > { %1766 = vbcast.lane.b32.xlu1 %v5997_v47, 272  ;;  %1770 = vbcast.lane.b32.xlu0 %v5997_v47, 280  ;;  %v12426_v47 = vld [vmem:[#allocation22_spill] sm:$0xff] }
 0x291   : > { %v6708_v12 = vpop.permute.xlu1 %1234  ;;  %v6710_v11 = vpop.permute.xlu0 %1238 }
 0x292   : > { %12420 = vst [vmem:[#allocation166_spill] sm:$0xff] %v6708_v12  ;;  %12421 = vst [vmem:[#allocation167_spill] sm:$0xff] %v6710_v11 }
 0x293   : > { %1777 = vbcast.lane.b32.xlu1 %v6001_v50, 256  ;;  %1781 = vbcast.lane.b32.xlu0 %v6001_v50, 264 }
 0x295   : > { %v6714_v46 = vpop.permute.xlu1 %1245  ;;  %v6716_v33 = vpop.permute.xlu0 %1249 }
 0x296   : > { %12422 = vst [vmem:[#allocation168_spill] sm:$0xff] %v6714_v46  ;;  %12423 = vst [vmem:[#allocation169_spill] sm:$0xff] %v6716_v33 }
 0x297   : > { %1785 = vbcast.lane.b32.xlu1 %v6001_v50, 272  ;;  %1789 = vbcast.lane.b32.xlu0 %v6001_v50, 280  ;;  %v12431_v50 = vld [vmem:[#allocation23_spill] sm:$0xff] }
 0x299   : > { %v6720_v34 = vpop.permute.xlu1 %1253  ;;  %v6722_v40 = vpop.permute.xlu0 %1257 }
 0x29a   : > { %12424 = vst [vmem:[#allocation170_spill] sm:$0xff] %v6720_v34  ;;  %12425 = vst [vmem:[#allocation171_spill] sm:$0xff] %v6722_v40 }
 0x29b   : > { %1796 = vbcast.lane.b32.xlu1 %v12426_v47, 256  ;;  %1800 = vbcast.lane.b32.xlu0 %v12426_v47, 264 }
 0x29d   : > { %v6726_v11 = vpop.permute.xlu1 %1264  ;;  %v6728_v12 = vpop.permute.xlu0 %1268 }
 0x29e   : > { %12427 = vst [vmem:[#allocation22_spill] sm:$0xff] %v6726_v11  ;;  %12428 = vst [vmem:[#allocation172_spill] sm:$0xff] %v6728_v12 }
 0x29f   : > { %1804 = vbcast.lane.b32.xlu1 %v12426_v47, 272  ;;  %1808 = vbcast.lane.b32.xlu0 %v12426_v47, 280  ;;  %v12436_v47 = vld [vmem:[#allocation24_spill] sm:$0xff] }
 0x2a1   : > { %v6732_v33 = vpop.permute.xlu1 %1272  ;;  %v6734_v46 = vpop.permute.xlu0 %1276 }
 0x2a2   : > { %12429 = vst [vmem:[#allocation173_spill] sm:$0xff] %v6732_v33  ;;  %12430 = vst [vmem:[#allocation174_spill] sm:$0xff] %v6734_v46 }
 0x2a3   : > { %1815 = vbcast.lane.b32.xlu1 %v12431_v50, 256  ;;  %1819 = vbcast.lane.b32.xlu0 %v12431_v50, 264 }
 0x2a5   : > { %v6738_v40 = vpop.permute.xlu1 %1283  ;;  %v6740_v34 = vpop.permute.xlu0 %1287 }
 0x2a6   : > { %12432 = vst [vmem:[#allocation23_spill] sm:$0xff] %v6738_v40  ;;  %12433 = vst [vmem:[#allocation175_spill] sm:$0xff] %v6740_v34 }
 0x2a7   : > { %1823 = vbcast.lane.b32.xlu1 %v12431_v50, 272  ;;  %1827 = vbcast.lane.b32.xlu0 %v12431_v50, 280  ;;  %v12441_v50 = vld [vmem:[#allocation25_spill] sm:$0xff] }
 0x2a9   : > { %v6744_v12 = vpop.permute.xlu1 %1291  ;;  %v6746_v11 = vpop.permute.xlu0 %1295 }
 0x2aa   : > { %12434 = vst [vmem:[#allocation176_spill] sm:$0xff] %v6744_v12  ;;  %12435 = vst [vmem:[#allocation177_spill] sm:$0xff] %v6746_v11 }
 0x2ab   : > { %1834 = vbcast.lane.b32.xlu1 %v12436_v47, 256  ;;  %1838 = vbcast.lane.b32.xlu0 %v12436_v47, 264 }
 0x2ad   : > { %v6750_v46 = vpop.permute.xlu1 %1302  ;;  %v6752_v33 = vpop.permute.xlu0 %1306 }
 0x2ae   : > { %12437 = vst [vmem:[#allocation24_spill] sm:$0xff] %v6750_v46  ;;  %12438 = vst [vmem:[#allocation178_spill] sm:$0xff] %v6752_v33 }
 0x2af   : > { %1842 = vbcast.lane.b32.xlu1 %v12436_v47, 272  ;;  %1846 = vbcast.lane.b32.xlu0 %v12436_v47, 280  ;;  %v12446_v47 = vld [vmem:[#allocation26_spill] sm:$0xff] }
 0x2b1   : > { %v6756_v34 = vpop.permute.xlu1 %1310  ;;  %v6758_v40 = vpop.permute.xlu0 %1314 }
 0x2b2   : > { %12439 = vst [vmem:[#allocation179_spill] sm:$0xff] %v6756_v34  ;;  %12440 = vst [vmem:[#allocation180_spill] sm:$0xff] %v6758_v40 }
 0x2b3   : > { %1853 = vbcast.lane.b32.xlu1 %v12441_v50, 256  ;;  %1857 = vbcast.lane.b32.xlu0 %v12441_v50, 264 }
 0x2b5   : > { %v6762_v11 = vpop.permute.xlu1 %1321  ;;  %v6764_v12 = vpop.permute.xlu0 %1325 }
 0x2b6   : > { %12442 = vst [vmem:[#allocation25_spill] sm:$0xff] %v6762_v11  ;;  %12443 = vst [vmem:[#allocation181_spill] sm:$0xff] %v6764_v12 }
 0x2b7   : > { %1861 = vbcast.lane.b32.xlu1 %v12441_v50, 272  ;;  %1865 = vbcast.lane.b32.xlu0 %v12441_v50, 280 }
 0x2b9   : > { %v6768_v33 = vpop.permute.xlu1 %1329  ;;  %v6770_v46 = vpop.permute.xlu0 %1333 }
 0x2ba   : > { %12444 = vst [vmem:[#allocation182_spill] sm:$0xff] %v6768_v33  ;;  %12445 = vst [vmem:[#allocation183_spill] sm:$0xff] %v6770_v46 }
 0x2bb   : > { %1872 = vbcast.lane.b32.xlu1 %v12446_v47, 256  ;;  %1876 = vbcast.lane.b32.xlu0 %v12446_v47, 264 }
 0x2bd   : > { %v6774_v40 = vpop.permute.xlu1 %1572  ;;  %v6776_v34 = vpop.permute.xlu0 %1576 }
 0x2be   : > { %12447 = vst [vmem:[#allocation26_spill] sm:$0xff] %v6774_v40  ;;  %12448 = vst [vmem:[#allocation184_spill] sm:$0xff] %v6776_v34 }
 0x2bf   : > { %1880 = vbcast.lane.b32.xlu1 %v12446_v47, 272  ;;  %1884 = vbcast.lane.b32.xlu0 %v12446_v47, 280  ;;  %v12455_v47 = vld [vmem:[#allocation27_spill] sm:$0xff] }
 0x2c1   : > { %v6780_v12 = vpop.permute.xlu1 %1580  ;;  %v6782_v11 = vpop.permute.xlu0 %1584 }
 0x2c2   : > { %12449 = vst [vmem:[#allocation185_spill] sm:$0xff] %v6780_v12  ;;  %12450 = vst [vmem:[#allocation186_spill] sm:$0xff] %v6782_v11 }
 0x2c3   : > { %1891 = vbcast.lane.b32.xlu1 %v6037_v39, 256  ;;  %1895 = vbcast.lane.b32.xlu0 %v6037_v39, 264 }
 0x2c5   : > { %v6786_v50 = vpop.permute.xlu1 %1591  ;;  %v6788_v46 = vpop.permute.xlu0 %1595 }
 0x2c6   : > { %12451 = vst [vmem:[#allocation187_spill] sm:$0xff] %v6786_v50  ;;  %12452 = vst [vmem:[#allocation188_spill] sm:$0xff] %v6788_v46 }
 0x2c7   : > { %1899 = vbcast.lane.b32.xlu1 %v6037_v39, 272  ;;  %1903 = vbcast.lane.b32.xlu0 %v6037_v39, 280  ;;  %v12460_v39 = vld [vmem:[#allocation28_spill] sm:$0xff] }
 0x2c9   : > { %v6792_v34 = vpop.permute.xlu1 %1599  ;;  %v6794_v40 = vpop.permute.xlu0 %1603 }
 0x2ca   : > { %12453 = vst [vmem:[#allocation189_spill] sm:$0xff] %v6792_v34  ;;  %12454 = vst [vmem:[#allocation190_spill] sm:$0xff] %v6794_v40 }
 0x2cb   : > { %2142 = vbcast.lane.b32.xlu1 %v12455_v47, 256  ;;  %2146 = vbcast.lane.b32.xlu0 %v12455_v47, 264 }
 0x2cd   : > { %v6798_v11 = vpop.permute.xlu1 %1610  ;;  %v6800_v12 = vpop.permute.xlu0 %1614 }
 0x2ce   : > { %12456 = vst [vmem:[#allocation27_spill] sm:$0xff] %v6798_v11  ;;  %12457 = vst [vmem:[#allocation191_spill] sm:$0xff] %v6800_v12 }
 0x2cf   : > { %2150 = vbcast.lane.b32.xlu1 %v12455_v47, 272  ;;  %2154 = vbcast.lane.b32.xlu0 %v12455_v47, 280  ;;  %v12465_v47 = vld [vmem:[#allocation29_spill] sm:$0xff] }
 0x2d1   : > { %v6804_v46 = vpop.permute.xlu1 %1618  ;;  %v6806_v50 = vpop.permute.xlu0 %1622 }
 0x2d2   : > { %12458 = vst [vmem:[#allocation192_spill] sm:$0xff] %v6804_v46  ;;  %12459 = vst [vmem:[#allocation193_spill] sm:$0xff] %v6806_v50 }
 0x2d3   : > { %2161 = vbcast.lane.b32.xlu1 %v12460_v39, 256  ;;  %2165 = vbcast.lane.b32.xlu0 %v12460_v39, 264 }
 0x2d5   : > { %v6810_v40 = vpop.permute.xlu1 %1629  ;;  %v6812_v34 = vpop.permute.xlu0 %1633 }
 0x2d6   : > { %12461 = vst [vmem:[#allocation28_spill] sm:$0xff] %v6810_v40  ;;  %12462 = vst [vmem:[#allocation194_spill] sm:$0xff] %v6812_v34 }
 0x2d7   : > { %2169 = vbcast.lane.b32.xlu1 %v12460_v39, 272  ;;  %2173 = vbcast.lane.b32.xlu0 %v12460_v39, 280  ;;  %v12470_v39 = vld [vmem:[#allocation30_spill] sm:$0xff] }
 0x2d9   : > { %v6816_v12 = vpop.permute.xlu1 %1637  ;;  %v6818_v11 = vpop.permute.xlu0 %1641 }
 0x2da   : > { %12463 = vst [vmem:[#allocation195_spill] sm:$0xff] %v6816_v12  ;;  %12464 = vst [vmem:[#allocation196_spill] sm:$0xff] %v6818_v11 }
 0x2db   : > { %2180 = vbcast.lane.b32.xlu1 %v12465_v47, 256  ;;  %2184 = vbcast.lane.b32.xlu0 %v12465_v47, 264 }
 0x2dd   : > { %v6822_v50 = vpop.permute.xlu1 %1648  ;;  %v6824_v46 = vpop.permute.xlu0 %1652 }
 0x2de   : > { %12466 = vst [vmem:[#allocation29_spill] sm:$0xff] %v6822_v50  ;;  %12467 = vst [vmem:[#allocation197_spill] sm:$0xff] %v6824_v46 }
 0x2df   : > { %2188 = vbcast.lane.b32.xlu1 %v12465_v47, 272  ;;  %2192 = vbcast.lane.b32.xlu0 %v12465_v47, 280  ;;  %v12475_v47 = vld [vmem:[#allocation31_spill] sm:$0xff] }
 0x2e1   : > { %v6828_v34 = vpop.permute.xlu1 %1656  ;;  %v6830_v40 = vpop.permute.xlu0 %1660 }
 0x2e2   : > { %12468 = vst [vmem:[#allocation198_spill] sm:$0xff] %v6828_v34  ;;  %12469 = vst [vmem:[#allocation199_spill] sm:$0xff] %v6830_v40 }
 0x2e3   : > { %2199 = vbcast.lane.b32.xlu1 %v12470_v39, 256  ;;  %2203 = vbcast.lane.b32.xlu0 %v12470_v39, 264 }
 0x2e5   : > { %v6834_v11 = vpop.permute.xlu1 %1667  ;;  %v6836_v12 = vpop.permute.xlu0 %1671 }
 0x2e6   : > { %12471 = vst [vmem:[#allocation30_spill] sm:$0xff] %v6834_v11  ;;  %12472 = vst [vmem:[#allocation200_spill] sm:$0xff] %v6836_v12 }
 0x2e7   : > { %2207 = vbcast.lane.b32.xlu1 %v12470_v39, 272  ;;  %2211 = vbcast.lane.b32.xlu0 %v12470_v39, 280  ;;  %v12480_v39 = vld [vmem:[#allocation32_spill] sm:$0xff] }
 0x2e9   : > { %v6840_v46 = vpop.permute.xlu1 %1675  ;;  %v6842_v50 = vpop.permute.xlu0 %1679 }
 0x2ea   : > { %12473 = vst [vmem:[#allocation201_spill] sm:$0xff] %v6840_v46  ;;  %12474 = vst [vmem:[#allocation202_spill] sm:$0xff] %v6842_v50 }
 0x2eb   : > { %2218 = vbcast.lane.b32.xlu1 %v12475_v47, 256  ;;  %2222 = vbcast.lane.b32.xlu0 %v12475_v47, 264 }
 0x2ed   : > { %v6846_v40 = vpop.permute.xlu1 %1686  ;;  %v6848_v34 = vpop.permute.xlu0 %1690 }
 0x2ee   : > { %12476 = vst [vmem:[#allocation31_spill] sm:$0xff] %v6846_v40  ;;  %12477 = vst [vmem:[#allocation203_spill] sm:$0xff] %v6848_v34 }
 0x2ef   : > { %2226 = vbcast.lane.b32.xlu1 %v12475_v47, 272  ;;  %2230 = vbcast.lane.b32.xlu0 %v12475_v47, 280  ;;  %v12485_v47 = vld [vmem:[#allocation33_spill] sm:$0xff] }
 0x2f1   : > { %v6852_v12 = vpop.permute.xlu1 %1694  ;;  %v6854_v11 = vpop.permute.xlu0 %1698 }
 0x2f2   : > { %12478 = vst [vmem:[#allocation204_spill] sm:$0xff] %v6852_v12  ;;  %12479 = vst [vmem:[#allocation205_spill] sm:$0xff] %v6854_v11 }
 0x2f3   : > { %2237 = vbcast.lane.b32.xlu1 %v12480_v39, 256  ;;  %2241 = vbcast.lane.b32.xlu0 %v12480_v39, 264 }
 0x2f5   : > { %v6858_v50 = vpop.permute.xlu1 %1705  ;;  %v6860_v46 = vpop.permute.xlu0 %1709 }
 0x2f6   : > { %12481 = vst [vmem:[#allocation32_spill] sm:$0xff] %v6858_v50  ;;  %12482 = vst [vmem:[#allocation206_spill] sm:$0xff] %v6860_v46 }
 0x2f7   : > { %2245 = vbcast.lane.b32.xlu1 %v12480_v39, 272  ;;  %2249 = vbcast.lane.b32.xlu0 %v12480_v39, 280  ;;  %v12490_v39 = vld [vmem:[#allocation34_spill] sm:$0xff] }
 0x2f9   : > { %v6864_v34 = vpop.permute.xlu1 %1713  ;;  %v6866_v40 = vpop.permute.xlu0 %1717 }
 0x2fa   : > { %12483 = vst [vmem:[#allocation207_spill] sm:$0xff] %v6864_v34  ;;  %12484 = vst [vmem:[#allocation208_spill] sm:$0xff] %v6866_v40 }
 0x2fb   : > { %2256 = vbcast.lane.b32.xlu1 %v12485_v47, 256  ;;  %2260 = vbcast.lane.b32.xlu0 %v12485_v47, 264 }
 0x2fd   : > { %v6870_v11 = vpop.permute.xlu1 %1758  ;;  %v6872_v12 = vpop.permute.xlu0 %1762 }
 0x2fe   : > { %12486 = vst [vmem:[#allocation33_spill] sm:$0xff] %v6870_v11  ;;  %12487 = vst [vmem:[#allocation209_spill] sm:$0xff] %v6872_v12 }
 0x2ff   : > { %2264 = vbcast.lane.b32.xlu1 %v12485_v47, 272  ;;  %2268 = vbcast.lane.b32.xlu0 %v12485_v47, 280  ;;  %v12495_v47 = vld [vmem:[#allocation35_spill] sm:$0xff] }
 0x301   : > { %v6876_v46 = vpop.permute.xlu1 %1766  ;;  %v6878_v50 = vpop.permute.xlu0 %1770 }
 0x302   : > { %12488 = vst [vmem:[#allocation210_spill] sm:$0xff] %v6876_v46  ;;  %12489 = vst [vmem:[#allocation211_spill] sm:$0xff] %v6878_v50 }
 0x303   : > { %2275 = vbcast.lane.b32.xlu1 %v12490_v39, 256  ;;  %2279 = vbcast.lane.b32.xlu0 %v12490_v39, 264 }
 0x305   : > { %v6882_v40 = vpop.permute.xlu1 %1777  ;;  %v6884_v34 = vpop.permute.xlu0 %1781 }
 0x306   : > { %12491 = vst [vmem:[#allocation34_spill] sm:$0xff] %v6882_v40  ;;  %12492 = vst [vmem:[#allocation212_spill] sm:$0xff] %v6884_v34 }
 0x307   : > { %2283 = vbcast.lane.b32.xlu1 %v12490_v39, 272  ;;  %2287 = vbcast.lane.b32.xlu0 %v12490_v39, 280  ;;  %v12500_v39 = vld [vmem:[#allocation36_spill] sm:$0xff] }
 0x309   : > { %v6888_v12 = vpop.permute.xlu1 %1785  ;;  %v6890_v11 = vpop.permute.xlu0 %1789 }
 0x30a   : > { %12493 = vst [vmem:[#allocation213_spill] sm:$0xff] %v6888_v12  ;;  %12494 = vst [vmem:[#allocation214_spill] sm:$0xff] %v6890_v11 }
 0x30b   : > { %2328 = vbcast.lane.b32.xlu1 %v12495_v47, 256  ;;  %2332 = vbcast.lane.b32.xlu0 %v12495_v47, 264 }
 0x30d   : > { %v6894_v50 = vpop.permute.xlu1 %1796  ;;  %v6896_v46 = vpop.permute.xlu0 %1800 }
 0x30e   : > { %12496 = vst [vmem:[#allocation35_spill] sm:$0xff] %v6894_v50  ;;  %12497 = vst [vmem:[#allocation215_spill] sm:$0xff] %v6896_v46 }
 0x30f   : > { %2336 = vbcast.lane.b32.xlu1 %v12495_v47, 272  ;;  %2340 = vbcast.lane.b32.xlu0 %v12495_v47, 280  ;;  %v12505_v47 = vld [vmem:[#allocation37_spill] sm:$0xff] }
 0x311   : > { %v6900_v34 = vpop.permute.xlu1 %1804  ;;  %v6902_v40 = vpop.permute.xlu0 %1808 }
 0x312   : > { %12498 = vst [vmem:[#allocation216_spill] sm:$0xff] %v6900_v34  ;;  %12499 = vst [vmem:[#allocation217_spill] sm:$0xff] %v6902_v40 }
 0x313   : > { %2347 = vbcast.lane.b32.xlu1 %v12500_v39, 256  ;;  %2351 = vbcast.lane.b32.xlu0 %v12500_v39, 264 }
 0x315   : > { %v6906_v11 = vpop.permute.xlu1 %1815  ;;  %v6908_v12 = vpop.permute.xlu0 %1819 }
 0x316   : > { %12501 = vst [vmem:[#allocation36_spill] sm:$0xff] %v6906_v11  ;;  %12502 = vst [vmem:[#allocation218_spill] sm:$0xff] %v6908_v12 }
 0x317   : > { %2355 = vbcast.lane.b32.xlu1 %v12500_v39, 272  ;;  %2359 = vbcast.lane.b32.xlu0 %v12500_v39, 280  ;;  %v12510_v39 = vld [vmem:[#allocation38_spill] sm:$0xff] }
 0x319   : > { %v6912_v46 = vpop.permute.xlu1 %1823  ;;  %v6914_v50 = vpop.permute.xlu0 %1827 }
 0x31a   : > { %12503 = vst [vmem:[#allocation219_spill] sm:$0xff] %v6912_v46  ;;  %12504 = vst [vmem:[#allocation220_spill] sm:$0xff] %v6914_v50 }
 0x31b   : > { %2366 = vbcast.lane.b32.xlu1 %v12505_v47, 256  ;;  %2370 = vbcast.lane.b32.xlu0 %v12505_v47, 264 }
 0x31d   : > { %v6918_v40 = vpop.permute.xlu1 %1834  ;;  %v6920_v34 = vpop.permute.xlu0 %1838 }
 0x31e   : > { %12506 = vst [vmem:[#allocation37_spill] sm:$0xff] %v6918_v40  ;;  %12507 = vst [vmem:[#allocation221_spill] sm:$0xff] %v6920_v34 }
 0x31f   : > { %2374 = vbcast.lane.b32.xlu1 %v12505_v47, 272  ;;  %2378 = vbcast.lane.b32.xlu0 %v12505_v47, 280  ;;  %v12515_v47 = vld [vmem:[#allocation39_spill] sm:$0xff] }
 0x321   : > { %v6924_v12 = vpop.permute.xlu1 %1842  ;;  %v6926_v11 = vpop.permute.xlu0 %1846 }
 0x322   : > { %12508 = vst [vmem:[#allocation222_spill] sm:$0xff] %v6924_v12  ;;  %12509 = vst [vmem:[#allocation223_spill] sm:$0xff] %v6926_v11 }
 0x323   : > { %2385 = vbcast.lane.b32.xlu1 %v12510_v39, 256  ;;  %2389 = vbcast.lane.b32.xlu0 %v12510_v39, 264 }
 0x325   : > { %v6930_v50 = vpop.permute.xlu1 %1853  ;;  %v6932_v46 = vpop.permute.xlu0 %1857 }
 0x326   : > { %12511 = vst [vmem:[#allocation38_spill] sm:$0xff] %v6930_v50  ;;  %12512 = vst [vmem:[#allocation224_spill] sm:$0xff] %v6932_v46 }
 0x327   : > { %2393 = vbcast.lane.b32.xlu1 %v12510_v39, 272  ;;  %2397 = vbcast.lane.b32.xlu0 %v12510_v39, 280  ;;  %v12520_v39 = vld [vmem:[#allocation40_spill] sm:$0xff] }
 0x329   : > { %v6936_v34 = vpop.permute.xlu1 %1861  ;;  %v6938_v40 = vpop.permute.xlu0 %1865 }
 0x32a   : > { %12513 = vst [vmem:[#allocation225_spill] sm:$0xff] %v6936_v34  ;;  %12514 = vst [vmem:[#allocation226_spill] sm:$0xff] %v6938_v40 }
 0x32b   : > { %2404 = vbcast.lane.b32.xlu1 %v12515_v47, 256  ;;  %2408 = vbcast.lane.b32.xlu0 %v12515_v47, 264 }
 0x32d   : > { %v6942_v11 = vpop.permute.xlu1 %1872  ;;  %v6944_v12 = vpop.permute.xlu0 %1876 }
 0x32e   : > { %12516 = vst [vmem:[#allocation39_spill] sm:$0xff] %v6942_v11  ;;  %12517 = vst [vmem:[#allocation227_spill] sm:$0xff] %v6944_v12 }
 0x32f   : > { %2412 = vbcast.lane.b32.xlu1 %v12515_v47, 272  ;;  %2416 = vbcast.lane.b32.xlu0 %v12515_v47, 280  ;;  %v12525_v47 = vld [vmem:[#allocation41_spill] sm:$0xff] }
 0x331   : > { %v6948_v46 = vpop.permute.xlu1 %1880  ;;  %v6950_v50 = vpop.permute.xlu0 %1884 }
 0x332   : > { %12518 = vst [vmem:[#allocation228_spill] sm:$0xff] %v6948_v46  ;;  %12519 = vst [vmem:[#allocation229_spill] sm:$0xff] %v6950_v50 }
 0x333   : > { %2423 = vbcast.lane.b32.xlu1 %v12520_v39, 256  ;;  %2427 = vbcast.lane.b32.xlu0 %v12520_v39, 264 }
 0x335   : > { %v6954_v40 = vpop.permute.xlu1 %1891  ;;  %v6956_v34 = vpop.permute.xlu0 %1895 }
 0x336   : > { %12521 = vst [vmem:[#allocation40_spill] sm:$0xff] %v6954_v40  ;;  %12522 = vst [vmem:[#allocation230_spill] sm:$0xff] %v6956_v34 }
 0x337   : > { %2431 = vbcast.lane.b32.xlu1 %v12520_v39, 272  ;;  %2435 = vbcast.lane.b32.xlu0 %v12520_v39, 280  ;;  %v12530_v39 = vld [vmem:[#allocation42_spill] sm:$0xff] }
 0x339   : > { %v6960_v12 = vpop.permute.xlu1 %1899  ;;  %v6962_v11 = vpop.permute.xlu0 %1903 }
 0x33a   : > { %12523 = vst [vmem:[#allocation231_spill] sm:$0xff] %v6960_v12  ;;  %12524 = vst [vmem:[#allocation232_spill] sm:$0xff] %v6962_v11 }
 0x33b   : > { %2442 = vbcast.lane.b32.xlu1 %v12525_v47, 256  ;;  %2446 = vbcast.lane.b32.xlu0 %v12525_v47, 264 }
 0x33d   : > { %v6966_v50 = vpop.permute.xlu1 %2142  ;;  %v6968_v46 = vpop.permute.xlu0 %2146 }
 0x33e   : > { %12526 = vst [vmem:[#allocation41_spill] sm:$0xff] %v6966_v50  ;;  %12527 = vst [vmem:[#allocation233_spill] sm:$0xff] %v6968_v46 }
 0x33f   : > { %2450 = vbcast.lane.b32.xlu1 %v12525_v47, 272  ;;  %2454 = vbcast.lane.b32.xlu0 %v12525_v47, 280  ;;  %v12535_v47 = vld [vmem:[#allocation43_spill] sm:$0xff] }
 0x341   : > { %v6972_v34 = vpop.permute.xlu1 %2150  ;;  %v6974_v40 = vpop.permute.xlu0 %2154 }
 0x342   : > { %12528 = vst [vmem:[#allocation234_spill] sm:$0xff] %v6972_v34  ;;  %12529 = vst [vmem:[#allocation235_spill] sm:$0xff] %v6974_v40 }
 0x343   : > { %2461 = vbcast.lane.b32.xlu1 %v12530_v39, 256  ;;  %2465 = vbcast.lane.b32.xlu0 %v12530_v39, 264 }
 0x345   : > { %v6978_v11 = vpop.permute.xlu1 %2161  ;;  %v6980_v12 = vpop.permute.xlu0 %2165 }
 0x346   : > { %12531 = vst [vmem:[#allocation42_spill] sm:$0xff] %v6978_v11  ;;  %12532 = vst [vmem:[#allocation236_spill] sm:$0xff] %v6980_v12 }
 0x347   : > { %2469 = vbcast.lane.b32.xlu1 %v12530_v39, 272  ;;  %2473 = vbcast.lane.b32.xlu0 %v12530_v39, 280  ;;  %v12540_v39 = vld [vmem:[#allocation44_spill] sm:$0xff] }
 0x349   : > { %v6984_v46 = vpop.permute.xlu1 %2169  ;;  %v6986_v50 = vpop.permute.xlu0 %2173 }
 0x34a   : > { %12533 = vst [vmem:[#allocation237_spill] sm:$0xff] %v6984_v46  ;;  %12534 = vst [vmem:[#allocation238_spill] sm:$0xff] %v6986_v50 }
 0x34b   : > { %2712 = vbcast.lane.b32.xlu1 %v12535_v47, 256  ;;  %2716 = vbcast.lane.b32.xlu0 %v12535_v47, 264 }
 0x34d   : > { %v6990_v40 = vpop.permute.xlu1 %2180  ;;  %v6992_v34 = vpop.permute.xlu0 %2184 }
 0x34e   : > { %12536 = vst [vmem:[#allocation43_spill] sm:$0xff] %v6990_v40  ;;  %12537 = vst [vmem:[#allocation239_spill] sm:$0xff] %v6992_v34 }
 0x34f   : > { %2720 = vbcast.lane.b32.xlu1 %v12535_v47, 272  ;;  %2724 = vbcast.lane.b32.xlu0 %v12535_v47, 280  ;;  %v12545_v47 = vld [vmem:[#allocation45_spill] sm:$0xff] }
 0x351   : > { %v6996_v12 = vpop.permute.xlu1 %2188  ;;  %v6998_v11 = vpop.permute.xlu0 %2192 }
 0x352   : > { %12538 = vst [vmem:[#allocation240_spill] sm:$0xff] %v6996_v12  ;;  %12539 = vst [vmem:[#allocation241_spill] sm:$0xff] %v6998_v11 }
 0x353   : > { %2731 = vbcast.lane.b32.xlu1 %v12540_v39, 256  ;;  %2735 = vbcast.lane.b32.xlu0 %v12540_v39, 264 }
 0x355   : > { %v7002_v50 = vpop.permute.xlu1 %2199  ;;  %v7004_v46 = vpop.permute.xlu0 %2203 }
 0x356   : > { %12541 = vst [vmem:[#allocation44_spill] sm:$0xff] %v7002_v50  ;;  %12542 = vst [vmem:[#allocation242_spill] sm:$0xff] %v7004_v46 }
 0x357   : > { %2739 = vbcast.lane.b32.xlu1 %v12540_v39, 272  ;;  %2743 = vbcast.lane.b32.xlu0 %v12540_v39, 280  ;;  %v12550_v39 = vld [vmem:[#allocation46_spill] sm:$0xff] }
 0x359   : > { %v7008_v34 = vpop.permute.xlu1 %2207  ;;  %v7010_v40 = vpop.permute.xlu0 %2211 }
 0x35a   : > { %12543 = vst [vmem:[#allocation243_spill] sm:$0xff] %v7008_v34  ;;  %12544 = vst [vmem:[#allocation244_spill] sm:$0xff] %v7010_v40 }
 0x35b   : > { %2750 = vbcast.lane.b32.xlu1 %v12545_v47, 256  ;;  %2754 = vbcast.lane.b32.xlu0 %v12545_v47, 264 }
 0x35d   : > { %v7014_v11 = vpop.permute.xlu1 %2218  ;;  %v7016_v12 = vpop.permute.xlu0 %2222 }
 0x35e   : > { %12546 = vst [vmem:[#allocation45_spill] sm:$0xff] %v7014_v11  ;;  %12547 = vst [vmem:[#allocation245_spill] sm:$0xff] %v7016_v12 }
 0x35f   : > { %2758 = vbcast.lane.b32.xlu1 %v12545_v47, 272  ;;  %2762 = vbcast.lane.b32.xlu0 %v12545_v47, 280  ;;  %v12555_v47 = vld [vmem:[#allocation47_spill] sm:$0xff] }
 0x361   : > { %v7020_v46 = vpop.permute.xlu1 %2226  ;;  %v7022_v50 = vpop.permute.xlu0 %2230 }
 0x362   : > { %12548 = vst [vmem:[#allocation246_spill] sm:$0xff] %v7020_v46  ;;  %12549 = vst [vmem:[#allocation247_spill] sm:$0xff] %v7022_v50 }
 0x363   : > { %2769 = vbcast.lane.b32.xlu1 %v12550_v39, 256  ;;  %2773 = vbcast.lane.b32.xlu0 %v12550_v39, 264 }
 0x365   : > { %v7026_v40 = vpop.permute.xlu1 %2237  ;;  %v7028_v34 = vpop.permute.xlu0 %2241 }
 0x366   : > { %12551 = vst [vmem:[#allocation46_spill] sm:$0xff] %v7026_v40  ;;  %12552 = vst [vmem:[#allocation248_spill] sm:$0xff] %v7028_v34 }
 0x367   : > { %2777 = vbcast.lane.b32.xlu1 %v12550_v39, 272  ;;  %2781 = vbcast.lane.b32.xlu0 %v12550_v39, 280  ;;  %v12560_v39 = vld [vmem:[#allocation48_spill] sm:$0xff] }
 0x369   : > { %v7032_v12 = vpop.permute.xlu1 %2245  ;;  %v7034_v11 = vpop.permute.xlu0 %2249 }
 0x36a   : > { %12553 = vst [vmem:[#allocation249_spill] sm:$0xff] %v7032_v12  ;;  %12554 = vst [vmem:[#allocation250_spill] sm:$0xff] %v7034_v11 }
 0x36b   : > { %2788 = vbcast.lane.b32.xlu1 %v12555_v47, 256  ;;  %2792 = vbcast.lane.b32.xlu0 %v12555_v47, 264 }
 0x36d   : > { %v7038_v50 = vpop.permute.xlu1 %2256  ;;  %v7040_v46 = vpop.permute.xlu0 %2260 }
 0x36e   : > { %12556 = vst [vmem:[#allocation47_spill] sm:$0xff] %v7038_v50  ;;  %12557 = vst [vmem:[#allocation251_spill] sm:$0xff] %v7040_v46 }
 0x36f   : > { %2796 = vbcast.lane.b32.xlu1 %v12555_v47, 272  ;;  %2800 = vbcast.lane.b32.xlu0 %v12555_v47, 280  ;;  %v12565_v47 = vld [vmem:[#allocation49_spill] sm:$0xff] }
 0x371   : > { %v7044_v34 = vpop.permute.xlu1 %2264  ;;  %v7046_v40 = vpop.permute.xlu0 %2268 }
 0x372   : > { %12558 = vst [vmem:[#allocation252_spill] sm:$0xff] %v7044_v34  ;;  %12559 = vst [vmem:[#allocation253_spill] sm:$0xff] %v7046_v40 }
 0x373   : > { %2807 = vbcast.lane.b32.xlu1 %v12560_v39, 256  ;;  %2811 = vbcast.lane.b32.xlu0 %v12560_v39, 264 }
 0x375   : > { %v7050_v11 = vpop.permute.xlu1 %2275  ;;  %v7052_v12 = vpop.permute.xlu0 %2279 }
 0x376   : > { %12561 = vst [vmem:[#allocation48_spill] sm:$0xff] %v7050_v11  ;;  %12562 = vst [vmem:[#allocation254_spill] sm:$0xff] %v7052_v12 }
 0x377   : > { %2815 = vbcast.lane.b32.xlu1 %v12560_v39, 272  ;;  %2819 = vbcast.lane.b32.xlu0 %v12560_v39, 280  ;;  %v12570_v39 = vld [vmem:[#allocation50_spill] sm:$0xff] }
 0x379   : > { %v7056_v46 = vpop.permute.xlu1 %2283  ;;  %v7058_v50 = vpop.permute.xlu0 %2287 }
 0x37a   : > { %12563 = vst [vmem:[#allocation255_spill] sm:$0xff] %v7056_v46  ;;  %12564 = vst [vmem:[#allocation256_spill] sm:$0xff] %v7058_v50 }
 0x37b   : > { %2826 = vbcast.lane.b32.xlu1 %v12565_v47, 256  ;;  %2830 = vbcast.lane.b32.xlu0 %v12565_v47, 264 }
 0x37d   : > { %v7062_v40 = vpop.permute.xlu1 %2328  ;;  %v7064_v34 = vpop.permute.xlu0 %2332 }
 0x37e   : > { %12566 = vst [vmem:[#allocation49_spill] sm:$0xff] %v7062_v40  ;;  %12567 = vst [vmem:[#allocation257_spill] sm:$0xff] %v7064_v34 }
 0x37f   : > { %2834 = vbcast.lane.b32.xlu1 %v12565_v47, 272  ;;  %2838 = vbcast.lane.b32.xlu0 %v12565_v47, 280  ;;  %v12575_v47 = vld [vmem:[#allocation51_spill] sm:$0xff] }
 0x381   : > { %v7068_v12 = vpop.permute.xlu1 %2336  ;;  %v7070_v11 = vpop.permute.xlu0 %2340 }
 0x382   : > { %12568 = vst [vmem:[#allocation258_spill] sm:$0xff] %v7068_v12  ;;  %12569 = vst [vmem:[#allocation259_spill] sm:$0xff] %v7070_v11 }
 0x383   : > { %2845 = vbcast.lane.b32.xlu1 %v12570_v39, 256  ;;  %2849 = vbcast.lane.b32.xlu0 %v12570_v39, 264 }
 0x385   : > { %v7074_v50 = vpop.permute.xlu1 %2347  ;;  %v7076_v46 = vpop.permute.xlu0 %2351 }
 0x386   : > { %12571 = vst [vmem:[#allocation50_spill] sm:$0xff] %v7074_v50  ;;  %12572 = vst [vmem:[#allocation260_spill] sm:$0xff] %v7076_v46 }
 0x387   : > { %2853 = vbcast.lane.b32.xlu1 %v12570_v39, 272  ;;  %2857 = vbcast.lane.b32.xlu0 %v12570_v39, 280  ;;  %v12580_v39 = vld [vmem:[#allocation52_spill] sm:$0xff] }
 0x389   : > { %v7080_v34 = vpop.permute.xlu1 %2355  ;;  %v7082_v40 = vpop.permute.xlu0 %2359 }
 0x38a   : > { %12573 = vst [vmem:[#allocation261_spill] sm:$0xff] %v7080_v34  ;;  %12574 = vst [vmem:[#allocation262_spill] sm:$0xff] %v7082_v40 }
 0x38b   : > { %2898 = vbcast.lane.b32.xlu1 %v12575_v47, 256  ;;  %2902 = vbcast.lane.b32.xlu0 %v12575_v47, 264 }
 0x38d   : > { %v7086_v11 = vpop.permute.xlu1 %2366  ;;  %v7088_v12 = vpop.permute.xlu0 %2370 }
 0x38e   : > { %12576 = vst [vmem:[#allocation51_spill] sm:$0xff] %v7086_v11  ;;  %12577 = vst [vmem:[#allocation263_spill] sm:$0xff] %v7088_v12 }
 0x38f   : > { %2906 = vbcast.lane.b32.xlu1 %v12575_v47, 272  ;;  %2910 = vbcast.lane.b32.xlu0 %v12575_v47, 280  ;;  %v12585_v47 = vld [vmem:[#allocation53_spill] sm:$0xff] }
 0x391   : > { %v7092_v46 = vpop.permute.xlu1 %2374  ;;  %v7094_v50 = vpop.permute.xlu0 %2378 }
 0x392   : > { %12578 = vst [vmem:[#allocation264_spill] sm:$0xff] %v7092_v46  ;;  %12579 = vst [vmem:[#allocation265_spill] sm:$0xff] %v7094_v50 }
 0x393   : > { %2917 = vbcast.lane.b32.xlu1 %v12580_v39, 256  ;;  %2921 = vbcast.lane.b32.xlu0 %v12580_v39, 264 }
 0x395   : > { %v7098_v40 = vpop.permute.xlu1 %2385  ;;  %v7100_v34 = vpop.permute.xlu0 %2389 }
 0x396   : > { %12581 = vst [vmem:[#allocation52_spill] sm:$0xff] %v7098_v40  ;;  %12582 = vst [vmem:[#allocation266_spill] sm:$0xff] %v7100_v34  ;;  %v12588_v34 = vlaneseq }
 0x397   : > { %2925 = vbcast.lane.b32.xlu1 %v12580_v39, 272  ;;  %2929 = vbcast.lane.b32.xlu0 %v12580_v39, 280 }
 0x398   : > { %v616_v40 = vand.u32 127, %v12588_v34 }
 0x399   : > { %v7104_v12 = vpop.permute.xlu1 %2393  ;;  %v7106_v11 = vpop.permute.xlu0 %2397 }
 0x39a   : > { %12583 = vst [vmem:[#allocation267_spill] sm:$0xff] %v7104_v12  ;;  %12584 = vst [vmem:[#allocation268_spill] sm:$0xff] %v7106_v11  ;;  %v12591_v12 = vld [vmem:[#allocation54_spill] sm:$0xff]  ;;  %v617_v11 = vand.u32 1, %v616_v40  ;;  %v1564_v32 = vshra.s32 %v616_v40, 2  ;;  %v2134_v35 = vshra.s32 %v616_v40, 3 }
 0x39b   : > { %2936 = vbcast.lane.b32.xlu1 %v12585_v47, 256  ;;  %2940 = vbcast.lane.b32.xlu0 %v12585_v47, 264  ;;  %v2704_v21 = vshra.s32 %v616_v40, 4  ;;  %v3274_v34 = vshra.s32 %v616_v40, 5 }
 0x39c   : > { %vm7129_vm1 = vcmp.eq.s32.totalorder %v617_v11, 1  ;;  %v7141_v9 = vand.u32 1, %v2134_v35 }
 0x39d   : > { %v7110_v50 = vpop.permute.xlu1 %2404  ;;  %v7112_v46 = vpop.permute.xlu0 %2408  ;;  %v7143_v18 = vand.u32 1, %v2704_v21  ;;  %v7153_v11 = vsel %vm7129_vm1, %v6390_v54, 1.0  ;;  %v7164_v21 = vsel %vm7129_vm1, %v6396_v26, 1.0  ;;  %v7169_v35 = vsel %vm7129_vm1, %v6398_v27, 1.0 }
 0x39e   : > { %12586 = vst [vmem:[#allocation53_spill] sm:$0xff] %v7110_v50  ;;  %12587 = vst [vmem:[#allocation269_spill] sm:$0xff] %v7112_v46  ;;  %v994_v46 = vshra.s32 %v616_v40, 1  ;;  %v7174_v54 = vsel %vm7129_vm1, %v6402_v30, 1.0  ;;  %v7186_v26 = vsel %vm7129_vm1, %v6408_v5, 1.0  ;;  %v7191_v27 = vsel %vm7129_vm1, %v6410_v41, 1.0 }
 0x39f   : > { %2944 = vbcast.lane.b32.xlu1 %v12585_v47, 272  ;;  %2948 = vbcast.lane.b32.xlu0 %v12585_v47, 280  ;;  %v3844_v47 = vshra.s32 %v616_v40, 6  ;;  %12599 = vst [vmem:[#allocation276_spill] sm:$0xff] %v7141_v9  ;;  %12600 = vst [vmem:[#allocation277_spill] sm:$0xff] %v7143_v18  ;;  %v7146_v40 = vand.u32 1, %v3274_v34 }
 0x3a0   : > { %v7196_v30 = vsel %vm7129_vm1, %v6414_v42, 1.0  ;;  %v7209_v5 = vsel %vm7129_vm1, %v6420_v17, 1.0  ;;  %v7214_v41 = vsel %vm7129_vm1, %v6422_v37, 1.0  ;;  %v7219_v42 = vsel %vm7129_vm1, %v6426_v48, 1.0  ;;  %v12631_v18 = vld [vmem:[#allocation111_spill] sm:$0xff] }
 0x3a1   : > { %v7117_v33 = vpop.permute.xlu1 %2412  ;;  %v7119_v39 = vpop.permute.xlu0 %2416  ;;  %12602 = vst [vmem:[#allocation55_spill] sm:$0xff] %v7146_v40  ;;  %12608 = vst [vmem:[#allocation283_spill] sm:$0xff] %v7209_v5  ;;  %v7230_v17 = vsel %vm7129_vm1, %v6432_v1, 1.0  ;;  %v7235_v37 = vsel %vm7129_vm1, %v6434_v61, 1.0  ;;  %v7240_v48 = vsel %vm7129_vm1, %v6438_v49, 1.0  ;;  %v7251_v1 = vsel %vm7129_vm1, %v6444_v23, 1.0 }
 0x3a2   : > { %12589 = vst [vmem:[#allocation270_spill] sm:$0xff] %v7117_v33  ;;  %12590 = vst [vmem:[#allocation271_spill] sm:$0xff] %v7119_v39  ;;  %v7256_v61 = vsel %vm7129_vm1, %v6446_v56, 1.0  ;;  %v7261_v49 = vsel %vm7129_vm1, %v6450_v59, 1.0  ;;  %v7273_v23 = vsel %vm7129_vm1, %v6456_v44, 1.0  ;;  %v7278_v56 = vsel %vm7129_vm1, %v6458_v25, 1.0 }
 0x3a3   : > { %2955 = vbcast.lane.b32.xlu1 %v12591_v12, 256  ;;  %2959 = vbcast.lane.b32.xlu0 %v12591_v12, 264  ;;  %12609 = vst [vmem:[#allocation284_spill] sm:$0xff] %v7240_v48  ;;  %12610 = vst [vmem:[#allocation285_spill] sm:$0xff] %v7261_v49  ;;  %v7283_v59 = vsel %vm7129_vm1, %v6462_v55, 1.0  ;;  %v7295_v44 = vsel %vm7129_vm1, %v6468_v51, 1.0 }
 0x3a4   : > { %12613 = vst [vmem:[#allocation288_spill] sm:$0xff] %v7273_v23  ;;  %12614 = vst [vmem:[#allocation289_spill] sm:$0xff] %v7278_v56  ;;  %v7300_v25 = vsel %vm7129_vm1, %v6470_v52, 1.0  ;;  %v7305_v55 = vsel %vm7129_vm1, %v6474_v6, 1.0  ;;  %v7316_v51 = vsel %vm7129_vm1, %v6480_v28, 1.0  ;;  %v7321_v52 = vsel %vm7129_vm1, %v6482_v13, 1.0 }
 0x3a5   : > { %v7123_v22 = vpop.permute.xlu1 %2423  ;;  %v7125_v50 = vpop.permute.xlu0 %2427  ;;  %12615 = vst [vmem:[#allocation290_spill] sm:$0xff] %v7283_v59  ;;  %12618 = vst [vmem:[#allocation293_spill] sm:$0xff] %v7295_v44  ;;  %v7326_v6 = vsel %vm7129_vm1, %v6486_v60, 0.0  ;;  %v7337_v28 = vsel %vm7129_vm1, %v6492_v36, 0.0  ;;  %v7342_v13 = vsel %vm7129_vm1, %v6494_v38, 0.0  ;;  %v7347_v60 = vsel %vm7129_vm1, %v6498_v62, 0.0 }
 0x3a6   : > { %12592 = vst [vmem:[#allocation54_spill] sm:$0xff] %v7123_v22  ;;  %12593 = vst [vmem:[#allocation272_spill] sm:$0xff] %v7125_v50  ;;  %v7137_v22 = vand.u32 1, %v994_v46  ;;  %v7139_v50 = vand.u32 1, %v1564_v32  ;;  %v7158_v32 = vsel %vm7129_vm1, %v6392_v14, 1.0  ;;  %v7179_v14 = vsel %vm7129_vm1, %v6404_v31, 1.0 }
 0x3a7   : > { %2963 = vbcast.lane.b32.xlu1 %v12591_v12, 272  ;;  %2967 = vbcast.lane.b32.xlu0 %v12591_v12, 280  ;;  %v7148_v12 = vand.u32 1, %v3844_v47  ;;  %12604 = vst [vmem:[#allocation279_spill] sm:$0xff] %v7158_v32  ;;  %v7201_v31 = vsel %vm7129_vm1, %v6416_v45, 1.0  ;;  %v7224_v45 = vsel %vm7129_vm1, %v6428_v57, 1.0 }
 0x3a8   : > { %12598 = vst [vmem:[#allocation275_spill] sm:$0xff] %v7139_v50  ;;  %12606 = vst [vmem:[#allocation281_spill] sm:$0xff] %v7201_v31  ;;  %vm996_vm2 = vcmp.eq.s32.totalorder %v7137_v22, 1  ;;  %v7245_v57 = vsel %vm7129_vm1, %v6440_v58, 1.0  ;;  %v7266_v58 = vsel %vm7129_vm1, %v6452_v53, 1.0  ;;  %v7288_v53 = vsel %vm7129_vm1, %v6464_v0, 1.0 }
 0x3a9   : > { %v7133_v33 = vpop.permute.xlu1 %2431  ;;  %v7135_v20 = vpop.permute.xlu0 %2435  ;;  %12603 = vst [vmem:[#allocation278_spill] sm:$0xff] %v7148_v12  ;;  %12611 = vst [vmem:[#allocation286_spill] sm:$0xff] %v7266_v58  ;;  %v7310_v0 = vsel %vm7129_vm1, %v6476_v8, 1.0  ;;  %v12622_v12 = vld [vmem:[#allocation56_spill] sm:$0xff]  ;;  %v7331_v8 = vsel %vm7129_vm1, %v6488_v43, 0.0  ;;  %v7352_v43 = vsel %vm7129_vm1, %v6500_v10, 0.0 }
 0x3aa   : > { %12596 = vst [vmem:[#allocation273_spill] sm:$0xff] %v7133_v33  ;;  %12597 = vst [vmem:[#allocation274_spill] sm:$0xff] %v7135_v20  ;;  %v7359_v36 = vsel %vm7129_vm1, %v6504_v24, 0.0  ;;  %v7381_v24 = vsel %vm7129_vm1, %v6516_v16, 0.0  ;;  %v12632_v20 = vld [vmem:[#allocation112_spill] sm:$0xff]  ;;  %v7402_v16 = vsel %vm7129_vm1, %v6528_v29, 0.0 }
 0x3ab   : > { %2974 = vbcast.lane.b32.xlu1 %v12601_v15, 256  ;;  %2978 = vbcast.lane.b32.xlu0 %v12601_v15, 264  ;;  %12616 = vst [vmem:[#allocation291_spill] sm:$0xff] %v7288_v53  ;;  %12619 = vst [vmem:[#allocation294_spill] sm:$0xff] %v7300_v25  ;;  %v12634_v33 = vld [vmem:[#allocation114_spill] sm:$0xff]  ;;  %v12635_v9 = vld [vmem:[#allocation115_spill] sm:$0xff] }
 0x3ac   : > { %12620 = vst [vmem:[#allocation295_spill] sm:$0xff] %v7305_v55  ;;  %12621 = vst [vmem:[#allocation296_spill] sm:$0xff] %v7310_v0  ;;  %v7423_v29 = vsel %vm7129_vm1, %v6540_v63, 0.0  ;;  %v12636_v50 = vld [vmem:[#allocation116_spill] sm:$0xff]  ;;  %v7445_v63 = vsel %vm7129_vm1, %v6552_v4, 0.0  ;;  %v12642_v0 = vld [vmem:[#allocation119_spill] sm:$0xff] }
 0x3ad   : > { %v7181_v46 = vpop.permute.xlu1 %2442  ;;  %v7203_v34 = vpop.permute.xlu0 %2446  ;;  %12623 = vst [vmem:[#allocation56_spill] sm:$0xff] %v7316_v51  ;;  %12624 = vst [vmem:[#allocation297_spill] sm:$0xff] %v7321_v52  ;;  %v12637_v52 = vld [vmem:[#allocation117_spill] sm:$0xff]  ;;  %v12638_v51 = vld [vmem:[#allocation118_spill] sm:$0xff] }
 0x3ae   : > { %12605 = vst [vmem:[#allocation280_spill] sm:$0xff] %v7181_v46  ;;  %12607 = vst [vmem:[#allocation282_spill] sm:$0xff] %v7203_v34  ;;  %v12628_v34 = vld [vmem:[#allocation109_spill] sm:$0xff]  ;;  %v12630_v46 = vld [vmem:[#allocation110_spill] sm:$0xff] }
 0x3af   : > { %2982 = vbcast.lane.b32.xlu1 %v12601_v15, 272  ;;  %2986 = vbcast.lane.b32.xlu0 %v12601_v15, 280  ;;  %v7374_v10 = vsel %vm7129_vm1, %v12628_v34, 0.0  ;;  %v7396_v34 = vsel %vm7129_vm1, %v12632_v20, 0.0  ;;  %v7417_v20 = vsel %vm7129_vm1, %v12635_v9, 0.0  ;;  %v7438_v9 = vsel %vm7129_vm1, %v12638_v51, 0.0 }
 0x3b0   : > { %12641 = vst [vmem:[#allocation110_spill] sm:$0xff] %v7445_v63  ;;  %v12644_v55 = vld [vmem:[#allocation120_spill] sm:$0xff]  ;;  %v1151_v51 = vsel %vm996_vm2, %v6582_v19, 1.0  ;;  %v12647_v25 = vld [vmem:[#allocation121_spill] sm:$0xff]  ;;  %v12650_v44 = vld [vmem:[#allocation122_spill] sm:$0xff] }
 0x3b1   : > { %v7268_v15 = vpop.permute.xlu1 %2450  ;;  %v7290_v47 = vpop.permute.xlu0 %2454  ;;  %v7465_v4 = vsel %vm7129_vm1, %v12647_v25, 0.0  ;;  %v12652_v53 = vld [vmem:[#allocation127_spill] sm:$0xff] }
 0x3b2   : > { %12612 = vst [vmem:[#allocation287_spill] sm:$0xff] %v7268_v15  ;;  %12617 = vst [vmem:[#allocation292_spill] sm:$0xff] %v7290_v47  ;;  %v12626_v47 = vld [vmem:[#allocation107_spill] sm:$0xff]  ;;  %v12627_v15 = vld [vmem:[#allocation108_spill] sm:$0xff]  ;;  %v1152_v19 = vsel %vm996_vm2, %v12652_v53, 1.0  ;;  %v1153_v53 = vsel %vm996_vm2, %v6588_v7, 1.0  ;;  %v7517_v7 = vmul.f32 %v1151_v51, %v7326_v6 }
 0x3b3   : > { %2993 = vbcast.lane.b32.xlu1 %v12622_v12, 256  ;;  %2997 = vbcast.lane.b32.xlu0 %v12622_v12, 264  ;;  %v7364_v38 = vsel %vm7129_vm1, %v12626_v47, 0.0  ;;  %v7369_v62 = vsel %vm7129_vm1, %v12627_v15, 0.0  ;;  %v7386_v47 = vsel %vm7129_vm1, %v12630_v46, 0.0  ;;  %v7391_v15 = vsel %vm7129_vm1, %v12631_v18, 0.0 }
 0x3b4   : > { %v7412_v18 = vsel %vm7129_vm1, %v12634_v33, 0.0  ;;  %v7433_v33 = vsel %vm7129_vm1, %v12637_v52, 0.0  ;;  %12639 = vst [vmem:[#allocation108_spill] sm:$0xff] %v7438_v9  ;;  %v7455_v52 = vsel %vm7129_vm1, %v12644_v55, 0.0  ;;  %12648 = vst [vmem:[#allocation114_spill] sm:$0xff] %v7465_v4  ;;  %v7475_v55 = vsel %vm7129_vm1, %v12650_v44, 0.0 }
 0x3b5   : > { %v7354_v40 = vpop.permute.xlu1 %2461  ;;  %12645 = vst [vmem:[#allocation112_spill] sm:$0xff] %v7455_v52  ;;  %12651 = vst [vmem:[#allocation116_spill] sm:$0xff] %v7475_v55  ;;  %v12654_v52 = vld [vmem:[#allocation123_spill] sm:$0xff]  ;;  %v12656_v4 = vld [vmem:[#allocation124_spill] sm:$0xff]  ;;  %v7520_v39 = vmul.f32 %v1152_v19, %v7153_v11 }
 0x3b6   : > { %12625 = vst [vmem:[#allocation298_spill] sm:$0xff] %v7354_v40  ;;  %v7376_v40 = vpop.permute.xlu0 %2465  ;;  %v7484_v25 = vsel %vm7129_vm1, %v12654_v52, 0.0  ;;  %v12660_v55 = vld [vmem:[#allocation126_spill] sm:$0xff] }
 0x3b7   : > { %12629 = vst [vmem:[#allocation107_spill] sm:$0xff] %v7376_v40  ;;  %3001 = vbcast.lane.b32.xlu1 %v12622_v12, 272  ;;  %v12633_v40 = vld [vmem:[#allocation113_spill] sm:$0xff]  ;;  %3005 = vbcast.lane.b32.xlu0 %v12622_v12, 280  ;;  %12655 = vst [vmem:[#allocation117_spill] sm:$0xff] %v7484_v25  ;;  %v7503_v52 = vsel %vm7129_vm1, %v12660_v55, 0.0  ;;  %v7506_v25 = vmul.f32 %v1151_v51, %v7158_v32  ;;  %v7523_v55 = vmul.f32 %v1152_v19, %v7331_v8 }
 0x3b8   : > { %v7407_v46 = vsel %vm7129_vm1, %v12633_v40, 0.0  ;;  %v7428_v40 = vsel %vm7129_vm1, %v12636_v50, 0.0  ;;  %v7450_v50 = vsel %vm7129_vm1, %v12642_v0, 0.0  ;;  %v7470_v0 = vsel %vm7129_vm1, %v6564_v2, 0.0  ;;  %12661 = vst [vmem:[#allocation120_spill] sm:$0xff] %v7503_v52 }
 0x3b9   : > { %v7440_v12 = vpop.permute.xlu1 %2469  ;;  %12643 = vst [vmem:[#allocation111_spill] sm:$0xff] %v7450_v50  ;;  %12649 = vst [vmem:[#allocation115_spill] sm:$0xff] %v7470_v0  ;;  %v7489_v2 = vsel %vm7129_vm1, %v12656_v4, 0.0  ;;  %v12658_v0 = vld [vmem:[#allocation125_spill] sm:$0xff]  ;;  %v12663_v4 = vld [vmem:[#allocation128_spill] sm:$0xff]  ;;  %v7531_v32 = vmul.f32 %v1153_v53, %v7164_v21  ;;  %v1157_v51 = vsel %vm996_vm2, %v6600_v3, 1.0 }
 0x3ba   : > { %12640 = vst [vmem:[#allocation109_spill] sm:$0xff] %v7440_v12  ;;  %v7460_v12 = vpop.permute.xlu0 %2473  ;;  %12657 = vst [vmem:[#allocation118_spill] sm:$0xff] %v7489_v2  ;;  %v7494_v44 = vsel %vm7129_vm1, %v12658_v0, 0.0  ;;  %v1154_v2 = vsel %vm996_vm2, %v12663_v4, 1.0  ;;  %v12664_v0 = vld [vmem:[#allocation129_spill] sm:$0xff] }
 0x3bb   : > { %12646 = vst [vmem:[#allocation113_spill] sm:$0xff] %v7460_v12  ;;  %v12653_v12 = vld [vmem:[#allocation57_spill] sm:$0xff]  ;;  %12659 = vst [vmem:[#allocation119_spill] sm:$0xff] %v7494_v44  ;;  %v1155_v44 = vsel %vm996_vm2, %v12664_v0, 1.0  ;;  %v7534_v0 = vmul.f32 %v1153_v53, %v7337_v28  ;;  %v12675_v53 = vld [vmem:[#allocation132_spill] sm:$0xff] }
 0x3bc   : > { %3012 = vbcast.lane.b32.xlu1 %v12653_v12, 256  ;;  %3016 = vbcast.lane.b32.xlu0 %v12653_v12, 264  ;;  %12662 = vst [vmem:[#allocation121_spill] sm:$0xff] %v7506_v25  ;;  %12666 = vst [vmem:[#allocation127_spill] sm:$0xff] %v7523_v55  ;;  %v12667_v25 = vld [vmem:[#allocation130_spill] sm:$0xff]  ;;  %v7557_v3 = vmul.f32 %v1155_v44, %v7347_v60  ;;  %v7571_v55 = vmul.f32 %v1157_v51, %v7186_v26 }
 0x3bd   : > { %v7514_v59 = vpop.permute.xlu1 %2712  ;;  %v1156_v52 = vsel %vm996_vm2, %v12667_v25, 1.0  ;;  %12669 = vst [vmem:[#allocation123_spill] sm:$0xff] %v7531_v32  ;;  %12670 = vst [vmem:[#allocation124_spill] sm:$0xff] %v7534_v0  ;;  %v7544_v25 = vmul.f32 %v1154_v2, %v7169_v35  ;;  %v7550_v32 = vmul.f32 %v1155_v44, %v7174_v54  ;;  %v1159_v0 = vsel %vm996_vm2, %v12675_v53, 1.0  ;;  %v12683_v53 = vld [vmem:[#allocation134_spill] sm:$0xff] }
 0x3be   : > { %12665 = vst [vmem:[#allocation122_spill] sm:$0xff] %v7514_v59  ;;  %v7528_v4 = vpop.permute.xlu0 %2716  ;;  %v12671_v59 = vld [vmem:[#allocation131_spill] sm:$0xff]  ;;  %12680 = vst [vmem:[#allocation132_spill] sm:$0xff] %v7571_v55  ;;  %v12689_v55 = vld [vmem:[#allocation58_spill] sm:$0xff] }
 0x3bf   : > { %12668 = vst [vmem:[#allocation57_spill] sm:$0xff] %v7528_v4  ;;  %v1158_v19 = vsel %vm996_vm2, %v12671_v59, 1.0  ;;  %12672 = vst [vmem:[#allocation125_spill] sm:$0xff] %v7544_v25  ;;  %v7547_v4 = vmul.f32 %v1154_v2, %v7342_v13  ;;  %v7560_v59 = vmul.f32 %v1156_v52, %v7179_v14  ;;  %v7563_v25 = vmul.f32 %v1156_v52, %v7352_v43  ;;  %v12678_v2 = vld [vmem:[#allocation133_spill] sm:$0xff] }
 0x3c0   : > { %3020 = vbcast.lane.b32.xlu1 %v12653_v12, 272  ;;  %12674 = vst [vmem:[#allocation128_spill] sm:$0xff] %v7550_v32  ;;  %3024 = vbcast.lane.b32.xlu0 %v12653_v12, 280  ;;  %v7574_v12 = vmul.f32 %v1157_v51, %v7359_v36  ;;  %v7577_v44 = vmul.f32 %v1158_v19, %v7191_v27  ;;  %v1161_v52 = vsel %vm996_vm2, %v12683_v53, 1.0 }
 0x3c1   : > { %12673 = vst [vmem:[#allocation126_spill] sm:$0xff] %v7547_v4  ;;  %12676 = vst [vmem:[#allocation129_spill] sm:$0xff] %v7560_v59  ;;  %v1160_v4 = vsel %vm996_vm2, %v12678_v2, 1.0  ;;  %v7568_v32 = vpop.permute.xlu1 %2720  ;;  %v7585_v59 = vmul.f32 %v1158_v19, %v7364_v38  ;;  %v7588_v2 = vmul.f32 %v1159_v0, %v7196_v30  ;;  %v7598_v53 = vmul.f32 %v1159_v0, %v7369_v62  ;;  %v12696_v0 = vld [vmem:[#allocation138_spill] sm:$0xff] }
 0x3c2   : > { %12677 = vst [vmem:[#allocation130_spill] sm:$0xff] %v7563_v25  ;;  %12679 = vst [vmem:[#allocation131_spill] sm:$0xff] %v7568_v32  ;;  %v7582_v25 = vpop.permute.xlu0 %2724  ;;  %v12687_v32 = vld [vmem:[#allocation135_spill] sm:$0xff]  ;;  %v7604_v19 = vmul.f32 %v1160_v4, %v7374_v10 }
 0x3c3   : > { %12681 = vst [vmem:[#allocation133_spill] sm:$0xff] %v7574_v12  ;;  %12682 = vst [vmem:[#allocation299_spill] sm:$0xff] %v7577_v44  ;;  %v1162_v51 = vsel %vm996_vm2, %v12687_v32, 1.0  ;;  %v12688_v12 = vld [vmem:[#allocation136_spill] sm:$0xff]  ;;  %v7611_v32 = vmul.f32 %v1161_v52, %v7209_v5 }
 0x3c4   : > { %12684 = vst [vmem:[#allocation134_spill] sm:$0xff] %v7582_v25  ;;  %12685 = vst [vmem:[#allocation300_spill] sm:$0xff] %v7585_v59  ;;  %v1163_v44 = vsel %vm996_vm2, %v12688_v12, 1.0  ;;  %3031 = vbcast.lane.b32.xlu1 %v12689_v55, 256  ;;  %v7601_v25 = vmul.f32 %v1160_v4, %v7201_v31  ;;  %3035 = vbcast.lane.b32.xlu0 %v12689_v55, 264  ;;  %v7614_v12 = vmul.f32 %v1161_v52, %v7381_v24  ;;  %v12701_v52 = vld [vmem:[#allocation140_spill] sm:$0xff] }
 0x3c5   : > { %12686 = vst [vmem:[#allocation301_spill] sm:$0xff] %v7588_v2  ;;  %12690 = vst [vmem:[#allocation135_spill] sm:$0xff] %v7598_v53  ;;  %v12693_v2 = vld [vmem:[#allocation137_spill] sm:$0xff]  ;;  %v1165_v53 = vsel %vm996_vm2, %v12696_v0, 1.0  ;;  %v7628_v31 = vmul.f32 %v1162_v51, %v7386_v47  ;;  %v7639_v5 = vmul.f32 %v1163_v44, %v7391_v15 }
 0x3c6   : > { %12691 = vst [vmem:[#allocation136_spill] sm:$0xff] %v7601_v25  ;;  %12692 = vst [vmem:[#allocation58_spill] sm:$0xff] %v7604_v19  ;;  %v1164_v59 = vsel %vm996_vm2, %v12693_v2, 1.0  ;;  %v12697_v25 = vld [vmem:[#allocation139_spill] sm:$0xff]  ;;  %v7622_v19 = vpop.permute.xlu1 %2731  ;;  %v7625_v2 = vmul.f32 %v1162_v51, %v7214_v41  ;;  %v7636_v0 = vpop.permute.xlu0 %2735  ;;  %v12705_v51 = vld [vmem:[#allocation141_spill] sm:$0xff] }
 0x3c7   : > { %12694 = vst [vmem:[#allocation137_spill] sm:$0xff] %v7611_v32  ;;  %12695 = vst [vmem:[#allocation302_spill] sm:$0xff] %v7614_v12  ;;  %v1166_v4 = vsel %vm996_vm2, %v12697_v25, 1.0  ;;  %v7631_v32 = vmul.f32 %v1163_v44, %v7219_v42  ;;  %v1167_v12 = vsel %vm996_vm2, %v12701_v52, 1.0  ;;  %v7642_v25 = vmul.f32 %v1164_v59, %v7224_v45 }
 0x3c8   : > { %12698 = vst [vmem:[#allocation138_spill] sm:$0xff] %v7622_v19  ;;  %12699 = vst [vmem:[#allocation139_spill] sm:$0xff] %v7628_v31  ;;  %v7645_v19 = vmul.f32 %v1164_v59, %v7396_v34  ;;  %v1168_v31 = vsel %vm996_vm2, %v12705_v51, 1.0  ;;  %3039 = vbcast.lane.b32.xlu1 %v12689_v55, 272  ;;  %v7655_v52 = vmul.f32 %v1165_v53, %v7402_v16  ;;  %3043 = vbcast.lane.b32.xlu0 %v12689_v55, 280 }
 0x3c9   : > { %12700 = vst [vmem:[#allocation303_spill] sm:$0xff] %v7631_v32  ;;  %12702 = vst [vmem:[#allocation140_spill] sm:$0xff] %v7636_v0  ;;  %v7652_v32 = vmul.f32 %v1165_v53, %v7230_v17  ;;  %v7658_v44 = vmul.f32 %v1166_v4, %v7235_v37  ;;  %v12709_v0 = vld [vmem:[#allocation142_spill] sm:$0xff]  ;;  %v7668_v51 = vmul.f32 %v1167_v12, %v7240_v48 }
 0x3ca   : > { %12703 = vst [vmem:[#allocation304_spill] sm:$0xff] %v7642_v25  ;;  %12704 = vst [vmem:[#allocation305_spill] sm:$0xff] %v7645_v19  ;;  %v1169_v59 = vsel %vm996_vm2, %v12709_v0, 1.0  ;;  %v7665_v19 = vmul.f32 %v1166_v4, %v7407_v46  ;;  %v12712_v25 = vld [vmem:[#allocation143_spill] sm:$0xff]  ;;  %v7679_v0 = vmul.f32 %v1167_v12, %v7412_v18  ;;  %v7682_v55 = vmul.f32 %v1168_v31, %v7245_v57  ;;  %v12722_v12 = vld [vmem:[#allocation146_spill] sm:$0xff] }
 0x3cb   : > { %12706 = vst [vmem:[#allocation141_spill] sm:$0xff] %v7652_v32  ;;  %12707 = vst [vmem:[#allocation306_spill] sm:$0xff] %v7655_v52  ;;  %v1170_v53 = vsel %vm996_vm2, %v12712_v25, 1.0  ;;  %v12713_v52 = vld [vmem:[#allocation144_spill] sm:$0xff]  ;;  %v7676_v32 = vpop.permute.xlu1 %2739  ;;  %v7685_v4 = vmul.f32 %v1168_v31, %v7417_v20  ;;  %v7690_v25 = vpop.permute.xlu0 %2743  ;;  %v7693_v48 = vmul.f32 %v1169_v59, %v7251_v1 }
 0x3cc   : > { %12708 = vst [vmem:[#allocation307_spill] sm:$0xff] %v7658_v44  ;;  %12710 = vst [vmem:[#allocation142_spill] sm:$0xff] %v7665_v19  ;;  %v1171_v44 = vsel %vm996_vm2, %v12713_v52, 1.0  ;;  %v7696_v52 = vmul.f32 %v1169_v59, %v7423_v29  ;;  %v12728_v59 = vld [vmem:[#allocation148_spill] sm:$0xff] }
 0x3cd   : > { %12711 = vst [vmem:[#allocation308_spill] sm:$0xff] %v7668_v51  ;;  %12714 = vst [vmem:[#allocation143_spill] sm:$0xff] %v7676_v32  ;;  %v12718_v51 = vld [vmem:[#allocation145_spill] sm:$0xff]  ;;  %v1173_v32 = vsel %vm996_vm2, %v12722_v12, 1.0  ;;  %v7719_v12 = vmul.f32 %v1171_v44, %v7433_v33 }
 0x3ce   : > { %12715 = vst [vmem:[#allocation144_spill] sm:$0xff] %v7679_v0  ;;  %12716 = vst [vmem:[#allocation309_spill] sm:$0xff] %v7682_v55  ;;  %v1172_v19 = vsel %vm996_vm2, %v12718_v51, 1.0  ;;  %v12723_v55 = vld [vmem:[#allocation147_spill] sm:$0xff]  ;;  %v7706_v51 = vmul.f32 %v1170_v53, %v7256_v61  ;;  %v7733_v0 = vmul.f32 %v1173_v32, %v7273_v23  ;;  %v12742_v23 = vld [vmem:[#allocation112_spill] sm:$0xff] }
 0x3cf   : > { %12717 = vst [vmem:[#allocation310_spill] sm:$0xff] %v7685_v4  ;;  %12719 = vst [vmem:[#allocation145_spill] sm:$0xff] %v7690_v25  ;;  %v1174_v31 = vsel %vm996_vm2, %v12723_v55, 1.0  ;;  %v12724_v4 = vld [vmem:[#allocation59_spill] sm:$0xff]  ;;  %v7709_v25 = vmul.f32 %v1170_v53, %v7428_v40  ;;  %v7722_v55 = vmul.f32 %v1172_v19, %v7266_v58  ;;  %v12732_v53 = vld [vmem:[#allocation149_spill] sm:$0xff] }
 0x3d0   : > { %12720 = vst [vmem:[#allocation311_spill] sm:$0xff] %v7693_v48  ;;  %12721 = vst [vmem:[#allocation312_spill] sm:$0xff] %v7696_v52  ;;  %3282 = vbcast.lane.b32.xlu1 %v12724_v4, 256  ;;  %v7712_v48 = vmul.f32 %v1171_v44, %v7261_v49  ;;  %v1175_v52 = vsel %vm996_vm2, %v12728_v59, 1.0  ;;  %3286 = vbcast.lane.b32.xlu0 %v12724_v4, 264  ;;  %v7736_v59 = vmul.f32 %v1173_v32, %v7445_v63  ;;  %v12744_v32 = vld [vmem:[#allocation151_spill] sm:$0xff] }
 0x3d1   : > { %12725 = vst [vmem:[#allocation146_spill] sm:$0xff] %v7706_v51  ;;  %12726 = vst [vmem:[#allocation147_spill] sm:$0xff] %v7709_v25  ;;  %v7725_v51 = vmul.f32 %v1172_v19, %v7438_v9  ;;  %v1176_v25 = vsel %vm996_vm2, %v12732_v53, 1.0  ;;  %v7739_v44 = vmul.f32 %v1174_v31, %v7278_v56  ;;  %v12740_v53 = vld [vmem:[#allocation290_spill] sm:$0xff]  ;;  %v12786_v49 = vld [vmem:[#allocation160_spill] sm:$0xff] }
 0x3d2   : > { %12727 = vst [vmem:[#allocation59_spill] sm:$0xff] %v7712_v48  ;;  %12729 = vst [vmem:[#allocation148_spill] sm:$0xff] %v7719_v12  ;;  %v7730_v48 = vpop.permute.xlu1 %2750  ;;  %v12737_v12 = vld [vmem:[#allocation150_spill] sm:$0xff] }
 0x3d3   : > { %12730 = vst [vmem:[#allocation313_spill] sm:$0xff] %v7722_v55  ;;  %12731 = vst [vmem:[#allocation314_spill] sm:$0xff] %v7725_v51  ;;  %v1177_v19 = vsel %vm996_vm2, %v12737_v12, 1.0  ;;  %v7744_v51 = vpop.permute.xlu0 %2754  ;;  %v7747_v55 = vmul.f32 %v1174_v31, %v7450_v50  ;;  %v12747_v12 = vld [vmem:[#allocation152_spill] sm:$0xff]  ;;  %v12758_v63 = vld [vmem:[#allocation294_spill] sm:$0xff] }
 0x3d4   : > { %12733 = vst [vmem:[#allocation149_spill] sm:$0xff] %v7730_v48  ;;  %12734 = vst [vmem:[#allocation315_spill] sm:$0xff] %v7733_v0  ;;  %v7750_v48 = vmul.f32 %v1175_v52, %v12740_v53  ;;  %v7753_v0 = vmul.f32 %v1175_v52, %v12742_v23  ;;  %3290 = vbcast.lane.b32.xlu1 %v12724_v4, 272  ;;  %v1179_v31 = vsel %vm996_vm2, %v12747_v12, 1.0  ;;  %3294 = vbcast.lane.b32.xlu0 %v12724_v4, 280  ;;  %v12752_v53 = vld [vmem:[#allocation293_spill] sm:$0xff] }
 0x3d5   : > { %12735 = vst [vmem:[#allocation316_spill] sm:$0xff] %v7736_v59  ;;  %12736 = vst [vmem:[#allocation317_spill] sm:$0xff] %v7739_v44  ;;  %v1178_v59 = vsel %vm996_vm2, %v12744_v32, 1.0  ;;  %v12745_v44 = vld [vmem:[#allocation291_spill] sm:$0xff]  ;;  %v12750_v32 = vld [vmem:[#allocation114_spill] sm:$0xff] }
 0x3d6   : > { %12738 = vst [vmem:[#allocation150_spill] sm:$0xff] %v7744_v51  ;;  %12739 = vst [vmem:[#allocation318_spill] sm:$0xff] %v7747_v55  ;;  %v7760_v56 = vmul.f32 %v1176_v25, %v12745_v44  ;;  %v12748_v51 = vld [vmem:[#allocation153_spill] sm:$0xff]  ;;  %v12749_v55 = vld [vmem:[#allocation156_spill] sm:$0xff]  ;;  %v7776_v44 = vmul.f32 %v1177_v19, %v12752_v53  ;;  %v7787_v58 = vmul.f32 %v1178_v59, %v12758_v63 }
 0x3d7   : > { %12741 = vst [vmem:[#allocation319_spill] sm:$0xff] %v7750_v48  ;;  %12743 = vst [vmem:[#allocation320_spill] sm:$0xff] %v7753_v0  ;;  %v1180_v48 = vsel %vm996_vm2, %v12748_v51, 1.0  ;;  %v1335_v52 = vsel %vm996_vm2, %v12749_v55, 0.0  ;;  %v7773_v0 = vmul.f32 %v1176_v25, %v12750_v32  ;;  %v12756_v12 = vld [vmem:[#allocation157_spill] sm:$0xff]  ;;  %v7784_v51 = vpop.permute.xlu1 %2758  ;;  %v12760_v55 = vld [vmem:[#allocation116_spill] sm:$0xff] }
 0x3d8   : > { %12746 = vst [vmem:[#allocation151_spill] sm:$0xff] %v7760_v56  ;;  %12753 = vst [vmem:[#allocation153_spill] sm:$0xff] %v7776_v44  ;;  %v12754_v56 = vld [vmem:[#allocation115_spill] sm:$0xff]  ;;  %v1336_v50 = vsel %vm996_vm2, %v12756_v12, 0.0  ;;  %v7790_v4 = vmul.f32 %v1178_v59, %v12760_v55  ;;  %v12762_v25 = vld [vmem:[#allocation154_spill] sm:$0xff]  ;;  %v1399_v59 = vmul.f32 %v1335_v52, %v7326_v6 }
 0x3d9   : > { %12751 = vst [vmem:[#allocation152_spill] sm:$0xff] %v7773_v0  ;;  %v7779_v23 = vmul.f32 %v1177_v19, %v12754_v56  ;;  %12757 = vst [vmem:[#allocation157_spill] sm:$0xff] %v7784_v51  ;;  %v1181_v0 = vsel %vm996_vm2, %v12762_v25, 1.0  ;;  %v12763_v44 = vld [vmem:[#allocation155_spill] sm:$0xff]  ;;  %v12767_v51 = vld [vmem:[#allocation117_spill] sm:$0xff]  ;;  %v1400_v32 = vmul.f32 %v1336_v50, %v7331_v8 }
 0x3da   : > { %12759 = vst [vmem:[#allocation321_spill] sm:$0xff] %v7787_v58  ;;  %12761 = vst [vmem:[#allocation322_spill] sm:$0xff] %v7790_v4  ;;  %v1182_v19 = vsel %vm996_vm2, %v12763_v44, 1.0  ;;  %v12765_v53 = vld [vmem:[#allocation295_spill] sm:$0xff]  ;;  %v7804_v56 = vmul.f32 %v1179_v31, %v12767_v51  ;;  %v12769_v58 = vld [vmem:[#allocation296_spill] sm:$0xff] }
 0x3db   : > { %12755 = vst [vmem:[#allocation156_spill] sm:$0xff] %v7779_v23  ;;  %v7798_v23 = vpop.permute.xlu0 %2762  ;;  %v7801_v12 = vmul.f32 %v1179_v31, %v12765_v53  ;;  %v7807_v63 = vmul.f32 %v1180_v48, %v12769_v58  ;;  %v12771_v4 = vld [vmem:[#allocation60_spill] sm:$0xff]  ;;  %v12772_v25 = vld [vmem:[#allocation279_spill] sm:$0xff]  ;;  %v12773_v44 = vld [vmem:[#allocation158_spill] sm:$0xff]  ;;  %v7832_v51 = vpop.permute.xlu1 %2769 }
 0x3dc   : > { %12764 = vst [vmem:[#allocation154_spill] sm:$0xff] %v7798_v23  ;;  %12768 = vst [vmem:[#allocation323_spill] sm:$0xff] %v7804_v56  ;;  %3301 = vbcast.lane.b32.xlu1 %v12771_v4, 256  ;;  %v1463_v55 = vmul.f32 %v1335_v52, %v12772_v25  ;;  %v1337_v23 = vsel %vm996_vm2, %v12773_v44, 0.0  ;;  %v12774_v53 = vld [vmem:[#allocation159_spill] sm:$0xff]  ;;  %3305 = vbcast.lane.b32.xlu0 %v12771_v4, 264 }
 0x3dd   : > { %12766 = vst [vmem:[#allocation155_spill] sm:$0xff] %v7801_v12  ;;  %12770 = vst [vmem:[#allocation324_spill] sm:$0xff] %v7807_v63  ;;  %v1338_v31 = vsel %vm996_vm2, %v12774_v53, 0.0  ;;  %v12775_v56 = vld [vmem:[#allocation118_spill] sm:$0xff]  ;;  %v12777_v6 = vld [vmem:[#allocation56_spill] sm:$0xff]  ;;  %v1464_v53 = vmul.f32 %v1336_v50, %v7153_v11 }
 0x3de   : > { %v7821_v63 = vmul.f32 %v1180_v48, %v12775_v56  ;;  %v7824_v12 = vmul.f32 %v1181_v0, %v12777_v6  ;;  %v12779_v58 = vld [vmem:[#allocation119_spill] sm:$0xff]  ;;  %v12781_v8 = vld [vmem:[#allocation297_spill] sm:$0xff]  ;;  %12783 = vst [vmem:[#allocation118_spill] sm:$0xff] %v7832_v51  ;;  %v12784_v44 = vld [vmem:[#allocation120_spill] sm:$0xff]  ;;  %v1339_v48 = vsel %vm996_vm2, %v12786_v49, 0.0  ;;  %v1402_v51 = vmul.f32 %v1338_v31, %v7342_v13 }
 0x3df   : > { %v7827_v52 = vmul.f32 %v1181_v0, %v12779_v58  ;;  %v7830_v25 = vmul.f32 %v1182_v19, %v12781_v8  ;;  %v7835_v9 = vmul.f32 %v1182_v19, %v12784_v44  ;;  %v7844_v0 = vpop.permute.xlu0 %2773  ;;  %v12789_v19 = vld [vmem:[#allocation162_spill] sm:$0xff]  ;;  %v1466_v49 = vmul.f32 %v1338_v31, %v7169_v35  ;;  %v12790_v50 = vld [vmem:[#allocation121_spill] sm:$0xff]  ;;  %v12796_v31 = vld [vmem:[#allocation123_spill] sm:$0xff] }
 0x3e0   : > { %12776 = vst [vmem:[#allocation60_spill] sm:$0xff] %v7821_v63  ;;  %12778 = vst [vmem:[#allocation279_spill] sm:$0xff] %v7824_v12  ;;  %v12787_v63 = vld [vmem:[#allocation161_spill] sm:$0xff]  ;;  %v1341_v11 = vsel %vm996_vm2, %v12789_v19, 0.0  ;;  %3309 = vbcast.lane.b32.xlu1 %v12771_v4, 272  ;;  %3313 = vbcast.lane.b32.xlu0 %v12771_v4, 280 }
 0x3e1   : > { %12780 = vst [vmem:[#allocation158_spill] sm:$0xff] %v7827_v52  ;;  %12782 = vst [vmem:[#allocation159_spill] sm:$0xff] %v7830_v25  ;;  %v1340_v12 = vsel %vm996_vm2, %v12787_v63, 0.0  ;;  %v1401_v52 = vmul.f32 %v1337_v23, %v7337_v28  ;;  %v1465_v25 = vmul.f32 %v1337_v23, %v7164_v21  ;;  %v7858_v63 = vadd.f32 %v7517_v7, %v1463_v55  ;;  %v12791_v19 = vld [vmem:[#allocation163_spill] sm:$0xff] }
 0x3e2   : > { %12785 = vst [vmem:[#allocation56_spill] sm:$0xff] %v7835_v9  ;;  %12788 = vst [vmem:[#allocation119_spill] sm:$0xff] %v7844_v0  ;;  %v7855_v9 = vsub.f32 %v12790_v50, %v1399_v59  ;;  %v7861_v28 = vsub.f32 %v7520_v39, %v1400_v32  ;;  %v1403_v21 = vmul.f32 %v1339_v48, %v7347_v60  ;;  %v1342_v35 = vsel %vm996_vm2, %v12791_v19, 0.0  ;;  %v7870_v59 = vpop.permute.xlu1 %2777  ;;  %v12793_v32 = vld [vmem:[#allocation164_spill] sm:$0xff] }
 0x3e3   : > { %v1467_v23 = vmul.f32 %v1339_v48, %v7174_v54  ;;  %v1404_v13 = vmul.f32 %v1340_v12, %v7352_v43  ;;  %12792 = vst [vmem:[#allocation297_spill] sm:$0xff] %v7870_v59  ;;  %v1468_v7 = vmul.f32 %v1340_v12, %v7179_v14  ;;  %v1405_v55 = vmul.f32 %v1341_v11, %v7359_v36  ;;  %v7878_v4 = vpop.permute.xlu0 %2781  ;;  %v12795_v54 = vld [vmem:[#allocation127_spill] sm:$0xff]  ;;  %v12797_v50 = vld [vmem:[#allocation124_spill] sm:$0xff]  ;;  %v12798_v14 = vld [vmem:[#allocation125_spill] sm:$0xff] }
 0x3e4   : > { %v1469_v39 = vmul.f32 %v1341_v11, %v7186_v26  ;;  %v1343_v60 = vsel %vm996_vm2, %v12793_v32, 0.0  ;;  %12794 = vst [vmem:[#allocation120_spill] sm:$0xff] %v7878_v4  ;;  %v7881_v43 = vadd.f32 %v12795_v54, %v1464_v53  ;;  %v7884_v48 = vsub.f32 %v12796_v31, %v1401_v52  ;;  %v12799_v36 = vld [vmem:[#allocation61_spill] sm:$0xff]  ;;  %v12801_v54 = vld [vmem:[#allocation126_spill] sm:$0xff] }
 0x3e5   : > { %v7887_v19 = vadd.f32 %v12797_v50, %v1465_v25  ;;  %v7890_v12 = vsub.f32 %v12798_v14, %v1402_v51  ;;  %3320 = vbcast.lane.b32.xlu1 %v12799_v36, 256  ;;  %v1406_v26 = vmul.f32 %v1342_v35, %v7364_v38  ;;  %v1470_v11 = vmul.f32 %v1342_v35, %v7191_v27  ;;  %v12800_v32 = vld [vmem:[#allocation165_spill] sm:$0xff]  ;;  %v12802_v25 = vld [vmem:[#allocation128_spill] sm:$0xff]  ;;  %v12805_v35 = vld [vmem:[#allocation166_spill] sm:$0xff] }
 0x3e6   : > { %v1344_v53 = vsel %vm996_vm2, %v12800_v32, 0.0  ;;  %v7899_v4 = vadd.f32 %v12801_v54, %v1466_v49  ;;  %3324 = vbcast.lane.b32.xlu0 %v12799_v36, 264  ;;  %v1407_v52 = vmul.f32 %v1343_v60, %v7369_v62  ;;  %v7904_v51 = vsub.f32 %v12802_v25, %v1403_v21  ;;  %v12803_v38 = vld [vmem:[#allocation129_spill] sm:$0xff]  ;;  %v7912_v27 = vpop.permute.xlu1 %2788  ;;  %v12806_v14 = vld [vmem:[#allocation130_spill] sm:$0xff]  ;;  %v12807_v54 = vld [vmem:[#allocation132_spill] sm:$0xff] }
 0x3e7   : > { %v7907_v31 = vadd.f32 %v7557_v3, %v1467_v23  ;;  %v7910_v50 = vsub.f32 %v12803_v38, %v1404_v13  ;;  %12804 = vst [vmem:[#allocation160_spill] sm:$0xff] %v7912_v27  ;;  %v1345_v49 = vsel %vm996_vm2, %v12805_v35, 0.0  ;;  %v7918_v32 = vadd.f32 %v12806_v14, %v1468_v7  ;;  %v12808_v21 = vld [vmem:[#allocation133_spill] sm:$0xff]  ;;  %v7926_v3 = vpop.permute.xlu0 %2792  ;;  %v12810_v38 = vld [vmem:[#allocation167_spill] sm:$0xff]  ;;  %v12811_v35 = vld [vmem:[#allocation168_spill] sm:$0xff] }
 0x3e8   : > { %v7921_v62 = vsub.f32 %v12807_v54, %v1405_v55  ;;  %v7924_v25 = vadd.f32 %v12808_v21, %v1469_v39  ;;  %12809 = vst [vmem:[#allocation161_spill] sm:$0xff] %v7926_v3  ;;  %v1471_v23 = vmul.f32 %v1343_v60, %v7196_v30  ;;  %v1408_v13 = vmul.f32 %v1344_v53, %v7374_v10  ;;  %v12812_v55 = vld [vmem:[#allocation281_spill] sm:$0xff]  ;;  %v12814_v21 = vld [vmem:[#allocation299_spill] sm:$0xff]  ;;  %v12815_v10 = vld [vmem:[#allocation300_spill] sm:$0xff] }
 0x3e9   : > { %v1346_v27 = vsel %vm996_vm2, %v12810_v38, 0.0  ;;  %v1347_v7 = vsel %vm996_vm2, %v12811_v35, 0.0  ;;  %3328 = vbcast.lane.b32.xlu1 %v12799_v36, 272  ;;  %v1472_v14 = vmul.f32 %v1344_v53, %v12812_v55  ;;  %v12813_v39 = vld [vmem:[#allocation169_spill] sm:$0xff]  ;;  %v7942_v30 = vsub.f32 %v12814_v21, %v1406_v26  ;;  %v12816_v3 = vld [vmem:[#allocation283_spill] sm:$0xff]  ;;  %v12817_v59 = vld [vmem:[#allocation170_spill] sm:$0xff] }
 0x3ea   : > { %v1348_v54 = vsel %vm996_vm2, %v12813_v39, 0.0  ;;  %v7945_v60 = vadd.f32 %v12815_v10, %v1470_v11  ;;  %3332 = vbcast.lane.b32.xlu0 %v12799_v36, 280  ;;  %v1409_v38 = vmul.f32 %v1345_v49, %v7381_v24  ;;  %v1473_v35 = vmul.f32 %v1345_v49, %v12816_v3  ;;  %v12818_v55 = vld [vmem:[#allocation301_spill] sm:$0xff]  ;;  %v7956_v39 = vpop.permute.xlu1 %2796  ;;  %v12820_v36 = vld [vmem:[#allocation171_spill] sm:$0xff] }
 0x3eb   : > { %v1349_v53 = vsel %vm996_vm2, %v12817_v59, 0.0  ;;  %v7954_v0 = vsub.f32 %v12818_v55, %v1407_v52  ;;  %12819 = vst [vmem:[#allocation162_spill] sm:$0xff] %v7956_v39  ;;  %v1410_v26 = vmul.f32 %v1346_v27, %v7386_v47  ;;  %v1474_v11 = vmul.f32 %v1346_v27, %v7214_v41  ;;  %v7964_v49 = vpop.permute.xlu0 %2800  ;;  %v12822_v52 = vld [vmem:[#allocation135_spill] sm:$0xff]  ;;  %v12823_v55 = vld [vmem:[#allocation136_spill] sm:$0xff]  ;;  %v12825_v47 = vld [vmem:[#allocation62_spill] sm:$0xff] }
 0x3ec   : > { %v1411_v21 = vmul.f32 %v1347_v7, %v7391_v15  ;;  %v1350_v24 = vsel %vm996_vm2, %v12820_v36, 0.0  ;;  %12821 = vst [vmem:[#allocation121_spill] sm:$0xff] %v7964_v49  ;;  %v1475_v3 = vmul.f32 %v1347_v7, %v7219_v42  ;;  %v1412_v59 = vmul.f32 %v1348_v54, %v7396_v34  ;;  %v12826_v36 = vld [vmem:[#allocation22_spill] sm:$0xff] }
 0x3ed   : > { %v7969_v10 = vadd.f32 %v12822_v52, %v1471_v23  ;;  %v7972_v39 = vsub.f32 %v12823_v55, %v1408_v13  ;;  %3339 = vbcast.lane.b32.xlu1 %v12825_v47, 256  ;;  %v1476_v41 = vmul.f32 %v1348_v54, %v7224_v45  ;;  %v1413_v15 = vmul.f32 %v1349_v53, %v7402_v16  ;;  %v12827_v23 = vld [vmem:[#allocation58_spill] sm:$0xff]  ;;  %v12828_v13 = vld [vmem:[#allocation137_spill] sm:$0xff] }
 0x3ee   : > { %v1477_v27 = vmul.f32 %v1349_v53, %v7230_v17  ;;  %v1351_v42 = vsel %vm996_vm2, %v12826_v36, 0.0  ;;  %3343 = vbcast.lane.b32.xlu0 %v12825_v47, 264  ;;  %v1414_v34 = vmul.f32 %v1350_v24, %v7407_v46  ;;  %v7984_v7 = vadd.f32 %v12827_v23, %v1472_v14  ;;  %v12830_v55 = vld [vmem:[#allocation302_spill] sm:$0xff]  ;;  %v7992_v16 = vpop.permute.xlu1 %2807  ;;  %v12832_v53 = vld [vmem:[#allocation139_spill] sm:$0xff]  ;;  %v12836_v23 = vld [vmem:[#allocation172_spill] sm:$0xff] }
 0x3ef   : > { %12824 = vst [vmem:[#allocation163_spill] sm:$0xff] %v7972_v39  ;;  %v7987_v52 = vsub.f32 %v12828_v13, %v1409_v38  ;;  %v7990_v45 = vadd.f32 %v12830_v55, %v1473_v35  ;;  %12831 = vst [vmem:[#allocation127_spill] sm:$0xff] %v7992_v16  ;;  %v1478_v17 = vmul.f32 %v1350_v24, %v7235_v37  ;;  %v12833_v46 = vld [vmem:[#allocation303_spill] sm:$0xff]  ;;  %v8004_v14 = vpop.permute.xlu0 %2811  ;;  %v1352_v35 = vsel %vm996_vm2, %v12836_v23, 0.0  ;;  %v12837_v37 = vld [vmem:[#allocation304_spill] sm:$0xff] }
 0x3f0   : > { %v7996_v54 = vsub.f32 %v7625_v2, %v1410_v26  ;;  %v7999_v36 = vadd.f32 %v12832_v53, %v1474_v11  ;;  %v8002_v49 = vsub.f32 %v12833_v46, %v1411_v21  ;;  %12835 = vst [vmem:[#allocation124_spill] sm:$0xff] %v8004_v14  ;;  %v1415_v38 = vmul.f32 %v1351_v42, %v7412_v18  ;;  %v12839_v26 = vld [vmem:[#allocation173_spill] sm:$0xff]  ;;  %v12844_v53 = vld [vmem:[#allocation306_spill] sm:$0xff]  ;;  %v12864_v16 = vld [vmem:[#allocation144_spill] sm:$0xff] }
 0x3f1   : > { %12829 = vst [vmem:[#allocation164_spill] sm:$0xff] %v7987_v52  ;;  %v8011_v13 = vadd.f32 %v7639_v5, %v1475_v3  ;;  %v8014_v2 = vsub.f32 %v12837_v37, %v1412_v59  ;;  %3347 = vbcast.lane.b32.xlu1 %v12825_v47, 272  ;;  %v1353_v11 = vsel %vm996_vm2, %v12839_v26, 0.0  ;;  %v12840_v21 = vld [vmem:[#allocation305_spill] sm:$0xff]  ;;  %v8027_v46 = vadd.f32 %v12844_v53, %v1477_v27  ;;  %v12846_v5 = vld [vmem:[#allocation284_spill] sm:$0xff]  ;;  %v12847_v59 = vld [vmem:[#allocation174_spill] sm:$0xff] }
 0x3f2   : > { %12834 = vst [vmem:[#allocation123_spill] sm:$0xff] %v8002_v49  ;;  %v8021_v24 = vadd.f32 %v12840_v21, %v1476_v41  ;;  %v12842_v18 = vld [vmem:[#allocation141_spill] sm:$0xff]  ;;  %3351 = vbcast.lane.b32.xlu0 %v12825_v47, 280  ;;  %v1479_v3 = vmul.f32 %v1351_v42, %v12846_v5  ;;  %v1354_v23 = vsel %vm996_vm2, %v12847_v59, 0.0  ;;  %v12848_v37 = vld [vmem:[#allocation23_spill] sm:$0xff]  ;;  %v1416_v27 = vmul.f32 %v1352_v35, %v7417_v20  ;;  %v12853_v53 = vld [vmem:[#allocation142_spill] sm:$0xff] }
 0x3f3   : > { %12838 = vst [vmem:[#allocation125_spill] sm:$0xff] %v8014_v2  ;;  %v8024_v55 = vsub.f32 %v12842_v18, %v1413_v15  ;;  %12845 = vst [vmem:[#allocation126_spill] sm:$0xff] %v8027_v46  ;;  %v1355_v26 = vsel %vm996_vm2, %v12848_v37, 0.0  ;;  %v12849_v41 = vld [vmem:[#allocation307_spill] sm:$0xff]  ;;  %v8040_v15 = vpop.permute.xlu1 %2815  ;;  %v1480_v18 = vmul.f32 %v1352_v35, %v7245_v57  ;;  %v8048_v5 = vadd.f32 %v12853_v53, %v1478_v17  ;;  %v8050_v59 = vpop.permute.xlu0 %2819  ;;  %v12857_v20 = vld [vmem:[#allocation308_spill] sm:$0xff] }
 0x3f4   : > { %12841 = vst [vmem:[#allocation61_spill] sm:$0xff] %v8021_v24  ;;  %v8038_v21 = vsub.f32 %v12849_v41, %v1414_v34  ;;  %12851 = vst [vmem:[#allocation129_spill] sm:$0xff] %v8040_v15  ;;  %v12852_v47 = vld [vmem:[#allocation175_spill] sm:$0xff]  ;;  %v1417_v37 = vmul.f32 %v1353_v11, %v7423_v29  ;;  %v1481_v34 = vmul.f32 %v1353_v11, %v7251_v1  ;;  %v12856_v41 = vld [vmem:[#allocation176_spill] sm:$0xff] }
 0x3f5   : > { %12843 = vst [vmem:[#allocation165_spill] sm:$0xff] %v8024_v55  ;;  %v1356_v42 = vsel %vm996_vm2, %v12852_v47, 0.0  ;;  %12854 = vst [vmem:[#allocation166_spill] sm:$0xff] %v8048_v5  ;;  %v1357_v15 = vsel %vm996_vm2, %v12856_v41, 0.0  ;;  %v8058_v14 = vsub.f32 %v12857_v20, %v1415_v38  ;;  %v12859_v57 = vld [vmem:[#allocation63_spill] sm:$0xff]  ;;  %v1418_v35 = vmul.f32 %v1354_v23, %v7428_v40  ;;  %v12860_v53 = vld [vmem:[#allocation177_spill] sm:$0xff] }
 0x3f6   : > { %12850 = vst [vmem:[#allocation128_spill] sm:$0xff] %v8038_v21  ;;  %12855 = vst [vmem:[#allocation130_spill] sm:$0xff] %v8050_v59  ;;  %3358 = vbcast.lane.b32.xlu1 %v12859_v57, 256  ;;  %v1482_v17 = vmul.f32 %v1354_v23, %v7256_v61  ;;  %v1419_v47 = vmul.f32 %v1355_v26, %v7433_v33  ;;  %v1358_v29 = vsel %vm996_vm2, %v12860_v53, 0.0  ;;  %3362 = vbcast.lane.b32.xlu0 %v12859_v57, 264  ;;  %v12861_v1 = vld [vmem:[#allocation285_spill] sm:$0xff] }
 0x3f7   : > { %12858 = vst [vmem:[#allocation132_spill] sm:$0xff] %v8058_v14  ;;  %v1483_v11 = vmul.f32 %v1355_v26, %v12861_v1  ;;  %v12862_v41 = vld [vmem:[#allocation108_spill] sm:$0xff]  ;;  %v12863_v38 = vld [vmem:[#allocation286_spill] sm:$0xff]  ;;  %v8072_v14 = vadd.f32 %v12864_v16, %v1479_v3  ;;  %v8074_v40 = vpop.permute.xlu1 %2826  ;;  %v12869_v21 = vld [vmem:[#allocation309_spill] sm:$0xff]  ;;  %v8084_v26 = vpop.permute.xlu0 %2830 }
 0x3f8   : > { %v1420_v59 = vmul.f32 %v1356_v42, %v12862_v41  ;;  %v1484_v20 = vmul.f32 %v1356_v42, %v12863_v38  ;;  %12866 = vst [vmem:[#allocation167_spill] sm:$0xff] %v8074_v40  ;;  %v12867_v61 = vld [vmem:[#allocation110_spill] sm:$0xff]  ;;  %v12868_v33 = vld [vmem:[#allocation288_spill] sm:$0xff]  ;;  %v8079_v46 = vsub.f32 %v12869_v21, %v1416_v27  ;;  %12873 = vst [vmem:[#allocation169_spill] sm:$0xff] %v8084_v26 }
 0x3f9   : > { %12865 = vst [vmem:[#allocation133_spill] sm:$0xff] %v8072_v14  ;;  %v1421_v23 = vmul.f32 %v1357_v15, %v12867_v61  ;;  %v1485_v5 = vmul.f32 %v1357_v15, %v12868_v33  ;;  %v12871_v53 = vld [vmem:[#allocation310_spill] sm:$0xff]  ;;  %v12874_v1 = vld [vmem:[#allocation275_spill] sm:$0xff]  ;;  %v12876_v16 = vld [vmem:[#allocation24_spill] sm:$0xff] }
 0x3fa   : > { %12870 = vst [vmem:[#allocation168_spill] sm:$0xff] %v8079_v46  ;;  %v8082_v55 = vadd.f32 %v12871_v53, %v1480_v18  ;;  %vm1566_vm3 = vcmp.eq.s32.totalorder %v12874_v1, 1  ;;  %v12875_v42 = vld [vmem:[#allocation111_spill] sm:$0xff]  ;;  %v1359_v3 = vsel %vm996_vm2, %v12876_v16, 0.0  ;;  %v12879_v15 = vld [vmem:[#allocation312_spill] sm:$0xff]  ;;  %3366 = vbcast.lane.b32.xlu1 %v12859_v57, 272 }
 0x3fb   : > { %v1422_v41 = vmul.f32 %v1358_v29, %v12875_v42  ;;  %v12877_v38 = vld [vmem:[#allocation311_spill] sm:$0xff]  ;;  %v8095_v33 = vadd.f32 %v12879_v15, %v1481_v34  ;;  %v12881_v21 = vld [vmem:[#allocation289_spill] sm:$0xff]  ;;  %v12882_v18 = vld [vmem:[#allocation146_spill] sm:$0xff]  ;;  %3370 = vbcast.lane.b32.xlu0 %v12859_v57, 280 }
 0x3fc   : > { %12872 = vst [vmem:[#allocation281_spill] sm:$0xff] %v8082_v55  ;;  %v8092_v61 = vsub.f32 %v12877_v38, %v1417_v37  ;;  %v1486_v27 = vmul.f32 %v1358_v29, %v12881_v21  ;;  %v8100_v53 = vsub.f32 %v12882_v18, %v1418_v35  ;;  %v12884_v26 = vld [vmem:[#allocation147_spill] sm:$0xff]  ;;  %v12888_v37 = vld [vmem:[#allocation178_spill] sm:$0xff]  ;;  %v12889_v16 = vld [vmem:[#allocation148_spill] sm:$0xff] }
 0x3fd   : > { %12880 = vst [vmem:[#allocation300_spill] sm:$0xff] %v8095_v33  ;;  %v8103_v40 = vadd.f32 %v12884_v26, %v1482_v17  ;;  %v12886_v42 = vld [vmem:[#allocation59_spill] sm:$0xff]  ;;  %v1360_v34 = vsel %vm996_vm2, %v12888_v37, 0.0  ;;  %v8113_v38 = vadd.f32 %v12889_v16, %v1483_v11  ;;  %v12891_v15 = vld [vmem:[#allocation313_spill] sm:$0xff]  ;;  %v12893_v35 = vld [vmem:[#allocation314_spill] sm:$0xff]  ;;  %v8121_v17 = vpop.permute.xlu1 %2834  ;;  %v8133_v16 = vpop.permute.xlu0 %2838 }
 0x3fe   : > { %12878 = vst [vmem:[#allocation299_spill] sm:$0xff] %v8092_v61  ;;  %12883 = vst [vmem:[#allocation283_spill] sm:$0xff] %v8100_v53  ;;  %v8106_v55 = vsub.f32 %v12886_v42, %v1419_v47  ;;  %v8116_v29 = vsub.f32 %v12891_v15, %v1420_v59  ;;  %v8119_v21 = vadd.f32 %v12893_v35, %v1484_v20  ;;  %v12896_v26 = vld [vmem:[#allocation112_spill] sm:$0xff]  ;;  %v12897_v18 = vld [vmem:[#allocation179_spill] sm:$0xff] }
 0x3ff   : > { %12885 = vst [vmem:[#allocation170_spill] sm:$0xff] %v8103_v40  ;;  %12890 = vst [vmem:[#allocation171_spill] sm:$0xff] %v8113_v38  ;;  %v1423_v47 = vmul.f32 %v1359_v3, %v12896_v26  ;;  %v1361_v57 = vsel %vm996_vm2, %v12897_v18, 0.0  ;;  %v12898_v42 = vld [vmem:[#allocation315_spill] sm:$0xff]  ;;  %v12900_v37 = vld [vmem:[#allocation316_spill] sm:$0xff] }
 0x400   : > { %12887 = vst [vmem:[#allocation301_spill] sm:$0xff] %v8106_v55  ;;  %12892 = vst [vmem:[#allocation135_spill] sm:$0xff] %v8116_v29  ;;  %v8128_v55 = vsub.f32 %v12898_v42, %v1421_v23  ;;  %v8131_v11 = vadd.f32 %v12900_v37, %v1485_v5  ;;  %v12903_v59 = vld [vmem:[#allocation290_spill] sm:$0xff]  ;;  %v12904_v20 = vld [vmem:[#allocation180_spill] sm:$0xff] }
 0x401   : > { %12894 = vst [vmem:[#allocation136_spill] sm:$0xff] %v8119_v21  ;;  %12895 = vst [vmem:[#allocation62_spill] sm:$0xff] %v8121_v17  ;;  %v1487_v15 = vmul.f32 %v1359_v3, %v12903_v59  ;;  %v1362_v35 = vsel %vm996_vm2, %v12904_v20, 0.0  ;;  %v12905_v17 = vld [vmem:[#allocation25_spill] sm:$0xff]  ;;  %v12908_v23 = vld [vmem:[#allocation64_spill] sm:$0xff] }
 0x402   : > { %12899 = vst [vmem:[#allocation22_spill] sm:$0xff] %v8128_v55  ;;  %12901 = vst [vmem:[#allocation58_spill] sm:$0xff] %v8131_v11  ;;  %v1363_v26 = vsel %vm996_vm2, %v12905_v17, 0.0  ;;  %v12906_v21 = vld [vmem:[#allocation317_spill] sm:$0xff]  ;;  %3377 = vbcast.lane.b32.xlu1 %v12908_v23, 256  ;;  %v12909_v42 = vld [vmem:[#allocation114_spill] sm:$0xff] }
 0x403   : > { %12902 = vst [vmem:[#allocation137_spill] sm:$0xff] %v8133_v16  ;;  %v8143_v18 = vsub.f32 %v12906_v21, %v1422_v41  ;;  %v1424_v5 = vmul.f32 %v1360_v34, %v12909_v42  ;;  %v12910_v37 = vld [vmem:[#allocation291_spill] sm:$0xff]  ;;  %v12911_v16 = vld [vmem:[#allocation181_spill] sm:$0xff]  ;;  %v12912_v59 = vld [vmem:[#allocation318_spill] sm:$0xff]  ;;  %3381 = vbcast.lane.b32.xlu0 %v12908_v23, 264 }
 0x404   : > { %v1488_v11 = vmul.f32 %v1360_v34, %v12910_v37  ;;  %v1364_v3 = vsel %vm996_vm2, %v12911_v16, 0.0  ;;  %v8152_v55 = vadd.f32 %v12912_v59, %v1486_v27  ;;  %v12914_v20 = vld [vmem:[#allocation115_spill] sm:$0xff]  ;;  %v12915_v29 = vld [vmem:[#allocation293_spill] sm:$0xff]  ;;  %v12916_v21 = vld [vmem:[#allocation182_spill] sm:$0xff]  ;;  %v8163_v37 = vpop.permute.xlu1 %2845 }
 0x405   : > { %12907 = vst [vmem:[#allocation302_spill] sm:$0xff] %v8143_v18  ;;  %v1425_v17 = vmul.f32 %v1361_v57, %v12914_v20  ;;  %v1489_v41 = vmul.f32 %v1361_v57, %v12915_v29  ;;  %v1365_v18 = vsel %vm996_vm2, %v12916_v21, 0.0  ;;  %v12917_v42 = vld [vmem:[#allocation183_spill] sm:$0xff]  ;;  %12918 = vst [vmem:[#allocation303_spill] sm:$0xff] %v8163_v37  ;;  %v12919_v16 = vld [vmem:[#allocation116_spill] sm:$0xff]  ;;  %v8171_v29 = vpop.permute.xlu0 %2849  ;;  %v1428_v21 = vmul.f32 %v1364_v3, %v12775_v56 }
 0x406   : > { %12913 = vst [vmem:[#allocation139_spill] sm:$0xff] %v8152_v55  ;;  %v1366_v34 = vsel %vm996_vm2, %v12917_v42, 0.0  ;;  %v1426_v38 = vmul.f32 %v1362_v35, %v12919_v16  ;;  %v12920_v27 = vld [vmem:[#allocation294_spill] sm:$0xff]  ;;  %v12921_v55 = vld [vmem:[#allocation117_spill] sm:$0xff]  ;;  %v12922_v53 = vld [vmem:[#allocation319_spill] sm:$0xff]  ;;  %3385 = vbcast.lane.b32.xlu1 %v12908_v23, 272 }
 0x407   : > { %v1490_v59 = vmul.f32 %v1362_v35, %v12920_v27  ;;  %v1427_v40 = vmul.f32 %v1363_v26, %v12921_v55  ;;  %v8169_v20 = vsub.f32 %v12922_v53, %v1423_v47  ;;  %12924 = vst [vmem:[#allocation304_spill] sm:$0xff] %v8171_v29  ;;  %v12925_v57 = vld [vmem:[#allocation295_spill] sm:$0xff]  ;;  %v12926_v61 = vld [vmem:[#allocation296_spill] sm:$0xff]  ;;  %v1429_v35 = vmul.f32 %v1365_v18, %v12779_v58 }
 0x408   : > { %v1491_v33 = vmul.f32 %v1363_v26, %v12925_v57  ;;  %v1492_v22 = vmul.f32 %v1364_v3, %v12926_v61  ;;  %v12927_v42 = vld [vmem:[#allocation320_spill] sm:$0xff]  ;;  %v1493_v55 = vmul.f32 %v1365_v18, %v12777_v6  ;;  %v1430_v53 = vmul.f32 %v1366_v34, %v12784_v44  ;;  %v12928_v47 = vld [vmem:[#allocation151_spill] sm:$0xff]  ;;  %3389 = vbcast.lane.b32.xlu0 %v12908_v23, 280  ;;  %v8197_v58 = vpop.permute.xlu1 %2853  ;;  %v12934_v6 = vld [vmem:[#allocation26_spill] sm:$0xff] }
 0x409   : > { %12923 = vst [vmem:[#allocation172_spill] sm:$0xff] %v8169_v20  ;;  %v8177_v46 = vadd.f32 %v12927_v42, %v1487_v15  ;;  %v8184_v16 = vsub.f32 %v12928_v47, %v1424_v5  ;;  %v1494_v56 = vmul.f32 %v1366_v34, %v12781_v8  ;;  %v12930_v26 = vld [vmem:[#allocation152_spill] sm:$0xff]  ;;  %v12931_v15 = vld [vmem:[#allocation153_spill] sm:$0xff]  ;;  %12933 = vst [vmem:[#allocation305_spill] sm:$0xff] %v8197_v58  ;;  %v1721_v44 = vsel %vm1566_vm3, %v12934_v6, 1.0 }
 0x40a   : > { %v8189_v61 = vadd.f32 %v12930_v26, %v1488_v11  ;;  %v8192_v3 = vsub.f32 %v12931_v15, %v1425_v17  ;;  %v12932_v27 = vld [vmem:[#allocation156_spill] sm:$0xff]  ;;  %v12935_v18 = vld [vmem:[#allocation321_spill] sm:$0xff]  ;;  %v12936_v23 = vld [vmem:[#allocation322_spill] sm:$0xff]  ;;  %v8211_v17 = vpop.permute.xlu0 %2857 }
 0x40b   : > { %12929 = vst [vmem:[#allocation173_spill] sm:$0xff] %v8184_v16  ;;  %v8195_v57 = vadd.f32 %v12932_v27, %v1489_v41  ;;  %v8203_v5 = vsub.f32 %v12935_v18, %v1426_v38  ;;  %v8206_v8 = vadd.f32 %v12936_v23, %v1490_v59  ;;  %v12937_v11 = vld [vmem:[#allocation155_spill] sm:$0xff]  ;;  %12939 = vst [vmem:[#allocation306_spill] sm:$0xff] %v8211_v17  ;;  %v12940_v42 = vld [vmem:[#allocation184_spill] sm:$0xff] }
 0x40c   : > { %v8209_v34 = vsub.f32 %v12937_v11, %v1427_v40  ;;  %v1722_v41 = vsel %vm1566_vm3, %v12940_v42, 1.0  ;;  %v12941_v47 = vld [vmem:[#allocation323_spill] sm:$0xff]  ;;  %v12942_v15 = vld [vmem:[#allocation324_spill] sm:$0xff]  ;;  %v12944_v59 = vld [vmem:[#allocation65_spill] sm:$0xff] }
 0x40d   : > { %v8217_v26 = vadd.f32 %v12941_v47, %v1491_v33  ;;  %v8220_v27 = vsub.f32 %v12942_v15, %v1428_v21  ;;  %v12943_v38 = vld [vmem:[#allocation60_spill] sm:$0xff]  ;;  %3396 = vbcast.lane.b32.xlu1 %v12944_v59, 256  ;;  %v12945_v18 = vld [vmem:[#allocation185_spill] sm:$0xff]  ;;  %v12946_v23 = vld [vmem:[#allocation279_spill] sm:$0xff]  ;;  %3400 = vbcast.lane.b32.xlu0 %v12944_v59, 264  ;;  %v8240_v21 = vmul.f32 %v1721_v44, %v7855_v9 }
 0x40e   : > { %12938 = vst [vmem:[#allocation141_spill] sm:$0xff] %v8209_v34  ;;  %v8223_v6 = vadd.f32 %v12943_v38, %v1492_v22  ;;  %v1723_v40 = vsel %vm1566_vm3, %v12945_v18, 1.0  ;;  %v8230_v11 = vsub.f32 %v12946_v23, %v1429_v35  ;;  %v12947_v17 = vld [vmem:[#allocation158_spill] sm:$0xff]  ;;  %v12948_v33 = vld [vmem:[#allocation159_spill] sm:$0xff]  ;;  %v12951_v18 = vld [vmem:[#allocation56_spill] sm:$0xff]  ;;  %v8265_v29 = vpop.permute.xlu0 %2902 }
 0x40f   : > { %v8233_v42 = vadd.f32 %v12947_v17, %v1493_v55  ;;  %v8236_v47 = vsub.f32 %v12948_v33, %v1430_v53  ;;  %v12949_v22 = vld [vmem:[#allocation186_spill] sm:$0xff]  ;;  %v12950_v38 = vld [vmem:[#allocation187_spill] sm:$0xff]  ;;  %v8249_v23 = vadd.f32 %v12951_v18, %v1494_v56  ;;  %v8251_v55 = vpop.permute.xlu1 %2898  ;;  %v8254_v53 = vmul.f32 %v1721_v44, %v7858_v63  ;;  %v12953_v58 = vld [vmem:[#allocation188_spill] sm:$0xff]  ;;  %12954 = vst [vmem:[#allocation174_spill] sm:$0xff] %v8265_v29 }
 0x410   : > { %v1724_v15 = vsel %vm1566_vm3, %v12949_v22, 1.0  ;;  %v1725_v35 = vsel %vm1566_vm3, %v12950_v38, 1.0  ;;  %12952 = vst [vmem:[#allocation284_spill] sm:$0xff] %v8251_v55  ;;  %v8257_v17 = vmul.f32 %v1722_v41, %v7861_v28  ;;  %v8260_v33 = vmul.f32 %v1722_v41, %v7881_v43  ;;  %v12957_v44 = vld [vmem:[#allocation189_spill] sm:$0xff]  ;;  %v12958_v55 = vld [vmem:[#allocation190_spill] sm:$0xff] }
 0x411   : > { %v1726_v22 = vsel %vm1566_vm3, %v12953_v58, 1.0  ;;  %v8268_v56 = vmul.f32 %v1723_v40, %v7884_v48  ;;  %v8271_v38 = vmul.f32 %v1723_v40, %v7887_v19  ;;  %v1727_v18 = vsel %vm1566_vm3, %v12957_v44, 1.0  ;;  %3404 = vbcast.lane.b32.xlu1 %v12944_v59, 272  ;;  %v12962_v40 = vld [vmem:[#allocation27_spill] sm:$0xff]  ;;  %3408 = vbcast.lane.b32.xlu0 %v12944_v59, 280 }
 0x412   : > { %v1728_v41 = vsel %vm1566_vm3, %v12958_v55, 1.0  ;;  %v8281_v58 = vmul.f32 %v1724_v15, %v7890_v12  ;;  %v8284_v29 = vmul.f32 %v1724_v15, %v7899_v4  ;;  %v8287_v37 = vmul.f32 %v1725_v35, %v7904_v51  ;;  %v12965_v15 = vld [vmem:[#allocation191_spill] sm:$0xff] }
 0x413   : > { %12955 = vst [vmem:[#allocation23_spill] sm:$0xff] %v8268_v56  ;;  %12956 = vst [vmem:[#allocation307_spill] sm:$0xff] %v8271_v38  ;;  %v1729_v38 = vsel %vm1566_vm3, %v12962_v40, 1.0  ;;  %v8294_v44 = vmul.f32 %v1725_v35, %v7907_v31  ;;  %v8297_v55 = vmul.f32 %v1726_v22, %v7910_v50  ;;  %v8308_v56 = vmul.f32 %v1727_v18, %v7921_v62  ;;  %v12970_v40 = vld [vmem:[#allocation192_spill] sm:$0xff] }
 0x414   : > { %12959 = vst [vmem:[#allocation175_spill] sm:$0xff] %v8281_v58  ;;  %12960 = vst [vmem:[#allocation142_spill] sm:$0xff] %v8284_v29  ;;  %v8300_v58 = vmul.f32 %v1726_v22, %v7918_v32  ;;  %v1730_v29 = vsel %vm1566_vm3, %v12965_v15, 1.0  ;;  %v8311_v59 = vmul.f32 %v1727_v18, %v7924_v25  ;;  %v8314_v35 = vmul.f32 %v1728_v41, %v7942_v30 }
 0x415   : > { %12961 = vst [vmem:[#allocation176_spill] sm:$0xff] %v8287_v37  ;;  %12963 = vst [vmem:[#allocation308_spill] sm:$0xff] %v8297_v55  ;;  %v8305_v37 = vpop.permute.xlu1 %2906  ;;  %v1731_v22 = vsel %vm1566_vm3, %v12970_v40, 1.0  ;;  %v8322_v55 = vmul.f32 %v1728_v41, %v7945_v60  ;;  %v8325_v15 = vmul.f32 %v1729_v38, %v7954_v0  ;;  %v8335_v40 = vmul.f32 %v1729_v38, %v7969_v10  ;;  %v12983_v38 = vld [vmem:[#allocation195_spill] sm:$0xff] }
 0x416   : > { %12964 = vst [vmem:[#allocation63_spill] sm:$0xff] %v8300_v58  ;;  %12966 = vst [vmem:[#allocation177_spill] sm:$0xff] %v8305_v37  ;;  %v8319_v58 = vpop.permute.xlu0 %2910  ;;  %v12974_v37 = vld [vmem:[#allocation193_spill] sm:$0xff]  ;;  %v8341_v41 = vmul.f32 %v1730_v29, %v7984_v7 }
 0x417   : > { %12967 = vst [vmem:[#allocation285_spill] sm:$0xff] %v8308_v56  ;;  %12968 = vst [vmem:[#allocation108_spill] sm:$0xff] %v8311_v59  ;;  %v1732_v18 = vsel %vm1566_vm3, %v12974_v37, 1.0  ;;  %v12975_v59 = vld [vmem:[#allocation28_spill] sm:$0xff]  ;;  %v12976_v56 = vld [vmem:[#allocation66_spill] sm:$0xff]  ;;  %v8348_v37 = vmul.f32 %v1731_v22, %v7987_v52 }
 0x418   : > { %12969 = vst [vmem:[#allocation286_spill] sm:$0xff] %v8314_v35  ;;  %12971 = vst [vmem:[#allocation144_spill] sm:$0xff] %v8319_v58  ;;  %v1733_v35 = vsel %vm1566_vm3, %v12975_v59, 1.0  ;;  %3415 = vbcast.lane.b32.xlu1 %v12976_v56, 256  ;;  %v8338_v58 = vmul.f32 %v1730_v29, %v7972_v39  ;;  %3419 = vbcast.lane.b32.xlu0 %v12976_v56, 264  ;;  %v8351_v59 = vmul.f32 %v1731_v22, %v7990_v45  ;;  %v12989_v22 = vld [vmem:[#allocation29_spill] sm:$0xff] }
 0x419   : > { %12972 = vst [vmem:[#allocation110_spill] sm:$0xff] %v8322_v55  ;;  %12973 = vst [vmem:[#allocation288_spill] sm:$0xff] %v8325_v15  ;;  %v12980_v15 = vld [vmem:[#allocation194_spill] sm:$0xff]  ;;  %v8365_v39 = vmul.f32 %v1732_v18, %v7999_v36  ;;  %v8376_v52 = vmul.f32 %v1733_v35, %v8011_v13 }
 0x41a   : > { %12977 = vst [vmem:[#allocation309_spill] sm:$0xff] %v8335_v40  ;;  %12978 = vst [vmem:[#allocation310_spill] sm:$0xff] %v8338_v58  ;;  %v1734_v55 = vsel %vm1566_vm3, %v12980_v15, 1.0  ;;  %v1735_v40 = vsel %vm1566_vm3, %v12983_v38, 1.0  ;;  %v12984_v58 = vld [vmem:[#allocation196_spill] sm:$0xff]  ;;  %v8362_v15 = vmul.f32 %v1732_v18, %v7996_v54  ;;  %v8373_v38 = vpop.permute.xlu0 %2921  ;;  %v12994_v18 = vld [vmem:[#allocation197_spill] sm:$0xff] }
 0x41b   : > { %12979 = vst [vmem:[#allocation275_spill] sm:$0xff] %v8341_v41  ;;  %12981 = vst [vmem:[#allocation111_spill] sm:$0xff] %v8348_v37  ;;  %v1736_v29 = vsel %vm1566_vm3, %v12984_v58, 1.0  ;;  %v8359_v41 = vpop.permute.xlu1 %2917  ;;  %v8368_v37 = vmul.f32 %v1733_v35, %v8002_v49  ;;  %v8379_v58 = vmul.f32 %v1734_v55, %v8014_v2  ;;  %v12999_v35 = vld [vmem:[#allocation128_spill] sm:$0xff]  ;;  %v13001_v2 = vld [vmem:[#allocation198_spill] sm:$0xff] }
 0x41c   : > { %12982 = vst [vmem:[#allocation24_spill] sm:$0xff] %v8351_v59  ;;  %12985 = vst [vmem:[#allocation311_spill] sm:$0xff] %v8359_v41  ;;  %v1737_v59 = vsel %vm1566_vm3, %v12989_v22, 1.0  ;;  %v8382_v41 = vmul.f32 %v1734_v55, %v8021_v24  ;;  %3423 = vbcast.lane.b32.xlu1 %v12976_v56, 272  ;;  %v12997_v22 = vld [vmem:[#allocation126_spill] sm:$0xff]  ;;  %v1739_v55 = vsel %vm1566_vm3, %v13001_v2, 1.0 }
 0x41d   : > { %12986 = vst [vmem:[#allocation312_spill] sm:$0xff] %v8362_v15  ;;  %12987 = vst [vmem:[#allocation289_spill] sm:$0xff] %v8365_v39  ;;  %v1738_v39 = vsel %vm1566_vm3, %v12994_v18, 1.0  ;;  %3427 = vbcast.lane.b32.xlu0 %v12976_v56, 280  ;;  %v13004_v18 = vld [vmem:[#allocation132_spill] sm:$0xff]  ;;  %v8416_v2 = vmul.f32 %v1737_v59, %v8072_v14 }
 0x41e   : > { %12988 = vst [vmem:[#allocation146_spill] sm:$0xff] %v8368_v37  ;;  %12990 = vst [vmem:[#allocation147_spill] sm:$0xff] %v8373_v38  ;;  %v12995_v37 = vld [vmem:[#allocation165_spill] sm:$0xff]  ;;  %v8392_v38 = vmul.f32 %v1735_v40, %v12997_v22  ;;  %v8405_v24 = vmul.f32 %v1737_v59, %v13004_v18  ;;  %v13010_v56 = vld [vmem:[#allocation168_spill] sm:$0xff] }
 0x41f   : > { %12991 = vst [vmem:[#allocation59_spill] sm:$0xff] %v8376_v52  ;;  %12992 = vst [vmem:[#allocation178_spill] sm:$0xff] %v8379_v58  ;;  %v8389_v15 = vmul.f32 %v1735_v40, %v12995_v37  ;;  %v8395_v52 = vmul.f32 %v1736_v29, %v12999_v35  ;;  %v13006_v37 = vld [vmem:[#allocation199_spill] sm:$0xff]  ;;  %v8419_v35 = vmul.f32 %v1738_v39, %v13010_v56  ;;  %v13020_v59 = vld [vmem:[#allocation201_spill] sm:$0xff] }
 0x420   : > { %12993 = vst [vmem:[#allocation148_spill] sm:$0xff] %v8382_v41  ;;  %12998 = vst [vmem:[#allocation314_spill] sm:$0xff] %v8392_v38  ;;  %v13002_v41 = vld [vmem:[#allocation166_spill] sm:$0xff]  ;;  %v1740_v40 = vsel %vm1566_vm3, %v13006_v37, 1.0  ;;  %v8427_v37 = vpop.permute.xlu0 %2929  ;;  %v13023_v56 = vld [vmem:[#allocation283_spill] sm:$0xff] }
 0x421   : > { %12996 = vst [vmem:[#allocation313_spill] sm:$0xff] %v8389_v15  ;;  %13000 = vst [vmem:[#allocation112_spill] sm:$0xff] %v8395_v52  ;;  %v8402_v58 = vmul.f32 %v1736_v29, %v13002_v41  ;;  %v13007_v38 = vld [vmem:[#allocation30_spill] sm:$0xff]  ;;  %v8413_v15 = vpop.permute.xlu1 %2925  ;;  %v13012_v29 = vld [vmem:[#allocation281_spill] sm:$0xff] }
 0x422   : > { %13005 = vst [vmem:[#allocation315_spill] sm:$0xff] %v8405_v24  ;;  %v1741_v52 = vsel %vm1566_vm3, %v13007_v38, 1.0  ;;  %13008 = vst [vmem:[#allocation316_spill] sm:$0xff] %v8413_v15  ;;  %v13014_v24 = vld [vmem:[#allocation200_spill] sm:$0xff]  ;;  %v13016_v41 = vld [vmem:[#allocation299_spill] sm:$0xff] }
 0x423   : > { %13003 = vst [vmem:[#allocation179_spill] sm:$0xff] %v8402_v58  ;;  %13009 = vst [vmem:[#allocation290_spill] sm:$0xff] %v8416_v2  ;;  %v8422_v58 = vmul.f32 %v1738_v39, %v13012_v29  ;;  %v1742_v18 = vsel %vm1566_vm3, %v13014_v24, 1.0  ;;  %v8430_v22 = vmul.f32 %v1739_v55, %v13016_v41  ;;  %v13018_v38 = vld [vmem:[#allocation300_spill] sm:$0xff]  ;;  %v1743_v2 = vsel %vm1566_vm3, %v13020_v59, 1.0  ;;  %v13030_v59 = vld [vmem:[#allocation171_spill] sm:$0xff] }
 0x424   : > { %13011 = vst [vmem:[#allocation180_spill] sm:$0xff] %v8419_v35  ;;  %13015 = vst [vmem:[#allocation317_spill] sm:$0xff] %v8427_v37  ;;  %v8433_v15 = vmul.f32 %v1739_v55, %v13018_v38  ;;  %v13021_v35 = vld [vmem:[#allocation202_spill] sm:$0xff]  ;;  %v8443_v24 = vmul.f32 %v1740_v40, %v13023_v56  ;;  %v13029_v55 = vld [vmem:[#allocation31_spill] sm:$0xff]  ;;  %v8456_v38 = vmul.f32 %v1741_v52, %v13030_v59 }
 0x425   : > { %13013 = vst [vmem:[#allocation25_spill] sm:$0xff] %v8422_v58  ;;  %13017 = vst [vmem:[#allocation64_spill] sm:$0xff] %v8430_v22  ;;  %v1744_v39 = vsel %vm1566_vm3, %v13021_v35, 1.0  ;;  %v13022_v58 = vld [vmem:[#allocation67_spill] sm:$0xff]  ;;  %v13025_v37 = vld [vmem:[#allocation170_spill] sm:$0xff] }
 0x426   : > { %13019 = vst [vmem:[#allocation114_spill] sm:$0xff] %v8433_v15  ;;  %3468 = vbcast.lane.b32.xlu1 %v13022_v58, 256  ;;  %13024 = vst [vmem:[#allocation291_spill] sm:$0xff] %v8443_v24  ;;  %v8446_v29 = vmul.f32 %v1740_v40, %v13025_v37  ;;  %v13027_v22 = vld [vmem:[#allocation301_spill] sm:$0xff]  ;;  %v1745_v15 = vsel %vm1566_vm3, %v13029_v55, 1.0  ;;  %3472 = vbcast.lane.b32.xlu0 %v13022_v58, 264 }
 0x427   : > { %v8449_v41 = vmul.f32 %v1741_v52, %v13027_v22  ;;  %13031 = vst [vmem:[#allocation115_spill] sm:$0xff] %v8456_v38  ;;  %v13032_v35 = vld [vmem:[#allocation135_spill] sm:$0xff]  ;;  %v13034_v56 = vld [vmem:[#allocation136_spill] sm:$0xff]  ;;  %v13038_v22 = vld [vmem:[#allocation22_spill] sm:$0xff] }
 0x428   : > { %13026 = vst [vmem:[#allocation181_spill] sm:$0xff] %v8446_v29  ;;  %v8459_v14 = vmul.f32 %v1742_v18, %v13032_v35  ;;  %v8462_v24 = vmul.f32 %v1742_v18, %v13034_v56  ;;  %v13036_v40 = vld [vmem:[#allocation203_spill] sm:$0xff]  ;;  %v8470_v37 = vmul.f32 %v1743_v2, %v13038_v22  ;;  %v13039_v55 = vld [vmem:[#allocation58_spill] sm:$0xff]  ;;  %v13043_v35 = vld [vmem:[#allocation204_spill] sm:$0xff] }
 0x429   : > { %13028 = vst [vmem:[#allocation318_spill] sm:$0xff] %v8449_v41  ;;  %v1746_v29 = vsel %vm1566_vm3, %v13036_v40, 1.0  ;;  %v8467_v41 = vpop.permute.xlu1 %2936  ;;  %v8473_v49 = vmul.f32 %v1743_v2, %v13039_v55  ;;  %v13041_v52 = vld [vmem:[#allocation302_spill] sm:$0xff]  ;;  %v1747_v18 = vsel %vm1566_vm3, %v13043_v35, 1.0  ;;  %v8487_v40 = vmul.f32 %v1745_v15, %v8169_v20  ;;  %v13049_v2 = vld [vmem:[#allocation205_spill] sm:$0xff]  ;;  %v13051_v35 = vld [vmem:[#allocation32_spill] sm:$0xff] }
 0x42a   : > { %13033 = vst [vmem:[#allocation293_spill] sm:$0xff] %v8459_v14  ;;  %13035 = vst [vmem:[#allocation182_spill] sm:$0xff] %v8462_v24  ;;  %v8476_v38 = vmul.f32 %v1744_v39, %v13041_v52  ;;  %v8481_v24 = vpop.permute.xlu0 %2940  ;;  %v13045_v14 = vld [vmem:[#allocation139_spill] sm:$0xff]  ;;  %3476 = vbcast.lane.b32.xlu1 %v13022_v58, 272  ;;  %3480 = vbcast.lane.b32.xlu0 %v13022_v58, 280 }
 0x42b   : > { %13037 = vst [vmem:[#allocation183_spill] sm:$0xff] %v8467_v41  ;;  %13040 = vst [vmem:[#allocation116_spill] sm:$0xff] %v8473_v49  ;;  %v8484_v56 = vmul.f32 %v1744_v39, %v13045_v14  ;;  %v8490_v41 = vmul.f32 %v1745_v15, %v8177_v46  ;;  %v1748_v49 = vsel %vm1566_vm3, %v13049_v2, 1.0  ;;  %v1749_v39 = vsel %vm1566_vm3, %v13051_v35, 1.0  ;;  %v13057_v35 = vld [vmem:[#allocation209_spill] sm:$0xff] }
 0x42c   : > { %13042 = vst [vmem:[#allocation294_spill] sm:$0xff] %v8476_v38  ;;  %13044 = vst [vmem:[#allocation117_spill] sm:$0xff] %v8481_v24  ;;  %v8497_v38 = vmul.f32 %v1746_v29, %v8184_v16  ;;  %v13052_v24 = vld [vmem:[#allocation206_spill] sm:$0xff]  ;;  %v8510_v2 = vmul.f32 %v1746_v29, %v8189_v61  ;;  %v1906_v16 = vsel %vm1566_vm3, %v13057_v35, 0.0  ;;  %v8524_v20 = vmul.f32 %v1748_v49, %v8203_v5 }
 0x42d   : > { %13046 = vst [vmem:[#allocation319_spill] sm:$0xff] %v8484_v56  ;;  %13047 = vst [vmem:[#allocation295_spill] sm:$0xff] %v8487_v40  ;;  %v1750_v40 = vsel %vm1566_vm3, %v13052_v24, 1.0  ;;  %v13053_v56 = vld [vmem:[#allocation33_spill] sm:$0xff]  ;;  %v8521_v24 = vpop.permute.xlu1 %2944  ;;  %v8527_v58 = vmul.f32 %v1748_v49, %v8206_v8  ;;  %v8538_v35 = vmul.f32 %v1749_v39, %v8209_v34  ;;  %v13068_v34 = vld [vmem:[#allocation211_spill] sm:$0xff] }
 0x42e   : > { %13048 = vst [vmem:[#allocation296_spill] sm:$0xff] %v8490_v41  ;;  %13050 = vst [vmem:[#allocation320_spill] sm:$0xff] %v8497_v38  ;;  %v1905_v15 = vsel %vm1566_vm3, %v13053_v56, 0.0  ;;  %v8513_v41 = vmul.f32 %v1747_v18, %v8192_v3  ;;  %v8516_v38 = vmul.f32 %v1747_v18, %v8195_v57  ;;  %v13061_v56 = vld [vmem:[#allocation207_spill] sm:$0xff] }
 0x42f   : > { %13054 = vst [vmem:[#allocation151_spill] sm:$0xff] %v8510_v2  ;;  %13058 = vst [vmem:[#allocation156_spill] sm:$0xff] %v8521_v24  ;;  %v1751_v29 = vsel %vm1566_vm3, %v13061_v56, 1.0  ;;  %v8541_v24 = vmul.f32 %v1749_v39, %v8217_v26  ;;  %v1969_v49 = vmul.f32 %v1905_v15, %v7858_v63  ;;  %v2033_v56 = vmul.f32 %v1905_v15, %v7855_v9 }
 0x430   : > { %13055 = vst [vmem:[#allocation152_spill] sm:$0xff] %v8513_v41  ;;  %13056 = vst [vmem:[#allocation153_spill] sm:$0xff] %v8516_v38  ;;  %v13062_v41 = vld [vmem:[#allocation208_spill] sm:$0xff]  ;;  %v8535_v38 = vpop.permute.xlu0 %2948  ;;  %v1970_v2 = vmul.f32 %v1906_v16, %v7881_v43  ;;  %v1908_v39 = vsel %vm1566_vm3, %v13068_v34, 0.0  ;;  %v8561_v63 = vmul.f32 %v1751_v29, %v8230_v11  ;;  %v8564_v9 = vmul.f32 %v1751_v29, %v8233_v42 }
 0x431   : > { %13059 = vst [vmem:[#allocation26_spill] sm:$0xff] %v8524_v20  ;;  %13060 = vst [vmem:[#allocation321_spill] sm:$0xff] %v8527_v58  ;;  %v1752_v18 = vsel %vm1566_vm3, %v13062_v41, 1.0  ;;  %v8544_v20 = vmul.f32 %v1750_v40, %v8220_v27  ;;  %v13066_v58 = vld [vmem:[#allocation68_spill] sm:$0xff]  ;;  %v13067_v41 = vld [vmem:[#allocation210_spill] sm:$0xff]  ;;  %v8569_v15 = vpop.permute.xlu1 %2955  ;;  %v2034_v34 = vmul.f32 %v1906_v16, %v7861_v28  ;;  %v2036_v16 = vmul.f32 %v1908_v39, %v7890_v12 }
 0x432   : > { %13063 = vst [vmem:[#allocation322_spill] sm:$0xff] %v8535_v38  ;;  %13064 = vst [vmem:[#allocation155_spill] sm:$0xff] %v8541_v24  ;;  %3487 = vbcast.lane.b32.xlu1 %v13066_v58, 256  ;;  %v1907_v38 = vsel %vm1566_vm3, %v13067_v41, 0.0  ;;  %3491 = vbcast.lane.b32.xlu0 %v13066_v58, 264  ;;  %v8567_v43 = vmul.f32 %v1752_v18, %v8236_v47  ;;  %v8572_v41 = vmul.f32 %v1752_v18, %v8249_v23  ;;  %v13074_v24 = vld [vmem:[#allocation34_spill] sm:$0xff] }
 0x433   : > { %13065 = vst [vmem:[#allocation184_spill] sm:$0xff] %v8544_v20  ;;  %v8558_v20 = vmul.f32 %v1750_v40, %v8223_v6  ;;  %13070 = vst [vmem:[#allocation324_spill] sm:$0xff] %v8561_v63  ;;  %v1909_v40 = vsel %vm1566_vm3, %v13074_v24, 0.0  ;;  %v13077_v18 = vld [vmem:[#allocation213_spill] sm:$0xff]  ;;  %v8592_v24 = vsub.f32 %v8240_v21, %v1969_v49 }
 0x434   : > { %13071 = vst [vmem:[#allocation60_spill] sm:$0xff] %v8564_v9  ;;  %13072 = vst [vmem:[#allocation65_spill] sm:$0xff] %v8567_v43  ;;  %v8581_v29 = vpop.permute.xlu0 %2959  ;;  %v1971_v9 = vmul.f32 %v1907_v38, %v7887_v19  ;;  %v2035_v43 = vmul.f32 %v1907_v38, %v7884_v48  ;;  %v1911_v28 = vsel %vm1566_vm3, %v13077_v18, 0.0  ;;  %v8598_v19 = vsub.f32 %v8257_v17, %v1970_v2  ;;  %v13078_v18 = vld [vmem:[#allocation214_spill] sm:$0xff]  ;;  %v13080_v2 = vld [vmem:[#allocation35_spill] sm:$0xff] }
 0x435   : > { %13069 = vst [vmem:[#allocation323_spill] sm:$0xff] %v8558_v20  ;;  %13073 = vst [vmem:[#allocation185_spill] sm:$0xff] %v8569_v15  ;;  %v13075_v20 = vld [vmem:[#allocation212_spill] sm:$0xff]  ;;  %v1972_v15 = vmul.f32 %v1908_v39, %v7899_v4  ;;  %v1973_v4 = vmul.f32 %v1909_v40, %v7907_v31  ;;  %v2037_v48 = vmul.f32 %v1909_v40, %v7904_v51  ;;  %v1912_v12 = vsel %vm1566_vm3, %v13078_v18, 0.0  ;;  %v8607_v21 = vpop.permute.xlu1 %2963  ;;  %v13083_v39 = vld [vmem:[#allocation307_spill] sm:$0xff] }
 0x436   : > { %v1910_v63 = vsel %vm1566_vm3, %v13075_v20, 0.0  ;;  %13076 = vst [vmem:[#allocation279_spill] sm:$0xff] %v8581_v29  ;;  %3495 = vbcast.lane.b32.xlu1 %v13066_v58, 272  ;;  %v8595_v20 = vadd.f32 %v8254_v53, %v2033_v56  ;;  %3499 = vbcast.lane.b32.xlu0 %v13066_v58, 280  ;;  %13079 = vst [vmem:[#allocation158_spill] sm:$0xff] %v8607_v21  ;;  %v1975_v49 = vmul.f32 %v1911_v28, %v7924_v25  ;;  %v13085_v25 = vld [vmem:[#allocation69_spill] sm:$0xff] }
 0x437   : > { %v1974_v38 = vmul.f32 %v1910_v63, %v7918_v32  ;;  %v2038_v53 = vmul.f32 %v1910_v63, %v7910_v50  ;;  %v2039_v17 = vmul.f32 %v1911_v28, %v7921_v62  ;;  %v1913_v31 = vsel %vm1566_vm3, %v13080_v2, 0.0  ;;  %v13082_v32 = vld [vmem:[#allocation23_spill] sm:$0xff] }
 0x438   : > { %v8615_v58 = vpop.permute.xlu0 %2967  ;;  %v8618_v51 = vadd.f32 %v8260_v33, %v2034_v34  ;;  %v8621_v56 = vsub.f32 %v13082_v32, %v1971_v9  ;;  %v8624_v40 = vadd.f32 %v13083_v39, %v2035_v43  ;;  %v13084_v50 = vld [vmem:[#allocation175_spill] sm:$0xff]  ;;  %v1976_v62 = vmul.f32 %v1912_v12, %v7945_v60  ;;  %v13087_v34 = vld [vmem:[#allocation142_spill] sm:$0xff]  ;;  %v13088_v43 = vld [vmem:[#allocation176_spill] sm:$0xff] }
 0x439   : > { %13081 = vst [vmem:[#allocation159_spill] sm:$0xff] %v8615_v58  ;;  %v8627_v63 = vsub.f32 %v13084_v50, %v1972_v15  ;;  %v2040_v28 = vmul.f32 %v1912_v12, %v7942_v30  ;;  %v13086_v18 = vld [vmem:[#allocation215_spill] sm:$0xff]  ;;  %v8636_v2 = vadd.f32 %v13087_v34, %v2036_v16  ;;  %v1977_v9 = vmul.f32 %v1913_v31, %v7969_v10  ;;  %v13089_v60 = vld [vmem:[#allocation308_spill] sm:$0xff]  ;;  %v8649_v30 = vpop.permute.xlu1 %2974  ;;  %v13093_v34 = vld [vmem:[#allocation285_spill] sm:$0xff] }
 0x43a   : > { %3506 = vbcast.lane.b32.xlu1 %v13085_v25, 256  ;;  %v1914_v33 = vsel %vm1566_vm3, %v13086_v18, 0.0  ;;  %3510 = vbcast.lane.b32.xlu0 %v13085_v25, 264  ;;  %v8641_v15 = vsub.f32 %v13088_v43, %v1973_v4  ;;  %v8644_v32 = vadd.f32 %v8294_v44, %v2037_v48  ;;  %v8647_v39 = vsub.f32 %v13089_v60, %v1974_v38  ;;  %v13091_v12 = vld [vmem:[#allocation216_spill] sm:$0xff]  ;;  %v13092_v50 = vld [vmem:[#allocation63_spill] sm:$0xff]  ;;  %v13098_v60 = vld [vmem:[#allocation217_spill] sm:$0xff] }
 0x43b   : > { %13090 = vst [vmem:[#allocation186_spill] sm:$0xff] %v8649_v30  ;;  %v1915_v16 = vsel %vm1566_vm3, %v13091_v12, 0.0  ;;  %v8655_v18 = vadd.f32 %v13092_v50, %v2038_v53  ;;  %v8658_v10 = vsub.f32 %v13093_v34, %v1975_v49  ;;  %v13095_v4 = vld [vmem:[#allocation108_spill] sm:$0xff]  ;;  %v2041_v48 = vmul.f32 %v1913_v31, %v7954_v0  ;;  %v13100_v49 = vld [vmem:[#allocation163_spill] sm:$0xff] }
 0x43c   : > { %v8661_v43 = vadd.f32 %v13095_v4, %v2039_v17  ;;  %v8663_v44 = vpop.permute.xlu0 %2978  ;;  %v1978_v38 = vmul.f32 %v1914_v33, %v7984_v7  ;;  %v1916_v30 = vsel %vm1566_vm3, %v13098_v60, 0.0  ;;  %v13099_v12 = vld [vmem:[#allocation36_spill] sm:$0xff]  ;;  %v2042_v50 = vmul.f32 %v1914_v33, %v13100_v49  ;;  %v13101_v17 = vld [vmem:[#allocation218_spill] sm:$0xff]  ;;  %v13107_v58 = vld [vmem:[#allocation219_spill] sm:$0xff] }
 0x43d   : > { %13094 = vst [vmem:[#allocation187_spill] sm:$0xff] %v8658_v10  ;;  %13097 = vst [vmem:[#allocation188_spill] sm:$0xff] %v8663_v44  ;;  %v1917_v53 = vsel %vm1566_vm3, %v13099_v12, 0.0  ;;  %v1918_v34 = vsel %vm1566_vm3, %v13101_v17, 0.0  ;;  %v13102_v4 = vld [vmem:[#allocation286_spill] sm:$0xff]  ;;  %v1979_v60 = vmul.f32 %v1915_v16, %v7990_v45  ;;  %v13106_v44 = vld [vmem:[#allocation164_spill] sm:$0xff]  ;;  %v8693_v17 = vpop.permute.xlu1 %2982 }
 0x43e   : > { %13096 = vst [vmem:[#allocation56_spill] sm:$0xff] %v8661_v43  ;;  %3514 = vbcast.lane.b32.xlu1 %v13085_v25, 272  ;;  %v8679_v0 = vsub.f32 %v13102_v4, %v1976_v62  ;;  %v13104_v7 = vld [vmem:[#allocation110_spill] sm:$0xff]  ;;  %3518 = vbcast.lane.b32.xlu0 %v13085_v25, 280  ;;  %v2043_v12 = vmul.f32 %v1915_v16, %v13106_v44  ;;  %v1919_v33 = vsel %vm1566_vm3, %v13107_v58, 0.0  ;;  %v13108_v49 = vld [vmem:[#allocation288_spill] sm:$0xff] }
 0x43f   : > { %v8682_v31 = vadd.f32 %v13104_v7, %v2040_v28  ;;  %v8691_v21 = vsub.f32 %v13108_v49, %v1977_v9  ;;  %13110 = vst [vmem:[#allocation191_spill] sm:$0xff] %v8693_v17  ;;  %v1980_v62 = vmul.f32 %v1916_v30, %v7999_v36  ;;  %v2044_v28 = vmul.f32 %v1916_v30, %v7996_v54  ;;  %v13111_v25 = vld [vmem:[#allocation220_spill] sm:$0xff]  ;;  %v13113_v44 = vld [vmem:[#allocation123_spill] sm:$0xff]  ;;  %v13114_v58 = vld [vmem:[#allocation61_spill] sm:$0xff] }
 0x440   : > { %13103 = vst [vmem:[#allocation189_spill] sm:$0xff] %v8679_v0  ;;  %v1981_v4 = vmul.f32 %v1917_v53, %v8011_v13  ;;  %v1920_v45 = vsel %vm1566_vm3, %v13111_v25, 0.0  ;;  %v8701_v16 = vpop.permute.xlu0 %2986  ;;  %v2045_v7 = vmul.f32 %v1917_v53, %v13113_v44  ;;  %v1982_v29 = vmul.f32 %v1918_v34, %v13114_v58  ;;  %v13115_v9 = vld [vmem:[#allocation309_spill] sm:$0xff]  ;;  %v13117_v17 = vld [vmem:[#allocation310_spill] sm:$0xff]  ;;  %v13125_v58 = vld [vmem:[#allocation275_spill] sm:$0xff] }
 0x441   : > { %13105 = vst [vmem:[#allocation190_spill] sm:$0xff] %v8682_v31  ;;  %13109 = vst [vmem:[#allocation27_spill] sm:$0xff] %v8691_v21  ;;  %v8706_v49 = vadd.f32 %v13115_v9, %v2041_v48  ;;  %v8709_v21 = vsub.f32 %v13117_v17, %v1978_v38  ;;  %v13119_v36 = vld [vmem:[#allocation70_spill] sm:$0xff]  ;;  %v13120_v54 = vld [vmem:[#allocation125_spill] sm:$0xff]  ;;  %v8721_v9 = vadd.f32 %v13125_v58, %v2042_v50 }
 0x442   : > { %13112 = vst [vmem:[#allocation192_spill] sm:$0xff] %v8701_v16  ;;  %3525 = vbcast.lane.b32.xlu1 %v13119_v36, 256  ;;  %v2046_v13 = vmul.f32 %v1918_v34, %v13120_v54  ;;  %v13121_v30 = vld [vmem:[#allocation126_spill] sm:$0xff]  ;;  %v13122_v0 = vld [vmem:[#allocation165_spill] sm:$0xff]  ;;  %3529 = vbcast.lane.b32.xlu0 %v13119_v36, 264  ;;  %v13127_v38 = vld [vmem:[#allocation111_spill] sm:$0xff]  ;;  %v8729_v54 = vpop.permute.xlu1 %2993 }
 0x443   : > { %13116 = vst [vmem:[#allocation193_spill] sm:$0xff] %v8706_v49  ;;  %13118 = vst [vmem:[#allocation28_spill] sm:$0xff] %v8709_v21  ;;  %v1983_v31 = vmul.f32 %v1919_v33, %v13121_v30  ;;  %v2047_v25 = vmul.f32 %v1919_v33, %v13122_v0  ;;  %v13123_v43 = vld [vmem:[#allocation37_spill] sm:$0xff]  ;;  %v13124_v44 = vld [vmem:[#allocation166_spill] sm:$0xff]  ;;  %v8724_v17 = vsub.f32 %v13127_v38, %v1979_v60 }
 0x444   : > { %v1921_v53 = vsel %vm1566_vm3, %v13123_v43, 0.0  ;;  %v1984_v48 = vmul.f32 %v1920_v45, %v13124_v44  ;;  %13126 = vst [vmem:[#allocation66_spill] sm:$0xff] %v8721_v9  ;;  %v13129_v16 = vld [vmem:[#allocation24_spill] sm:$0xff]  ;;  %13131 = vst [vmem:[#allocation196_spill] sm:$0xff] %v8729_v54  ;;  %v13135_v43 = vld [vmem:[#allocation289_spill] sm:$0xff]  ;;  %v8741_v50 = vpop.permute.xlu0 %2997 }
 0x445   : > { %13128 = vst [vmem:[#allocation194_spill] sm:$0xff] %v8724_v17  ;;  %v8727_v34 = vadd.f32 %v13129_v16, %v2043_v12  ;;  %v13132_v0 = vld [vmem:[#allocation128_spill] sm:$0xff]  ;;  %v8736_v49 = vadd.f32 %v13135_v43, %v2044_v28  ;;  %v13137_v44 = vld [vmem:[#allocation146_spill] sm:$0xff]  ;;  %13139 = vst [vmem:[#allocation199_spill] sm:$0xff] %v8741_v50 }
 0x446   : > { %v2048_v33 = vmul.f32 %v1920_v45, %v13132_v0  ;;  %v13133_v30 = vld [vmem:[#allocation312_spill] sm:$0xff]  ;;  %v8739_v10 = vsub.f32 %v13137_v44, %v1981_v4  ;;  %v13140_v60 = vld [vmem:[#allocation133_spill] sm:$0xff]  ;;  %v13142_v16 = vld [vmem:[#allocation59_spill] sm:$0xff]  ;;  %3533 = vbcast.lane.b32.xlu1 %v13119_v36, 272  ;;  %3537 = vbcast.lane.b32.xlu0 %v13119_v36, 280 }
 0x447   : > { %13130 = vst [vmem:[#allocation195_spill] sm:$0xff] %v8727_v34  ;;  %v8733_v21 = vsub.f32 %v13133_v30, %v1980_v62  ;;  %13136 = vst [vmem:[#allocation197_spill] sm:$0xff] %v8736_v49  ;;  %v1985_v58 = vmul.f32 %v1921_v53, %v13140_v60  ;;  %v13141_v38 = vld [vmem:[#allocation221_spill] sm:$0xff]  ;;  %v8748_v54 = vadd.f32 %v13142_v16, %v2045_v7  ;;  %v13144_v45 = vld [vmem:[#allocation178_spill] sm:$0xff] }
 0x448   : > { %13138 = vst [vmem:[#allocation198_spill] sm:$0xff] %v8739_v10  ;;  %v1922_v12 = vsel %vm1566_vm3, %v13141_v38, 0.0  ;;  %v8751_v62 = vsub.f32 %v13144_v45, %v1982_v29  ;;  %v13146_v28 = vld [vmem:[#allocation222_spill] sm:$0xff]  ;;  %v13147_v0 = vld [vmem:[#allocation148_spill] sm:$0xff]  ;;  %v13149_v43 = vld [vmem:[#allocation313_spill] sm:$0xff] }
 0x449   : > { %13134 = vst [vmem:[#allocation29_spill] sm:$0xff] %v8733_v21  ;;  %13143 = vst [vmem:[#allocation30_spill] sm:$0xff] %v8748_v54  ;;  %v1923_v4 = vsel %vm1566_vm3, %v13146_v28, 0.0  ;;  %v8758_v30 = vadd.f32 %v13147_v0, %v2046_v13  ;;  %v8761_v44 = vsub.f32 %v13149_v43, %v1983_v31  ;;  %v13151_v60 = vld [vmem:[#allocation314_spill] sm:$0xff]  ;;  %v13153_v7 = vld [vmem:[#allocation132_spill] sm:$0xff]  ;;  %v8777_v31 = vpop.permute.xlu1 %3001 }
 0x44a   : > { %13145 = vst [vmem:[#allocation200_spill] sm:$0xff] %v8751_v62  ;;  %v8764_v38 = vadd.f32 %v13151_v60, %v2047_v25  ;;  %v2049_v29 = vmul.f32 %v1921_v53, %v13153_v7  ;;  %v13154_v16 = vld [vmem:[#allocation223_spill] sm:$0xff]  ;;  %v13155_v50 = vld [vmem:[#allocation38_spill] sm:$0xff]  ;;  %v13156_v13 = vld [vmem:[#allocation112_spill] sm:$0xff] }
 0x44b   : > { %13148 = vst [vmem:[#allocation201_spill] sm:$0xff] %v8758_v30  ;;  %13150 = vst [vmem:[#allocation202_spill] sm:$0xff] %v8761_v44  ;;  %v1924_v45 = vsel %vm1566_vm3, %v13154_v16, 0.0  ;;  %v1925_v28 = vsel %vm1566_vm3, %v13155_v50, 0.0  ;;  %v8775_v0 = vsub.f32 %v13156_v13, %v1984_v48  ;;  %v13159_v43 = vld [vmem:[#allocation281_spill] sm:$0xff]  ;;  %v13160_v60 = vld [vmem:[#allocation168_spill] sm:$0xff]  ;;  %v8787_v16 = vpop.permute.xlu0 %3005 }
 0x44c   : > { %13152 = vst [vmem:[#allocation67_spill] sm:$0xff] %v8764_v38  ;;  %13158 = vst [vmem:[#allocation171_spill] sm:$0xff] %v8777_v31  ;;  %v1986_v25 = vmul.f32 %v1922_v12, %v13159_v43  ;;  %v2050_v38 = vmul.f32 %v1922_v12, %v13160_v60  ;;  %v13161_v36 = vld [vmem:[#allocation224_spill] sm:$0xff]  ;;  %v13162_v7 = vld [vmem:[#allocation179_spill] sm:$0xff] }
 0x44d   : > { %13157 = vst [vmem:[#allocation31_spill] sm:$0xff] %v8775_v0  ;;  %v1926_v53 = vsel %vm1566_vm3, %v13161_v36, 0.0  ;;  %v8785_v44 = vadd.f32 %v13162_v7, %v2048_v33  ;;  %13164 = vst [vmem:[#allocation22_spill] sm:$0xff] %v8787_v16  ;;  %v13165_v30 = vld [vmem:[#allocation300_spill] sm:$0xff]  ;;  %v13166_v62 = vld [vmem:[#allocation299_spill] sm:$0xff]  ;;  %v1989_v7 = vmul.f32 %v1925_v28, %v13030_v59 }
 0x44e   : > { %v1987_v50 = vmul.f32 %v1923_v4, %v13165_v30  ;;  %v2051_v48 = vmul.f32 %v1923_v4, %v13166_v62  ;;  %v13167_v13 = vld [vmem:[#allocation225_spill] sm:$0xff]  ;;  %v13168_v43 = vld [vmem:[#allocation315_spill] sm:$0xff]  ;;  %v13171_v60 = vld [vmem:[#allocation170_spill] sm:$0xff] }
 0x44f   : > { %13163 = vst [vmem:[#allocation203_spill] sm:$0xff] %v8785_v44  ;;  %v1927_v31 = vsel %vm1566_vm3, %v13167_v13, 0.0  ;;  %v8795_v0 = vsub.f32 %v13168_v43, %v1985_v58  ;;  %v13170_v12 = vld [vmem:[#allocation71_spill] sm:$0xff]  ;;  %v1988_v36 = vmul.f32 %v1924_v45, %v13171_v60  ;;  %v13173_v16 = vld [vmem:[#allocation226_spill] sm:$0xff]  ;;  %v13174_v62 = vld [vmem:[#allocation301_spill] sm:$0xff]  ;;  %v8811_v60 = vpop.permute.xlu1 %3012 }
 0x450   : > { %3544 = vbcast.lane.b32.xlu1 %v13170_v12, 256  ;;  %v13172_v54 = vld [vmem:[#allocation283_spill] sm:$0xff]  ;;  %v1928_v30 = vsel %vm1566_vm3, %v13173_v16, 0.0  ;;  %3548 = vbcast.lane.b32.xlu0 %v13170_v12, 264  ;;  %v2053_v4 = vmul.f32 %v1925_v28, %v13174_v62  ;;  %v13175_v13 = vld [vmem:[#allocation136_spill] sm:$0xff]  ;;  %13178 = vst [vmem:[#allocation302_spill] sm:$0xff] %v8811_v60  ;;  %v2055_v59 = vmul.f32 %v1927_v31, %v13038_v22  ;;  %v8821_v28 = vpop.permute.xlu0 %3016 }
 0x451   : > { %13169 = vst [vmem:[#allocation58_spill] sm:$0xff] %v8795_v0  ;;  %v2052_v33 = vmul.f32 %v1924_v45, %v13172_v54  ;;  %v1990_v44 = vmul.f32 %v1926_v53, %v13175_v13  ;;  %v13176_v58 = vld [vmem:[#allocation135_spill] sm:$0xff]  ;;  %v13177_v0 = vld [vmem:[#allocation290_spill] sm:$0xff]  ;;  %v1991_v54 = vmul.f32 %v1927_v31, %v13039_v55  ;;  %v13179_v45 = vld [vmem:[#allocation180_spill] sm:$0xff] }
 0x452   : > { %v2054_v43 = vmul.f32 %v1926_v53, %v13176_v58  ;;  %v8809_v10 = vadd.f32 %v13177_v0, %v2049_v29  ;;  %v8816_v49 = vsub.f32 %v13179_v45, %v1986_v25  ;;  %v13180_v16 = vld [vmem:[#allocation25_spill] sm:$0xff]  ;;  %13181 = vst [vmem:[#allocation204_spill] sm:$0xff] %v8821_v28  ;;  %v13182_v62 = vld [vmem:[#allocation276_spill] sm:$0xff]  ;;  %v1992_v53 = vmul.f32 %v1928_v30, %v13045_v14  ;;  %v13183_v29 = vld [vmem:[#allocation39_spill] sm:$0xff] }
 0x453   : > { %v8819_v21 = vadd.f32 %v13180_v16, %v2050_v38  ;;  %vm2136_vm4 = vcmp.eq.s32.totalorder %v13182_v62, 1  ;;  %v1929_v0 = vsel %vm1566_vm3, %v13183_v29, 0.0  ;;  %v13184_v13 = vld [vmem:[#allocation64_spill] sm:$0xff]  ;;  %v13185_v22 = vld [vmem:[#allocation114_spill] sm:$0xff]  ;;  %v2056_v38 = vmul.f32 %v1928_v30, %v13041_v52  ;;  %v13186_v25 = vld [vmem:[#allocation291_spill] sm:$0xff] }
 0x454   : > { %v8829_v55 = vsub.f32 %v13184_v13, %v1987_v50  ;;  %v8832_v31 = vadd.f32 %v13185_v22, %v2051_v48  ;;  %3552 = vbcast.lane.b32.xlu1 %v13170_v12, 272  ;;  %v8837_v58 = vsub.f32 %v13186_v25, %v1988_v36  ;;  %v13187_v45 = vld [vmem:[#allocation181_spill] sm:$0xff]  ;;  %v13188_v14 = vld [vmem:[#allocation318_spill] sm:$0xff]  ;;  %3556 = vbcast.lane.b32.xlu0 %v13170_v12, 280  ;;  %v13190_v50 = vld [vmem:[#allocation227_spill] sm:$0xff] }
 0x455   : > { %v8840_v16 = vadd.f32 %v13187_v45, %v2052_v33  ;;  %v8843_v28 = vsub.f32 %v13188_v14, %v1989_v7  ;;  %v1930_v48 = vsel %vm1566_vm3, %v13190_v50, 0.0  ;;  %v13191_v29 = vld [vmem:[#allocation115_spill] sm:$0xff]  ;;  %v13192_v22 = vld [vmem:[#allocation293_spill] sm:$0xff]  ;;  %v13194_v36 = vld [vmem:[#allocation182_spill] sm:$0xff]  ;;  %v8858_v33 = vpop.permute.xlu1 %3020  ;;  %v1993_v7 = vmul.f32 %v1929_v0, %v8177_v46  ;;  %v8870_v50 = vpop.permute.xlu0 %3024 }
 0x456   : > { %v8850_v13 = vadd.f32 %v13191_v29, %v2053_v4  ;;  %v8853_v52 = vsub.f32 %v13192_v22, %v1990_v44  ;;  %v8856_v30 = vadd.f32 %v13194_v36, %v2054_v43  ;;  %13196 = vst [vmem:[#allocation206_spill] sm:$0xff] %v8858_v33  ;;  %v13197_v25 = vld [vmem:[#allocation228_spill] sm:$0xff]  ;;  %v8865_v45 = vsub.f32 %v8470_v37, %v1991_v54  ;;  %v13202_v43 = vld [vmem:[#allocation229_spill] sm:$0xff]  ;;  %v13204_v33 = vld [vmem:[#allocation294_spill] sm:$0xff] }
 0x457   : > { %13189 = vst [vmem:[#allocation139_spill] sm:$0xff] %v8843_v28  ;;  %v1931_v12 = vsel %vm1566_vm3, %v13197_v25, 0.0  ;;  %v13198_v14 = vld [vmem:[#allocation116_spill] sm:$0xff]  ;;  %13200 = vst [vmem:[#allocation209_spill] sm:$0xff] %v8870_v50  ;;  %v1932_v22 = vsel %vm1566_vm3, %v13202_v43, 0.0  ;;  %v8880_v25 = vsub.f32 %v13204_v33, %v1992_v53  ;;  %v1994_v54 = vmul.f32 %v1930_v48, %v8189_v61  ;;  %v13208_v50 = vld [vmem:[#allocation230_spill] sm:$0xff] }
 0x458   : > { %13193 = vst [vmem:[#allocation205_spill] sm:$0xff] %v8853_v52  ;;  %13195 = vst [vmem:[#allocation32_spill] sm:$0xff] %v8856_v30  ;;  %v8868_v4 = vadd.f32 %v13198_v14, %v2055_v59  ;;  %v13201_v44 = vld [vmem:[#allocation172_spill] sm:$0xff]  ;;  %v13207_v59 = vld [vmem:[#allocation173_spill] sm:$0xff]  ;;  %v1995_v43 = vmul.f32 %v1931_v12, %v8195_v57  ;;  %v2059_v53 = vmul.f32 %v1931_v12, %v8192_v3 }
 0x459   : > { %v2057_v29 = vmul.f32 %v1929_v0, %v13201_v44  ;;  %v13203_v36 = vld [vmem:[#allocation40_spill] sm:$0xff]  ;;  %13205 = vst [vmem:[#allocation207_spill] sm:$0xff] %v8880_v25  ;;  %v2058_v14 = vmul.f32 %v1930_v48, %v13207_v59  ;;  %v1934_v0 = vsel %vm1566_vm3, %v13208_v50, 0.0  ;;  %v13209_v44 = vld [vmem:[#allocation319_spill] sm:$0xff]  ;;  %v8900_v59 = vpop.permute.xlu1 %3031  ;;  %v1996_v50 = vmul.f32 %v1932_v22, %v8206_v8  ;;  %v8908_v3 = vpop.permute.xlu0 %3035  ;;  %v13217_v12 = vld [vmem:[#allocation141_spill] sm:$0xff] }
 0x45a   : > { %13199 = vst [vmem:[#allocation33_spill] sm:$0xff] %v8868_v4  ;;  %v1933_v46 = vsel %vm1566_vm3, %v13203_v36, 0.0  ;;  %v13206_v37 = vld [vmem:[#allocation72_spill] sm:$0xff]  ;;  %v8889_v60 = vadd.f32 %v13209_v44, %v2056_v38  ;;  %v13211_v33 = vld [vmem:[#allocation231_spill] sm:$0xff]  ;;  %13213 = vst [vmem:[#allocation68_spill] sm:$0xff] %v8900_v59  ;;  %v2060_v38 = vmul.f32 %v1932_v22, %v8203_v5  ;;  %v2062_v1 = vmul.f32 %v1934_v0, %v8220_v27 }
 0x45b   : > { %3563 = vbcast.lane.b32.xlu1 %v13206_v37, 256  ;;  %3567 = vbcast.lane.b32.xlu0 %v13206_v37, 264  ;;  %v1935_v36 = vsel %vm1566_vm3, %v13211_v33, 0.0  ;;  %v13212_v61 = vld [vmem:[#allocation232_spill] sm:$0xff]  ;;  %v1997_v44 = vmul.f32 %v1933_v46, %v8217_v26  ;;  %13216 = vst [vmem:[#allocation211_spill] sm:$0xff] %v8908_v3  ;;  %v2061_v25 = vmul.f32 %v1933_v46, %v13217_v12  ;;  %v13221_v22 = vld [vmem:[#allocation151_spill] sm:$0xff] }
 0x45c   : > { %13210 = vst [vmem:[#allocation208_spill] sm:$0xff] %v8889_v60  ;;  %v1936_v48 = vsel %vm1566_vm3, %v13212_v61, 0.0  ;;  %v13214_v60 = vld [vmem:[#allocation295_spill] sm:$0xff]  ;;  %v1998_v33 = vmul.f32 %v1934_v0, %v8223_v6  ;;  %v13218_v61 = vld [vmem:[#allocation296_spill] sm:$0xff]  ;;  %v1999_v5 = vmul.f32 %v1935_v36, %v8233_v42  ;;  %v2063_v8 = vmul.f32 %v1935_v36, %v8230_v11  ;;  %v13223_v0 = vld [vmem:[#allocation153_spill] sm:$0xff] }
 0x45d   : > { %v8906_v57 = vsub.f32 %v13214_v60, %v1993_v7  ;;  %v8914_v4 = vadd.f32 %v13218_v61, %v2057_v29  ;;  %v2000_v26 = vmul.f32 %v1936_v48, %v8249_v23  ;;  %v13219_v60 = vld [vmem:[#allocation320_spill] sm:$0xff]  ;;  %v2064_v6 = vmul.f32 %v1936_v48, %v8236_v47  ;;  %v8934_v42 = vpop.permute.xlu1 %3039  ;;  %v13225_v11 = vld [vmem:[#allocation41_spill] sm:$0xff]  ;;  %v13231_v61 = vld [vmem:[#allocation155_spill] sm:$0xff] }
 0x45e   : > { %v8921_v7 = vsub.f32 %v13219_v60, %v1994_v54  ;;  %v8926_v27 = vadd.f32 %v13221_v22, %v2058_v14  ;;  %v13222_v29 = vld [vmem:[#allocation152_spill] sm:$0xff]  ;;  %v8932_v12 = vadd.f32 %v13223_v0, %v2059_v53  ;;  %13224 = vst [vmem:[#allocation212_spill] sm:$0xff] %v8934_v42  ;;  %v2291_v23 = vsel %vm2136_vm4, %v13225_v11, 1.0  ;;  %v13226_v54 = vld [vmem:[#allocation26_spill] sm:$0xff]  ;;  %v13230_v48 = vld [vmem:[#allocation233_spill] sm:$0xff] }
 0x45f   : > { %13215 = vst [vmem:[#allocation210_spill] sm:$0xff] %v8906_v57  ;;  %3571 = vbcast.lane.b32.xlu1 %v13206_v37, 272  ;;  %3575 = vbcast.lane.b32.xlu0 %v13206_v37, 280  ;;  %v8929_v46 = vsub.f32 %v13222_v29, %v1995_v43  ;;  %v8940_v36 = vsub.f32 %v13226_v54, %v1996_v50  ;;  %v13227_v37 = vld [vmem:[#allocation321_spill] sm:$0xff]  ;;  %v8948_v43 = vpop.permute.xlu0 %3043  ;;  %v2292_v53 = vsel %vm2136_vm4, %v13230_v48, 1.0  ;;  %v13232_v22 = vld [vmem:[#allocation184_spill] sm:$0xff] }
 0x460   : > { %13220 = vst [vmem:[#allocation34_spill] sm:$0xff] %v8921_v7  ;;  %v8943_v47 = vadd.f32 %v13227_v37, %v2060_v38  ;;  %v8946_v14 = vsub.f32 %v8538_v35, %v1997_v44  ;;  %13229 = vst [vmem:[#allocation214_spill] sm:$0xff] %v8948_v43  ;;  %v8954_v60 = vadd.f32 %v13231_v61, %v2061_v25  ;;  %v13233_v50 = vld [vmem:[#allocation323_spill] sm:$0xff]  ;;  %v13234_v38 = vld [vmem:[#allocation73_spill] sm:$0xff] }
 0x461   : > { %v8957_v29 = vsub.f32 %v13232_v22, %v1998_v33  ;;  %v8960_v0 = vadd.f32 %v13233_v50, %v2062_v1  ;;  %v13235_v11 = vld [vmem:[#allocation234_spill] sm:$0xff]  ;;  %v13236_v44 = vld [vmem:[#allocation324_spill] sm:$0xff]  ;;  %v13238_v25 = vld [vmem:[#allocation65_spill] sm:$0xff]  ;;  %v8977_v33 = vmul.f32 %v2291_v23, %v8592_v24 }
 0x462   : > { %13228 = vst [vmem:[#allocation213_spill] sm:$0xff] %v8946_v14  ;;  %v2293_v35 = vsel %vm2136_vm4, %v13235_v11, 1.0  ;;  %v8967_v54 = vsub.f32 %v13236_v44, %v1999_v5  ;;  %v13237_v37 = vld [vmem:[#allocation60_spill] sm:$0xff]  ;;  %v8973_v61 = vsub.f32 %v13238_v25, %v2000_v26  ;;  %v13239_v1 = vld [vmem:[#allocation235_spill] sm:$0xff]  ;;  %v13240_v50 = vld [vmem:[#allocation42_spill] sm:$0xff]  ;;  %v8986_v11 = vadd.f32 %v8572_v41, %v2064_v6 }
 0x463   : > { %3582 = vbcast.lane.b32.xlu1 %v13234_v38, 256  ;;  %v8970_v48 = vadd.f32 %v13237_v37, %v2063_v8  ;;  %3586 = vbcast.lane.b32.xlu0 %v13234_v38, 264  ;;  %v2294_v22 = vsel %vm2136_vm4, %v13239_v1, 1.0  ;;  %v2295_v5 = vsel %vm2136_vm4, %v13240_v50, 1.0  ;;  %v8988_v8 = vpop.permute.xlu1 %3282  ;;  %v8991_v26 = vmul.f32 %v2291_v23, %v8595_v20  ;;  %v13243_v25 = vld [vmem:[#allocation236_spill] sm:$0xff]  ;;  %v9002_v43 = vpop.permute.xlu0 %3286  ;;  %v13247_v23 = vld [vmem:[#allocation237_spill] sm:$0xff] }
 0x464   : > { %13241 = vst [vmem:[#allocation35_spill] sm:$0xff] %v8988_v8  ;;  %v8994_v44 = vmul.f32 %v2292_v53, %v8598_v19  ;;  %v8997_v37 = vmul.f32 %v2292_v53, %v8618_v51  ;;  %v2296_v1 = vsel %vm2136_vm4, %v13243_v25, 1.0  ;;  %13244 = vst [vmem:[#allocation307_spill] sm:$0xff] %v9002_v43  ;;  %v9005_v41 = vmul.f32 %v2293_v35, %v8621_v56  ;;  %v13248_v8 = vld [vmem:[#allocation238_spill] sm:$0xff] }
 0x465   : > { %v9008_v6 = vmul.f32 %v2293_v35, %v8624_v40  ;;  %v2297_v50 = vsel %vm2136_vm4, %v13247_v23, 1.0  ;;  %v2298_v53 = vsel %vm2136_vm4, %v13248_v8, 1.0  ;;  %v9018_v25 = vmul.f32 %v2294_v22, %v8627_v63  ;;  %v13252_v35 = vld [vmem:[#allocation43_spill] sm:$0xff] }
 0x466   : > { %13242 = vst [vmem:[#allocation23_spill] sm:$0xff] %v8997_v37  ;;  %13245 = vst [vmem:[#allocation175_spill] sm:$0xff] %v9005_v41  ;;  %v9021_v43 = vmul.f32 %v2294_v22, %v8636_v2  ;;  %v9024_v42 = vmul.f32 %v2295_v5, %v8641_v15  ;;  %v2299_v3 = vsel %vm2136_vm4, %v13252_v35, 1.0  ;;  %v9031_v23 = vmul.f32 %v2295_v5, %v8644_v32  ;;  %v13256_v22 = vld [vmem:[#allocation239_spill] sm:$0xff]  ;;  %v13260_v35 = vld [vmem:[#allocation56_spill] sm:$0xff] }
 0x467   : > { %13246 = vst [vmem:[#allocation69_spill] sm:$0xff] %v9008_v6  ;;  %3590 = vbcast.lane.b32.xlu1 %v13234_v38, 272  ;;  %13249 = vst [vmem:[#allocation215_spill] sm:$0xff] %v9018_v25  ;;  %3594 = vbcast.lane.b32.xlu0 %v13234_v38, 280  ;;  %v9034_v8 = vmul.f32 %v2296_v1, %v8647_v39  ;;  %v9037_v59 = vmul.f32 %v2296_v1, %v8655_v18  ;;  %v13258_v25 = vld [vmem:[#allocation187_spill] sm:$0xff]  ;;  %v13262_v5 = vld [vmem:[#allocation189_spill] sm:$0xff] }
 0x468   : > { %13250 = vst [vmem:[#allocation142_spill] sm:$0xff] %v9021_v43  ;;  %13251 = vst [vmem:[#allocation176_spill] sm:$0xff] %v9024_v42  ;;  %v2300_v43 = vsel %vm2136_vm4, %v13256_v22, 1.0  ;;  %v9042_v42 = vpop.permute.xlu1 %3290  ;;  %v9045_v6 = vmul.f32 %v2297_v50, %v13258_v25  ;;  %v9048_v38 = vmul.f32 %v2297_v50, %v13260_v35  ;;  %v13264_v41 = vld [vmem:[#allocation240_spill] sm:$0xff]  ;;  %v13268_v22 = vld [vmem:[#allocation27_spill] sm:$0xff] }
 0x469   : > { %13253 = vst [vmem:[#allocation308_spill] sm:$0xff] %v9031_v23  ;;  %13254 = vst [vmem:[#allocation216_spill] sm:$0xff] %v9034_v8  ;;  %v9051_v23 = vmul.f32 %v2298_v53, %v13262_v5  ;;  %v2301_v1 = vsel %vm2136_vm4, %v13264_v41, 1.0  ;;  %v13266_v8 = vld [vmem:[#allocation190_spill] sm:$0xff]  ;;  %v13270_v25 = vld [vmem:[#allocation241_spill] sm:$0xff] }
 0x46a   : > { %13255 = vst [vmem:[#allocation63_spill] sm:$0xff] %v9037_v59  ;;  %13257 = vst [vmem:[#allocation285_spill] sm:$0xff] %v9042_v42  ;;  %v9056_v59 = vpop.permute.xlu0 %3294  ;;  %v9059_v37 = vmul.f32 %v2298_v53, %v13266_v8  ;;  %v9062_v42 = vmul.f32 %v2299_v3, %v13268_v22  ;;  %v2302_v50 = vsel %vm2136_vm4, %v13270_v25, 1.0  ;;  %v13273_v5 = vld [vmem:[#allocation193_spill] sm:$0xff]  ;;  %v9078_v53 = vmul.f32 %v2300_v43, %v8721_v9 }
 0x46b   : > { %13259 = vst [vmem:[#allocation108_spill] sm:$0xff] %v9045_v6  ;;  %13261 = vst [vmem:[#allocation217_spill] sm:$0xff] %v9048_v38  ;;  %v13271_v38 = vld [vmem:[#allocation44_spill] sm:$0xff]  ;;  %v13272_v6 = vld [vmem:[#allocation74_spill] sm:$0xff]  ;;  %v9072_v41 = vmul.f32 %v2299_v3, %v13273_v5  ;;  %v9085_v25 = vmul.f32 %v2301_v1, %v8724_v17 }
 0x46c   : > { %13263 = vst [vmem:[#allocation36_spill] sm:$0xff] %v9051_v23  ;;  %13265 = vst [vmem:[#allocation163_spill] sm:$0xff] %v9056_v59  ;;  %v2303_v23 = vsel %vm2136_vm4, %v13271_v38, 1.0  ;;  %3601 = vbcast.lane.b32.xlu1 %v13272_v6, 256  ;;  %v13275_v59 = vld [vmem:[#allocation28_spill] sm:$0xff]  ;;  %3605 = vbcast.lane.b32.xlu0 %v13272_v6, 264  ;;  %v9088_v38 = vmul.f32 %v2301_v1, %v8727_v34 }
 0x46d   : > { %13267 = vst [vmem:[#allocation218_spill] sm:$0xff] %v9059_v37  ;;  %13269 = vst [vmem:[#allocation286_spill] sm:$0xff] %v9062_v42  ;;  %v9075_v35 = vmul.f32 %v2300_v43, %v13275_v59  ;;  %v13278_v42 = vld [vmem:[#allocation242_spill] sm:$0xff]  ;;  %v13281_v3 = vld [vmem:[#allocation243_spill] sm:$0xff] }
 0x46e   : > { %13274 = vst [vmem:[#allocation110_spill] sm:$0xff] %v9072_v41  ;;  %13277 = vst [vmem:[#allocation219_spill] sm:$0xff] %v9078_v53  ;;  %v2304_v37 = vsel %vm2136_vm4, %v13278_v42, 1.0  ;;  %v2305_v41 = vsel %vm2136_vm4, %v13281_v3, 1.0  ;;  %v9096_v53 = vpop.permute.xlu1 %3301  ;;  %v13284_v59 = vld [vmem:[#allocation29_spill] sm:$0xff]  ;;  %v9110_v3 = vpop.permute.xlu0 %3305  ;;  %v13292_v34 = vld [vmem:[#allocation30_spill] sm:$0xff] }
 0x46f   : > { %13276 = vst [vmem:[#allocation164_spill] sm:$0xff] %v9075_v35  ;;  %13279 = vst [vmem:[#allocation288_spill] sm:$0xff] %v9085_v25  ;;  %v13282_v35 = vld [vmem:[#allocation244_spill] sm:$0xff]  ;;  %v9099_v42 = vmul.f32 %v2302_v50, %v13284_v59  ;;  %v13286_v9 = vld [vmem:[#allocation197_spill] sm:$0xff]  ;;  %v9113_v5 = vmul.f32 %v2303_v23, %v13292_v34 }
 0x470   : > { %13280 = vst [vmem:[#allocation220_spill] sm:$0xff] %v9088_v38  ;;  %v2306_v43 = vsel %vm2136_vm4, %v13282_v35, 1.0  ;;  %13283 = vst [vmem:[#allocation123_spill] sm:$0xff] %v9096_v53  ;;  %v9102_v22 = vmul.f32 %v2302_v50, %v13286_v9  ;;  %v13288_v25 = vld [vmem:[#allocation198_spill] sm:$0xff]  ;;  %v13290_v1 = vld [vmem:[#allocation45_spill] sm:$0xff]  ;;  %3609 = vbcast.lane.b32.xlu1 %v13272_v6, 272 }
 0x471   : > { %13285 = vst [vmem:[#allocation61_spill] sm:$0xff] %v9099_v42  ;;  %v9105_v17 = vmul.f32 %v2303_v23, %v13288_v25  ;;  %v2307_v38 = vsel %vm2136_vm4, %v13290_v1, 1.0  ;;  %13291 = vst [vmem:[#allocation70_spill] sm:$0xff] %v9110_v3  ;;  %v13294_v35 = vld [vmem:[#allocation200_spill] sm:$0xff]  ;;  %v13296_v59 = vld [vmem:[#allocation201_spill] sm:$0xff]  ;;  %3613 = vbcast.lane.b32.xlu0 %v13272_v6, 280 }
 0x472   : > { %13287 = vst [vmem:[#allocation309_spill] sm:$0xff] %v9102_v22  ;;  %13293 = vst [vmem:[#allocation125_spill] sm:$0xff] %v9113_v5  ;;  %v9116_v53 = vmul.f32 %v2304_v37, %v13294_v35  ;;  %v9119_v42 = vmul.f32 %v2304_v37, %v13296_v59  ;;  %v13298_v50 = vld [vmem:[#allocation245_spill] sm:$0xff]  ;;  %v13301_v1 = vld [vmem:[#allocation67_spill] sm:$0xff] }
 0x473   : > { %13289 = vst [vmem:[#allocation310_spill] sm:$0xff] %v9105_v17  ;;  %v2308_v22 = vsel %vm2136_vm4, %v13298_v50, 1.0  ;;  %v13299_v17 = vld [vmem:[#allocation202_spill] sm:$0xff]  ;;  %v9129_v3 = vmul.f32 %v2305_v41, %v13301_v1  ;;  %v13303_v23 = vld [vmem:[#allocation31_spill] sm:$0xff] }
 0x474   : > { %13295 = vst [vmem:[#allocation126_spill] sm:$0xff] %v9116_v53  ;;  %13297 = vst [vmem:[#allocation165_spill] sm:$0xff] %v9119_v42  ;;  %v9126_v25 = vmul.f32 %v2305_v41, %v13299_v17  ;;  %v9132_v5 = vmul.f32 %v2306_v43, %v13303_v23  ;;  %v13305_v35 = vld [vmem:[#allocation246_spill] sm:$0xff]  ;;  %v13306_v42 = vld [vmem:[#allocation203_spill] sm:$0xff]  ;;  %v9156_v6 = vmul.f32 %v2308_v22, %v8816_v49 }
 0x475   : > { %13302 = vst [vmem:[#allocation166_spill] sm:$0xff] %v9129_v3  ;;  %v2309_v37 = vsel %vm2136_vm4, %v13305_v35, 1.0  ;;  %v9139_v53 = vmul.f32 %v2306_v43, %v13306_v42  ;;  %v13308_v50 = vld [vmem:[#allocation58_spill] sm:$0xff]  ;;  %v13310_v17 = vld [vmem:[#allocation247_spill] sm:$0xff]  ;;  %v9153_v35 = vmul.f32 %v2307_v38, %v8809_v10  ;;  %v9159_v43 = vmul.f32 %v2308_v22, %v8819_v21 }
 0x476   : > { %13300 = vst [vmem:[#allocation37_spill] sm:$0xff] %v9126_v25  ;;  %13304 = vst [vmem:[#allocation275_spill] sm:$0xff] %v9132_v5  ;;  %v9142_v59 = vmul.f32 %v2307_v38, %v13308_v50  ;;  %v2310_v41 = vsel %vm2136_vm4, %v13310_v17, 1.0  ;;  %v13311_v3 = vld [vmem:[#allocation46_spill] sm:$0xff]  ;;  %v9150_v25 = vpop.permute.xlu1 %3309  ;;  %v9164_v17 = vpop.permute.xlu0 %3313  ;;  %v9167_v50 = vmul.f32 %v2309_v37, %v8829_v55  ;;  %v13320_v38 = vld [vmem:[#allocation249_spill] sm:$0xff] }
 0x477   : > { %13307 = vst [vmem:[#allocation111_spill] sm:$0xff] %v9139_v53  ;;  %v2311_v5 = vsel %vm2136_vm4, %v13311_v3, 1.0  ;;  %13312 = vst [vmem:[#allocation128_spill] sm:$0xff] %v9150_v25  ;;  %v9170_v3 = vmul.f32 %v2309_v37, %v8832_v31  ;;  %v2313_v25 = vsel %vm2136_vm4, %v13320_v38, 1.0  ;;  %v13326_v37 = vld [vmem:[#allocation47_spill] sm:$0xff] }
 0x478   : > { %13309 = vst [vmem:[#allocation24_spill] sm:$0xff] %v9142_v59  ;;  %13313 = vst [vmem:[#allocation312_spill] sm:$0xff] %v9153_v35  ;;  %v13316_v59 = vld [vmem:[#allocation248_spill] sm:$0xff]  ;;  %v9193_v38 = vmul.f32 %v2311_v5, %v8850_v13  ;;  %v9207_v35 = vmul.f32 %v2313_v25, %v8865_v45 }
 0x479   : > { %13314 = vst [vmem:[#allocation289_spill] sm:$0xff] %v9156_v6  ;;  %13315 = vst [vmem:[#allocation146_spill] sm:$0xff] %v9159_v43  ;;  %v2312_v53 = vsel %vm2136_vm4, %v13316_v59, 1.0  ;;  %v13321_v6 = vld [vmem:[#allocation250_spill] sm:$0xff]  ;;  %v13322_v43 = vld [vmem:[#allocation75_spill] sm:$0xff]  ;;  %v9180_v59 = vmul.f32 %v2310_v41, %v8837_v58 }
 0x47a   : > { %13317 = vst [vmem:[#allocation133_spill] sm:$0xff] %v9164_v17  ;;  %13318 = vst [vmem:[#allocation221_spill] sm:$0xff] %v9167_v50  ;;  %v2314_v22 = vsel %vm2136_vm4, %v13321_v6, 1.0  ;;  %3852 = vbcast.lane.b32.xlu1 %v13322_v43, 256  ;;  %v9183_v17 = vmul.f32 %v2310_v41, %v8840_v16  ;;  %v9186_v50 = vmul.f32 %v2311_v5, %v8843_v28  ;;  %3856 = vbcast.lane.b32.xlu0 %v13322_v43, 264  ;;  %v13330_v41 = vld [vmem:[#allocation251_spill] sm:$0xff] }
 0x47b   : > { %13319 = vst [vmem:[#allocation59_spill] sm:$0xff] %v9170_v3  ;;  %13323 = vst [vmem:[#allocation178_spill] sm:$0xff] %v9180_v59  ;;  %v2315_v3 = vsel %vm2136_vm4, %v13326_v37, 1.0  ;;  %v9196_v6 = vmul.f32 %v2312_v53, %v8853_v52  ;;  %v9199_v59 = vmul.f32 %v2312_v53, %v8856_v30  ;;  %v13332_v37 = vld [vmem:[#allocation33_spill] sm:$0xff]  ;;  %v13334_v5 = vld [vmem:[#allocation207_spill] sm:$0xff] }
 0x47c   : > { %13324 = vst [vmem:[#allocation222_spill] sm:$0xff] %v9183_v17  ;;  %13325 = vst [vmem:[#allocation148_spill] sm:$0xff] %v9186_v50  ;;  %v2316_v17 = vsel %vm2136_vm4, %v13330_v41, 1.0  ;;  %v9204_v50 = vpop.permute.xlu1 %3320  ;;  %v9210_v28 = vmul.f32 %v2313_v25, %v13332_v37  ;;  %v13336_v52 = vld [vmem:[#allocation252_spill] sm:$0xff]  ;;  %v9224_v41 = vmul.f32 %v2315_v3, %v8906_v57  ;;  %v13342_v25 = vld [vmem:[#allocation253_spill] sm:$0xff] }
 0x47d   : > { %13327 = vst [vmem:[#allocation313_spill] sm:$0xff] %v9193_v38  ;;  %13328 = vst [vmem:[#allocation314_spill] sm:$0xff] %v9196_v6  ;;  %v9213_v38 = vmul.f32 %v2314_v22, %v13334_v5  ;;  %v2317_v53 = vsel %vm2136_vm4, %v13336_v52, 1.0  ;;  %v13338_v6 = vld [vmem:[#allocation208_spill] sm:$0xff] }
 0x47e   : > { %13329 = vst [vmem:[#allocation132_spill] sm:$0xff] %v9199_v59  ;;  %13331 = vst [vmem:[#allocation223_spill] sm:$0xff] %v9204_v50  ;;  %v9218_v59 = vpop.permute.xlu0 %3324  ;;  %v9221_v30 = vmul.f32 %v2314_v22, %v13338_v6  ;;  %v9227_v50 = vmul.f32 %v2315_v3, %v8914_v4  ;;  %3860 = vbcast.lane.b32.xlu1 %v13322_v43, 272  ;;  %v13344_v52 = vld [vmem:[#allocation48_spill] sm:$0xff]  ;;  %3864 = vbcast.lane.b32.xlu0 %v13322_v43, 280  ;;  %v13354_v43 = vld [vmem:[#allocation255_spill] sm:$0xff] }
 0x47f   : > { %13333 = vst [vmem:[#allocation38_spill] sm:$0xff] %v9210_v28  ;;  %13335 = vst [vmem:[#allocation112_spill] sm:$0xff] %v9213_v38  ;;  %v2318_v28 = vsel %vm2136_vm4, %v13342_v25, 1.0  ;;  %v9234_v38 = vmul.f32 %v2316_v17, %v8921_v7  ;;  %v2319_v22 = vsel %vm2136_vm4, %v13344_v52, 1.0  ;;  %v9247_v25 = vmul.f32 %v2316_v17, %v8926_v27  ;;  %v13350_v52 = vld [vmem:[#allocation257_spill] sm:$0xff] }
 0x480   : > { %13337 = vst [vmem:[#allocation281_spill] sm:$0xff] %v9218_v59  ;;  %13339 = vst [vmem:[#allocation168_spill] sm:$0xff] %v9221_v30  ;;  %v13345_v59 = vld [vmem:[#allocation254_spill] sm:$0xff]  ;;  %v13346_v30 = vld [vmem:[#allocation49_spill] sm:$0xff]  ;;  %v2476_v7 = vsel %vm2136_vm4, %v13350_v52, 0.0  ;;  %v9261_v57 = vmul.f32 %v2318_v28, %v8940_v36  ;;  %v2321_v17 = vsel %vm2136_vm4, %v13354_v43, 1.0  ;;  %v9275_v52 = vmul.f32 %v2319_v22, %v8946_v14 }
 0x481   : > { %13340 = vst [vmem:[#allocation224_spill] sm:$0xff] %v9224_v41  ;;  %13341 = vst [vmem:[#allocation179_spill] sm:$0xff] %v9227_v50  ;;  %v2320_v41 = vsel %vm2136_vm4, %v13345_v59, 1.0  ;;  %v2475_v3 = vsel %vm2136_vm4, %v13346_v30, 0.0  ;;  %v9250_v50 = vmul.f32 %v2317_v53, %v8929_v46  ;;  %v9258_v59 = vpop.permute.xlu1 %3328  ;;  %v9264_v30 = vmul.f32 %v2318_v28, %v8943_v47  ;;  %v13361_v14 = vld [vmem:[#allocation259_spill] sm:$0xff] }
 0x482   : > { %13343 = vst [vmem:[#allocation300_spill] sm:$0xff] %v9234_v38  ;;  %13347 = vst [vmem:[#allocation299_spill] sm:$0xff] %v9247_v25  ;;  %v9253_v38 = vmul.f32 %v2317_v53, %v8932_v12  ;;  %v2539_v28 = vmul.f32 %v2475_v3, %v8595_v20  ;;  %v2603_v43 = vmul.f32 %v2475_v3, %v8592_v24 }
 0x483   : > { %13348 = vst [vmem:[#allocation225_spill] sm:$0xff] %v9250_v50  ;;  %13351 = vst [vmem:[#allocation71_spill] sm:$0xff] %v9258_v59  ;;  %v13355_v50 = vld [vmem:[#allocation256_spill] sm:$0xff]  ;;  %v9278_v59 = vmul.f32 %v2319_v22, %v8954_v60  ;;  %v2540_v25 = vmul.f32 %v2476_v7, %v8618_v51  ;;  %v2478_v22 = vsel %vm2136_vm4, %v13361_v14, 0.0  ;;  %v9298_v20 = vmul.f32 %v2321_v17, %v8967_v54 }
 0x484   : > { %13349 = vst [vmem:[#allocation315_spill] sm:$0xff] %v9253_v38  ;;  %13352 = vst [vmem:[#allocation170_spill] sm:$0xff] %v9261_v57  ;;  %v2322_v53 = vsel %vm2136_vm4, %v13355_v50, 1.0  ;;  %v9272_v38 = vpop.permute.xlu0 %3332  ;;  %v9281_v57 = vmul.f32 %v2320_v41, %v8957_v29  ;;  %v13360_v50 = vld [vmem:[#allocation258_spill] sm:$0xff]  ;;  %v9301_v24 = vmul.f32 %v2321_v17, %v8970_v48  ;;  %v2604_v14 = vmul.f32 %v2476_v7, %v8598_v19 }
 0x485   : > { %13353 = vst [vmem:[#allocation283_spill] sm:$0xff] %v9264_v30  ;;  %13356 = vst [vmem:[#allocation226_spill] sm:$0xff] %v9272_v38  ;;  %v13359_v30 = vld [vmem:[#allocation76_spill] sm:$0xff]  ;;  %v2477_v38 = vsel %vm2136_vm4, %v13360_v50, 0.0  ;;  %v9304_v51 = vmul.f32 %v2322_v53, %v8973_v61  ;;  %v9306_v3 = vpop.permute.xlu1 %3339  ;;  %v9309_v50 = vmul.f32 %v2322_v53, %v8986_v11  ;;  %v13370_v53 = vld [vmem:[#allocation261_spill] sm:$0xff]  ;;  %v2606_v7 = vmul.f32 %v2478_v22, %v8627_v63 }
 0x486   : > { %13357 = vst [vmem:[#allocation301_spill] sm:$0xff] %v9278_v59  ;;  %13358 = vst [vmem:[#allocation136_spill] sm:$0xff] %v9281_v57  ;;  %3871 = vbcast.lane.b32.xlu1 %v13359_v30, 256  ;;  %3875 = vbcast.lane.b32.xlu0 %v13359_v30, 264  ;;  %v9295_v57 = vmul.f32 %v2320_v41, %v8960_v0  ;;  %v13367_v59 = vld [vmem:[#allocation50_spill] sm:$0xff]  ;;  %v2481_v19 = vsel %vm2136_vm4, %v13370_v53, 0.0 }
 0x487   : > { %13363 = vst [vmem:[#allocation290_spill] sm:$0xff] %v9298_v20  ;;  %13364 = vst [vmem:[#allocation180_spill] sm:$0xff] %v9301_v24  ;;  %v2479_v41 = vsel %vm2136_vm4, %v13367_v59, 0.0  ;;  %v2541_v24 = vmul.f32 %v2477_v38, %v8624_v40  ;;  %v9329_v59 = vsub.f32 %v8977_v33, %v2539_v28  ;;  %v9335_v40 = vsub.f32 %v8994_v44, %v2540_v25  ;;  %v13372_v53 = vld [vmem:[#allocation262_spill] sm:$0xff]  ;;  %v13374_v28 = vld [vmem:[#allocation56_spill] sm:$0xff] }
 0x488   : > { %13362 = vst [vmem:[#allocation135_spill] sm:$0xff] %v9295_v57  ;;  %13365 = vst [vmem:[#allocation25_spill] sm:$0xff] %v9304_v51  ;;  %v13368_v57 = vld [vmem:[#allocation260_spill] sm:$0xff]  ;;  %v9318_v17 = vpop.permute.xlu0 %3343  ;;  %v2605_v51 = vmul.f32 %v2477_v38, %v8621_v56  ;;  %v2543_v56 = vmul.f32 %v2479_v41, %v8644_v32  ;;  %v2482_v63 = vsel %vm2136_vm4, %v13372_v53, 0.0  ;;  %v13375_v44 = vld [vmem:[#allocation187_spill] sm:$0xff] }
 0x489   : > { %13366 = vst [vmem:[#allocation276_spill] sm:$0xff] %v9306_v3  ;;  %v2480_v20 = vsel %vm2136_vm4, %v13368_v57, 0.0  ;;  %13369 = vst [vmem:[#allocation39_spill] sm:$0xff] %v9318_v17  ;;  %v2542_v3 = vmul.f32 %v2478_v22, %v8636_v2  ;;  %v9332_v57 = vadd.f32 %v8991_v26, %v2603_v43  ;;  %v2607_v2 = vmul.f32 %v2479_v41, %v8641_v15  ;;  %v9344_v33 = vpop.permute.xlu1 %3347  ;;  %v13376_v22 = vld [vmem:[#allocation51_spill] sm:$0xff]  ;;  %v13380_v53 = vld [vmem:[#allocation69_spill] sm:$0xff] }
 0x48a   : > { %3879 = vbcast.lane.b32.xlu1 %v13359_v30, 272  ;;  %13371 = vst [vmem:[#allocation64_spill] sm:$0xff] %v9335_v40  ;;  %3883 = vbcast.lane.b32.xlu0 %v13359_v30, 280  ;;  %v2544_v38 = vmul.f32 %v2480_v20, %v8655_v18  ;;  %13373 = vst [vmem:[#allocation114_spill] sm:$0xff] %v9344_v33  ;;  %v2608_v26 = vmul.f32 %v2480_v20, %v8647_v39  ;;  %v2483_v32 = vsel %vm2136_vm4, %v13376_v22, 0.0  ;;  %v13378_v15 = vld [vmem:[#allocation23_spill] sm:$0xff] }
 0x48b   : > { %v2545_v43 = vmul.f32 %v2481_v19, %v13374_v28  ;;  %v2609_v25 = vmul.f32 %v2481_v19, %v13375_v44  ;;  %v9355_v18 = vadd.f32 %v13378_v15, %v2604_v14  ;;  %v13379_v41 = vld [vmem:[#allocation175_spill] sm:$0xff]  ;;  %v9361_v33 = vadd.f32 %v13380_v53, %v2605_v51  ;;  %v13384_v28 = vld [vmem:[#allocation77_spill] sm:$0xff]  ;;  %v13387_v15 = vld [vmem:[#allocation142_spill] sm:$0xff] }
 0x48c   : > { %v9352_v30 = vpop.permute.xlu0 %3351  ;;  %v9358_v17 = vsub.f32 %v13379_v41, %v2541_v24  ;;  %v13382_v39 = vld [vmem:[#allocation215_spill] sm:$0xff]  ;;  %v2546_v19 = vmul.f32 %v2482_v63, %v13266_v8  ;;  %v13385_v44 = vld [vmem:[#allocation189_spill] sm:$0xff]  ;;  %v13390_v41 = vld [vmem:[#allocation176_spill] sm:$0xff] }
 0x48d   : > { %13377 = vst [vmem:[#allocation291_spill] sm:$0xff] %v9352_v30  ;;  %13381 = vst [vmem:[#allocation181_spill] sm:$0xff] %v9361_v33  ;;  %v9364_v20 = vsub.f32 %v13382_v39, %v2542_v3  ;;  %v2610_v22 = vmul.f32 %v2482_v63, %v13385_v44  ;;  %v13386_v40 = vld [vmem:[#allocation263_spill] sm:$0xff]  ;;  %v9373_v30 = vadd.f32 %v13387_v15, %v2606_v7  ;;  %v13389_v24 = vld [vmem:[#allocation193_spill] sm:$0xff]  ;;  %v9386_v63 = vpop.permute.xlu1 %3358 }
 0x48e   : > { %3890 = vbcast.lane.b32.xlu1 %v13384_v28, 256  ;;  %v2484_v14 = vsel %vm2136_vm4, %v13386_v40, 0.0  ;;  %3894 = vbcast.lane.b32.xlu0 %v13384_v28, 264  ;;  %v2547_v51 = vmul.f32 %v2483_v32, %v13389_v24  ;;  %v9378_v3 = vsub.f32 %v13390_v41, %v2543_v56  ;;  %v13392_v53 = vld [vmem:[#allocation308_spill] sm:$0xff]  ;;  %13396 = vst [vmem:[#allocation228_spill] sm:$0xff] %v9386_v63  ;;  %v13398_v40 = vld [vmem:[#allocation63_spill] sm:$0xff] }
 0x48f   : > { %13383 = vst [vmem:[#allocation318_spill] sm:$0xff] %v9364_v20  ;;  %13388 = vst [vmem:[#allocation227_spill] sm:$0xff] %v9373_v30  ;;  %v9381_v39 = vadd.f32 %v13392_v53, %v2607_v2  ;;  %v13394_v8 = vld [vmem:[#allocation216_spill] sm:$0xff]  ;;  %v9392_v15 = vadd.f32 %v13398_v40, %v2608_v26  ;;  %v13402_v56 = vld [vmem:[#allocation217_spill] sm:$0xff] }
 0x490   : > { %13391 = vst [vmem:[#allocation115_spill] sm:$0xff] %v9378_v3  ;;  %v9384_v20 = vsub.f32 %v13394_v8, %v2544_v38  ;;  %v13397_v44 = vld [vmem:[#allocation264_spill] sm:$0xff]  ;;  %v9398_v41 = vadd.f32 %v13402_v56, %v2609_v25  ;;  %v9400_v2 = vpop.permute.xlu0 %3362  ;;  %v13405_v53 = vld [vmem:[#allocation27_spill] sm:$0xff]  ;;  %v13406_v8 = vld [vmem:[#allocation66_spill] sm:$0xff] }
 0x491   : > { %13393 = vst [vmem:[#allocation293_spill] sm:$0xff] %v9381_v39  ;;  %v2485_v7 = vsel %vm2136_vm4, %v13397_v44, 0.0  ;;  %13399 = vst [vmem:[#allocation116_spill] sm:$0xff] %v9392_v15  ;;  %v13400_v30 = vld [vmem:[#allocation108_spill] sm:$0xff]  ;;  %v2611_v38 = vmul.f32 %v2483_v32, %v13405_v53  ;;  %v13407_v63 = vld [vmem:[#allocation265_spill] sm:$0xff] }
 0x492   : > { %13395 = vst [vmem:[#allocation182_spill] sm:$0xff] %v9384_v20  ;;  %v9395_v24 = vsub.f32 %v13400_v30, %v2545_v43  ;;  %13403 = vst [vmem:[#allocation229_spill] sm:$0xff] %v9398_v41  ;;  %v2548_v20 = vmul.f32 %v2484_v14, %v13406_v8  ;;  %v2486_v39 = vsel %vm2136_vm4, %v13407_v63, 0.0  ;;  %v13408_v44 = vld [vmem:[#allocation52_spill] sm:$0xff]  ;;  %3898 = vbcast.lane.b32.xlu1 %v13384_v28, 272  ;;  %v13410_v25 = vld [vmem:[#allocation266_spill] sm:$0xff] }
 0x493   : > { %13404 = vst [vmem:[#allocation40_spill] sm:$0xff] %v9400_v2  ;;  %v2487_v26 = vsel %vm2136_vm4, %v13408_v44, 0.0  ;;  %v13409_v43 = vld [vmem:[#allocation28_spill] sm:$0xff]  ;;  %v2488_v40 = vsel %vm2136_vm4, %v13410_v25, 0.0  ;;  %v13413_v53 = vld [vmem:[#allocation218_spill] sm:$0xff]  ;;  %3902 = vbcast.lane.b32.xlu0 %v13384_v28, 280  ;;  %v9430_v25 = vpop.permute.xlu1 %3366 }
 0x494   : > { %13401 = vst [vmem:[#allocation172_spill] sm:$0xff] %v9395_v24  ;;  %v2612_v30 = vmul.f32 %v2484_v14, %v13409_v43  ;;  %v13411_v56 = vld [vmem:[#allocation36_spill] sm:$0xff]  ;;  %v9419_v8 = vadd.f32 %v13413_v53, %v2610_v22  ;;  %v13415_v63 = vld [vmem:[#allocation195_spill] sm:$0xff]  ;;  %v13416_v41 = vld [vmem:[#allocation194_spill] sm:$0xff]  ;;  %v2551_v53 = vmul.f32 %v2487_v26, %v13292_v34 }
 0x495   : > { %v9416_v32 = vsub.f32 %v13411_v56, %v2546_v19  ;;  %v2549_v2 = vmul.f32 %v2485_v7, %v13415_v63  ;;  %v2613_v44 = vmul.f32 %v2485_v7, %v13416_v41  ;;  %v13417_v24 = vld [vmem:[#allocation267_spill] sm:$0xff]  ;;  %v13418_v43 = vld [vmem:[#allocation286_spill] sm:$0xff]  ;;  %13420 = vst [vmem:[#allocation230_spill] sm:$0xff] %v9430_v25  ;;  %v2550_v19 = vmul.f32 %v2486_v39, %v13286_v9  ;;  %v13421_v56 = vld [vmem:[#allocation29_spill] sm:$0xff]  ;;  %v9438_v7 = vpop.permute.xlu0 %3370 }
 0x496   : > { %13414 = vst [vmem:[#allocation72_spill] sm:$0xff] %v9419_v8  ;;  %v2489_v14 = vsel %vm2136_vm4, %v13417_v24, 0.0  ;;  %v9428_v15 = vsub.f32 %v13418_v43, %v2547_v51  ;;  %v2614_v22 = vmul.f32 %v2486_v39, %v13421_v56  ;;  %v13422_v28 = vld [vmem:[#allocation268_spill] sm:$0xff]  ;;  %13423 = vst [vmem:[#allocation319_spill] sm:$0xff] %v9438_v7  ;;  %v13424_v41 = vld [vmem:[#allocation198_spill] sm:$0xff] }
 0x497   : > { %13412 = vst [vmem:[#allocation294_spill] sm:$0xff] %v9416_v32  ;;  %v2490_v63 = vsel %vm2136_vm4, %v13422_v28, 0.0  ;;  %v2615_v8 = vmul.f32 %v2487_v26, %v13424_v41  ;;  %v13425_v24 = vld [vmem:[#allocation201_spill] sm:$0xff]  ;;  %v13426_v51 = vld [vmem:[#allocation110_spill] sm:$0xff]  ;;  %v13427_v25 = vld [vmem:[#allocation164_spill] sm:$0xff]  ;;  %v2553_v56 = vmul.f32 %v2489_v14, %v13301_v1  ;;  %v9466_v1 = vpop.permute.xlu1 %3377 }
 0x498   : > { %13419 = vst [vmem:[#allocation173_spill] sm:$0xff] %v9428_v15  ;;  %v2552_v32 = vmul.f32 %v2488_v40, %v13425_v24  ;;  %v9443_v43 = vadd.f32 %v13426_v51, %v2611_v38  ;;  %v9446_v15 = vsub.f32 %v13427_v25, %v2548_v20  ;;  %v13429_v9 = vld [vmem:[#allocation78_spill] sm:$0xff]  ;;  %v13430_v39 = vld [vmem:[#allocation200_spill] sm:$0xff]  ;;  %v13432_v33 = vld [vmem:[#allocation53_spill] sm:$0xff]  ;;  %v2554_v38 = vmul.f32 %v2490_v63, %v13306_v42 }
 0x499   : > { %3909 = vbcast.lane.b32.xlu1 %v13429_v9, 256  ;;  %v2616_v34 = vmul.f32 %v2488_v40, %v13430_v39  ;;  %v13431_v3 = vld [vmem:[#allocation202_spill] sm:$0xff]  ;;  %v2491_v26 = vsel %vm2136_vm4, %v13432_v33, 0.0  ;;  %3913 = vbcast.lane.b32.xlu0 %v13429_v9, 264  ;;  %v13433_v41 = vld [vmem:[#allocation219_spill] sm:$0xff]  ;;  %v13434_v20 = vld [vmem:[#allocation288_spill] sm:$0xff] }
 0x49a   : > { %13428 = vst [vmem:[#allocation231_spill] sm:$0xff] %v9446_v15  ;;  %v2617_v28 = vmul.f32 %v2489_v14, %v13431_v3  ;;  %v9458_v24 = vadd.f32 %v13433_v41, %v2612_v30  ;;  %v9461_v25 = vsub.f32 %v13434_v20, %v2549_v2  ;;  %v13436_v51 = vld [vmem:[#allocation220_spill] sm:$0xff]  ;;  %13437 = vst [vmem:[#allocation295_spill] sm:$0xff] %v9466_v1  ;;  %v13438_v14 = vld [vmem:[#allocation61_spill] sm:$0xff]  ;;  %v9478_v30 = vpop.permute.xlu0 %3381 }
 0x49b   : > { %v9464_v40 = vadd.f32 %v13436_v51, %v2613_v44  ;;  %v2618_v3 = vmul.f32 %v2490_v63, %v13303_v23  ;;  %v9470_v39 = vsub.f32 %v13438_v14, %v2550_v19  ;;  %v13439_v33 = vld [vmem:[#allocation309_spill] sm:$0xff]  ;;  %v13440_v42 = vld [vmem:[#allocation310_spill] sm:$0xff]  ;;  %13441 = vst [vmem:[#allocation141_spill] sm:$0xff] %v9478_v30  ;;  %v2555_v2 = vmul.f32 %v2491_v26, %v8809_v10 }
 0x49c   : > { %13435 = vst [vmem:[#allocation232_spill] sm:$0xff] %v9461_v25  ;;  %v9473_v7 = vadd.f32 %v13439_v33, %v2614_v22  ;;  %v9476_v15 = vsub.f32 %v13440_v42, %v2551_v53  ;;  %v13442_v41 = vld [vmem:[#allocation269_spill] sm:$0xff]  ;;  %v13444_v23 = vld [vmem:[#allocation126_spill] sm:$0xff] }
 0x49d   : > { %v2492_v44 = vsel %vm2136_vm4, %v13442_v41, 0.0  ;;  %v13443_v20 = vld [vmem:[#allocation125_spill] sm:$0xff]  ;;  %v9488_v19 = vsub.f32 %v13444_v23, %v2552_v32  ;;  %3917 = vbcast.lane.b32.xlu1 %v13429_v9, 272  ;;  %v13446_v22 = vld [vmem:[#allocation270_spill] sm:$0xff]  ;;  %3921 = vbcast.lane.b32.xlu0 %v13429_v9, 280  ;;  %v13458_v9 = vld [vmem:[#allocation272_spill] sm:$0xff] }
 0x49e   : > { %v9485_v51 = vadd.f32 %v13443_v20, %v2615_v8  ;;  %v2493_v53 = vsel %vm2136_vm4, %v13446_v22, 0.0  ;;  %v13447_v63 = vld [vmem:[#allocation165_spill] sm:$0xff]  ;;  %v13450_v42 = vld [vmem:[#allocation166_spill] sm:$0xff]  ;;  %v13453_v20 = vld [vmem:[#allocation271_spill] sm:$0xff] }
 0x49f   : > { %13445 = vst [vmem:[#allocation296_spill] sm:$0xff] %v9488_v19  ;;  %v9495_v14 = vadd.f32 %v13447_v63, %v2616_v34  ;;  %v13448_v10 = vld [vmem:[#allocation37_spill] sm:$0xff]  ;;  %v9501_v41 = vadd.f32 %v13450_v42, %v2617_v28  ;;  %v13452_v8 = vld [vmem:[#allocation58_spill] sm:$0xff]  ;;  %v2494_v23 = vsel %vm2136_vm4, %v13453_v20, 0.0  ;;  %v13455_v34 = vld [vmem:[#allocation275_spill] sm:$0xff]  ;;  %v2556_v28 = vmul.f32 %v2492_v44, %v8819_v21  ;;  %v9524_v20 = vpop.permute.xlu0 %3389 }
 0x4a0   : > { %v9498_v33 = vsub.f32 %v13448_v10, %v2553_v56  ;;  %v2619_v32 = vmul.f32 %v2491_v26, %v13452_v8  ;;  %v13454_v30 = vld [vmem:[#allocation54_spill] sm:$0xff]  ;;  %v9512_v63 = vsub.f32 %v13455_v34, %v2554_v38  ;;  %v9514_v56 = vpop.permute.xlu1 %3385  ;;  %v2620_v10 = vmul.f32 %v2492_v44, %v8816_v49  ;;  %v13459_v42 = vld [vmem:[#allocation111_spill] sm:$0xff]  ;;  %13461 = vst [vmem:[#allocation26_spill] sm:$0xff] %v9524_v20  ;;  %v13462_v34 = vld [vmem:[#allocation273_spill] sm:$0xff] }
 0x4a1   : > { %13451 = vst [vmem:[#allocation151_spill] sm:$0xff] %v9501_v41  ;;  %v2495_v22 = vsel %vm2136_vm4, %v13454_v30, 0.0  ;;  %13457 = vst [vmem:[#allocation153_spill] sm:$0xff] %v9514_v56  ;;  %v2496_v26 = vsel %vm2136_vm4, %v13458_v9, 0.0  ;;  %v9522_v8 = vadd.f32 %v13459_v42, %v2618_v3  ;;  %v2557_v30 = vmul.f32 %v2493_v53, %v8832_v31  ;;  %v13463_v21 = vld [vmem:[#allocation24_spill] sm:$0xff]  ;;  %v13465_v49 = vld [vmem:[#allocation79_spill] sm:$0xff] }
 0x4a2   : > { %13449 = vst [vmem:[#allocation320_spill] sm:$0xff] %v9498_v33  ;;  %13456 = vst [vmem:[#allocation152_spill] sm:$0xff] %v9512_v63  ;;  %v2621_v38 = vmul.f32 %v2493_v53, %v8829_v55  ;;  %v2497_v56 = vsel %vm2136_vm4, %v13462_v34, 0.0  ;;  %v9532_v1 = vsub.f32 %v13463_v21, %v2555_v2  ;;  %3928 = vbcast.lane.b32.xlu1 %v13465_v49, 256  ;;  %v13466_v42 = vld [vmem:[#allocation274_spill] sm:$0xff]  ;;  %3932 = vbcast.lane.b32.xlu0 %v13465_v49, 264 }
 0x4a3   : > { %13460 = vst [vmem:[#allocation41_spill] sm:$0xff] %v9522_v8  ;;  %v2558_v44 = vmul.f32 %v2494_v23, %v8840_v16  ;;  %v2622_v3 = vmul.f32 %v2494_v23, %v8837_v58  ;;  %v2559_v9 = vmul.f32 %v2495_v22, %v8850_v13  ;;  %v2498_v31 = vsel %vm2136_vm4, %v13466_v42, 0.0  ;;  %v13467_v55 = vld [vmem:[#allocation139_spill] sm:$0xff]  ;;  %v13468_v34 = vld [vmem:[#allocation32_spill] sm:$0xff]  ;;  %v13469_v2 = vld [vmem:[#allocation205_spill] sm:$0xff] }
 0x4a4   : > { %13464 = vst [vmem:[#allocation321_spill] sm:$0xff] %v9532_v1  ;;  %v2623_v53 = vmul.f32 %v2495_v22, %v13467_v55  ;;  %v2560_v20 = vmul.f32 %v2496_v26, %v13468_v34  ;;  %v2624_v21 = vmul.f32 %v2496_v26, %v13469_v2  ;;  %v13470_v1 = vld [vmem:[#allocation312_spill] sm:$0xff]  ;;  %v9548_v16 = vpop.permute.xlu1 %3396  ;;  %v2561_v58 = vmul.f32 %v2497_v56, %v13332_v37  ;;  %v13472_v23 = vld [vmem:[#allocation289_spill] sm:$0xff]  ;;  %v13473_v42 = vld [vmem:[#allocation146_spill] sm:$0xff]  ;;  %v9558_v22 = vpop.permute.xlu0 %3400 }
 0x4a5   : > { %v9546_v8 = vadd.f32 %v13470_v1, %v2619_v32  ;;  %13471 = vst [vmem:[#allocation233_spill] sm:$0xff] %v9548_v16  ;;  %v2625_v13 = vmul.f32 %v2497_v56, %v8865_v45  ;;  %v9553_v63 = vsub.f32 %v13472_v23, %v2556_v28  ;;  %v9556_v41 = vadd.f32 %v13473_v42, %v2620_v10  ;;  %v13475_v55 = vld [vmem:[#allocation277_spill] sm:$0xff]  ;;  %v13476_v1 = vld [vmem:[#allocation280_spill] sm:$0xff]  ;;  %v13478_v45 = vld [vmem:[#allocation59_spill] sm:$0xff] }
 0x4a6   : > { %13474 = vst [vmem:[#allocation155_spill] sm:$0xff] %v9558_v22  ;;  %vm2706_vm5 = vcmp.eq.s32.totalorder %v13475_v55, 1  ;;  %v2562_v26 = vmul.f32 %v2498_v31, %v13338_v6  ;;  %v2499_v32 = vsel %vm2136_vm4, %v13476_v1, 0.0  ;;  %v13477_v34 = vld [vmem:[#allocation221_spill] sm:$0xff]  ;;  %v9569_v56 = vadd.f32 %v13478_v45, %v2621_v38  ;;  %3936 = vbcast.lane.b32.xlu1 %v13465_v49, 272  ;;  %v13479_v10 = vld [vmem:[#allocation178_spill] sm:$0xff] }
 0x4a7   : > { %v9566_v37 = vsub.f32 %v13477_v34, %v2557_v30  ;;  %v2626_v28 = vmul.f32 %v2498_v31, %v13334_v5  ;;  %v9574_v2 = vsub.f32 %v13479_v10, %v2558_v44  ;;  %v13480_v23 = vld [vmem:[#allocation222_spill] sm:$0xff]  ;;  %v13481_v6 = vld [vmem:[#allocation148_spill] sm:$0xff]  ;;  %3940 = vbcast.lane.b32.xlu0 %v13465_v49, 280  ;;  %v13484_v1 = vld [vmem:[#allocation313_spill] sm:$0xff] }
 0x4a8   : > { %v9577_v42 = vadd.f32 %v13480_v23, %v2622_v3  ;;  %v9580_v22 = vsub.f32 %v13481_v6, %v2559_v9  ;;  %v13483_v30 = vld [vmem:[#allocation282_spill] sm:$0xff]  ;;  %v9587_v34 = vadd.f32 %v13484_v1, %v2623_v53  ;;  %v13487_v44 = vld [vmem:[#allocation132_spill] sm:$0xff]  ;;  %v9595_v3 = vpop.permute.xlu1 %3404  ;;  %v2563_v9 = vmul.f32 %v2499_v32, %v8914_v4  ;;  %v13490_v10 = vld [vmem:[#allocation287_spill] sm:$0xff] }
 0x4a9   : > { %v2500_v38 = vsel %vm2136_vm4, %v13483_v30, 0.0  ;;  %v13485_v45 = vld [vmem:[#allocation314_spill] sm:$0xff]  ;;  %v9593_v31 = vadd.f32 %v13487_v44, %v2624_v21  ;;  %13489 = vst [vmem:[#allocation234_spill] sm:$0xff] %v9595_v3  ;;  %v2501_v49 = vsel %vm2136_vm4, %v13490_v10, 0.0  ;;  %v9602_v23 = vsub.f32 %v9207_v35, %v2561_v58  ;;  %v9607_v30 = vpop.permute.xlu0 %3408  ;;  %v13495_v21 = vld [vmem:[#allocation292_spill] sm:$0xff] }
 0x4aa   : > { %13482 = vst [vmem:[#allocation184_spill] sm:$0xff] %v9580_v22  ;;  %v9590_v5 = vsub.f32 %v13485_v45, %v2560_v20  ;;  %v13491_v6 = vld [vmem:[#allocation38_spill] sm:$0xff]  ;;  %13493 = vst [vmem:[#allocation60_spill] sm:$0xff] %v9607_v30  ;;  %v2502_v45 = vsel %vm2136_vm4, %v13495_v21, 0.0  ;;  %v13497_v3 = vld [vmem:[#allocation112_spill] sm:$0xff]  ;;  %v2564_v58 = vmul.f32 %v2500_v38, %v8926_v27  ;;  %v2565_v21 = vmul.f32 %v2501_v49, %v8932_v12 }
 0x4ab   : > { %13488 = vst [vmem:[#allocation73_spill] sm:$0xff] %v9593_v31  ;;  %v9605_v53 = vadd.f32 %v13491_v6, %v2625_v13  ;;  %v13494_v20 = vld [vmem:[#allocation210_spill] sm:$0xff]  ;;  %v9617_v10 = vsub.f32 %v13497_v3, %v2562_v26  ;;  %v13499_v35 = vld [vmem:[#allocation80_spill] sm:$0xff]  ;;  %v13501_v30 = vld [vmem:[#allocation107_spill] sm:$0xff]  ;;  %v2629_v26 = vmul.f32 %v2501_v49, %v8929_v46 }
 0x4ac   : > { %13486 = vst [vmem:[#allocation323_spill] sm:$0xff] %v9590_v5  ;;  %v2627_v1 = vmul.f32 %v2499_v32, %v13494_v20  ;;  %v13496_v44 = vld [vmem:[#allocation298_spill] sm:$0xff]  ;;  %3947 = vbcast.lane.b32.xlu1 %v13499_v35, 256  ;;  %v2504_v32 = vsel %vm2136_vm4, %v13501_v30, 0.0  ;;  %v13502_v20 = vld [vmem:[#allocation168_spill] sm:$0xff]  ;;  %3951 = vbcast.lane.b32.xlu0 %v13499_v35, 264  ;;  %v2566_v30 = vmul.f32 %v2502_v45, %v8943_v47 }
 0x4ad   : > { %13492 = vst [vmem:[#allocation324_spill] sm:$0xff] %v9605_v53  ;;  %v2503_v4 = vsel %vm2136_vm4, %v13496_v44, 0.0  ;;  %13498 = vst [vmem:[#allocation65_spill] sm:$0xff] %v9617_v10  ;;  %v13500_v13 = vld [vmem:[#allocation34_spill] sm:$0xff]  ;;  %v9626_v16 = vadd.f32 %v13502_v20, %v2626_v28  ;;  %v13504_v3 = vld [vmem:[#allocation109_spill] sm:$0xff]  ;;  %v2630_v28 = vmul.f32 %v2502_v45, %v8940_v36  ;;  %v9645_v46 = vpop.permute.xlu0 %3419  ;;  %v2632_v62 = vmul.f32 %v2504_v32, %v8957_v29 }
 0x4ae   : > { %v2628_v6 = vmul.f32 %v2500_v38, %v13500_v13  ;;  %v2505_v44 = vsel %vm2136_vm4, %v13504_v3, 0.0  ;;  %v13505_v27 = vld [vmem:[#allocation113_spill] sm:$0xff]  ;;  %v9637_v13 = vpop.permute.xlu1 %3415  ;;  %v2567_v20 = vmul.f32 %v2503_v4, %v8954_v60  ;;  %13508 = vst [vmem:[#allocation236_spill] sm:$0xff] %v9645_v46  ;;  %v2568_v3 = vmul.f32 %v2504_v32, %v8960_v0  ;;  %v13512_v45 = vld [vmem:[#allocation299_spill] sm:$0xff] }
 0x4af   : > { %13503 = vst [vmem:[#allocation235_spill] sm:$0xff] %v9626_v16  ;;  %v2506_v38 = vsel %vm2136_vm4, %v13505_v27, 0.0  ;;  %13506 = vst [vmem:[#allocation42_spill] sm:$0xff] %v9637_v13  ;;  %v13507_v16 = vld [vmem:[#allocation224_spill] sm:$0xff]  ;;  %v13509_v49 = vld [vmem:[#allocation213_spill] sm:$0xff]  ;;  %v2569_v36 = vmul.f32 %v2505_v44, %v8970_v48  ;;  %v2633_v47 = vmul.f32 %v2505_v44, %v8967_v54 }
 0x4b0   : > { %v9643_v12 = vsub.f32 %v13507_v16, %v2563_v9  ;;  %v2631_v10 = vmul.f32 %v2503_v4, %v13509_v49  ;;  %v13510_v27 = vld [vmem:[#allocation179_spill] sm:$0xff]  ;;  %3955 = vbcast.lane.b32.xlu1 %v13499_v35, 272  ;;  %v2570_v60 = vmul.f32 %v2506_v38, %v8986_v11  ;;  %v13511_v16 = vld [vmem:[#allocation300_spill] sm:$0xff]  ;;  %3959 = vbcast.lane.b32.xlu0 %v13499_v35, 280  ;;  %v13517_v54 = vld [vmem:[#allocation122_spill] sm:$0xff] }
 0x4b1   : > { %v9651_v53 = vadd.f32 %v13510_v27, %v2627_v1  ;;  %v9658_v9 = vsub.f32 %v13511_v16, %v2564_v58  ;;  %v2634_v0 = vmul.f32 %v2506_v38, %v8973_v61  ;;  %v9663_v29 = vadd.f32 %v13512_v45, %v2628_v6  ;;  %v13513_v1 = vld [vmem:[#allocation225_spill] sm:$0xff]  ;;  %v13515_v32 = vld [vmem:[#allocation315_spill] sm:$0xff]  ;;  %v13518_v58 = vld [vmem:[#allocation170_spill] sm:$0xff] }
 0x4b2   : > { %v9666_v4 = vsub.f32 %v13513_v1, %v2565_v21  ;;  %v9669_v49 = vadd.f32 %v13515_v32, %v2629_v26  ;;  %v9671_v48 = vpop.permute.xlu1 %3423  ;;  %v2861_v11 = vsel %vm2706_vm5, %v13517_v54, 1.0  ;;  %v9677_v44 = vsub.f32 %v13518_v58, %v2566_v30  ;;  %v13520_v35 = vld [vmem:[#allocation283_spill] sm:$0xff]  ;;  %v9685_v21 = vpop.permute.xlu0 %3427  ;;  %v13522_v38 = vld [vmem:[#allocation57_spill] sm:$0xff]  ;;  %v13524_v45 = vld [vmem:[#allocation136_spill] sm:$0xff] }
 0x4b3   : > { %13516 = vst [vmem:[#allocation238_spill] sm:$0xff] %v9671_v48  ;;  %v9680_v61 = vadd.f32 %v13520_v35, %v2630_v28  ;;  %v9683_v6 = vsub.f32 %v9275_v52, %v2567_v20  ;;  %13521 = vst [vmem:[#allocation239_spill] sm:$0xff] %v9685_v21  ;;  %v2862_v26 = vsel %vm2706_vm5, %v13522_v38, 1.0  ;;  %v13523_v27 = vld [vmem:[#allocation301_spill] sm:$0xff]  ;;  %v9694_v1 = vsub.f32 %v13524_v45, %v2568_v3  ;;  %v13525_v30 = vld [vmem:[#allocation135_spill] sm:$0xff] }
 0x4b4   : > { %13514 = vst [vmem:[#allocation237_spill] sm:$0xff] %v9666_v4  ;;  %13519 = vst [vmem:[#allocation43_spill] sm:$0xff] %v9677_v44  ;;  %v9691_v16 = vadd.f32 %v13523_v27, %v2631_v10  ;;  %v9697_v32 = vadd.f32 %v13525_v30, %v2632_v62  ;;  %v13526_v28 = vld [vmem:[#allocation81_spill] sm:$0xff]  ;;  %v13527_v54 = vld [vmem:[#allocation131_spill] sm:$0xff]  ;;  %v9714_v3 = vmul.f32 %v2861_v11, %v9329_v59 }
 0x4b5   : > { %3966 = vbcast.lane.b32.xlu1 %v13526_v28, 256  ;;  %v2863_v52 = vsel %vm2706_vm5, %v13527_v54, 1.0  ;;  %v13528_v20 = vld [vmem:[#allocation290_spill] sm:$0xff]  ;;  %v13530_v35 = vld [vmem:[#allocation180_spill] sm:$0xff]  ;;  %v13532_v10 = vld [vmem:[#allocation25_spill] sm:$0xff]  ;;  %3970 = vbcast.lane.b32.xlu0 %v13526_v28, 264  ;;  %v9723_v54 = vadd.f32 %v9309_v50, %v2634_v0 }
 0x4b6   : > { %v9704_v58 = vsub.f32 %v13528_v20, %v2569_v36  ;;  %v9707_v38 = vadd.f32 %v13530_v35, %v2633_v47  ;;  %v9710_v27 = vsub.f32 %v13532_v10, %v2570_v60  ;;  %13534 = vst [vmem:[#allocation44_spill] sm:$0xff] %v9714_v3  ;;  %v13535_v62 = vld [vmem:[#allocation134_spill] sm:$0xff]  ;;  %v9725_v47 = vpop.permute.xlu1 %3468  ;;  %v9728_v60 = vmul.f32 %v2861_v11, %v9332_v57  ;;  %v13540_v20 = vld [vmem:[#allocation64_spill] sm:$0xff]  ;;  %v9739_v48 = vpop.permute.xlu0 %3472  ;;  %v13546_v0 = vld [vmem:[#allocation181_spill] sm:$0xff] }
 0x4b7   : > { %v2864_v45 = vsel %vm2706_vm5, %v13535_v62, 1.0  ;;  %v13536_v30 = vld [vmem:[#allocation138_spill] sm:$0xff]  ;;  %13537 = vst [vmem:[#allocation74_spill] sm:$0xff] %v9723_v54  ;;  %13538 = vst [vmem:[#allocation242_spill] sm:$0xff] %v9725_v47  ;;  %v9731_v35 = vmul.f32 %v2862_v26, %v13540_v20  ;;  %v9734_v10 = vmul.f32 %v2862_v26, %v9355_v18  ;;  %v13543_v21 = vld [vmem:[#allocation140_spill] sm:$0xff]  ;;  %v9742_v50 = vmul.f32 %v2863_v52, %v9358_v17 }
 0x4b8   : > { %13529 = vst [vmem:[#allocation240_spill] sm:$0xff] %v9704_v58  ;;  %13531 = vst [vmem:[#allocation190_spill] sm:$0xff] %v9707_v38  ;;  %v2865_v36 = vsel %vm2706_vm5, %v13536_v30, 1.0  ;;  %v2866_v62 = vsel %vm2706_vm5, %v13543_v21, 1.0  ;;  %v9745_v30 = vmul.f32 %v2863_v52, %v13546_v0  ;;  %v13548_v11 = vld [vmem:[#allocation143_spill] sm:$0xff]  ;;  %v13549_v47 = vld [vmem:[#allocation145_spill] sm:$0xff] }
 0x4b9   : > { %13533 = vst [vmem:[#allocation241_spill] sm:$0xff] %v9710_v27  ;;  %13539 = vst [vmem:[#allocation243_spill] sm:$0xff] %v9728_v60  ;;  %v2867_v46 = vsel %vm2706_vm5, %v13548_v11, 1.0  ;;  %v2868_v26 = vsel %vm2706_vm5, %v13549_v47, 1.0  ;;  %3974 = vbcast.lane.b32.xlu1 %v13526_v28, 272  ;;  %v13550_v13 = vld [vmem:[#allocation318_spill] sm:$0xff] }
 0x4ba   : > { %13541 = vst [vmem:[#allocation244_spill] sm:$0xff] %v9731_v35  ;;  %13542 = vst [vmem:[#allocation197_spill] sm:$0xff] %v9734_v10  ;;  %v9755_v21 = vmul.f32 %v2864_v45, %v13550_v13  ;;  %v13556_v52 = vld [vmem:[#allocation149_spill] sm:$0xff]  ;;  %3978 = vbcast.lane.b32.xlu0 %v13526_v28, 280  ;;  %v13559_v47 = vld [vmem:[#allocation182_spill] sm:$0xff] }
 0x4bb   : > { %13544 = vst [vmem:[#allocation45_spill] sm:$0xff] %v9739_v48  ;;  %13545 = vst [vmem:[#allocation30_spill] sm:$0xff] %v9742_v50  ;;  %v13552_v48 = vld [vmem:[#allocation227_spill] sm:$0xff]  ;;  %v13557_v11 = vld [vmem:[#allocation293_spill] sm:$0xff]  ;;  %v9771_v3 = vmul.f32 %v2866_v62, %v13559_v47 }
 0x4bc   : > { %13547 = vst [vmem:[#allocation245_spill] sm:$0xff] %v9745_v30  ;;  %13551 = vst [vmem:[#allocation67_spill] sm:$0xff] %v9755_v21  ;;  %v9758_v10 = vmul.f32 %v2864_v45, %v13552_v48  ;;  %v13554_v50 = vld [vmem:[#allocation115_spill] sm:$0xff]  ;;  %v2869_v30 = vsel %vm2706_vm5, %v13556_v52, 1.0  ;;  %v9768_v60 = vmul.f32 %v2865_v36, %v13557_v11  ;;  %v13561_v13 = vld [vmem:[#allocation116_spill] sm:$0xff] }
 0x4bd   : > { %v9761_v35 = vmul.f32 %v2865_v36, %v13554_v50  ;;  %13560 = vst [vmem:[#allocation247_spill] sm:$0xff] %v9771_v3  ;;  %v9774_v21 = vmul.f32 %v2866_v62, %v13561_v13  ;;  %v13563_v45 = vld [vmem:[#allocation150_spill] sm:$0xff]  ;;  %v13565_v50 = vld [vmem:[#allocation172_spill] sm:$0xff]  ;;  %v13567_v52 = vld [vmem:[#allocation229_spill] sm:$0xff] }
 0x4be   : > { %13553 = vst [vmem:[#allocation31_spill] sm:$0xff] %v9758_v10  ;;  %13558 = vst [vmem:[#allocation203_spill] sm:$0xff] %v9768_v60  ;;  %v2870_v10 = vsel %vm2706_vm5, %v13563_v45, 1.0  ;;  %v9782_v48 = vmul.f32 %v2867_v46, %v13565_v50  ;;  %v9785_v28 = vmul.f32 %v2867_v46, %v13567_v52  ;;  %v13569_v36 = vld [vmem:[#allocation294_spill] sm:$0xff]  ;;  %v13571_v47 = vld [vmem:[#allocation157_spill] sm:$0xff] }
 0x4bf   : > { %13555 = vst [vmem:[#allocation246_spill] sm:$0xff] %v9761_v35  ;;  %13562 = vst [vmem:[#allocation46_spill] sm:$0xff] %v9774_v21  ;;  %v9779_v35 = vpop.permute.xlu1 %3476  ;;  %v9788_v60 = vmul.f32 %v2868_v26, %v13569_v36  ;;  %v2871_v62 = vsel %vm2706_vm5, %v13571_v47, 1.0  ;;  %v9793_v21 = vpop.permute.xlu0 %3480  ;;  %v13573_v3 = vld [vmem:[#allocation72_spill] sm:$0xff]  ;;  %v13575_v45 = vld [vmem:[#allocation173_spill] sm:$0xff]  ;;  %v9809_v47 = vmul.f32 %v2869_v30, %v9443_v43 }
 0x4c0   : > { %13564 = vst [vmem:[#allocation248_spill] sm:$0xff] %v9779_v35  ;;  %13566 = vst [vmem:[#allocation249_spill] sm:$0xff] %v9782_v48  ;;  %v9796_v13 = vmul.f32 %v2868_v26, %v13573_v3  ;;  %v9799_v35 = vmul.f32 %v2869_v30, %v13575_v45  ;;  %v13577_v50 = vld [vmem:[#allocation154_spill] sm:$0xff]  ;;  %v9815_v26 = vmul.f32 %v2870_v10, %v9458_v24  ;;  %v13587_v30 = vld [vmem:[#allocation297_spill] sm:$0xff] }
 0x4c1   : > { %13568 = vst [vmem:[#allocation250_spill] sm:$0xff] %v9785_v28  ;;  %13570 = vst [vmem:[#allocation75_spill] sm:$0xff] %v9788_v60  ;;  %v2872_v46 = vsel %vm2706_vm5, %v13577_v50, 1.0  ;;  %v13578_v28 = vld [vmem:[#allocation118_spill] sm:$0xff]  ;;  %v9822_v50 = vmul.f32 %v2871_v62, %v9461_v25 }
 0x4c2   : > { %13572 = vst [vmem:[#allocation47_spill] sm:$0xff] %v9793_v21  ;;  %13574 = vst [vmem:[#allocation251_spill] sm:$0xff] %v9796_v13  ;;  %v2873_v60 = vsel %vm2706_vm5, %v13578_v28, 1.0  ;;  %v13579_v48 = vld [vmem:[#allocation82_spill] sm:$0xff]  ;;  %v13581_v21 = vld [vmem:[#allocation231_spill] sm:$0xff]  ;;  %v9825_v28 = vmul.f32 %v2871_v62, %v9464_v40 }
 0x4c3   : > { %13576 = vst [vmem:[#allocation33_spill] sm:$0xff] %v9799_v35  ;;  %3985 = vbcast.lane.b32.xlu1 %v13579_v48, 256  ;;  %13580 = vst [vmem:[#allocation207_spill] sm:$0xff] %v9809_v47  ;;  %v9812_v36 = vmul.f32 %v2870_v10, %v13581_v21  ;;  %v13584_v35 = vld [vmem:[#allocation119_spill] sm:$0xff]  ;;  %3989 = vbcast.lane.b32.xlu0 %v13579_v48, 264  ;;  %v2875_v47 = vsel %vm2706_vm5, %v13587_v30, 1.0  ;;  %v9839_v21 = vmul.f32 %v2872_v46, %v9473_v7  ;;  %v9847_v30 = vpop.permute.xlu0 %3491 }
 0x4c4   : > { %13583 = vst [vmem:[#allocation208_spill] sm:$0xff] %v9815_v26  ;;  %v2874_v13 = vsel %vm2706_vm5, %v13584_v35, 1.0  ;;  %13585 = vst [vmem:[#allocation253_spill] sm:$0xff] %v9822_v50  ;;  %v9833_v26 = vpop.permute.xlu1 %3487  ;;  %v9836_v35 = vmul.f32 %v2872_v46, %v9470_v39  ;;  %v9842_v50 = vmul.f32 %v2873_v60, %v9476_v15  ;;  %v13593_v62 = vld [vmem:[#allocation160_spill] sm:$0xff]  ;;  %v9850_v25 = vmul.f32 %v2873_v60, %v9485_v51  ;;  %v13598_v46 = vld [vmem:[#allocation161_spill] sm:$0xff] }
 0x4c5   : > { %13582 = vst [vmem:[#allocation252_spill] sm:$0xff] %v9812_v36  ;;  %13586 = vst [vmem:[#allocation48_spill] sm:$0xff] %v9825_v28  ;;  %v13588_v36 = vld [vmem:[#allocation120_spill] sm:$0xff]  ;;  %v2877_v28 = vsel %vm2706_vm5, %v13593_v62, 1.0  ;;  %v13600_v62 = vld [vmem:[#allocation151_spill] sm:$0xff] }
 0x4c6   : > { %v2876_v10 = vsel %vm2706_vm5, %v13588_v36, 1.0  ;;  %13589 = vst [vmem:[#allocation254_spill] sm:$0xff] %v9833_v26  ;;  %13590 = vst [vmem:[#allocation49_spill] sm:$0xff] %v9836_v35  ;;  %v9853_v36 = vmul.f32 %v2874_v13, %v9488_v19  ;;  %v9856_v26 = vmul.f32 %v2874_v13, %v9495_v14  ;;  %v13602_v60 = vld [vmem:[#allocation152_spill] sm:$0xff]  ;;  %v13604_v35 = vld [vmem:[#allocation162_spill] sm:$0xff] }
 0x4c7   : > { %13591 = vst [vmem:[#allocation257_spill] sm:$0xff] %v9839_v21  ;;  %13592 = vst [vmem:[#allocation255_spill] sm:$0xff] %v9842_v50  ;;  %v2878_v21 = vsel %vm2706_vm5, %v13598_v46, 1.0  ;;  %3993 = vbcast.lane.b32.xlu1 %v13579_v48, 272  ;;  %v9863_v50 = vmul.f32 %v2875_v47, %v9498_v33  ;;  %v2879_v13 = vsel %vm2706_vm5, %v13604_v35, 1.0  ;;  %3997 = vbcast.lane.b32.xlu0 %v13579_v48, 280 }
 0x4c8   : > { %13594 = vst [vmem:[#allocation256_spill] sm:$0xff] %v9847_v30  ;;  %13595 = vst [vmem:[#allocation76_spill] sm:$0xff] %v9850_v25  ;;  %v9866_v30 = vmul.f32 %v2875_v47, %v13600_v62  ;;  %v9869_v25 = vmul.f32 %v2876_v10, %v13602_v60  ;;  %v13607_v46 = vld [vmem:[#allocation321_spill] sm:$0xff]  ;;  %v9890_v35 = vmul.f32 %v2877_v28, %v9546_v8 }
 0x4c9   : > { %13596 = vst [vmem:[#allocation258_spill] sm:$0xff] %v9853_v36  ;;  %13597 = vst [vmem:[#allocation259_spill] sm:$0xff] %v9856_v26  ;;  %v13605_v26 = vld [vmem:[#allocation41_spill] sm:$0xff]  ;;  %v9879_v19 = vmul.f32 %v2877_v28, %v13607_v46  ;;  %v9893_v48 = vmul.f32 %v2878_v21, %v9553_v63  ;;  %v9904_v46 = vmul.f32 %v2879_v13, %v9566_v37 }
 0x4ca   : > { %13599 = vst [vmem:[#allocation50_spill] sm:$0xff] %v9863_v50  ;;  %13601 = vst [vmem:[#allocation260_spill] sm:$0xff] %v9866_v30  ;;  %v9876_v36 = vmul.f32 %v2876_v10, %v13605_v26  ;;  %v13609_v33 = vld [vmem:[#allocation121_spill] sm:$0xff]  ;;  %v13610_v30 = vld [vmem:[#allocation127_spill] sm:$0xff]  ;;  %v9887_v50 = vpop.permute.xlu1 %3495  ;;  %v9896_v10 = vmul.f32 %v2878_v21, %v9556_v41 }
 0x4cb   : > { %13603 = vst [vmem:[#allocation261_spill] sm:$0xff] %v9869_v25  ;;  %13608 = vst [vmem:[#allocation56_spill] sm:$0xff] %v9879_v19  ;;  %v2880_v47 = vsel %vm2706_vm5, %v13609_v33, 1.0  ;;  %v2881_v25 = vsel %vm2706_vm5, %v13610_v30, 1.0  ;;  %v13615_v19 = vld [vmem:[#allocation124_spill] sm:$0xff]  ;;  %v9901_v33 = vpop.permute.xlu0 %3499  ;;  %v9907_v30 = vmul.f32 %v2879_v13, %v9569_v56  ;;  %v13619_v28 = vld [vmem:[#allocation129_spill] sm:$0xff] }
 0x4cc   : > { %13606 = vst [vmem:[#allocation262_spill] sm:$0xff] %v9876_v36  ;;  %13611 = vst [vmem:[#allocation187_spill] sm:$0xff] %v9887_v50  ;;  %v2882_v36 = vsel %vm2706_vm5, %v13615_v19, 1.0  ;;  %v2883_v50 = vsel %vm2706_vm5, %v13619_v28, 1.0  ;;  %v9917_v19 = vmul.f32 %v2880_v47, %v9574_v2  ;;  %v13625_v13 = vld [vmem:[#allocation167_spill] sm:$0xff]  ;;  %v9930_v28 = vmul.f32 %v2881_v25, %v9587_v34 }
 0x4cd   : > { %13612 = vst [vmem:[#allocation51_spill] sm:$0xff] %v9890_v35  ;;  %13613 = vst [vmem:[#allocation23_spill] sm:$0xff] %v9893_v48  ;;  %v13620_v48 = vld [vmem:[#allocation130_spill] sm:$0xff]  ;;  %v9944_v35 = vmul.f32 %v2883_v50, %v9602_v23 }
 0x4ce   : > { %13614 = vst [vmem:[#allocation175_spill] sm:$0xff] %v9896_v10  ;;  %13616 = vst [vmem:[#allocation69_spill] sm:$0xff] %v9901_v33  ;;  %v2884_v21 = vsel %vm2706_vm5, %v13620_v48, 1.0  ;;  %v13621_v10 = vld [vmem:[#allocation83_spill] sm:$0xff]  ;;  %v9920_v33 = vmul.f32 %v2880_v47, %v9577_v42  ;;  %v9933_v48 = vmul.f32 %v2882_v36, %v9590_v5  ;;  %v13629_v47 = vld [vmem:[#allocation169_spill] sm:$0xff] }
 0x4cf   : > { %13617 = vst [vmem:[#allocation215_spill] sm:$0xff] %v9904_v46  ;;  %13618 = vst [vmem:[#allocation77_spill] sm:$0xff] %v9907_v30  ;;  %4038 = vbcast.lane.b32.xlu1 %v13621_v10, 256  ;;  %v9923_v46 = vmul.f32 %v2881_v25, %v9580_v22  ;;  %v2885_v30 = vsel %vm2706_vm5, %v13625_v13, 1.0  ;;  %4042 = vbcast.lane.b32.xlu0 %v13621_v10, 264  ;;  %v13631_v13 = vld [vmem:[#allocation324_spill] sm:$0xff] }
 0x4d0   : > { %13622 = vst [vmem:[#allocation189_spill] sm:$0xff] %v9917_v19  ;;  %13623 = vst [vmem:[#allocation263_spill] sm:$0xff] %v9920_v33  ;;  %v9936_v19 = vmul.f32 %v2882_v36, %v9593_v31  ;;  %v2886_v33 = vsel %vm2706_vm5, %v13629_v47, 1.0  ;;  %v9947_v22 = vmul.f32 %v2883_v50, %v13631_v13  ;;  %v13633_v25 = vld [vmem:[#allocation65_spill] sm:$0xff]  ;;  %v13635_v5 = vld [vmem:[#allocation62_spill] sm:$0xff]  ;;  %v9961_v47 = vmul.f32 %v2885_v30, %v9643_v12 }
 0x4d1   : > { %13624 = vst [vmem:[#allocation142_spill] sm:$0xff] %v9923_v46  ;;  %13626 = vst [vmem:[#allocation193_spill] sm:$0xff] %v9930_v28  ;;  %v9941_v46 = vpop.permute.xlu1 %3506  ;;  %v9950_v28 = vmul.f32 %v2884_v21, %v13633_v25  ;;  %v2887_v36 = vsel %vm2706_vm5, %v13635_v5, 1.0  ;;  %v13641_v50 = vld [vmem:[#allocation137_spill] sm:$0xff]  ;;  %v9974_v5 = vmul.f32 %v2886_v33, %v9663_v29 }
 0x4d2   : > { %13627 = vst [vmem:[#allocation176_spill] sm:$0xff] %v9933_v48  ;;  %13628 = vst [vmem:[#allocation308_spill] sm:$0xff] %v9936_v19  ;;  %v9955_v19 = vpop.permute.xlu0 %3510  ;;  %v13637_v48 = vld [vmem:[#allocation235_spill] sm:$0xff] }
 0x4d3   : > { %13630 = vst [vmem:[#allocation216_spill] sm:$0xff] %v9941_v46  ;;  %13632 = vst [vmem:[#allocation264_spill] sm:$0xff] %v9947_v22  ;;  %v9958_v31 = vmul.f32 %v2884_v21, %v13637_v48  ;;  %v9964_v46 = vmul.f32 %v2885_v30, %v9651_v53  ;;  %v2888_v22 = vsel %vm2706_vm5, %v13641_v50, 1.0  ;;  %4046 = vbcast.lane.b32.xlu1 %v13621_v10, 272  ;;  %v13644_v21 = vld [vmem:[#allocation303_spill] sm:$0xff]  ;;  %4050 = vbcast.lane.b32.xlu0 %v13621_v10, 280 }
 0x4d4   : > { %13634 = vst [vmem:[#allocation63_spill] sm:$0xff] %v9950_v28  ;;  %13636 = vst [vmem:[#allocation108_spill] sm:$0xff] %v9955_v19  ;;  %v9971_v28 = vmul.f32 %v2886_v33, %v9658_v9  ;;  %v2889_v19 = vsel %vm2706_vm5, %v13644_v21, 1.0  ;;  %v9984_v50 = vmul.f32 %v2887_v36, %v9666_v4  ;;  %v10001_v10 = vmul.f32 %v2888_v22, %v9680_v61 }
 0x4d5   : > { %13638 = vst [vmem:[#allocation217_spill] sm:$0xff] %v9958_v31  ;;  %13639 = vst [vmem:[#allocation27_spill] sm:$0xff] %v9961_v47  ;;  %v13645_v47 = vld [vmem:[#allocation284_spill] sm:$0xff]  ;;  %v9995_v31 = vpop.permute.xlu1 %3514 }
 0x4d6   : > { %13640 = vst [vmem:[#allocation66_spill] sm:$0xff] %v9964_v46  ;;  %13642 = vst [vmem:[#allocation265_spill] sm:$0xff] %v9971_v28  ;;  %v3045_v30 = vsel %vm2706_vm5, %v13645_v47, 0.0  ;;  %v9987_v46 = vmul.f32 %v2887_v36, %v9669_v49  ;;  %v13648_v28 = vld [vmem:[#allocation304_spill] sm:$0xff]  ;;  %v9998_v47 = vmul.f32 %v2888_v22, %v9677_v44  ;;  %v10009_v4 = vpop.permute.xlu0 %3518  ;;  %v13657_v44 = vld [vmem:[#allocation177_spill] sm:$0xff] }
 0x4d7   : > { %13643 = vst [vmem:[#allocation52_spill] sm:$0xff] %v9974_v5  ;;  %13646 = vst [vmem:[#allocation28_spill] sm:$0xff] %v9984_v50  ;;  %v2890_v33 = vsel %vm2706_vm5, %v13648_v28, 1.0  ;;  %v13649_v5 = vld [vmem:[#allocation305_spill] sm:$0xff]  ;;  %v13653_v50 = vld [vmem:[#allocation306_spill] sm:$0xff]  ;;  %v3047_v22 = vsel %vm2706_vm5, %v13657_v44, 0.0 }
 0x4d8   : > { %13647 = vst [vmem:[#allocation266_spill] sm:$0xff] %v9987_v46  ;;  %v2891_v21 = vsel %vm2706_vm5, %v13649_v5, 1.0  ;;  %13650 = vst [vmem:[#allocation36_spill] sm:$0xff] %v9995_v31  ;;  %v2892_v36 = vsel %vm2706_vm5, %v13653_v50, 1.0  ;;  %v13654_v46 = vld [vmem:[#allocation174_spill] sm:$0xff]  ;;  %v10012_v5 = vmul.f32 %v2889_v19, %v9683_v6  ;;  %v3109_v31 = vmul.f32 %v3045_v30, %v9332_v57 }
 0x4d9   : > { %13651 = vst [vmem:[#allocation218_spill] sm:$0xff] %v9998_v47  ;;  %13652 = vst [vmem:[#allocation195_spill] sm:$0xff] %v10001_v10  ;;  %v3046_v28 = vsel %vm2706_vm5, %v13654_v46, 0.0  ;;  %v3173_v47 = vmul.f32 %v3045_v30, %v9329_v59  ;;  %v13658_v10 = vld [vmem:[#allocation84_spill] sm:$0xff]  ;;  %v10021_v50 = vmul.f32 %v2889_v19, %v9691_v16  ;;  %v10024_v46 = vmul.f32 %v2890_v33, %v9694_v1 }
 0x4da   : > { %13655 = vst [vmem:[#allocation194_spill] sm:$0xff] %v10009_v4  ;;  %13656 = vst [vmem:[#allocation267_spill] sm:$0xff] %v10012_v5  ;;  %4057 = vbcast.lane.b32.xlu1 %v13658_v10, 256  ;;  %v10027_v4 = vmul.f32 %v2890_v33, %v9697_v32  ;;  %v10030_v5 = vmul.f32 %v2891_v21, %v9704_v58  ;;  %4061 = vbcast.lane.b32.xlu0 %v13658_v10, 264  ;;  %v13665_v19 = vld [vmem:[#allocation144_spill] sm:$0xff]  ;;  %v13676_v58 = vld [vmem:[#allocation318_spill] sm:$0xff] }
 0x4db   : > { %13659 = vst [vmem:[#allocation286_spill] sm:$0xff] %v10021_v50  ;;  %13660 = vst [vmem:[#allocation29_spill] sm:$0xff] %v10024_v46  ;;  %v10034_v59 = vmul.f32 %v2891_v21, %v9707_v38  ;;  %v10037_v57 = vmul.f32 %v2892_v36, %v9710_v27  ;;  %v3110_v44 = vmul.f32 %v3046_v28, %v9355_v18  ;;  %v3048_v30 = vsel %vm2706_vm5, %v13665_v19, 0.0  ;;  %v10043_v46 = vpop.permute.xlu1 %3525  ;;  %v10053_v50 = vpop.permute.xlu0 %3529 }
 0x4dc   : > { %13661 = vst [vmem:[#allocation268_spill] sm:$0xff] %v10027_v4  ;;  %13662 = vst [vmem:[#allocation198_spill] sm:$0xff] %v10030_v5  ;;  %v3174_v33 = vmul.f32 %v3046_v28, %v13540_v20  ;;  %v3111_v5 = vmul.f32 %v3047_v22, %v13546_v0  ;;  %v13667_v4 = vld [vmem:[#allocation311_spill] sm:$0xff]  ;;  %v10056_v18 = vmul.f32 %v2892_v36, %v9723_v54  ;;  %v13678_v36 = vld [vmem:[#allocation317_spill] sm:$0xff] }
 0x4dd   : > { %13663 = vst [vmem:[#allocation201_spill] sm:$0xff] %v10034_v59  ;;  %13664 = vst [vmem:[#allocation110_spill] sm:$0xff] %v10037_v57  ;;  %v3049_v21 = vsel %vm2706_vm5, %v13667_v4, 0.0  ;;  %v13668_v59 = vld [vmem:[#allocation147_spill] sm:$0xff]  ;;  %v3175_v19 = vmul.f32 %v3047_v22, %v9358_v17  ;;  %v3176_v38 = vmul.f32 %v3048_v30, %v13676_v58  ;;  %v3052_v17 = vsel %vm2706_vm5, %v13678_v36, 0.0  ;;  %v13685_v36 = vld [vmem:[#allocation197_spill] sm:$0xff] }
 0x4de   : > { %13666 = vst [vmem:[#allocation164_spill] sm:$0xff] %v10043_v46  ;;  %v3050_v57 = vsel %vm2706_vm5, %v13668_v59, 0.0  ;;  %13669 = vst [vmem:[#allocation78_spill] sm:$0xff] %v10053_v50  ;;  %v13671_v46 = vld [vmem:[#allocation44_spill] sm:$0xff]  ;;  %v13673_v20 = vld [vmem:[#allocation243_spill] sm:$0xff]  ;;  %4065 = vbcast.lane.b32.xlu1 %v13658_v10, 272  ;;  %v10088_v54 = vadd.f32 %v13685_v36, %v3174_v33 }
 0x4df   : > { %13670 = vst [vmem:[#allocation200_spill] sm:$0xff] %v10056_v18  ;;  %v10060_v27 = vsub.f32 %v13671_v46, %v3109_v31  ;;  %v10063_v0 = vadd.f32 %v13673_v20, %v3173_v47  ;;  %v13675_v4 = vld [vmem:[#allocation227_spill] sm:$0xff]  ;;  %v13677_v59 = vld [vmem:[#allocation316_spill] sm:$0xff]  ;;  %4069 = vbcast.lane.b32.xlu0 %v13658_v10, 280  ;;  %v3113_v31 = vmul.f32 %v3049_v21, %v13557_v11  ;;  %v10081_v58 = vpop.permute.xlu1 %3533  ;;  %v13687_v10 = vld [vmem:[#allocation30_spill] sm:$0xff] }
 0x4e0   : > { %v3112_v28 = vmul.f32 %v3048_v30, %v13675_v4  ;;  %v3051_v50 = vsel %vm2706_vm5, %v13677_v59, 0.0  ;;  %v13679_v47 = vld [vmem:[#allocation115_spill] sm:$0xff]  ;;  %v13680_v46 = vld [vmem:[#allocation116_spill] sm:$0xff]  ;;  %13682 = vst [vmem:[#allocation219_spill] sm:$0xff] %v10081_v58  ;;  %v13683_v30 = vld [vmem:[#allocation182_spill] sm:$0xff]  ;;  %v10091_v11 = vsub.f32 %v13687_v10, %v3111_v5 }
 0x4e1   : > { %13672 = vst [vmem:[#allocation202_spill] sm:$0xff] %v10060_v27  ;;  %13674 = vst [vmem:[#allocation53_spill] sm:$0xff] %v10063_v0  ;;  %v3177_v22 = vmul.f32 %v3049_v21, %v13679_v47  ;;  %v3114_v20 = vmul.f32 %v3050_v57, %v13680_v46  ;;  %v13681_v0 = vld [vmem:[#allocation244_spill] sm:$0xff]  ;;  %v3178_v18 = vmul.f32 %v3050_v57, %v13683_v30  ;;  %v13684_v59 = vld [vmem:[#allocation183_spill] sm:$0xff]  ;;  %v10093_v21 = vpop.permute.xlu0 %3537 }
 0x4e2   : > { %v10079_v4 = vsub.f32 %v13681_v0, %v3110_v44  ;;  %v3053_v27 = vsel %vm2706_vm5, %v13684_v59, 0.0  ;;  %13686 = vst [vmem:[#allocation288_spill] sm:$0xff] %v10088_v54  ;;  %13688 = vst [vmem:[#allocation220_spill] sm:$0xff] %v10091_v11  ;;  %v3115_v47 = vmul.f32 %v3051_v50, %v13567_v52  ;;  %v13690_v44 = vld [vmem:[#allocation172_spill] sm:$0xff]  ;;  %v3116_v46 = vmul.f32 %v3052_v17, %v13573_v3  ;;  %v13691_v58 = vld [vmem:[#allocation117_spill] sm:$0xff] }
 0x4e3   : > { %13689 = vst [vmem:[#allocation61_spill] sm:$0xff] %v10093_v21  ;;  %v3179_v0 = vmul.f32 %v3051_v50, %v13690_v44  ;;  %v3054_v57 = vsel %vm2706_vm5, %v13691_v58, 0.0  ;;  %v13692_v30 = vld [vmem:[#allocation85_spill] sm:$0xff]  ;;  %v13693_v59 = vld [vmem:[#allocation294_spill] sm:$0xff]  ;;  %v13695_v5 = vld [vmem:[#allocation67_spill] sm:$0xff]  ;;  %v3117_v3 = vmul.f32 %v3053_v27, %v9443_v43 }
 0x4e4   : > { %4076 = vbcast.lane.b32.xlu1 %v13692_v30, 256  ;;  %v3180_v33 = vmul.f32 %v3052_v17, %v13693_v59  ;;  %v13694_v36 = vld [vmem:[#allocation245_spill] sm:$0xff]  ;;  %v10107_v10 = vsub.f32 %v13695_v5, %v3112_v28  ;;  %v13696_v21 = vld [vmem:[#allocation31_spill] sm:$0xff]  ;;  %4080 = vbcast.lane.b32.xlu0 %v13692_v30, 264  ;;  %v13697_v50 = vld [vmem:[#allocation246_spill] sm:$0xff]  ;;  %v3181_v28 = vmul.f32 %v3053_v27, %v13575_v45 }
 0x4e5   : > { %v10104_v54 = vadd.f32 %v13694_v36, %v3175_v19  ;;  %v10110_v52 = vadd.f32 %v13696_v21, %v3176_v38  ;;  %v10115_v44 = vsub.f32 %v13697_v50, %v3113_v31  ;;  %v13698_v58 = vld [vmem:[#allocation203_spill] sm:$0xff]  ;;  %v10123_v19 = vpop.permute.xlu1 %3544  ;;  %v3118_v38 = vmul.f32 %v3054_v57, %v9458_v24  ;;  %v13702_v21 = vld [vmem:[#allocation156_spill] sm:$0xff]  ;;  %v13703_v43 = vld [vmem:[#allocation322_spill] sm:$0xff]  ;;  %v10133_v5 = vpop.permute.xlu0 %3548 }
 0x4e6   : > { %v10118_v11 = vadd.f32 %v13698_v58, %v3177_v22  ;;  %v13699_v17 = vld [vmem:[#allocation247_spill] sm:$0xff]  ;;  %13701 = vst [vmem:[#allocation310_spill] sm:$0xff] %v10123_v19  ;;  %v3055_v36 = vsel %vm2706_vm5, %v13702_v21, 0.0  ;;  %v3056_v31 = vsel %vm2706_vm5, %v13703_v43, 0.0  ;;  %13704 = vst [vmem:[#allocation269_spill] sm:$0xff] %v10133_v5  ;;  %v13705_v22 = vld [vmem:[#allocation46_spill] sm:$0xff] }
 0x4e7   : > { %v10121_v59 = vsub.f32 %v13699_v17, %v3114_v20  ;;  %v10136_v50 = vadd.f32 %v13705_v22, %v3178_v18  ;;  %v13706_v20 = vld [vmem:[#allocation249_spill] sm:$0xff]  ;;  %v13708_v17 = vld [vmem:[#allocation250_spill] sm:$0xff]  ;;  %v13709_v24 = vld [vmem:[#allocation75_spill] sm:$0xff] }
 0x4e8   : > { %v10139_v58 = vsub.f32 %v13706_v20, %v3115_v47  ;;  %v10142_v27 = vadd.f32 %v13708_v17, %v3179_v0  ;;  %v10145_v45 = vsub.f32 %v13709_v24, %v3116_v46  ;;  %4084 = vbcast.lane.b32.xlu1 %v13692_v30, 272  ;;  %v13711_v21 = vld [vmem:[#allocation231_spill] sm:$0xff]  ;;  %4088 = vbcast.lane.b32.xlu0 %v13692_v30, 280  ;;  %v13715_v46 = vld [vmem:[#allocation232_spill] sm:$0xff] }
 0x4e9   : > { %13700 = vst [vmem:[#allocation309_spill] sm:$0xff] %v10121_v59  ;;  %v3182_v19 = vmul.f32 %v3054_v57, %v13711_v21  ;;  %v13712_v59 = vld [vmem:[#allocation185_spill] sm:$0xff]  ;;  %v13713_v5 = vld [vmem:[#allocation279_spill] sm:$0xff]  ;;  %v3119_v0 = vmul.f32 %v3055_v36, %v9464_v40  ;;  %v3183_v20 = vmul.f32 %v3055_v36, %v13715_v46  ;;  %v3120_v17 = vmul.f32 %v3056_v31, %v9473_v7  ;;  %v13716_v57 = vld [vmem:[#allocation158_spill] sm:$0xff]  ;;  %v10177_v36 = vpop.permute.xlu0 %3556 }
 0x4ea   : > { %13707 = vst [vmem:[#allocation125_spill] sm:$0xff] %v10139_v58  ;;  %13710 = vst [vmem:[#allocation126_spill] sm:$0xff] %v10145_v45  ;;  %v3057_v43 = vsel %vm2706_vm5, %v13712_v59, 0.0  ;;  %v3058_v18 = vsel %vm2706_vm5, %v13713_v5, 0.0  ;;  %v13714_v47 = vld [vmem:[#allocation251_spill] sm:$0xff]  ;;  %v3059_v24 = vsel %vm2706_vm5, %v13716_v57, 0.0  ;;  %v10165_v59 = vpop.permute.xlu1 %3552  ;;  %v3184_v21 = vmul.f32 %v3056_v31, %v9470_v39 }
 0x4eb   : > { %v10156_v22 = vadd.f32 %v13714_v47, %v3180_v33  ;;  %13717 = vst [vmem:[#allocation270_spill] sm:$0xff] %v10165_v59  ;;  %v13718_v5 = vld [vmem:[#allocation33_spill] sm:$0xff]  ;;  %v13719_v33 = vld [vmem:[#allocation207_spill] sm:$0xff]  ;;  %v13720_v30 = vld [vmem:[#allocation252_spill] sm:$0xff]  ;;  %v3121_v7 = vmul.f32 %v3057_v43, %v9485_v51  ;;  %v3185_v46 = vmul.f32 %v3057_v43, %v9476_v15  ;;  %v3122_v57 = vmul.f32 %v3058_v18, %v9495_v14 }
 0x4ec   : > { %v10169_v45 = vsub.f32 %v13718_v5, %v3117_v3  ;;  %v10172_v47 = vadd.f32 %v13719_v33, %v3181_v28  ;;  %v10175_v40 = vsub.f32 %v13720_v30, %v3118_v38  ;;  %13722 = vst [vmem:[#allocation37_spill] sm:$0xff] %v10177_v36  ;;  %v13723_v59 = vld [vmem:[#allocation159_spill] sm:$0xff]  ;;  %v13724_v3 = vld [vmem:[#allocation86_spill] sm:$0xff]  ;;  %v13725_v31 = vld [vmem:[#allocation296_spill] sm:$0xff]  ;;  %v3123_v5 = vmul.f32 %v3059_v24, %v13600_v62 }
 0x4ed   : > { %v3060_v39 = vsel %vm2706_vm5, %v13723_v59, 0.0  ;;  %4095 = vbcast.lane.b32.xlu1 %v13724_v3, 256  ;;  %v3186_v28 = vmul.f32 %v3058_v18, %v13725_v31  ;;  %v13726_v38 = vld [vmem:[#allocation320_spill] sm:$0xff]  ;;  %v13727_v30 = vld [vmem:[#allocation186_spill] sm:$0xff]  ;;  %4099 = vbcast.lane.b32.xlu0 %v13724_v3, 264  ;;  %v13730_v43 = vld [vmem:[#allocation253_spill] sm:$0xff] }
 0x4ee   : > { %13721 = vst [vmem:[#allocation165_spill] sm:$0xff] %v10175_v40  ;;  %v3187_v33 = vmul.f32 %v3059_v24, %v13726_v38  ;;  %v3061_v51 = vsel %vm2706_vm5, %v13727_v30, 0.0  ;;  %v13728_v15 = vld [vmem:[#allocation208_spill] sm:$0xff]  ;;  %v10197_v36 = vsub.f32 %v13730_v43, %v3119_v0  ;;  %v13733_v18 = vld [vmem:[#allocation49_spill] sm:$0xff]  ;;  %v10205_v62 = vpop.permute.xlu1 %3563  ;;  %v3124_v24 = vmul.f32 %v3060_v39, %v13605_v26  ;;  %v10215_v0 = vpop.permute.xlu0 %3567  ;;  %v13738_v43 = vld [vmem:[#allocation255_spill] sm:$0xff] }
 0x4ef   : > { %v10194_v14 = vadd.f32 %v13728_v15, %v3182_v19  ;;  %v13732_v59 = vld [vmem:[#allocation48_spill] sm:$0xff]  ;;  %v10203_v31 = vsub.f32 %v13733_v18, %v3120_v17  ;;  %13734 = vst [vmem:[#allocation271_spill] sm:$0xff] %v10205_v62  ;;  %v3188_v38 = vmul.f32 %v3060_v39, %v13602_v60  ;;  %v13736_v15 = vld [vmem:[#allocation257_spill] sm:$0xff]  ;;  %13737 = vst [vmem:[#allocation54_spill] sm:$0xff] %v10215_v0 }
 0x4f0   : > { %13731 = vst [vmem:[#allocation58_spill] sm:$0xff] %v10197_v36  ;;  %v10200_v40 = vadd.f32 %v13732_v59, %v3183_v20  ;;  %v13735_v30 = vld [vmem:[#allocation188_spill] sm:$0xff]  ;;  %v3125_v20 = vmul.f32 %v3061_v51, %v9546_v8  ;;  %v10219_v17 = vsub.f32 %v13738_v43, %v3121_v7  ;;  %v13740_v26 = vld [vmem:[#allocation258_spill] sm:$0xff]  ;;  %v13742_v60 = vld [vmem:[#allocation191_spill] sm:$0xff] }
 0x4f1   : > { %13729 = vst [vmem:[#allocation166_spill] sm:$0xff] %v10194_v14  ;;  %v3062_v19 = vsel %vm2706_vm5, %v13735_v30, 0.0  ;;  %v10213_v14 = vadd.f32 %v13736_v15, %v3184_v21  ;;  %v13739_v59 = vld [vmem:[#allocation76_spill] sm:$0xff]  ;;  %v10225_v62 = vsub.f32 %v13740_v26, %v3122_v57  ;;  %4103 = vbcast.lane.b32.xlu1 %v13724_v3, 272  ;;  %v3063_v21 = vsel %vm2706_vm5, %v13742_v60, 0.0  ;;  %v13743_v39 = vld [vmem:[#allocation259_spill] sm:$0xff] }
 0x4f2   : > { %v10222_v18 = vadd.f32 %v13739_v59, %v3185_v46  ;;  %v10232_v30 = vadd.f32 %v13743_v39, %v3186_v28  ;;  %v13745_v15 = vld [vmem:[#allocation50_spill] sm:$0xff]  ;;  %v13747_v7 = vld [vmem:[#allocation260_spill] sm:$0xff]  ;;  %4107 = vbcast.lane.b32.xlu0 %v13724_v3, 280  ;;  %v13749_v46 = vld [vmem:[#allocation321_spill] sm:$0xff]  ;;  %v3126_v59 = vmul.f32 %v3062_v19, %v9556_v41  ;;  %v10249_v39 = vpop.permute.xlu1 %3571 }
 0x4f3   : > { %13741 = vst [vmem:[#allocation275_spill] sm:$0xff] %v10225_v62  ;;  %v10235_v8 = vsub.f32 %v13745_v15, %v3123_v5  ;;  %v10238_v43 = vadd.f32 %v13747_v7, %v3187_v33  ;;  %v3189_v57 = vmul.f32 %v3061_v51, %v13749_v46  ;;  %v13750_v26 = vld [vmem:[#allocation192_spill] sm:$0xff]  ;;  %13752 = vst [vmem:[#allocation24_spill] sm:$0xff] %v10249_v39  ;;  %v13753_v33 = vld [vmem:[#allocation199_spill] sm:$0xff]  ;;  %v10261_v46 = vpop.permute.xlu0 %3575 }
 0x4f4   : > { %13744 = vst [vmem:[#allocation272_spill] sm:$0xff] %v10232_v30  ;;  %v3064_v0 = vsel %vm2706_vm5, %v13750_v26, 0.0  ;;  %v13751_v60 = vld [vmem:[#allocation196_spill] sm:$0xff]  ;;  %v3190_v5 = vmul.f32 %v3062_v19, %v9553_v63  ;;  %v3066_v3 = vsel %vm2706_vm5, %v13753_v33, 0.0  ;;  %v13754_v15 = vld [vmem:[#allocation261_spill] sm:$0xff]  ;;  %v13756_v41 = vld [vmem:[#allocation262_spill] sm:$0xff]  ;;  %v3127_v26 = vmul.f32 %v3063_v21, %v9569_v56 }
 0x4f5   : > { %13746 = vst [vmem:[#allocation111_spill] sm:$0xff] %v10235_v8  ;;  %13748 = vst [vmem:[#allocation273_spill] sm:$0xff] %v10238_v43  ;;  %v3065_v28 = vsel %vm2706_vm5, %v13751_v60, 0.0  ;;  %v10256_v51 = vsub.f32 %v13754_v15, %v3124_v24  ;;  %v10259_v7 = vadd.f32 %v13756_v41, %v3188_v38  ;;  %v3191_v60 = vmul.f32 %v3063_v21, %v9566_v37  ;;  %v13759_v43 = vld [vmem:[#allocation171_spill] sm:$0xff]  ;;  %v13760_v19 = vld [vmem:[#allocation56_spill] sm:$0xff] }
 0x4f6   : > { %13758 = vst [vmem:[#allocation139_spill] sm:$0xff] %v10261_v46  ;;  %v3067_v63 = vsel %vm2706_vm5, %v13759_v43, 0.0  ;;  %v10269_v39 = vsub.f32 %v13760_v19, %v3125_v20  ;;  %v13762_v33 = vld [vmem:[#allocation87_spill] sm:$0xff]  ;;  %v3128_v24 = vmul.f32 %v3064_v0, %v9577_v42  ;;  %v3192_v38 = vmul.f32 %v3064_v0, %v9574_v2  ;;  %v13763_v41 = vld [vmem:[#allocation22_spill] sm:$0xff]  ;;  %v13764_v37 = vld [vmem:[#allocation184_spill] sm:$0xff]  ;;  %v10287_v42 = vpop.permute.xlu1 %3582 }
 0x4f7   : > { %13755 = vst [vmem:[#allocation79_spill] sm:$0xff] %v10256_v51  ;;  %13757 = vst [vmem:[#allocation274_spill] sm:$0xff] %v10259_v7  ;;  %4114 = vbcast.lane.b32.xlu1 %v13762_v33, 256  ;;  %v3129_v15 = vmul.f32 %v3065_v28, %v9587_v34  ;;  %v3068_v56 = vsel %vm2706_vm5, %v13763_v41, 0.0  ;;  %4118 = vbcast.lane.b32.xlu0 %v13762_v33, 264  ;;  %v3193_v21 = vmul.f32 %v3065_v28, %v13764_v37  ;;  %v13765_v43 = vld [vmem:[#allocation73_spill] sm:$0xff]  ;;  %v10295_v37 = vpop.permute.xlu0 %3586 }
 0x4f8   : > { %13761 = vst [vmem:[#allocation32_spill] sm:$0xff] %v10269_v39  ;;  %v3130_v46 = vmul.f32 %v3066_v3, %v13765_v43  ;;  %v13766_v20 = vld [vmem:[#allocation51_spill] sm:$0xff]  ;;  %13769 = vst [vmem:[#allocation312_spill] sm:$0xff] %v10287_v42  ;;  %v3131_v0 = vmul.f32 %v3067_v63, %v13631_v13  ;;  %v3195_v41 = vmul.f32 %v3067_v63, %v9602_v23  ;;  %v13771_v51 = vld [vmem:[#allocation302_spill] sm:$0xff] }
 0x4f9   : > { %v10282_v19 = vadd.f32 %v13766_v20, %v3189_v57  ;;  %v13767_v39 = vld [vmem:[#allocation23_spill] sm:$0xff]  ;;  %v3069_v28 = vsel %vm2706_vm5, %v13771_v51, 0.0  ;;  %13772 = vst [vmem:[#allocation289_spill] sm:$0xff] %v10295_v37  ;;  %v3132_v57 = vmul.f32 %v3068_v56, %v13637_v48  ;;  %v3196_v23 = vmul.f32 %v3068_v56, %v13633_v25  ;;  %v13777_v51 = vld [vmem:[#allocation189_spill] sm:$0xff]  ;;  %v13779_v48 = vld [vmem:[#allocation142_spill] sm:$0xff] }
 0x4fa   : > { %v10285_v7 = vsub.f32 %v13767_v39, %v3126_v59  ;;  %v13770_v2 = vld [vmem:[#allocation323_spill] sm:$0xff]  ;;  %v10311_v63 = vsub.f32 %v13777_v51, %v3128_v24  ;;  %v13783_v25 = vld [vmem:[#allocation176_spill] sm:$0xff]  ;;  %v10330_v56 = vpop.permute.xlu1 %3590 }
 0x4fb   : > { %v3194_v34 = vmul.f32 %v3066_v3, %v13770_v2  ;;  %v13773_v43 = vld [vmem:[#allocation55_spill] sm:$0xff]  ;;  %v13776_v3 = vld [vmem:[#allocation77_spill] sm:$0xff]  ;;  %4122 = vbcast.lane.b32.xlu1 %v13762_v33, 272  ;;  %4126 = vbcast.lane.b32.xlu0 %v13762_v33, 280  ;;  %v10328_v24 = vsub.f32 %v13783_v25, %v3130_v46  ;;  %13785 = vst [vmem:[#allocation280_spill] sm:$0xff] %v10330_v56  ;;  %v13789_v51 = vld [vmem:[#allocation264_spill] sm:$0xff] }
 0x4fc   : > { %13768 = vst [vmem:[#allocation205_spill] sm:$0xff] %v10285_v7  ;;  %vm3276_vm6 = vcmp.eq.s32.totalorder %v13773_v43, 1  ;;  %v13774_v59 = vld [vmem:[#allocation175_spill] sm:$0xff]  ;;  %v10306_v13 = vadd.f32 %v13776_v3, %v3191_v60  ;;  %v10317_v7 = vsub.f32 %v13779_v48, %v3129_v15  ;;  %v13787_v3 = vld [vmem:[#allocation308_spill] sm:$0xff]  ;;  %v3197_v46 = vmul.f32 %v3069_v28, %v9643_v12  ;;  %v13792_v48 = vld [vmem:[#allocation209_spill] sm:$0xff] }
 0x4fd   : > { %v10300_v39 = vadd.f32 %v13774_v59, %v3190_v5  ;;  %v13775_v20 = vld [vmem:[#allocation215_spill] sm:$0xff]  ;;  %v3133_v5 = vmul.f32 %v3069_v28, %v9651_v53  ;;  %v13782_v59 = vld [vmem:[#allocation193_spill] sm:$0xff]  ;;  %13784 = vst [vmem:[#allocation277_spill] sm:$0xff] %v10328_v24  ;;  %v10336_v33 = vadd.f32 %v13787_v3, %v3194_v34  ;;  %v10339_v53 = vsub.f32 %v9944_v35, %v3131_v0  ;;  %v13795_v35 = vld [vmem:[#allocation88_spill] sm:$0xff] }
 0x4fe   : > { %v10303_v42 = vsub.f32 %v13775_v20, %v3127_v26  ;;  %v13778_v2 = vld [vmem:[#allocation263_spill] sm:$0xff]  ;;  %13780 = vst [vmem:[#allocation146_spill] sm:$0xff] %v10317_v7  ;;  %v13781_v26 = vld [vmem:[#allocation204_spill] sm:$0xff]  ;;  %v10325_v20 = vadd.f32 %v13782_v59, %v3193_v21  ;;  %v10344_v21 = vpop.permute.xlu0 %3594  ;;  %v13797_v28 = vld [vmem:[#allocation217_spill] sm:$0xff] }
 0x4ff   : > { %v10314_v37 = vadd.f32 %v13778_v2, %v3192_v38  ;;  %v3070_v60 = vsel %vm2706_vm5, %v13781_v26, 0.0  ;;  %v13786_v38 = vld [vmem:[#allocation206_spill] sm:$0xff]  ;;  %13788 = vst [vmem:[#allocation221_spill] sm:$0xff] %v10339_v53  ;;  %v10342_v2 = vadd.f32 %v13789_v51, %v3195_v41  ;;  %13791 = vst [vmem:[#allocation178_spill] sm:$0xff] %v10344_v21  ;;  %v3072_v26 = vsel %vm2706_vm5, %v13792_v48, 0.0  ;;  %v13793_v59 = vld [vmem:[#allocation68_spill] sm:$0xff] }
 0x500   : > { %v3071_v15 = vsel %vm2706_vm5, %v13786_v38, 0.0  ;;  %v3073_v25 = vsel %vm2706_vm5, %v13793_v59, 0.0  ;;  %v13794_v34 = vld [vmem:[#allocation63_spill] sm:$0xff]  ;;  %4133 = vbcast.lane.b32.xlu1 %v13795_v35, 256  ;;  %v3134_v0 = vmul.f32 %v3070_v60, %v9663_v29  ;;  %v3198_v41 = vmul.f32 %v3070_v60, %v9658_v9  ;;  %4137 = vbcast.lane.b32.xlu0 %v13795_v35, 264  ;;  %v13799_v59 = vld [vmem:[#allocation237_spill] sm:$0xff]  ;;  %v10374_v9 = vpop.permute.xlu1 %3601 }
 0x501   : > { %13790 = vst [vmem:[#allocation59_spill] sm:$0xff] %v10342_v2  ;;  %v10354_v38 = vsub.f32 %v13794_v34, %v3132_v57  ;;  %v13796_v3 = vld [vmem:[#allocation211_spill] sm:$0xff]  ;;  %v10363_v51 = vadd.f32 %v13797_v28, %v3196_v23  ;;  %v3135_v48 = vmul.f32 %v3071_v15, %v9669_v49  ;;  %v3199_v57 = vmul.f32 %v3071_v15, %v13799_v59  ;;  %v13800_v34 = vld [vmem:[#allocation212_spill] sm:$0xff] }
 0x502   : > { %v3074_v12 = vsel %vm2706_vm5, %v13796_v3, 0.0  ;;  %v3075_v21 = vsel %vm2706_vm5, %v13800_v34, 0.0  ;;  %v13801_v29 = vld [vmem:[#allocation27_spill] sm:$0xff]  ;;  %13803 = vst [vmem:[#allocation282_spill] sm:$0xff] %v10374_v9  ;;  %v3136_v60 = vmul.f32 %v3072_v26, %v9680_v61  ;;  %v3137_v28 = vmul.f32 %v3073_v25, %v9691_v16  ;;  %v10382_v15 = vpop.permute.xlu0 %3605  ;;  %v13809_v61 = vld [vmem:[#allocation190_spill] sm:$0xff]  ;;  %v13810_v16 = vld [vmem:[#allocation240_spill] sm:$0xff] }
 0x503   : > { %13798 = vst [vmem:[#allocation222_spill] sm:$0xff] %v10363_v51  ;;  %v10372_v56 = vsub.f32 %v13801_v29, %v3133_v5  ;;  %v13804_v3 = vld [vmem:[#allocation43_spill] sm:$0xff]  ;;  %v13805_v51 = vld [vmem:[#allocation214_spill] sm:$0xff]  ;;  %13806 = vst [vmem:[#allocation313_spill] sm:$0xff] %v10382_v15  ;;  %v3201_v59 = vmul.f32 %v3073_v25, %v9683_v6  ;;  %v3138_v34 = vmul.f32 %v3074_v12, %v9697_v32 }
 0x504   : > { %v3200_v23 = vmul.f32 %v3072_v26, %v13804_v3  ;;  %v3076_v49 = vsel %vm2706_vm5, %v13805_v51, 0.0  ;;  %v3202_v5 = vmul.f32 %v3074_v12, %v9694_v1  ;;  %v13807_v29 = vld [vmem:[#allocation66_spill] sm:$0xff]  ;;  %4141 = vbcast.lane.b32.xlu1 %v13795_v35, 272  ;;  %v3139_v26 = vmul.f32 %v3075_v21, %v13809_v61  ;;  %v13812_v51 = vld [vmem:[#allocation52_spill] sm:$0xff]  ;;  %4145 = vbcast.lane.b32.xlu0 %v13795_v35, 280  ;;  %v13814_v1 = vld [vmem:[#allocation241_spill] sm:$0xff]  ;;  %v10408_v61 = vpop.permute.xlu1 %3609 }
 0x505   : > { %13802 = vst [vmem:[#allocation148_spill] sm:$0xff] %v10372_v56  ;;  %v10388_v9 = vadd.f32 %v13807_v29, %v3197_v46  ;;  %v3203_v3 = vmul.f32 %v3075_v21, %v13810_v16  ;;  %v13811_v56 = vld [vmem:[#allocation265_spill] sm:$0xff]  ;;  %v10397_v15 = vadd.f32 %v13812_v51, %v3198_v41  ;;  %v13813_v6 = vld [vmem:[#allocation74_spill] sm:$0xff]  ;;  %v3204_v25 = vmul.f32 %v3076_v49, %v13814_v1  ;;  %v13815_v46 = vld [vmem:[#allocation28_spill] sm:$0xff] }
 0x506   : > { %v10394_v55 = vsub.f32 %v13811_v56, %v3134_v0  ;;  %v3140_v32 = vmul.f32 %v3076_v49, %v13813_v6  ;;  %v10403_v12 = vsub.f32 %v13815_v46, %v3135_v48  ;;  %v13816_v29 = vld [vmem:[#allocation266_spill] sm:$0xff]  ;;  %13817 = vst [vmem:[#allocation132_spill] sm:$0xff] %v10408_v61  ;;  %v13818_v21 = vld [vmem:[#allocation35_spill] sm:$0xff]  ;;  %v10422_v48 = vpop.permute.xlu0 %3613 }
 0x507   : > { %13808 = vst [vmem:[#allocation314_spill] sm:$0xff] %v10388_v9  ;;  %v10406_v9 = vadd.f32 %v13816_v29, %v3199_v57  ;;  %v3431_v56 = vsel %vm3276_vm6, %v13818_v21, 1.0  ;;  %v13819_v0 = vld [vmem:[#allocation218_spill] sm:$0xff]  ;;  %v13821_v35 = vld [vmem:[#allocation195_spill] sm:$0xff]  ;;  %13825 = vst [vmem:[#allocation292_spill] sm:$0xff] %v10422_v48 }
 0x508   : > { %v10414_v41 = vsub.f32 %v13819_v0, %v3136_v60  ;;  %v10417_v16 = vadd.f32 %v13821_v35, %v3200_v23  ;;  %v13823_v51 = vld [vmem:[#allocation267_spill] sm:$0xff]  ;;  %v13827_v1 = vld [vmem:[#allocation286_spill] sm:$0xff]  ;;  %v13829_v29 = vld [vmem:[#allocation29_spill] sm:$0xff] }
 0x509   : > { %v10420_v49 = vsub.f32 %v13823_v51, %v3137_v28  ;;  %v13826_v6 = vld [vmem:[#allocation307_spill] sm:$0xff]  ;;  %v10428_v46 = vadd.f32 %v13827_v1, %v3201_v59  ;;  %v10431_v21 = vsub.f32 %v13829_v29, %v3138_v34  ;;  %v13831_v60 = vld [vmem:[#allocation268_spill] sm:$0xff]  ;;  %v13833_v23 = vld [vmem:[#allocation89_spill] sm:$0xff] }
 0x50a   : > { %13820 = vst [vmem:[#allocation287_spill] sm:$0xff] %v10414_v41  ;;  %13822 = vst [vmem:[#allocation38_spill] sm:$0xff] %v10417_v16  ;;  %v3432_v57 = vsel %vm3276_vm6, %v13826_v6, 1.0  ;;  %v10434_v0 = vadd.f32 %v13831_v60, %v3202_v5  ;;  %4152 = vbcast.lane.b32.xlu1 %v13833_v23, 256  ;;  %v13834_v35 = vld [vmem:[#allocation285_spill] sm:$0xff]  ;;  %v13835_v51 = vld [vmem:[#allocation163_spill] sm:$0xff] }
 0x50b   : > { %13824 = vst [vmem:[#allocation210_spill] sm:$0xff] %v10420_v49  ;;  %13828 = vst [vmem:[#allocation298_spill] sm:$0xff] %v10428_v46  ;;  %v3433_v28 = vsel %vm3276_vm6, %v13834_v35, 1.0  ;;  %v3434_v48 = vsel %vm3276_vm6, %v13835_v51, 1.0  ;;  %v13836_v6 = vld [vmem:[#allocation198_spill] sm:$0xff]  ;;  %v13838_v59 = vld [vmem:[#allocation201_spill] sm:$0xff] }
 0x50c   : > { %13830 = vst [vmem:[#allocation112_spill] sm:$0xff] %v10431_v21  ;;  %13832 = vst [vmem:[#allocation80_spill] sm:$0xff] %v10434_v0  ;;  %v10444_v61 = vsub.f32 %v13836_v6, %v3139_v26  ;;  %v10447_v1 = vadd.f32 %v13838_v59, %v3203_v3  ;;  %4156 = vbcast.lane.b32.xlu0 %v13833_v23, 264  ;;  %v13840_v34 = vld [vmem:[#allocation202_spill] sm:$0xff]  ;;  %v13842_v29 = vld [vmem:[#allocation123_spill] sm:$0xff]  ;;  %v10462_v26 = vpop.permute.xlu1 %3852  ;;  %v10468_v59 = vmul.f32 %v3432_v57, %v10079_v4 }
 0x50d   : > { %v10451_v5 = vmul.f32 %v3431_v56, %v13840_v34  ;;  %v3435_v60 = vsel %vm3276_vm6, %v13842_v29, 1.0  ;;  %v13843_v35 = vld [vmem:[#allocation110_spill] sm:$0xff]  ;;  %v13844_v21 = vld [vmem:[#allocation200_spill] sm:$0xff]  ;;  %13845 = vst [vmem:[#allocation109_spill] sm:$0xff] %v10462_v26  ;;  %v13846_v6 = vld [vmem:[#allocation53_spill] sm:$0xff] }
 0x50e   : > { %13837 = vst [vmem:[#allocation34_spill] sm:$0xff] %v10444_v61  ;;  %13839 = vst [vmem:[#allocation107_spill] sm:$0xff] %v10447_v1  ;;  %v10457_v0 = vsub.f32 %v13843_v35, %v3140_v32  ;;  %v10460_v51 = vadd.f32 %v13844_v21, %v3204_v25  ;;  %v10465_v3 = vmul.f32 %v3431_v56, %v13846_v6  ;;  %v13849_v1 = vld [vmem:[#allocation288_spill] sm:$0xff]  ;;  %v13851_v61 = vld [vmem:[#allocation70_spill] sm:$0xff]  ;;  %v10476_v32 = vpop.permute.xlu0 %3856  ;;  %4160 = vbcast.lane.b32.xlu1 %v13833_v23, 272 }
 0x50f   : > { %13841 = vst [vmem:[#allocation168_spill] sm:$0xff] %v10451_v5  ;;  %13848 = vst [vmem:[#allocation224_spill] sm:$0xff] %v10468_v59  ;;  %v10471_v5 = vmul.f32 %v3432_v57, %v13849_v1  ;;  %v3436_v29 = vsel %vm3276_vm6, %v13851_v61, 1.0  ;;  %v13853_v35 = vld [vmem:[#allocation220_spill] sm:$0xff]  ;;  %v10482_v21 = vmul.f32 %v3433_v28, %v10104_v54  ;;  %v10485_v56 = vmul.f32 %v3434_v48, %v10107_v10 }
 0x510   : > { %13847 = vst [vmem:[#allocation113_spill] sm:$0xff] %v10465_v3  ;;  %13852 = vst [vmem:[#allocation179_spill] sm:$0xff] %v10476_v32  ;;  %v10479_v25 = vmul.f32 %v3433_v28, %v13853_v35  ;;  %v13857_v26 = vld [vmem:[#allocation128_spill] sm:$0xff]  ;;  %v10495_v61 = vmul.f32 %v3435_v60, %v10115_v44  ;;  %v13860_v32 = vld [vmem:[#allocation133_spill] sm:$0xff]  ;;  %4164 = vbcast.lane.b32.xlu0 %v13833_v23, 280 }
 0x511   : > { %13850 = vst [vmem:[#allocation213_spill] sm:$0xff] %v10471_v5  ;;  %13855 = vst [vmem:[#allocation299_spill] sm:$0xff] %v10482_v21  ;;  %v3437_v57 = vsel %vm3276_vm6, %v13857_v26, 1.0  ;;  %v10492_v5 = vmul.f32 %v3434_v48, %v10110_v52  ;;  %v3438_v28 = vsel %vm3276_vm6, %v13860_v32, 1.0  ;;  %v13861_v21 = vld [vmem:[#allocation223_spill] sm:$0xff]  ;;  %v10505_v26 = vmul.f32 %v3435_v60, %v10118_v11  ;;  %v10516_v32 = vpop.permute.xlu1 %3860 }
 0x512   : > { %13854 = vst [vmem:[#allocation300_spill] sm:$0xff] %v10479_v25  ;;  %13856 = vst [vmem:[#allocation225_spill] sm:$0xff] %v10485_v56  ;;  %v3439_v56 = vsel %vm3276_vm6, %v13861_v21, 1.0  ;;  %v13863_v25 = vld [vmem:[#allocation309_spill] sm:$0xff]  ;;  %v10511_v48 = vmul.f32 %v3436_v29, %v10136_v50  ;;  %v10519_v3 = vmul.f32 %v3437_v57, %v10139_v58  ;;  %v10522_v23 = vmul.f32 %v3437_v57, %v10142_v27  ;;  %v13870_v60 = vld [vmem:[#allocation71_spill] sm:$0xff] }
 0x513   : > { %13858 = vst [vmem:[#allocation315_spill] sm:$0xff] %v10492_v5  ;;  %13859 = vst [vmem:[#allocation122_spill] sm:$0xff] %v10495_v61  ;;  %v10508_v59 = vmul.f32 %v3436_v29, %v13863_v25  ;;  %v13866_v61 = vld [vmem:[#allocation281_spill] sm:$0xff]  ;;  %v3441_v21 = vsel %vm3276_vm6, %v13870_v60, 1.0  ;;  %v13877_v57 = vld [vmem:[#allocation276_spill] sm:$0xff]  ;;  %v10546_v58 = vmul.f32 %v3439_v56, %v10172_v47 }
 0x514   : > { %13862 = vst [vmem:[#allocation170_spill] sm:$0xff] %v10505_v26  ;;  %13865 = vst [vmem:[#allocation57_spill] sm:$0xff] %v10511_v48  ;;  %v3440_v5 = vsel %vm3276_vm6, %v13866_v61, 1.0  ;;  %v10530_v48 = vpop.permute.xlu0 %3864  ;;  %v13873_v26 = vld [vmem:[#allocation126_spill] sm:$0xff] }
 0x515   : > { %13864 = vst [vmem:[#allocation283_spill] sm:$0xff] %v10508_v59  ;;  %13867 = vst [vmem:[#allocation301_spill] sm:$0xff] %v10516_v32  ;;  %v13871_v59 = vld [vmem:[#allocation226_spill] sm:$0xff]  ;;  %v10533_v61 = vmul.f32 %v3438_v28, %v13873_v26  ;;  %v10536_v32 = vmul.f32 %v3438_v28, %v10156_v22  ;;  %v13884_v28 = vld [vmem:[#allocation39_spill] sm:$0xff] }
 0x516   : > { %13868 = vst [vmem:[#allocation136_spill] sm:$0xff] %v10519_v3  ;;  %13869 = vst [vmem:[#allocation135_spill] sm:$0xff] %v10522_v23  ;;  %v3442_v29 = vsel %vm3276_vm6, %v13871_v59, 1.0  ;;  %v10539_v3 = vmul.f32 %v3439_v56, %v10169_v45  ;;  %v3443_v23 = vsel %vm3276_vm6, %v13877_v57, 1.0  ;;  %v13878_v60 = vld [vmem:[#allocation90_spill] sm:$0xff]  ;;  %v13880_v59 = vld [vmem:[#allocation165_spill] sm:$0xff]  ;;  %v10562_v57 = vmul.f32 %v3441_v21, %v10200_v40 }
 0x517   : > { %13872 = vst [vmem:[#allocation81_spill] sm:$0xff] %v10530_v48  ;;  %13874 = vst [vmem:[#allocation131_spill] sm:$0xff] %v10533_v61  ;;  %4171 = vbcast.lane.b32.xlu1 %v13878_v60, 256  ;;  %v10549_v48 = vmul.f32 %v3440_v5, %v13880_v59  ;;  %v13882_v26 = vld [vmem:[#allocation166_spill] sm:$0xff]  ;;  %4175 = vbcast.lane.b32.xlu0 %v13878_v60, 264  ;;  %v10565_v56 = vmul.f32 %v3442_v29, %v10203_v31 }
 0x518   : > { %13875 = vst [vmem:[#allocation290_spill] sm:$0xff] %v10536_v32  ;;  %13876 = vst [vmem:[#allocation180_spill] sm:$0xff] %v10539_v3  ;;  %v10552_v61 = vmul.f32 %v3440_v5, %v13882_v26  ;;  %v3444_v32 = vsel %vm3276_vm6, %v13884_v28, 1.0  ;;  %v10559_v3 = vmul.f32 %v3441_v21, %v10197_v36  ;;  %v10576_v28 = vmul.f32 %v3443_v23, %v10219_v17  ;;  %v13892_v36 = vld [vmem:[#allocation291_spill] sm:$0xff] }
 0x519   : > { %13879 = vst [vmem:[#allocation25_spill] sm:$0xff] %v10546_v58  ;;  %13881 = vst [vmem:[#allocation134_spill] sm:$0xff] %v10549_v48  ;;  %v13888_v58 = vld [vmem:[#allocation114_spill] sm:$0xff]  ;;  %v10573_v48 = vmul.f32 %v3442_v29, %v10213_v14  ;;  %v3446_v21 = vsel %vm3276_vm6, %v13892_v36, 1.0  ;;  %v10593_v29 = vmul.f32 %v3444_v32, %v10232_v30 }
 0x51a   : > { %13883 = vst [vmem:[#allocation138_spill] sm:$0xff] %v10552_v61  ;;  %13885 = vst [vmem:[#allocation64_spill] sm:$0xff] %v10559_v3  ;;  %v3445_v5 = vsel %vm3276_vm6, %v13888_v58, 1.0  ;;  %v10570_v61 = vpop.permute.xlu1 %3871  ;;  %v10584_v3 = vpop.permute.xlu0 %3875  ;;  %v10587_v58 = vmul.f32 %v3443_v23, %v10222_v18  ;;  %v13902_v23 = vld [vmem:[#allocation230_spill] sm:$0xff] }
 0x51b   : > { %13886 = vst [vmem:[#allocation140_spill] sm:$0xff] %v10562_v57  ;;  %13887 = vst [vmem:[#allocation181_spill] sm:$0xff] %v10565_v56  ;;  %v13893_v57 = vld [vmem:[#allocation228_spill] sm:$0xff]  ;;  %4179 = vbcast.lane.b32.xlu1 %v13878_v60, 272  ;;  %v10600_v36 = vmul.f32 %v3445_v5, %v10235_v8  ;;  %4183 = vbcast.lane.b32.xlu0 %v13878_v60, 280 }
 0x51c   : > { %13889 = vst [vmem:[#allocation143_spill] sm:$0xff] %v10570_v61  ;;  %13890 = vst [vmem:[#allocation145_spill] sm:$0xff] %v10573_v48  ;;  %v3447_v56 = vsel %vm3276_vm6, %v13893_v57, 1.0  ;;  %v10590_v61 = vmul.f32 %v3444_v32, %v10225_v62  ;;  %v13900_v57 = vld [vmem:[#allocation273_spill] sm:$0xff]  ;;  %v13906_v62 = vld [vmem:[#allocation274_spill] sm:$0xff] }
 0x51d   : > { %13891 = vst [vmem:[#allocation149_spill] sm:$0xff] %v10576_v28  ;;  %13894 = vst [vmem:[#allocation293_spill] sm:$0xff] %v10584_v3  ;;  %v13898_v28 = vld [vmem:[#allocation40_spill] sm:$0xff]  ;;  %v10603_v3 = vmul.f32 %v3445_v5, %v13900_v57  ;;  %v10616_v30 = vmul.f32 %v3446_v21, %v13906_v62  ;;  %v13910_v5 = vld [vmem:[#allocation295_spill] sm:$0xff]  ;;  %v10627_v57 = vmul.f32 %v3447_v56, %v10282_v19 }
 0x51e   : > { %13895 = vst [vmem:[#allocation150_spill] sm:$0xff] %v10587_v58  ;;  %13896 = vst [vmem:[#allocation229_spill] sm:$0xff] %v10590_v61  ;;  %v3448_v48 = vsel %vm3276_vm6, %v13898_v28, 1.0  ;;  %v3449_v58 = vsel %vm3276_vm6, %v13902_v23, 1.0  ;;  %v13903_v61 = vld [vmem:[#allocation319_spill] sm:$0xff]  ;;  %v10624_v23 = vpop.permute.xlu1 %3879 }
 0x51f   : > { %13897 = vst [vmem:[#allocation157_spill] sm:$0xff] %v10593_v29  ;;  %13899 = vst [vmem:[#allocation72_spill] sm:$0xff] %v10600_v36  ;;  %v3450_v32 = vsel %vm3276_vm6, %v13903_v61, 1.0  ;;  %v13904_v29 = vld [vmem:[#allocation79_spill] sm:$0xff]  ;;  %v13908_v36 = vld [vmem:[#allocation32_spill] sm:$0xff] }
 0x520   : > { %13901 = vst [vmem:[#allocation173_spill] sm:$0xff] %v10603_v3  ;;  %v10613_v28 = vmul.f32 %v3446_v21, %v13904_v29  ;;  %13907 = vst [vmem:[#allocation118_spill] sm:$0xff] %v10616_v30  ;;  %v10619_v8 = vmul.f32 %v3447_v56, %v13908_v36  ;;  %v3451_v3 = vsel %vm3276_vm6, %v13910_v5, 1.0  ;;  %v13912_v61 = vld [vmem:[#allocation205_spill] sm:$0xff]  ;;  %v10641_v36 = vmul.f32 %v3449_v58, %v10303_v42 }
 0x521   : > { %13911 = vst [vmem:[#allocation119_spill] sm:$0xff] %v10624_v23  ;;  %v10630_v60 = vmul.f32 %v3448_v48, %v13912_v61  ;;  %v13915_v21 = vld [vmem:[#allocation141_spill] sm:$0xff]  ;;  %v10644_v5 = vmul.f32 %v3449_v58, %v10306_v13  ;;  %v10647_v56 = vmul.f32 %v3450_v32, %v10311_v63 }
 0x522   : > { %13905 = vst [vmem:[#allocation154_spill] sm:$0xff] %v10613_v28  ;;  %13909 = vst [vmem:[#allocation82_spill] sm:$0xff] %v10619_v8  ;;  %v10633_v28 = vmul.f32 %v3448_v48, %v10300_v39  ;;  %v3452_v30 = vsel %vm3276_vm6, %v13915_v21, 1.0  ;;  %v10638_v8 = vpop.permute.xlu0 %3883  ;;  %v13920_v23 = vld [vmem:[#allocation153_spill] sm:$0xff]  ;;  %v10657_v21 = vmul.f32 %v3451_v3, %v10317_v7 }
 0x523   : > { %13913 = vst [vmem:[#allocation297_spill] sm:$0xff] %v10630_v60  ;;  %13916 = vst [vmem:[#allocation160_spill] sm:$0xff] %v10638_v8  ;;  %v3453_v48 = vsel %vm3276_vm6, %v13920_v23, 1.0  ;;  %v10654_v60 = vmul.f32 %v3450_v32, %v10314_v37  ;;  %v13924_v8 = vld [vmem:[#allocation26_spill] sm:$0xff]  ;;  %v10667_v23 = vmul.f32 %v3451_v3, %v10325_v20  ;;  %v10673_v32 = vmul.f32 %v3452_v30, %v10336_v33 }
 0x524   : > { %13914 = vst [vmem:[#allocation120_spill] sm:$0xff] %v10633_v28  ;;  %13917 = vst [vmem:[#allocation161_spill] sm:$0xff] %v10641_v36  ;;  %v13921_v28 = vld [vmem:[#allocation91_spill] sm:$0xff]  ;;  %v3454_v58 = vsel %vm3276_vm6, %v13924_v8, 1.0  ;;  %v10670_v36 = vmul.f32 %v3452_v30, %v10328_v24  ;;  %v10678_v8 = vpop.permute.xlu1 %3890  ;;  %v10681_v7 = vmul.f32 %v3453_v48, %v10339_v53  ;;  %v13933_v3 = vld [vmem:[#allocation234_spill] sm:$0xff] }
 0x525   : > { %13918 = vst [vmem:[#allocation151_spill] sm:$0xff] %v10644_v5  ;;  %13919 = vst [vmem:[#allocation152_spill] sm:$0xff] %v10647_v56  ;;  %4486 = vbcast.lane.b32.xlu1 %v13921_v28, 256  ;;  %v13925_v5 = vld [vmem:[#allocation233_spill] sm:$0xff]  ;;  %4490 = vbcast.lane.b32.xlu0 %v13921_v28, 264 }
 0x526   : > { %13922 = vst [vmem:[#allocation162_spill] sm:$0xff] %v10654_v60  ;;  %13923 = vst [vmem:[#allocation41_spill] sm:$0xff] %v10657_v21  ;;  %v3455_v56 = vsel %vm3276_vm6, %v13925_v5, 1.0  ;;  %v13929_v21 = vld [vmem:[#allocation155_spill] sm:$0xff]  ;;  %v10684_v5 = vmul.f32 %v3453_v48, %v10342_v2  ;;  %v13941_v48 = vld [vmem:[#allocation42_spill] sm:$0xff] }
 0x527   : > { %13926 = vst [vmem:[#allocation121_spill] sm:$0xff] %v10667_v23  ;;  %13927 = vst [vmem:[#allocation127_spill] sm:$0xff] %v10670_v36  ;;  %v3456_v60 = vsel %vm3276_vm6, %v13929_v21, 1.0  ;;  %v3457_v23 = vsel %vm3276_vm6, %v13933_v3, 1.0  ;;  %v13934_v36 = vld [vmem:[#allocation60_spill] sm:$0xff]  ;;  %v10695_v21 = vmul.f32 %v3454_v58, %v10354_v38  ;;  %v13942_v3 = vld [vmem:[#allocation314_spill] sm:$0xff] }
 0x528   : > { %13928 = vst [vmem:[#allocation124_spill] sm:$0xff] %v10673_v32  ;;  %13930 = vst [vmem:[#allocation129_spill] sm:$0xff] %v10678_v8  ;;  %v3458_v30 = vsel %vm3276_vm6, %v13934_v36, 1.0  ;;  %v10692_v32 = vpop.permute.xlu0 %3894  ;;  %v13937_v8 = vld [vmem:[#allocation222_spill] sm:$0xff]  ;;  %v10708_v2 = vmul.f32 %v3455_v56, %v13942_v3  ;;  %v10711_v36 = vmul.f32 %v3456_v60, %v10394_v55 }
 0x529   : > { %13931 = vst [vmem:[#allocation130_spill] sm:$0xff] %v10681_v7  ;;  %13932 = vst [vmem:[#allocation83_spill] sm:$0xff] %v10684_v5  ;;  %v10698_v24 = vmul.f32 %v3454_v58, %v13937_v8  ;;  %v13939_v7 = vld [vmem:[#allocation148_spill] sm:$0xff]  ;;  %v3459_v5 = vsel %vm3276_vm6, %v13941_v48, 1.0  ;;  %4494 = vbcast.lane.b32.xlu1 %v13921_v28, 272  ;;  %v13946_v58 = vld [vmem:[#allocation242_spill] sm:$0xff]  ;;  %v10724_v48 = vmul.f32 %v3457_v23, %v10406_v9 }
 0x52a   : > { %13935 = vst [vmem:[#allocation167_spill] sm:$0xff] %v10692_v32  ;;  %13936 = vst [vmem:[#allocation169_spill] sm:$0xff] %v10695_v21  ;;  %v10701_v53 = vmul.f32 %v3455_v56, %v13939_v7  ;;  %v10714_v32 = vmul.f32 %v3456_v60, %v10397_v15  ;;  %4498 = vbcast.lane.b32.xlu0 %v13921_v28, 280  ;;  %v10727_v56 = vmul.f32 %v3458_v30, %v10414_v41  ;;  %v13961_v41 = vld [vmem:[#allocation112_spill] sm:$0xff]  ;;  %v13966_v21 = vld [vmem:[#allocation254_spill] sm:$0xff] }
 0x52b   : > { %13938 = vst [vmem:[#allocation324_spill] sm:$0xff] %v10698_v24  ;;  %13943 = vst [vmem:[#allocation62_spill] sm:$0xff] %v10708_v2  ;;  %v3615_v24 = vsel %vm3276_vm6, %v13946_v58, 0.0  ;;  %v13950_v2 = vld [vmem:[#allocation236_spill] sm:$0xff]  ;;  %v10738_v28 = vmul.f32 %v3459_v5, %v10420_v49  ;;  %v13954_v58 = vld [vmem:[#allocation45_spill] sm:$0xff] }
 0x52c   : > { %13940 = vst [vmem:[#allocation65_spill] sm:$0xff] %v10701_v53  ;;  %13944 = vst [vmem:[#allocation235_spill] sm:$0xff] %v10711_v36  ;;  %v10721_v53 = vmul.f32 %v3457_v23, %v10403_v12  ;;  %v3460_v60 = vsel %vm3276_vm6, %v13950_v2, 1.0  ;;  %v10735_v36 = vmul.f32 %v3458_v30, %v10417_v16  ;;  %v3616_v23 = vsel %vm3276_vm6, %v13954_v58, 0.0  ;;  %v13960_v58 = vld [vmem:[#allocation92_spill] sm:$0xff] }
 0x52d   : > { %13945 = vst [vmem:[#allocation137_spill] sm:$0xff] %v10714_v32  ;;  %13948 = vst [vmem:[#allocation284_spill] sm:$0xff] %v10724_v48  ;;  %v10732_v32 = vpop.permute.xlu1 %3898  ;;  %v13955_v48 = vld [vmem:[#allocation248_spill] sm:$0xff]  ;;  %v10749_v2 = vmul.f32 %v3459_v5, %v10428_v46  ;;  %v3679_v49 = vmul.f32 %v3615_v24, %v13846_v6  ;;  %4505 = vbcast.lane.b32.xlu1 %v13960_v58, 256  ;;  %v10760_v16 = vmul.f32 %v3460_v60, %v13961_v41 }
 0x52e   : > { %13947 = vst [vmem:[#allocation303_spill] sm:$0xff] %v10721_v53  ;;  %13949 = vst [vmem:[#allocation304_spill] sm:$0xff] %v10727_v56  ;;  %v3617_v56 = vsel %vm3276_vm6, %v13955_v48, 0.0  ;;  %v10746_v53 = vpop.permute.xlu0 %3902  ;;  %v13963_v48 = vld [vmem:[#allocation80_spill] sm:$0xff]  ;;  %v3743_v5 = vmul.f32 %v3615_v24, %v13840_v34  ;;  %4509 = vbcast.lane.b32.xlu0 %v13960_v58, 264  ;;  %v3744_v6 = vmul.f32 %v3616_v23, %v10079_v4  ;;  %v13970_v34 = vld [vmem:[#allocation107_spill] sm:$0xff] }
 0x52f   : > { %13951 = vst [vmem:[#allocation305_spill] sm:$0xff] %v10732_v32  ;;  %13952 = vst [vmem:[#allocation306_spill] sm:$0xff] %v10735_v36  ;;  %v13958_v32 = vld [vmem:[#allocation238_spill] sm:$0xff]  ;;  %v13959_v36 = vld [vmem:[#allocation239_spill] sm:$0xff]  ;;  %v3681_v46 = vmul.f32 %v3617_v56, %v10104_v54  ;;  %v3745_v54 = vmul.f32 %v3617_v56, %v13853_v35 }
 0x530   : > { %13953 = vst [vmem:[#allocation174_spill] sm:$0xff] %v10738_v28  ;;  %13956 = vst [vmem:[#allocation177_spill] sm:$0xff] %v10746_v53  ;;  %v3461_v30 = vsel %vm3276_vm6, %v13958_v32, 1.0  ;;  %v3462_v28 = vsel %vm3276_vm6, %v13959_v36, 1.0  ;;  %v10763_v53 = vmul.f32 %v3460_v60, %v13963_v48  ;;  %v3680_v36 = vmul.f32 %v3616_v23, %v13849_v1  ;;  %v13973_v23 = vld [vmem:[#allocation256_spill] sm:$0xff] }
 0x531   : > { %13957 = vst [vmem:[#allocation84_spill] sm:$0xff] %v10749_v2  ;;  %13962 = vst [vmem:[#allocation144_spill] sm:$0xff] %v10760_v16  ;;  %v13965_v2 = vld [vmem:[#allocation47_spill] sm:$0xff]  ;;  %v3619_v16 = vsel %vm3276_vm6, %v13966_v21, 0.0  ;;  %v10776_v60 = vpop.permute.xlu1 %3909  ;;  %v10782_v41 = vmul.f32 %v3461_v30, %v13970_v34  ;;  %v10788_v1 = vmul.f32 %v3462_v28, %v10460_v51  ;;  %v13974_v48 = vld [vmem:[#allocation168_spill] sm:$0xff]  ;;  %4513 = vbcast.lane.b32.xlu1 %v13960_v58, 272 }
 0x532   : > { %13964 = vst [vmem:[#allocation311_spill] sm:$0xff] %v10763_v53  ;;  %v3618_v32 = vsel %vm3276_vm6, %v13965_v2, 0.0  ;;  %13967 = vst [vmem:[#allocation147_spill] sm:$0xff] %v10776_v60  ;;  %v13968_v53 = vld [vmem:[#allocation34_spill] sm:$0xff]  ;;  %v10785_v2 = vmul.f32 %v3462_v28, %v10457_v0  ;;  %v10790_v4 = vpop.permute.xlu0 %3913  ;;  %v3620_v60 = vsel %vm3276_vm6, %v13973_v23, 0.0  ;;  %v3683_v28 = vmul.f32 %v3619_v16, %v10118_v11  ;;  %4517 = vbcast.lane.b32.xlu0 %v13960_v58, 280 }
 0x533   : > { %v10779_v24 = vmul.f32 %v3461_v30, %v13968_v53  ;;  %13971 = vst [vmem:[#allocation243_spill] sm:$0xff] %v10788_v1  ;;  %13972 = vst [vmem:[#allocation227_spill] sm:$0xff] %v10790_v4  ;;  %v3682_v21 = vmul.f32 %v3618_v32, %v10110_v52  ;;  %v3746_v30 = vmul.f32 %v3618_v32, %v10107_v10  ;;  %v13976_v4 = vld [vmem:[#allocation187_spill] sm:$0xff]  ;;  %v13977_v52 = vld [vmem:[#allocation113_spill] sm:$0xff] }
 0x534   : > { %v3747_v1 = vmul.f32 %v3619_v16, %v10115_v44  ;;  %v3621_v35 = vsel %vm3276_vm6, %v13976_v4, 0.0  ;;  %v10809_v56 = vadd.f32 %v13977_v52, %v3743_v5  ;;  %v13978_v23 = vld [vmem:[#allocation224_spill] sm:$0xff]  ;;  %v3684_v44 = vmul.f32 %v3620_v60, %v10136_v50  ;;  %v13984_v4 = vld [vmem:[#allocation69_spill] sm:$0xff] }
 0x535   : > { %13969 = vst [vmem:[#allocation44_spill] sm:$0xff] %v10779_v24  ;;  %v10798_v24 = vsub.f32 %v13974_v48, %v3679_v49  ;;  %v10812_v49 = vsub.f32 %v13978_v23, %v3680_v36  ;;  %v13979_v48 = vld [vmem:[#allocation213_spill] sm:$0xff]  ;;  %v13981_v10 = vld [vmem:[#allocation300_spill] sm:$0xff]  ;;  %v10820_v11 = vpop.permute.xlu1 %3917  ;;  %v3748_v16 = vmul.f32 %v3620_v60, %v13863_v25  ;;  %v3622_v58 = vsel %vm3276_vm6, %v13984_v4, 0.0 }
 0x536   : > { %v10818_v32 = vsub.f32 %v13981_v10, %v3681_v46  ;;  %13983 = vst [vmem:[#allocation115_spill] sm:$0xff] %v10820_v11  ;;  %v13985_v5 = vld [vmem:[#allocation216_spill] sm:$0xff]  ;;  %v10830_v52 = vpop.permute.xlu0 %3921  ;;  %v13987_v46 = vld [vmem:[#allocation125_spill] sm:$0xff] }
 0x537   : > { %13975 = vst [vmem:[#allocation318_spill] sm:$0xff] %v10798_v24  ;;  %v10815_v24 = vadd.f32 %v13979_v48, %v3744_v6  ;;  %v3623_v36 = vsel %vm3276_vm6, %v13985_v5, 0.0  ;;  %13986 = vst [vmem:[#allocation116_spill] sm:$0xff] %v10830_v52  ;;  %v3685_v6 = vmul.f32 %v3621_v35, %v10142_v27  ;;  %v3749_v23 = vmul.f32 %v3621_v35, %v13987_v46  ;;  %v13988_v48 = vld [vmem:[#allocation299_spill] sm:$0xff]  ;;  %v13989_v50 = vld [vmem:[#allocation225_spill] sm:$0xff] }
 0x538   : > { %13982 = vst [vmem:[#allocation317_spill] sm:$0xff] %v10818_v32  ;;  %v10835_v10 = vadd.f32 %v13988_v48, %v3745_v54  ;;  %v10838_v11 = vsub.f32 %v13989_v50, %v3682_v21  ;;  %v13990_v25 = vld [vmem:[#allocation93_spill] sm:$0xff]  ;;  %v13991_v60 = vld [vmem:[#allocation108_spill] sm:$0xff]  ;;  %v13992_v32 = vld [vmem:[#allocation315_spill] sm:$0xff]  ;;  %v3686_v54 = vmul.f32 %v3622_v58, %v10156_v22  ;;  %v3687_v48 = vmul.f32 %v3623_v36, %v10172_v47 }
 0x539   : > { %13980 = vst [vmem:[#allocation316_spill] sm:$0xff] %v10815_v24  ;;  %4524 = vbcast.lane.b32.xlu1 %v13990_v25, 256  ;;  %v3624_v4 = vsel %vm3276_vm6, %v13991_v60, 0.0  ;;  %v10845_v5 = vadd.f32 %v13992_v32, %v3746_v30  ;;  %v13993_v52 = vld [vmem:[#allocation122_spill] sm:$0xff]  ;;  %4528 = vbcast.lane.b32.xlu0 %v13990_v25, 264  ;;  %v13998_v50 = vld [vmem:[#allocation36_spill] sm:$0xff]  ;;  %v10860_v30 = vpop.permute.xlu1 %3928 }
 0x53a   : > { %v10848_v24 = vsub.f32 %v13993_v52, %v3683_v28  ;;  %v13995_v27 = vld [vmem:[#allocation170_spill] sm:$0xff]  ;;  %v3625_v60 = vsel %vm3276_vm6, %v13998_v50, 0.0  ;;  %13999 = vst [vmem:[#allocation183_spill] sm:$0xff] %v10860_v30  ;;  %v3751_v28 = vmul.f32 %v3623_v36, %v10169_v45  ;;  %v14001_v52 = vld [vmem:[#allocation283_spill] sm:$0xff]  ;;  %v14002_v22 = vld [vmem:[#allocation57_spill] sm:$0xff]  ;;  %v3688_v47 = vmul.f32 %v3624_v4, %v13882_v26 }
 0x53b   : > { %v10851_v35 = vadd.f32 %v13995_v27, %v3747_v1  ;;  %v13997_v21 = vld [vmem:[#allocation126_spill] sm:$0xff]  ;;  %v10867_v27 = vsub.f32 %v14001_v52, %v3684_v44  ;;  %v14005_v30 = vld [vmem:[#allocation136_spill] sm:$0xff]  ;;  %v14006_v36 = vld [vmem:[#allocation135_spill] sm:$0xff]  ;;  %v3752_v44 = vmul.f32 %v3624_v4, %v13880_v59 }
 0x53c   : > { %13994 = vst [vmem:[#allocation244_spill] sm:$0xff] %v10848_v24  ;;  %v3750_v46 = vmul.f32 %v3622_v58, %v13997_v21  ;;  %v14000_v32 = vld [vmem:[#allocation194_spill] sm:$0xff]  ;;  %v10872_v58 = vpop.permute.xlu0 %3932  ;;  %v14004_v21 = vld [vmem:[#allocation164_spill] sm:$0xff]  ;;  %v10879_v45 = vsub.f32 %v14005_v30, %v3685_v6  ;;  %v10882_v24 = vadd.f32 %v14006_v36, %v3749_v23  ;;  %v14009_v30 = vld [vmem:[#allocation131_spill] sm:$0xff] }
 0x53d   : > { %13996 = vst [vmem:[#allocation182_spill] sm:$0xff] %v10851_v35  ;;  %v3626_v1 = vsel %vm3276_vm6, %v14000_v32, 0.0  ;;  %v10870_v35 = vadd.f32 %v14002_v22, %v3748_v16  ;;  %14003 = vst [vmem:[#allocation197_spill] sm:$0xff] %v10872_v58  ;;  %v3627_v50 = vsel %vm3276_vm6, %v14004_v21, 0.0  ;;  %4532 = vbcast.lane.b32.xlu1 %v13990_v25, 272  ;;  %v3689_v16 = vmul.f32 %v3625_v60, %v10200_v40  ;;  %v14007_v32 = vld [vmem:[#allocation58_spill] sm:$0xff]  ;;  %v10902_v40 = vpop.permute.xlu1 %3936 }
 0x53e   : > { %v3753_v52 = vmul.f32 %v3625_v60, %v14007_v32  ;;  %v14008_v22 = vld [vmem:[#allocation78_spill] sm:$0xff]  ;;  %4536 = vbcast.lane.b32.xlu0 %v13990_v25, 280  ;;  %v3690_v6 = vmul.f32 %v3626_v1, %v10213_v14  ;;  %v10894_v21 = vsub.f32 %v14009_v30, %v3686_v54  ;;  %v14011_v58 = vld [vmem:[#allocation180_spill] sm:$0xff]  ;;  %14013 = vst [vmem:[#allocation172_spill] sm:$0xff] %v10902_v40  ;;  %v14014_v32 = vld [vmem:[#allocation219_spill] sm:$0xff] }
 0x53f   : > { %v3628_v26 = vsel %vm3276_vm6, %v14008_v22, 0.0  ;;  %v14010_v23 = vld [vmem:[#allocation290_spill] sm:$0xff]  ;;  %v10900_v59 = vsub.f32 %v14011_v58, %v3687_v48  ;;  %v3754_v4 = vmul.f32 %v3626_v1, %v10203_v31  ;;  %v3691_v60 = vmul.f32 %v3627_v50, %v10222_v18  ;;  %v14015_v14 = vld [vmem:[#allocation25_spill] sm:$0xff]  ;;  %v14018_v30 = vld [vmem:[#allocation272_spill] sm:$0xff] }
 0x540   : > { %v10897_v36 = vadd.f32 %v14010_v23, %v3750_v46  ;;  %v3629_v25 = vsel %vm3276_vm6, %v14014_v32, 0.0  ;;  %v10910_v22 = vadd.f32 %v14015_v14, %v3751_v28  ;;  %v10912_v54 = vpop.permute.xlu0 %3940  ;;  %v3755_v46 = vmul.f32 %v3627_v50, %v10219_v17  ;;  %v14019_v58 = vld [vmem:[#allocation275_spill] sm:$0xff]  ;;  %v14020_v40 = vld [vmem:[#allocation61_spill] sm:$0xff]  ;;  %v14021_v18 = vld [vmem:[#allocation94_spill] sm:$0xff] }
 0x541   : > { %14012 = vst [vmem:[#allocation30_spill] sm:$0xff] %v10900_v59  ;;  %14017 = vst [vmem:[#allocation85_spill] sm:$0xff] %v10912_v54  ;;  %v3692_v48 = vmul.f32 %v3628_v26, %v14018_v30  ;;  %v3756_v23 = vmul.f32 %v3628_v26, %v14019_v58  ;;  %v3630_v31 = vsel %vm3276_vm6, %v14020_v40, 0.0  ;;  %4543 = vbcast.lane.b32.xlu1 %v14021_v18, 256  ;;  %v14022_v1 = vld [vmem:[#allocation134_spill] sm:$0xff]  ;;  %v14025_v14 = vld [vmem:[#allocation64_spill] sm:$0xff] }
 0x542   : > { %14016 = vst [vmem:[#allocation117_spill] sm:$0xff] %v10910_v22  ;;  %v10922_v59 = vsub.f32 %v14022_v1, %v3688_v47  ;;  %v14024_v32 = vld [vmem:[#allocation138_spill] sm:$0xff]  ;;  %v10928_v54 = vsub.f32 %v14025_v14, %v3689_v16  ;;  %v14026_v17 = vld [vmem:[#allocation140_spill] sm:$0xff]  ;;  %4547 = vbcast.lane.b32.xlu0 %v14021_v18, 264  ;;  %v14028_v26 = vld [vmem:[#allocation273_spill] sm:$0xff]  ;;  %v3694_v16 = vmul.f32 %v3630_v31, %v13906_v62 }
 0x543   : > { %v10925_v28 = vadd.f32 %v14024_v32, %v3752_v44  ;;  %v10931_v50 = vadd.f32 %v14026_v17, %v3753_v52  ;;  %v3693_v30 = vmul.f32 %v3629_v25, %v14028_v26  ;;  %v14029_v58 = vld [vmem:[#allocation111_spill] sm:$0xff]  ;;  %v14030_v22 = vld [vmem:[#allocation310_spill] sm:$0xff]  ;;  %v14031_v1 = vld [vmem:[#allocation181_spill] sm:$0xff]  ;;  %v10942_v44 = vpop.permute.xlu1 %3947 }
 0x544   : > { %14023 = vst [vmem:[#allocation294_spill] sm:$0xff] %v10922_v59  ;;  %v3757_v40 = vmul.f32 %v3629_v25, %v14029_v58  ;;  %v3631_v47 = vsel %vm3276_vm6, %v14030_v22, 0.0  ;;  %v10940_v59 = vsub.f32 %v14031_v1, %v3690_v6  ;;  %14033 = vst [vmem:[#allocation31_spill] sm:$0xff] %v10942_v44  ;;  %v14034_v32 = vld [vmem:[#allocation269_spill] sm:$0xff]  ;;  %v10954_v58 = vpop.permute.xlu0 %3951  ;;  %v14038_v22 = vld [vmem:[#allocation270_spill] sm:$0xff] }
 0x545   : > { %14027 = vst [vmem:[#allocation245_spill] sm:$0xff] %v10931_v50  ;;  %v3632_v52 = vsel %vm3276_vm6, %v14034_v32, 0.0  ;;  %v14035_v14 = vld [vmem:[#allocation145_spill] sm:$0xff]  ;;  %14037 = vst [vmem:[#allocation246_spill] sm:$0xff] %v10954_v58  ;;  %v3633_v6 = vsel %vm3276_vm6, %v14038_v22, 0.0  ;;  %v14039_v1 = vld [vmem:[#allocation150_spill] sm:$0xff] }
 0x546   : > { %14032 = vst [vmem:[#allocation67_spill] sm:$0xff] %v10940_v59  ;;  %v10949_v17 = vadd.f32 %v14035_v14, %v3754_v4  ;;  %v14036_v26 = vld [vmem:[#allocation149_spill] sm:$0xff]  ;;  %v10960_v44 = vadd.f32 %v14039_v1, %v3755_v46  ;;  %4551 = vbcast.lane.b32.xlu1 %v14021_v18, 272  ;;  %v3758_v4 = vmul.f32 %v3630_v31, %v13904_v29  ;;  %v14042_v14 = vld [vmem:[#allocation32_spill] sm:$0xff] }
 0x547   : > { %v10952_v25 = vsub.f32 %v14036_v26, %v3691_v60  ;;  %v14040_v62 = vld [vmem:[#allocation229_spill] sm:$0xff]  ;;  %v3695_v60 = vmul.f32 %v3631_v47, %v10282_v19  ;;  %v3759_v26 = vmul.f32 %v3631_v47, %v14042_v14  ;;  %4555 = vbcast.lane.b32.xlu0 %v14021_v18, 280  ;;  %v3696_v46 = vmul.f32 %v3632_v52, %v10300_v39  ;;  %v10986_v19 = vpop.permute.xlu1 %3955  ;;  %v14049_v18 = vld [vmem:[#allocation154_spill] sm:$0xff]  ;;  %v14105_v43 = vld [vmem:[#allocation284_spill] sm:$0xff] }
 0x548   : > { %v10963_v59 = vsub.f32 %v14040_v62, %v3692_v48  ;;  %v14041_v50 = vld [vmem:[#allocation157_spill] sm:$0xff]  ;;  %v14044_v48 = vld [vmem:[#allocation271_spill] sm:$0xff]  ;;  %14047 = vst [vmem:[#allocation203_spill] sm:$0xff] %v10986_v19  ;;  %v3760_v47 = vmul.f32 %v3632_v52, %v13912_v61  ;;  %v14048_v62 = vld [vmem:[#allocation54_spill] sm:$0xff]  ;;  %v10994_v14 = vsub.f32 %v14049_v18, %v3694_v16 }
 0x549   : > { %v10966_v32 = vadd.f32 %v14041_v50, %v3756_v23  ;;  %v14043_v58 = vld [vmem:[#allocation37_spill] sm:$0xff]  ;;  %v3635_v23 = vsel %vm3276_vm6, %v14044_v48, 0.0  ;;  %v14045_v50 = vld [vmem:[#allocation72_spill] sm:$0xff]  ;;  %v3636_v39 = vsel %vm3276_vm6, %v14048_v62, 0.0  ;;  %v10996_v48 = vpop.permute.xlu0 %3959  ;;  %v14053_v62 = vld [vmem:[#allocation118_spill] sm:$0xff] }
 0x54a   : > { %v3634_v22 = vsel %vm3276_vm6, %v14043_v58, 0.0  ;;  %v10981_v1 = vsub.f32 %v14045_v50, %v3693_v30  ;;  %v14046_v29 = vld [vmem:[#allocation173_spill] sm:$0xff]  ;;  %v3697_v58 = vmul.f32 %v3633_v6, %v10306_v13  ;;  %14050 = vst [vmem:[#allocation247_spill] sm:$0xff] %v10996_v48  ;;  %v3761_v30 = vmul.f32 %v3633_v6, %v10303_v42  ;;  %v14052_v13 = vld [vmem:[#allocation95_spill] sm:$0xff]  ;;  %v14054_v16 = vld [vmem:[#allocation82_spill] sm:$0xff] }
 0x54b   : > { %v10984_v31 = vadd.f32 %v14046_v29, %v3757_v40  ;;  %v3698_v40 = vmul.f32 %v3634_v22, %v10314_v37  ;;  %v3762_v50 = vmul.f32 %v3634_v22, %v10311_v63  ;;  %v14051_v29 = vld [vmem:[#allocation24_spill] sm:$0xff]  ;;  %4562 = vbcast.lane.b32.xlu1 %v14052_v13, 256  ;;  %v3699_v52 = vmul.f32 %v3635_v23, %v10325_v20  ;;  %v14057_v37 = vld [vmem:[#allocation146_spill] sm:$0xff]  ;;  %v14058_v22 = vld [vmem:[#allocation139_spill] sm:$0xff] }
 0x54c   : > { %v3637_v61 = vsel %vm3276_vm6, %v14051_v29, 0.0  ;;  %v11007_v19 = vadd.f32 %v14053_v62, %v3758_v4  ;;  %v11010_v18 = vsub.f32 %v14054_v16, %v3695_v60  ;;  %v11013_v42 = vadd.f32 %v10627_v57, %v3759_v26  ;;  %4566 = vbcast.lane.b32.xlu0 %v14052_v13, 264  ;;  %v14059_v20 = vld [vmem:[#allocation297_spill] sm:$0xff]  ;;  %v11024_v4 = vpop.permute.xlu1 %3966  ;;  %v14063_v16 = vld [vmem:[#allocation59_spill] sm:$0xff]  ;;  %v14064_v26 = vld [vmem:[#allocation120_spill] sm:$0xff] }
 0x54d   : > { %v3763_v63 = vmul.f32 %v3635_v23, %v14057_v37  ;;  %v3700_v6 = vmul.f32 %v3636_v39, %v10336_v33  ;;  %v3638_v29 = vsel %vm3276_vm6, %v14058_v22, 0.0  ;;  %v11022_v48 = vsub.f32 %v14059_v20, %v3696_v46  ;;  %14061 = vst [vmem:[#allocation249_spill] sm:$0xff] %v11024_v4  ;;  %v14062_v60 = vld [vmem:[#allocation277_spill] sm:$0xff]  ;;  %v11034_v33 = vpop.permute.xlu0 %3970  ;;  %v14067_v37 = vld [vmem:[#allocation312_spill] sm:$0xff]  ;;  %v14068_v46 = vld [vmem:[#allocation151_spill] sm:$0xff] }
 0x54e   : > { %14055 = vst [vmem:[#allocation156_spill] sm:$0xff] %v11010_v18  ;;  %14056 = vst [vmem:[#allocation322_spill] sm:$0xff] %v11013_v42  ;;  %v3764_v62 = vmul.f32 %v3636_v39, %v14062_v60  ;;  %v3701_v57 = vmul.f32 %v3637_v61, %v14063_v16  ;;  %v11029_v42 = vadd.f32 %v14064_v26, %v3760_v47  ;;  %v14065_v18 = vld [vmem:[#allocation161_spill] sm:$0xff]  ;;  %v3639_v22 = vsel %vm3276_vm6, %v14067_v37, 0.0  ;;  %v14069_v4 = vld [vmem:[#allocation152_spill] sm:$0xff] }
 0x54f   : > { %14060 = vst [vmem:[#allocation46_spill] sm:$0xff] %v11022_v48  ;;  %v11032_v23 = vsub.f32 %v14065_v18, %v3697_v58  ;;  %14066 = vst [vmem:[#allocation250_spill] sm:$0xff] %v11034_v33  ;;  %v11040_v20 = vadd.f32 %v14068_v46, %v3761_v30  ;;  %v11043_v48 = vsub.f32 %v14069_v4, %v3698_v40  ;;  %v14070_v39 = vld [vmem:[#allocation162_spill] sm:$0xff]  ;;  %4570 = vbcast.lane.b32.xlu1 %v14052_v13, 272  ;;  %v14072_v58 = vld [vmem:[#allocation221_spill] sm:$0xff] }
 0x550   : > { %v11046_v60 = vadd.f32 %v14070_v39, %v3762_v50  ;;  %v14071_v47 = vld [vmem:[#allocation278_spill] sm:$0xff]  ;;  %v3765_v18 = vmul.f32 %v3637_v61, %v14072_v58  ;;  %v3702_v16 = vmul.f32 %v3638_v29, %v13937_v8  ;;  %v14073_v26 = vld [vmem:[#allocation289_spill] sm:$0xff]  ;;  %4574 = vbcast.lane.b32.xlu0 %v14052_v13, 280  ;;  %v3766_v40 = vmul.f32 %v3638_v29, %v10354_v38  ;;  %v14076_v50 = vld [vmem:[#allocation280_spill] sm:$0xff]  ;;  %v11069_v58 = vpop.permute.xlu1 %3974 }
 0x551   : > { %vm3846_vm7 = vcmp.eq.s32.totalorder %v14071_v47, 1  ;;  %v3640_v37 = vsel %vm3276_vm6, %v14073_v26, 0.0  ;;  %v14074_v30 = vld [vmem:[#allocation41_spill] sm:$0xff]  ;;  %v3641_v4 = vsel %vm3276_vm6, %v14076_v50, 0.0  ;;  %v14078_v61 = vld [vmem:[#allocation127_spill] sm:$0xff]  ;;  %14079 = vst [vmem:[#allocation231_spill] sm:$0xff] %v11069_v58  ;;  %v3703_v26 = vmul.f32 %v3639_v22, %v13942_v3  ;;  %v11081_v50 = vpop.permute.xlu0 %3978 }
 0x552   : > { %v11056_v46 = vsub.f32 %v14074_v30, %v3699_v52  ;;  %v14077_v39 = vld [vmem:[#allocation121_spill] sm:$0xff]  ;;  %v11067_v8 = vsub.f32 %v14078_v61, %v3700_v6  ;;  %v14080_v52 = vld [vmem:[#allocation132_spill] sm:$0xff]  ;;  %v14082_v29 = vld [vmem:[#allocation130_spill] sm:$0xff]  ;;  %14083 = vst [vmem:[#allocation185_spill] sm:$0xff] %v11081_v50  ;;  %v3704_v6 = vmul.f32 %v3640_v37, %v10397_v15 }
 0x553   : > { %v11064_v33 = vadd.f32 %v14077_v39, %v3763_v63  ;;  %v3645_v13 = vsel %vm3276_vm6, %v14080_v52, 0.0  ;;  %v14081_v30 = vld [vmem:[#allocation124_spill] sm:$0xff]  ;;  %v3767_v63 = vmul.f32 %v3639_v22, %v13939_v7  ;;  %v3768_v39 = vmul.f32 %v3640_v37, %v10394_v55  ;;  %v14088_v7 = vld [vmem:[#allocation178_spill] sm:$0xff] }
 0x554   : > { %14075 = vst [vmem:[#allocation75_spill] sm:$0xff] %v11056_v46  ;;  %v11076_v38 = vadd.f32 %v14081_v30, %v3764_v62  ;;  %v11079_v46 = vsub.f32 %v14082_v29, %v3701_v57  ;;  %v14084_v61 = vld [vmem:[#allocation292_spill] sm:$0xff]  ;;  %v3705_v62 = vmul.f32 %v3641_v4, %v10406_v9  ;;  %v3769_v52 = vmul.f32 %v3641_v4, %v10403_v12  ;;  %v14086_v57 = vld [vmem:[#allocation83_spill] sm:$0xff]  ;;  %v14087_v29 = vld [vmem:[#allocation169_spill] sm:$0xff]  ;;  %v11107_v12 = vpop.permute.xlu1 %3985 }
 0x555   : > { %v3646_v3 = vsel %vm3276_vm6, %v14084_v61, 0.0  ;;  %v14085_v58 = vld [vmem:[#allocation96_spill] sm:$0xff]  ;;  %v11093_v30 = vadd.f32 %v14086_v57, %v3765_v18  ;;  %v11096_v50 = vsub.f32 %v14087_v29, %v3702_v16  ;;  %v3642_v15 = vsel %vm3276_vm6, %v14088_v7, 0.0  ;;  %14091 = vst [vmem:[#allocation251_spill] sm:$0xff] %v11107_v12  ;;  %v14092_v18 = vld [vmem:[#allocation282_spill] sm:$0xff]  ;;  %v14093_v57 = vld [vmem:[#allocation65_spill] sm:$0xff]  ;;  %v11117_v7 = vpop.permute.xlu0 %3989 }
 0x556   : > { %4639 = vbcast.lane.b32.xlu1 %v14085_v58, 256  ;;  %4643 = vbcast.lane.b32.xlu0 %v14085_v58, 264  ;;  %v3709_v55 = vmul.f32 %v3645_v13, %v13970_v34  ;;  %v3773_v22 = vmul.f32 %v3645_v13, %v13968_v53  ;;  %v14089_v37 = vld [vmem:[#allocation324_spill] sm:$0xff]  ;;  %v3643_v16 = vsel %vm3276_vm6, %v14092_v18, 0.0  ;;  %v3710_v4 = vmul.f32 %v3646_v3, %v10460_v51  ;;  %v14096_v34 = vld [vmem:[#allocation313_spill] sm:$0xff] }
 0x557   : > { %v11105_v9 = vadd.f32 %v14089_v37, %v3766_v40  ;;  %v3774_v61 = vmul.f32 %v3646_v3, %v10457_v0  ;;  %v11115_v29 = vsub.f32 %v14093_v57, %v3703_v26  ;;  %14095 = vst [vmem:[#allocation158_spill] sm:$0xff] %v11117_v7  ;;  %v3644_v53 = vsel %vm3276_vm6, %v14096_v34, 0.0  ;;  %v14097_v40 = vld [vmem:[#allocation62_spill] sm:$0xff]  ;;  %v14098_v37 = vld [vmem:[#allocation235_spill] sm:$0xff]  ;;  %v14099_v18 = vld [vmem:[#allocation137_spill] sm:$0xff] }
 0x558   : > { %v11123_v13 = vadd.f32 %v14097_v40, %v3767_v63  ;;  %v11126_v12 = vsub.f32 %v14098_v37, %v3704_v6  ;;  %v14101_v51 = vld [vmem:[#allocation97_spill] sm:$0xff]  ;;  %v14102_v0 = vld [vmem:[#allocation38_spill] sm:$0xff]  ;;  %v14103_v3 = vld [vmem:[#allocation287_spill] sm:$0xff]  ;;  %v11138_v34 = vadd.f32 %v14105_v43, %v3769_v52  ;;  %v11153_v52 = vsub.f32 %v10785_v2, %v3710_v4 }
 0x559   : > { %14090 = vst [vmem:[#allocation279_spill] sm:$0xff] %v11105_v9  ;;  %14094 = vst [vmem:[#allocation232_spill] sm:$0xff] %v11115_v29  ;;  %v11129_v9 = vadd.f32 %v14099_v18, %v3768_v39  ;;  %v3706_v26 = vmul.f32 %v3642_v15, %v14102_v0  ;;  %v3770_v57 = vmul.f32 %v3642_v15, %v14103_v3  ;;  %v14104_v7 = vld [vmem:[#allocation303_spill] sm:$0xff]  ;;  %v14106_v63 = vld [vmem:[#allocation298_spill] sm:$0xff]  ;;  %v3994_v0 = vpop.permute.xlu1 %3993 }
 0x55a   : > { %4658 = vbcast.lane.b32.xlu1 %v14101_v51, 256  ;;  %v11135_v29 = vsub.f32 %v14104_v7, %v3705_v62  ;;  %4662 = vbcast.lane.b32.xlu0 %v14101_v51, 264  ;;  %v3707_v6 = vmul.f32 %v3643_v16, %v14106_v63  ;;  %v14107_v40 = vld [vmem:[#allocation210_spill] sm:$0xff]  ;;  %v14108_v39 = vld [vmem:[#allocation44_spill] sm:$0xff]  ;;  %v4031_v62 = vsel %vm3846_vm7, %v3994_v0, 1.0  ;;  %14112 = vst [vmem:[#allocation159_spill] sm:$0xff] %v11153_v52  ;;  %v3998_v63 = vpop.permute.xlu0 %3997 }
 0x55b   : > { %14100 = vst [vmem:[#allocation33_spill] sm:$0xff] %v11129_v9  ;;  %v3771_v37 = vmul.f32 %v3643_v16, %v14107_v40  ;;  %v11144_v18 = vsub.f32 %v14108_v39, %v3709_v55  ;;  %v11147_v9 = vadd.f32 %v10782_v41, %v3773_v22  ;;  %v14111_v15 = vld [vmem:[#allocation80_spill] sm:$0xff]  ;;  %v14113_v7 = vld [vmem:[#allocation243_spill] sm:$0xff]  ;;  %v14115_v16 = vld [vmem:[#allocation109_spill] sm:$0xff]  ;;  %v4032_v40 = vsel %vm3846_vm7, %v3998_v63, 1.0 }
 0x55c   : > { %v3708_v3 = vmul.f32 %v3644_v53, %v14111_v15  ;;  %v11156_v43 = vadd.f32 %v14113_v7, %v3774_v61  ;;  %v4001_v55 = vsel %vm3846_vm7, %v14115_v16, 1.0  ;;  %v14118_v39 = vld [vmem:[#allocation98_spill] sm:$0xff]  ;;  %v14119_v2 = vld [vmem:[#allocation304_spill] sm:$0xff]  ;;  %v11177_v15 = vmul.f32 %v4032_v40, %v11153_v52  ;;  %v14125_v63 = vld [vmem:[#allocation179_spill] sm:$0xff] }
 0x55d   : > { %14109 = vst [vmem:[#allocation207_spill] sm:$0xff] %v11144_v18  ;;  %14110 = vst [vmem:[#allocation252_spill] sm:$0xff] %v11147_v9  ;;  %v11162_v41 = vmul.f32 %v4031_v62, %v11144_v18  ;;  %v11165_v22 = vmul.f32 %v4031_v62, %v11147_v9  ;;  %v11171_v4 = vsub.f32 %v14119_v2, %v3706_v26  ;;  %v14120_v61 = vld [vmem:[#allocation306_spill] sm:$0xff]  ;;  %v14123_v62 = vld [vmem:[#allocation112_spill] sm:$0xff] }
 0x55e   : > { %14114 = vst [vmem:[#allocation86_spill] sm:$0xff] %v11156_v43  ;;  %4677 = vbcast.lane.b32.xlu1 %v14118_v39, 256  ;;  %v11174_v0 = vadd.f32 %v14120_v61, %v3770_v57  ;;  %14121 = vst [vmem:[#allocation186_spill] sm:$0xff] %v11177_v15  ;;  %v11180_v7 = vmul.f32 %v4032_v40, %v11156_v43  ;;  %4681 = vbcast.lane.b32.xlu0 %v14118_v39, 264  ;;  %v14126_v26 = vld [vmem:[#allocation174_spill] sm:$0xff]  ;;  %v14128_v57 = vld [vmem:[#allocation84_spill] sm:$0xff]  ;;  %v4043_v43 = vpop.permute.xlu0 %4042 }
 0x55f   : > { %14116 = vst [vmem:[#allocation296_spill] sm:$0xff] %v11162_v41  ;;  %14117 = vst [vmem:[#allocation320_spill] sm:$0xff] %v11165_v22  ;;  %v11184_v16 = vmul.f32 %v3644_v53, %v14123_v62  ;;  %v4002_v22 = vsel %vm3846_vm7, %v14125_v63, 1.0  ;;  %v11190_v2 = vsub.f32 %v14126_v26, %v3707_v6  ;;  %v11193_v61 = vadd.f32 %v14128_v57, %v3771_v37  ;;  %v4039_v41 = vpop.permute.xlu1 %4038  ;;  %v14130_v15 = vld [vmem:[#allocation318_spill] sm:$0xff]  ;;  %v14131_v40 = vld [vmem:[#allocation301_spill] sm:$0xff] }
 0x560   : > { %14122 = vst [vmem:[#allocation208_spill] sm:$0xff] %v11180_v7  ;;  %v11196_v52 = vmul.f32 %v4001_v55, %v14130_v15  ;;  %v4003_v7 = vsel %vm3846_vm7, %v14131_v40, 1.0  ;;  %v14132_v53 = vld [vmem:[#allocation144_spill] sm:$0xff]  ;;  %v4185_v63 = vsel %vm3846_vm7, %v4039_v41, 0.0  ;;  %v4345_v6 = vmul.f32 %v4001_v55, %v10809_v56 }
 0x561   : > { %14124 = vst [vmem:[#allocation253_spill] sm:$0xff] %v11184_v16  ;;  %14127 = vst [vmem:[#allocation48_spill] sm:$0xff] %v11190_v2  ;;  %v11202_v62 = vsub.f32 %v14132_v53, %v3708_v3  ;;  %v11208_v37 = vmul.f32 %v4185_v63, %v10809_v56  ;;  %v4313_v26 = vmul.f32 %v4185_v63, %v14130_v15  ;;  %v4186_v57 = vsel %vm3846_vm7, %v4043_v43, 0.0  ;;  %v14136_v3 = vld [vmem:[#allocation316_spill] sm:$0xff]  ;;  %v14138_v56 = vld [vmem:[#allocation317_spill] sm:$0xff] }
 0x562   : > { %14129 = vst [vmem:[#allocation49_spill] sm:$0xff] %v11193_v61  ;;  %4647 = vbcast.lane.b32.xlu1 %v14085_v58, 272  ;;  %v11215_v40 = vmul.f32 %v4002_v22, %v10812_v49  ;;  %v4346_v53 = vmul.f32 %v4002_v22, %v14136_v3  ;;  %v11219_v41 = vmul.f32 %v4186_v57, %v14136_v3  ;;  %v14139_v15 = vld [vmem:[#allocation81_spill] sm:$0xff]  ;;  %v14141_v22 = vld [vmem:[#allocation143_spill] sm:$0xff] }
 0x563   : > { %14133 = vst [vmem:[#allocation188_spill] sm:$0xff] %v11202_v62  ;;  %14134 = vst [vmem:[#allocation257_spill] sm:$0xff] %v11208_v37  ;;  %v4314_v55 = vmul.f32 %v4186_v57, %v10812_v49  ;;  %4666 = vbcast.lane.b32.xlu0 %v14101_v51, 272  ;;  %v11224_v18 = vmul.f32 %v4003_v7, %v14138_v56  ;;  %v4004_v43 = vsel %vm3846_vm7, %v14139_v15, 1.0  ;;  %v4047_v63 = vpop.permute.xlu1 %4046  ;;  %v4005_v3 = vsel %vm3846_vm7, %v14141_v22, 1.0  ;;  %v4051_v57 = vpop.permute.xlu0 %4050  ;;  %v14143_v22 = vld [vmem:[#allocation99_spill] sm:$0xff] }
 0x564   : > { %14135 = vst [vmem:[#allocation255_spill] sm:$0xff] %v11215_v40  ;;  %14137 = vst [vmem:[#allocation76_spill] sm:$0xff] %v11219_v41  ;;  %v11231_v62 = vadd.f32 %v4345_v6, %v4313_v26  ;;  %v4187_v49 = vsel %vm3846_vm7, %v4047_v63, 0.0  ;;  %v4347_v15 = vmul.f32 %v4003_v7, %v10835_v10  ;;  %v4188_v26 = vsel %vm3846_vm7, %v4051_v57, 0.0 }
 0x565   : > { %v11240_v2 = vadd.f32 %v4346_v53, %v4314_v55  ;;  %v11244_v16 = vmul.f32 %v4187_v49, %v10835_v10  ;;  %v4315_v6 = vmul.f32 %v4187_v49, %v14138_v56  ;;  %v11251_v63 = vmul.f32 %v4004_v43, %v10838_v11  ;;  %v14145_v10 = vld [vmem:[#allocation244_spill] sm:$0xff]  ;;  %v14146_v56 = vld [vmem:[#allocation293_spill] sm:$0xff] }
 0x566   : > { %14140 = vst [vmem:[#allocation258_spill] sm:$0xff] %v11231_v62  ;;  %4696 = vbcast.lane.b32.xlu1 %v14143_v22, 256  ;;  %v4348_v9 = vmul.f32 %v4004_v43, %v10845_v5  ;;  %v11255_v53 = vmul.f32 %v4188_v26, %v10845_v5  ;;  %v4316_v7 = vmul.f32 %v4188_v26, %v10838_v11  ;;  %v4006_v49 = vsel %vm3846_vm7, %v14146_v56, 1.0  ;;  %v14148_v43 = vld [vmem:[#allocation119_spill] sm:$0xff]  ;;  %v14150_v56 = vld [vmem:[#allocation182_spill] sm:$0xff] }
 0x567   : > { %14142 = vst [vmem:[#allocation191_spill] sm:$0xff] %v11240_v2  ;;  %4700 = vbcast.lane.b32.xlu0 %v14143_v22, 264  ;;  %v11260_v55 = vmul.f32 %v4005_v3, %v14145_v10  ;;  %v4058_v57 = vpop.permute.xlu1 %4057  ;;  %v11267_v2 = vadd.f32 %v4347_v15, %v4315_v6  ;;  %v4007_v5 = vsel %vm3846_vm7, %v14148_v43, 1.0  ;;  %v4062_v26 = vpop.permute.xlu0 %4061  ;;  %v4349_v40 = vmul.f32 %v4005_v3, %v14150_v56 }
 0x568   : > { %14144 = vst [vmem:[#allocation259_spill] sm:$0xff] %v11255_v53  ;;  %v4189_v11 = vsel %vm3846_vm7, %v4058_v57, 0.0  ;;  %v11276_v41 = vadd.f32 %v4348_v9, %v4316_v7  ;;  %v4190_v6 = vsel %vm3846_vm7, %v4062_v26, 0.0  ;;  %v11287_v57 = vmul.f32 %v4006_v49, %v10867_v27  ;;  %v14154_v7 = vld [vmem:[#allocation100_spill] sm:$0xff] }
 0x569   : > { %14147 = vst [vmem:[#allocation50_spill] sm:$0xff] %v11267_v2  ;;  %v11280_v37 = vmul.f32 %v4189_v11, %v14150_v56  ;;  %v4317_v15 = vmul.f32 %v4189_v11, %v14145_v10  ;;  %v4350_v43 = vmul.f32 %v4006_v49, %v10870_v35  ;;  %v11291_v9 = vmul.f32 %v4190_v6, %v10870_v35  ;;  %v14155_v10 = vld [vmem:[#allocation160_spill] sm:$0xff]  ;;  %v14157_v49 = vld [vmem:[#allocation129_spill] sm:$0xff] }
 0x56a   : > { %14149 = vst [vmem:[#allocation260_spill] sm:$0xff] %v11276_v41  ;;  %4685 = vbcast.lane.b32.xlu1 %v14118_v39, 272  ;;  %14152 = vst [vmem:[#allocation192_spill] sm:$0xff] %v11287_v57  ;;  %v4318_v3 = vmul.f32 %v4190_v6, %v10867_v27  ;;  %v11296_v56 = vmul.f32 %v4007_v5, %v10879_v45  ;;  %v4008_v11 = vsel %vm3846_vm7, %v14155_v10, 1.0  ;;  %v4009_v35 = vsel %vm3846_vm7, %v14157_v49, 1.0  ;;  %v14248_v47 = vld [vmem:[#allocation257_spill] sm:$0xff] }
 0x56b   : > { %14151 = vst [vmem:[#allocation321_spill] sm:$0xff] %v11280_v37  ;;  %14153 = vst [vmem:[#allocation196_spill] sm:$0xff] %v11291_v9  ;;  %4715 = vbcast.lane.b32.xlu0 %v14154_v7, 256  ;;  %v4066_v26 = vpop.permute.xlu1 %4065  ;;  %v11303_v61 = vadd.f32 %v4349_v40, %v4317_v15  ;;  %v4070_v6 = vpop.permute.xlu0 %4069  ;;  %v4351_v10 = vmul.f32 %v4007_v5, %v10882_v24  ;;  %v4352_v49 = vmul.f32 %v4008_v11, %v10897_v36 }
 0x56c   : > { %v4191_v27 = vsel %vm3846_vm7, %v4066_v26, 0.0  ;;  %v11312_v2 = vadd.f32 %v4350_v43, %v4318_v3  ;;  %v4192_v15 = vsel %vm3846_vm7, %v4070_v6, 0.0  ;;  %v11323_v26 = vmul.f32 %v4008_v11, %v10894_v21  ;;  %v14160_v3 = vld [vmem:[#allocation101_spill] sm:$0xff] }
 0x56d   : > { %14156 = vst [vmem:[#allocation199_spill] sm:$0xff] %v11303_v61  ;;  %v11316_v53 = vmul.f32 %v4191_v27, %v10882_v24  ;;  %v4319_v40 = vmul.f32 %v4191_v27, %v10879_v45  ;;  %v11327_v43 = vmul.f32 %v4192_v15, %v10897_v36  ;;  %v4320_v5 = vmul.f32 %v4192_v15, %v10894_v21  ;;  %v14161_v24 = vld [vmem:[#allocation30_spill] sm:$0xff]  ;;  %v14162_v45 = vld [vmem:[#allocation167_spill] sm:$0xff]  ;;  %v14164_v11 = vld [vmem:[#allocation305_spill] sm:$0xff] }
 0x56e   : > { %14158 = vst [vmem:[#allocation261_spill] sm:$0xff] %v11312_v2  ;;  %4719 = vbcast.lane.b32.xlu1 %v14154_v7, 264  ;;  %v11332_v41 = vmul.f32 %v4009_v35, %v14161_v24  ;;  %v4010_v27 = vsel %vm3846_vm7, %v14162_v45, 1.0  ;;  %v4011_v36 = vsel %vm3846_vm7, %v14164_v11, 1.0  ;;  %v14166_v45 = vld [vmem:[#allocation117_spill] sm:$0xff]  ;;  %v14167_v11 = vld [vmem:[#allocation294_spill] sm:$0xff] }
 0x56f   : > { %14159 = vst [vmem:[#allocation262_spill] sm:$0xff] %v11327_v43  ;;  %4581 = vbcast.lane.b32.xlu0 %v14160_v3, 256  ;;  %v4077_v6 = vpop.permute.xlu1 %4076  ;;  %v11339_v2 = vadd.f32 %v4351_v10, %v4319_v40  ;;  %v4081_v15 = vpop.permute.xlu0 %4080  ;;  %v11348_v9 = vadd.f32 %v4352_v49, %v4320_v5  ;;  %v4353_v57 = vmul.f32 %v4009_v35, %v14166_v45 }
 0x570   : > { %v4193_v21 = vsel %vm3846_vm7, %v4077_v6, 0.0  ;;  %v4194_v40 = vsel %vm3846_vm7, %v4081_v15, 0.0  ;;  %v11359_v6 = vmul.f32 %v4010_v27, %v14167_v11  ;;  %v4354_v62 = vmul.f32 %v4010_v27, %v10925_v28  ;;  %v14170_v27 = vld [vmem:[#allocation147_spill] sm:$0xff] }
 0x571   : > { %14163 = vst [vmem:[#allocation171_spill] sm:$0xff] %v11339_v2  ;;  %14165 = vst [vmem:[#allocation56_spill] sm:$0xff] %v11348_v9  ;;  %v11352_v37 = vmul.f32 %v4193_v21, %v14166_v45  ;;  %v4321_v10 = vmul.f32 %v4193_v21, %v14161_v24  ;;  %v11363_v49 = vmul.f32 %v4194_v40, %v10925_v28  ;;  %v14168_v24 = vld [vmem:[#allocation177_spill] sm:$0xff]  ;;  %v4013_v28 = vsel %vm3846_vm7, %v14170_v27, 1.0  ;;  %v14173_v27 = vld [vmem:[#allocation67_spill] sm:$0xff] }
 0x572   : > { %4585 = vbcast.lane.b32.xlu1 %v14160_v3, 264  ;;  %v4322_v35 = vmul.f32 %v4194_v40, %v14167_v11  ;;  %v11368_v5 = vmul.f32 %v4011_v36, %v10928_v54  ;;  %v4012_v21 = vsel %vm3846_vm7, %v14168_v24, 1.0  ;;  %v14172_v24 = vld [vmem:[#allocation245_spill] sm:$0xff] }
 0x573   : > { %4651 = vbcast.lane.b32.xlu0 %v14085_v58, 280  ;;  %v4085_v15 = vpop.permute.xlu1 %4084  ;;  %v11375_v61 = vadd.f32 %v4353_v57, %v4321_v10  ;;  %v4089_v40 = vpop.permute.xlu0 %4088  ;;  %v4355_v2 = vmul.f32 %v4011_v36, %v14172_v24  ;;  %v4356_v45 = vmul.f32 %v4012_v21, %v10949_v17 }
 0x574   : > { %v4195_v58 = vsel %vm3846_vm7, %v4085_v15, 0.0  ;;  %v11384_v9 = vadd.f32 %v4354_v62, %v4322_v35  ;;  %v4196_v10 = vsel %vm3846_vm7, %v4089_v40, 0.0  ;;  %v11395_v15 = vmul.f32 %v4012_v21, %v14173_v27  ;;  %v14177_v21 = vld [vmem:[#allocation115_spill] sm:$0xff] }
 0x575   : > { %14169 = vst [vmem:[#allocation87_spill] sm:$0xff] %v11375_v61  ;;  %v11388_v43 = vmul.f32 %v4195_v58, %v14172_v24  ;;  %v4323_v57 = vmul.f32 %v4195_v58, %v10928_v54  ;;  %v11399_v62 = vmul.f32 %v4196_v10, %v10949_v17  ;;  %v4324_v36 = vmul.f32 %v4196_v10, %v14173_v27  ;;  %v14175_v54 = vld [vmem:[#allocation227_spill] sm:$0xff] }
 0x576   : > { %14171 = vst [vmem:[#allocation22_spill] sm:$0xff] %v11384_v9  ;;  %4670 = vbcast.lane.b32.xlu1 %v14101_v51, 280  ;;  %v11404_v35 = vmul.f32 %v4013_v28, %v10952_v25  ;;  %v4014_v58 = vsel %vm3846_vm7, %v14175_v54, 1.0  ;;  %v4015_v17 = vsel %vm3846_vm7, %v14177_v21, 1.0  ;;  %v4357_v54 = vmul.f32 %v4013_v28, %v10960_v44  ;;  %v14180_v21 = vld [vmem:[#allocation102_spill] sm:$0xff] }
 0x577   : > { %14174 = vst [vmem:[#allocation184_spill] sm:$0xff] %v11399_v62  ;;  %4704 = vbcast.lane.b32.xlu0 %v14143_v22, 272  ;;  %v4096_v51 = vpop.permute.xlu1 %4095  ;;  %v11411_v24 = vadd.f32 %v4355_v2, %v4323_v57  ;;  %v4100_v27 = vpop.permute.xlu0 %4099  ;;  %v11420_v9 = vadd.f32 %v4356_v45, %v4324_v36  ;;  %v4358_v40 = vmul.f32 %v4014_v58, %v10966_v32 }
 0x578   : > { %v4197_v10 = vsel %vm3846_vm7, %v4096_v51, 0.0  ;;  %v4198_v57 = vsel %vm3846_vm7, %v4100_v27, 0.0  ;;  %v11431_v51 = vmul.f32 %v4014_v58, %v10963_v59  ;;  %v14185_v58 = vld [vmem:[#allocation183_spill] sm:$0xff] }
 0x579   : > { %14176 = vst [vmem:[#allocation73_spill] sm:$0xff] %v11411_v24  ;;  %14178 = vst [vmem:[#allocation51_spill] sm:$0xff] %v11420_v9  ;;  %v11424_v61 = vmul.f32 %v4197_v10, %v10960_v44  ;;  %v4325_v2 = vmul.f32 %v4197_v10, %v10952_v25  ;;  %v11435_v45 = vmul.f32 %v4198_v57, %v10966_v32  ;;  %v14183_v25 = vld [vmem:[#allocation116_spill] sm:$0xff]  ;;  %v4017_v32 = vsel %vm3846_vm7, %v14185_v58, 1.0  ;;  %v14187_v58 = vld [vmem:[#allocation103_spill] sm:$0xff] }
 0x57a   : > { %4734 = vbcast.lane.b32.xlu1 %v14180_v21, 256  ;;  %14181 = vst [vmem:[#allocation323_spill] sm:$0xff] %v11431_v51  ;;  %v4326_v28 = vmul.f32 %v4198_v57, %v10963_v59  ;;  %v11440_v44 = vmul.f32 %v4015_v17, %v10981_v1  ;;  %v4016_v36 = vsel %vm3846_vm7, %v14183_v25, 1.0  ;;  %v4359_v25 = vmul.f32 %v4015_v17, %v10984_v31 }
 0x57b   : > { %14179 = vst [vmem:[#allocation23_spill] sm:$0xff] %v11424_v61  ;;  %14182 = vst [vmem:[#allocation302_spill] sm:$0xff] %v11435_v45  ;;  %4738 = vbcast.lane.b32.xlu0 %v14180_v21, 264  ;;  %v4104_v10 = vpop.permute.xlu1 %4103  ;;  %v11447_v11 = vadd.f32 %v4357_v54, %v4325_v2  ;;  %v4108_v57 = vpop.permute.xlu0 %4107  ;;  %v4360_v27 = vmul.f32 %v4016_v36, %v11007_v19 }
 0x57c   : > { %v4199_v59 = vsel %vm3846_vm7, %v4104_v10, 0.0  ;;  %v11456_v24 = vadd.f32 %v4358_v40, %v4326_v28  ;;  %v4200_v2 = vsel %vm3846_vm7, %v4108_v57, 0.0  ;;  %v11467_v10 = vmul.f32 %v4016_v36, %v10994_v14  ;;  %v14191_v36 = vld [vmem:[#allocation172_spill] sm:$0xff] }
 0x57d   : > { %14184 = vst [vmem:[#allocation55_spill] sm:$0xff] %v11447_v11  ;;  %v11460_v62 = vmul.f32 %v4199_v59, %v10984_v31  ;;  %v4327_v54 = vmul.f32 %v4199_v59, %v10981_v1  ;;  %v11471_v40 = vmul.f32 %v4200_v2, %v11007_v19  ;;  %v4328_v17 = vmul.f32 %v4200_v2, %v10994_v14  ;;  %v14188_v31 = vld [vmem:[#allocation156_spill] sm:$0xff]  ;;  %v14189_v1 = vld [vmem:[#allocation197_spill] sm:$0xff] }
 0x57e   : > { %14186 = vst [vmem:[#allocation175_spill] sm:$0xff] %v11456_v24  ;;  %4600 = vbcast.lane.b32.xlu1 %v14187_v58, 256  ;;  %v11476_v28 = vmul.f32 %v4017_v32, %v14188_v31  ;;  %v4018_v59 = vsel %vm3846_vm7, %v14189_v1, 1.0  ;;  %v4019_v19 = vsel %vm3846_vm7, %v14191_v36, 1.0  ;;  %v14193_v1 = vld [vmem:[#allocation322_spill] sm:$0xff] }
 0x57f   : > { %4604 = vbcast.lane.b32.xlu0 %v14187_v58, 264  ;;  %v4115_v57 = vpop.permute.xlu1 %4114  ;;  %v11483_v24 = vadd.f32 %v4359_v25, %v4327_v54  ;;  %v4119_v2 = vpop.permute.xlu0 %4118  ;;  %v11492_v45 = vadd.f32 %v4360_v27, %v4328_v17  ;;  %v4361_v51 = vmul.f32 %v4017_v32, %v14193_v1  ;;  %v14194_v36 = vld [vmem:[#allocation46_spill] sm:$0xff]  ;;  %v4362_v9 = vmul.f32 %v4018_v59, %v11029_v42 }
 0x580   : > { %v4201_v14 = vsel %vm3846_vm7, %v4115_v57, 0.0  ;;  %v4202_v54 = vsel %vm3846_vm7, %v4119_v2, 0.0  ;;  %v11503_v57 = vmul.f32 %v4018_v59, %v14194_v36  ;;  %v11512_v17 = vmul.f32 %v4019_v19, %v11032_v23  ;;  %v14199_v59 = vld [vmem:[#allocation31_spill] sm:$0xff] }
 0x581   : > { %14190 = vst [vmem:[#allocation215_spill] sm:$0xff] %v11483_v24  ;;  %14192 = vst [vmem:[#allocation77_spill] sm:$0xff] %v11492_v45  ;;  %v11496_v61 = vmul.f32 %v4201_v14, %v14193_v1  ;;  %v4329_v25 = vmul.f32 %v4201_v14, %v14188_v31  ;;  %v11507_v27 = vmul.f32 %v4202_v54, %v11029_v42  ;;  %v14197_v31 = vld [vmem:[#allocation85_spill] sm:$0xff]  ;;  %v4021_v42 = vsel %vm3846_vm7, %v14199_v59, 1.0  ;;  %v14201_v59 = vld [vmem:[#allocation104_spill] sm:$0xff] }
 0x582   : > { %4689 = vbcast.lane.b32.xlu1 %v14118_v39, 280  ;;  %14195 = vst [vmem:[#allocation189_spill] sm:$0xff] %v11503_v57  ;;  %v4330_v32 = vmul.f32 %v4202_v54, %v14194_v36  ;;  %v4020_v14 = vsel %vm3846_vm7, %v14197_v31, 1.0  ;;  %v4363_v31 = vmul.f32 %v4019_v19, %v11040_v20 }
 0x583   : > { %14196 = vst [vmem:[#allocation263_spill] sm:$0xff] %v11507_v27  ;;  %4723 = vbcast.lane.b32.xlu0 %v14154_v7, 272  ;;  %v4123_v39 = vpop.permute.xlu1 %4122  ;;  %v11519_v1 = vadd.f32 %v4361_v51, %v4329_v25  ;;  %v4127_v36 = vpop.permute.xlu0 %4126  ;;  %v4364_v2 = vmul.f32 %v4020_v14, %v11046_v60 }
 0x584   : > { %v4203_v54 = vsel %vm3846_vm7, %v4123_v39, 0.0  ;;  %v11528_v45 = vadd.f32 %v4362_v9, %v4330_v32  ;;  %v4204_v25 = vsel %vm3846_vm7, %v4127_v36, 0.0  ;;  %v11539_v39 = vmul.f32 %v4020_v14, %v11043_v48  ;;  %v14206_v14 = vld [vmem:[#allocation203_spill] sm:$0xff] }
 0x585   : > { %14198 = vst [vmem:[#allocation142_spill] sm:$0xff] %v11519_v1  ;;  %v11532_v24 = vmul.f32 %v4203_v54, %v11040_v20  ;;  %v4331_v51 = vmul.f32 %v4203_v54, %v11032_v23  ;;  %v11543_v9 = vmul.f32 %v4204_v25, %v11046_v60  ;;  %v4332_v19 = vmul.f32 %v4204_v25, %v11043_v48  ;;  %v14203_v20 = vld [vmem:[#allocation75_spill] sm:$0xff]  ;;  %v14204_v23 = vld [vmem:[#allocation246_spill] sm:$0xff] }
 0x586   : > { %14200 = vst [vmem:[#allocation204_spill] sm:$0xff] %v11528_v45  ;;  %4753 = vbcast.lane.b32.xlu1 %v14201_v59, 256  ;;  %v11548_v32 = vmul.f32 %v4021_v42, %v14203_v20  ;;  %v4022_v54 = vsel %vm3846_vm7, %v14204_v23, 1.0  ;;  %v4023_v60 = vsel %vm3846_vm7, %v14206_v14, 1.0  ;;  %v4365_v23 = vmul.f32 %v4021_v42, %v11064_v33 }
 0x587   : > { %14202 = vst [vmem:[#allocation193_spill] sm:$0xff] %v11543_v9  ;;  %4757 = vbcast.lane.b32.xlu0 %v14201_v59, 264  ;;  %v4134_v36 = vpop.permute.xlu1 %4133  ;;  %v11555_v45 = vadd.f32 %v4363_v31, %v4331_v51  ;;  %v4138_v25 = vpop.permute.xlu0 %4137  ;;  %v11564_v27 = vadd.f32 %v4364_v2, %v4332_v19  ;;  %v4366_v14 = vmul.f32 %v4022_v54, %v11076_v38  ;;  %v14210_v19 = vld [vmem:[#allocation105_spill] sm:$0xff] }
 0x588   : > { %v4205_v48 = vsel %vm3846_vm7, %v4134_v36, 0.0  ;;  %v4206_v51 = vsel %vm3846_vm7, %v4138_v25, 0.0  ;;  %v11575_v36 = vmul.f32 %v4022_v54, %v11067_v8  ;;  %v14213_v54 = vld [vmem:[#allocation249_spill] sm:$0xff] }
 0x589   : > { %14205 = vst [vmem:[#allocation176_spill] sm:$0xff] %v11555_v45  ;;  %14207 = vst [vmem:[#allocation206_spill] sm:$0xff] %v11564_v27  ;;  %v11568_v57 = vmul.f32 %v4205_v48, %v11064_v33  ;;  %v4333_v31 = vmul.f32 %v4205_v48, %v14203_v20  ;;  %v11579_v2 = vmul.f32 %v4206_v51, %v11076_v38  ;;  %v14212_v20 = vld [vmem:[#allocation247_spill] sm:$0xff]  ;;  %v4025_v38 = vsel %vm3846_vm7, %v14213_v54, 1.0 }
 0x58a   : > { %4589 = vbcast.lane.b32.xlu1 %v14160_v3, 272  ;;  %14208 = vst [vmem:[#allocation308_spill] sm:$0xff] %v11575_v36  ;;  %v4334_v42 = vmul.f32 %v4206_v51, %v11067_v8  ;;  %v11584_v33 = vmul.f32 %v4023_v60, %v11079_v46  ;;  %v4024_v48 = vsel %vm3846_vm7, %v14212_v20, 1.0  ;;  %v4367_v20 = vmul.f32 %v4023_v60, %v11093_v30  ;;  %v14217_v54 = vld [vmem:[#allocation279_spill] sm:$0xff] }
 0x58b   : > { %14209 = vst [vmem:[#allocation264_spill] sm:$0xff] %v11579_v2  ;;  %4619 = vbcast.lane.b32.xlu0 %v14210_v19, 256  ;;  %v4142_v25 = vpop.permute.xlu1 %4141  ;;  %v11591_v11 = vadd.f32 %v4365_v23, %v4333_v31  ;;  %v4146_v51 = vpop.permute.xlu0 %4145  ;;  %v4368_v1 = vmul.f32 %v4024_v48, %v14217_v54 }
 0x58c   : > { %14211 = vst [vmem:[#allocation209_spill] sm:$0xff] %v11584_v33  ;;  %v4207_v8 = vsel %vm3846_vm7, %v4142_v25, 0.0  ;;  %v11600_v45 = vadd.f32 %v4366_v14, %v4334_v42  ;;  %v4208_v31 = vsel %vm3846_vm7, %v4146_v51, 0.0  ;;  %v11611_v25 = vmul.f32 %v4024_v48, %v11096_v50  ;;  %v14222_v48 = vld [vmem:[#allocation231_spill] sm:$0xff] }
 0x58d   : > { %v11604_v9 = vmul.f32 %v4207_v8, %v11093_v30  ;;  %v4335_v23 = vmul.f32 %v4207_v8, %v11079_v46  ;;  %v11615_v14 = vmul.f32 %v4208_v31, %v14217_v54  ;;  %v4336_v60 = vmul.f32 %v4208_v31, %v11096_v50  ;;  %v14219_v30 = vld [vmem:[#allocation232_spill] sm:$0xff]  ;;  %v14220_v46 = vld [vmem:[#allocation250_spill] sm:$0xff] }
 0x58e   : > { %14214 = vst [vmem:[#allocation68_spill] sm:$0xff] %v11600_v45  ;;  %4623 = vbcast.lane.b32.xlu1 %v14210_v19, 264  ;;  %14216 = vst [vmem:[#allocation88_spill] sm:$0xff] %v11611_v25  ;;  %v11620_v42 = vmul.f32 %v4025_v38, %v14219_v30  ;;  %v4026_v8 = vsel %vm3846_vm7, %v14220_v46, 1.0  ;;  %v4027_v54 = vsel %vm3846_vm7, %v14222_v48, 1.0  ;;  %v4369_v46 = vmul.f32 %v4025_v38, %v11123_v13  ;;  %v14224_v48 = vld [vmem:[#allocation33_spill] sm:$0xff] }
 0x58f   : > { %14215 = vst [vmem:[#allocation63_spill] sm:$0xff] %v11604_v9  ;;  %14218 = vst [vmem:[#allocation211_spill] sm:$0xff] %v11615_v14  ;;  %4708 = vbcast.lane.b32.xlu0 %v14143_v22, 280  ;;  %v4153_v51 = vpop.permute.xlu1 %4152  ;;  %v11627_v45 = vadd.f32 %v4367_v20, %v4335_v23  ;;  %v4157_v22 = vpop.permute.xlu0 %4156  ;;  %v11636_v2 = vadd.f32 %v4368_v1, %v4336_v60  ;;  %v4370_v27 = vmul.f32 %v4026_v8, %v14224_v48  ;;  %v14225_v60 = vld [vmem:[#allocation106_spill] sm:$0xff]  ;;  %v14229_v25 = vld [vmem:[#allocation251_spill] sm:$0xff] }
 0x590   : > { %v4209_v50 = vsel %vm3846_vm7, %v4153_v51, 0.0  ;;  %v4210_v23 = vsel %vm3846_vm7, %v4157_v22, 0.0  ;;  %v11647_v51 = vmul.f32 %v4026_v8, %v11126_v12  ;;  %v4371_v8 = vmul.f32 %v4027_v54, %v11138_v34  ;;  %v14240_v31 = vld [vmem:[#allocation188_spill] sm:$0xff] }
 0x591   : > { %14221 = vst [vmem:[#allocation217_spill] sm:$0xff] %v11627_v45  ;;  %14223 = vst [vmem:[#allocation237_spill] sm:$0xff] %v11636_v2  ;;  %v11640_v36 = vmul.f32 %v4209_v50, %v11123_v13  ;;  %v4337_v20 = vmul.f32 %v4209_v50, %v14219_v30  ;;  %v11651_v1 = vmul.f32 %v4210_v23, %v14224_v48  ;;  %v14227_v30 = vld [vmem:[#allocation185_spill] sm:$0xff] }
 0x592   : > { %4742 = vbcast.lane.b32.xlu1 %v14180_v21, 272  ;;  %v4338_v38 = vmul.f32 %v4210_v23, %v11126_v12  ;;  %v11656_v13 = vmul.f32 %v4027_v54, %v11135_v29  ;;  %v4028_v50 = vsel %vm3846_vm7, %v14227_v30, 1.0  ;;  %v4029_v30 = vsel %vm3846_vm7, %v14229_v25, 1.0 }
 0x593   : > { %4772 = vbcast.lane.b32.xlu0 %v14225_v60, 256  ;;  %v4161_v22 = vpop.permute.xlu1 %4160  ;;  %v11663_v2 = vadd.f32 %v4369_v46, %v4337_v20  ;;  %v4165_v23 = vpop.permute.xlu0 %4164  ;;  %v11683_v20 = vmul.f32 %v4028_v50, %v11171_v4 }
 0x594   : > { %14226 = vst [vmem:[#allocation212_spill] sm:$0xff] %v11656_v13  ;;  %v4211_v12 = vsel %vm3846_vm7, %v4161_v22, 0.0  ;;  %v11670_v14 = vadd.f32 %v4370_v27, %v4338_v38  ;;  %v4212_v54 = vsel %vm3846_vm7, %v4165_v23, 0.0  ;;  %v4372_v27 = vmul.f32 %v4028_v50, %v11174_v0  ;;  %v14234_v22 = vld [vmem:[#allocation311_spill] sm:$0xff]  ;;  %v14237_v50 = vld [vmem:[#allocation48_spill] sm:$0xff] }
 0x595   : > { %v11676_v45 = vmul.f32 %v4211_v12, %v11138_v34  ;;  %v4339_v46 = vmul.f32 %v4211_v12, %v11135_v29  ;;  %14231 = vst [vmem:[#allocation214_spill] sm:$0xff] %v11683_v20  ;;  %v11687_v38 = vmul.f32 %v4212_v54, %v11174_v0  ;;  %v4340_v25 = vmul.f32 %v4212_v54, %v11171_v4  ;;  %v14233_v34 = vld [vmem:[#allocation253_spill] sm:$0xff]  ;;  %v14235_v12 = vld [vmem:[#allocation158_spill] sm:$0xff] }
 0x596   : > { %14228 = vst [vmem:[#allocation27_spill] sm:$0xff] %v11670_v14  ;;  %4776 = vbcast.lane.b32.xlu1 %v14225_v60, 264  ;;  %v3836_v29 = vadd.f32 %v14234_v22, %v14233_v34  ;;  %v4030_v23 = vsel %vm3846_vm7, %v14235_v12, 1.0  ;;  %v11701_v0 = vmul.f32 %v4029_v30, %v14237_v50  ;;  %v14239_v22 = vld [vmem:[#allocation49_spill] sm:$0xff] }
 0x597   : > { %14230 = vst [vmem:[#allocation43_spill] sm:$0xff] %v11676_v45  ;;  %14232 = vst [vmem:[#allocation66_spill] sm:$0xff] %v11687_v38  ;;  %4608 = vbcast.lane.b32.xlu0 %v14187_v58, 272  ;;  %v4172_v48 = vpop.permute.xlu1 %4171  ;;  %v11698_v9 = vadd.f32 %v4371_v8, %v4339_v46  ;;  %v4176_v54 = vpop.permute.xlu0 %4175  ;;  %v11705_v33 = vadd.f32 %v4372_v27, %v4340_v25  ;;  %v4373_v12 = vmul.f32 %v4029_v30, %v14239_v22  ;;  %v14253_v45 = vld [vmem:[#allocation76_spill] sm:$0xff] }
 0x598   : > { %v4213_v4 = vsel %vm3846_vm7, %v4172_v48, 0.0  ;;  %v4214_v46 = vsel %vm3846_vm7, %v4176_v54, 0.0  ;;  %v11718_v48 = vmul.f32 %v4030_v23, %v14240_v31  ;;  %v4374_v27 = vmul.f32 %v4030_v23, %v3836_v29 }
 0x599   : > { %14236 = vst [vmem:[#allocation190_spill] sm:$0xff] %v11698_v9  ;;  %14238 = vst [vmem:[#allocation240_spill] sm:$0xff] %v11705_v33  ;;  %v11711_v14 = vmul.f32 %v4213_v4, %v14239_v22  ;;  %v4341_v8 = vmul.f32 %v4213_v4, %v14237_v50  ;;  %v11720_v25 = vmul.f32 %v4214_v46, %v3836_v29  ;;  %v14242_v29 = vld [vmem:[#allocation252_spill] sm:$0xff] }
 0x59a   : > { %4727 = vbcast.lane.b32.xlu1 %v14154_v7, 280  ;;  %v4342_v34 = vmul.f32 %v4214_v46, %v14240_v31  ;;  %v14243_v31 = vld [vmem:[#allocation207_spill] sm:$0xff] }
 0x59b   : > { %4761 = vbcast.lane.b32.xlu0 %v14201_v59, 272  ;;  %v4180_v30 = vpop.permute.xlu1 %4179  ;;  %v11726_v50 = vadd.f32 %v4373_v12, %v4341_v8  ;;  %v4184_v7 = vpop.permute.xlu0 %4183  ;;  %v14244_v12 = vld [vmem:[#allocation86_spill] sm:$0xff] }
 0x59c   : > { %v4215_v4 = vsel %vm3846_vm7, %v4180_v30, 0.0  ;;  %v11732_v23 = vadd.f32 %v4374_v27, %v4342_v34  ;;  %v4216_v38 = vsel %vm3846_vm7, %v4184_v7, 0.0  ;;  %v14245_v30 = vld [vmem:[#allocation159_spill] sm:$0xff]  ;;  %v14246_v34 = vld [vmem:[#allocation296_spill] sm:$0xff]  ;;  %v14249_v7 = vsub.f32 %v11196_v52, %v14248_v47 }
 0x59d   : > { %v11735_v33 = vmul.f32 %v4215_v4, %v14242_v29  ;;  %v4343_v46 = vmul.f32 %v4215_v4, %v14243_v31  ;;  %v11742_v8 = vmul.f32 %v4216_v38, %v14244_v12  ;;  %v4344_v22 = vmul.f32 %v4216_v38, %v14245_v30  ;;  %v14247_v29 = vld [vmem:[#allocation320_spill] sm:$0xff]  ;;  %v14251_v12 = vld [vmem:[#allocation186_spill] sm:$0xff]  ;;  %v14252_v30 = vld [vmem:[#allocation255_spill] sm:$0xff] }
 0x59e   : > { %14241 = vst [vmem:[#allocation265_spill] sm:$0xff] %v11732_v23  ;;  %4593 = vbcast.lane.b32.xlu1 %v14160_v3, 280  ;;  %v14250_v3 = vld [vmem:[#allocation208_spill] sm:$0xff]  ;;  %v14254_v13 = vsub.f32 %v14252_v30, %v14253_v45  ;;  %v14255_v52 = vsub.f32 %v11224_v18, %v11244_v16 }
 0x59f   : > { %4627 = vbcast.lane.b32.xlu0 %v14210_v19, 272  ;;  %v4487_v54 = vpop.permute.xlu1 %4486  ;;  %v4311_v27 = vsub.f32 %v14246_v34, %v11735_v33  ;;  %v11749_v20 = vadd.f32 %v14247_v29, %v4343_v46  ;;  %v4491_v4 = vpop.permute.xlu0 %4490  ;;  %v11755_v9 = vadd.f32 %v14250_v3, %v4344_v22  ;;  %v14256_v22 = vld [vmem:[#allocation259_spill] sm:$0xff]  ;;  %v14260_v30 = vld [vmem:[#allocation192_spill] sm:$0xff] }
 0x5a0   : > { %v4818_v31 = vmul.f32 %v4487_v54, %v14249_v7  ;;  %v4819_v23 = vmul.f32 %v4491_v4, %v14254_v13  ;;  %v14257_v47 = vsub.f32 %v11251_v63, %v14256_v22  ;;  %v14258_v13 = vld [vmem:[#allocation321_spill] sm:$0xff]  ;;  %v14261_v38 = vld [vmem:[#allocation196_spill] sm:$0xff] }
 0x5a1   : > { %v14259_v4 = vsub.f32 %v11260_v55, %v14258_v13  ;;  %v14262_v18 = vsub.f32 %v14260_v30, %v14261_v38  ;;  %v14266_v38 = vsub.f32 %v11332_v41, %v11352_v37  ;;  %v14271_v37 = vld [vmem:[#allocation23_spill] sm:$0xff] }
 0x5a2   : > { %4746 = vbcast.lane.b32.xlu1 %v14180_v21, 280  ;;  %v14272_v41 = vsub.f32 %v11404_v35, %v14271_v37  ;;  %v14278_v35 = vsub.f32 %v11476_v28, %v11496_v61  ;;  %v14285_v61 = vld [vmem:[#allocation258_spill] sm:$0xff] }
 0x5a3   : > { %4780 = vbcast.lane.b32.xlu0 %v14225_v60, 272  ;;  %v4495_v46 = vpop.permute.xlu1 %4494  ;;  %v4499_v29 = vpop.permute.xlu0 %4498 }
 0x5a4   : > { %v11767_v54 = vmul.f32 %v4495_v46, %v14255_v52  ;;  %v11772_v7 = vmul.f32 %v4499_v29, %v14257_v47  ;;  %v14264_v29 = vld [vmem:[#allocation262_spill] sm:$0xff] }
 0x5a5   : > { %v14265_v52 = vsub.f32 %v11323_v26, %v14264_v29  ;;  %v14269_v26 = vld [vmem:[#allocation184_spill] sm:$0xff] }
 0x5a6   : > { %4612 = vbcast.lane.b32.xlu1 %v14187_v58, 280  ;;  %v14263_v58 = vsub.f32 %v11296_v56, %v11316_v53  ;;  %v14268_v53 = vsub.f32 %v11368_v5, %v11388_v43  ;;  %v14276_v43 = vsub.f32 %v11440_v44, %v11460_v62  ;;  %v14282_v62 = vsub.f32 %v11512_v17, %v11532_v24  ;;  %v14288_v17 = vld [vmem:[#allocation261_spill] sm:$0xff] }
 0x5a7   : > { %4765 = vbcast.lane.b32.xlu0 %v14201_v59, 280  ;;  %v4506_v45 = vpop.permute.xlu1 %4505  ;;  %v4510_v21 = vpop.permute.xlu0 %4509 }
 0x5a8   : > { %v4822_v3 = vmul.f32 %v4506_v45, %v14259_v4  ;;  %v4823_v16 = vmul.f32 %v4510_v21, %v14262_v18  ;;  %v14270_v4 = vsub.f32 %v11395_v15, %v14269_v26  ;;  %v14277_v15 = vsub.f32 %v11467_v10, %v11471_v40  ;;  %v14283_v10 = vld [vmem:[#allocation193_spill] sm:$0xff] }
 0x5a9   : > { %v14284_v40 = vsub.f32 %v11539_v39, %v14283_v10  ;;  %v14290_v10 = vld [vmem:[#allocation22_spill] sm:$0xff] }
 0x5aa   : > { %4631 = vbcast.lane.b32.xlu1 %v14210_v19, 280  ;;  %v14267_v19 = vsub.f32 %v11359_v6, %v11363_v49  ;;  %v14274_v6 = vld [vmem:[#allocation302_spill] sm:$0xff] }
 0x5ab   : > { %4784 = vbcast.lane.b32.xlu0 %v14225_v60, 280  ;;  %v4514_v63 = vpop.permute.xlu1 %4513  ;;  %v4518_v46 = vpop.permute.xlu0 %4517 }
 0x5ac   : > { %v4824_v59 = vmul.f32 %v4514_v63, %v14263_v58  ;;  %v11790_v22 = vmul.f32 %v4518_v46, %v14265_v52  ;;  %v14273_v58 = vld [vmem:[#allocation323_spill] sm:$0xff] }
 0x5ad   : > { %v14275_v49 = vsub.f32 %v14273_v58, %v14274_v6  ;;  %v14286_v6 = vld [vmem:[#allocation191_spill] sm:$0xff] }
 0x5af   : > { %v4525_v55 = vpop.permute.xlu1 %4524  ;;  %v4529_v47 = vpop.permute.xlu0 %4528 }
 0x5b0   : > { %v4826_v45 = vmul.f32 %v4525_v55, %v14266_v38  ;;  %v4827_v60 = vmul.f32 %v4529_v47, %v14267_v19 }
 0x5b3   : > { %v4533_v21 = vpop.permute.xlu1 %4532  ;;  %v4537_v13 = vpop.permute.xlu0 %4536 }
 0x5b4   : > { %v4828_v56 = vmul.f32 %v4533_v21, %v14268_v53  ;;  %v11804_v30 = vmul.f32 %v4537_v13, %v14270_v4  ;;  %v14279_v13 = vld [vmem:[#allocation189_spill] sm:$0xff]  ;;  %v14280_v53 = vld [vmem:[#allocation263_spill] sm:$0xff] }
 0x5b5   : > { %v14281_v26 = vsub.f32 %v14279_v13, %v14280_v53 }
 0x5b7   : > { %v4544_v18 = vpop.permute.xlu1 %4543  ;;  %v4548_v63 = vpop.permute.xlu0 %4547 }
 0x5b8   : > { %v4830_v46 = vmul.f32 %v4544_v18, %v14272_v41  ;;  %v4831_v29 = vmul.f32 %v4548_v63, %v14275_v49 }
 0x5bb   : > { %v4552_v52 = vpop.permute.xlu1 %4551  ;;  %v4556_v55 = vpop.permute.xlu0 %4555 }
 0x5bc   : > { %v11815_v5 = vmul.f32 %v4552_v52, %v14276_v43  ;;  %v11820_v47 = vmul.f32 %v4556_v55, %v14277_v15 }
 0x5bf   : > { %v4563_v38 = vpop.permute.xlu1 %4562  ;;  %v4567_v19 = vpop.permute.xlu0 %4566 }
 0x5c0   : > { %v4834_v21 = vmul.f32 %v4563_v38, %v14278_v35  ;;  %v4835_v4 = vmul.f32 %v4567_v19, %v14281_v26  ;;  %v14287_v38 = vld [vmem:[#allocation199_spill] sm:$0xff] }
 0x5c3   : > { %v4571_v18 = vpop.permute.xlu1 %4570  ;;  %v4575_v63 = vpop.permute.xlu0 %4574 }
 0x5c4   : > { %v11831_v44 = vmul.f32 %v4571_v18, %v14282_v62  ;;  %v11836_v37 = vmul.f32 %v4575_v63, %v14284_v40  ;;  %v14289_v18 = vld [vmem:[#allocation87_spill] sm:$0xff] }
 0x5c8   : > { %v4640_v41 = vpop.permute.xlu1 %4639  ;;  %v4644_v58 = vpop.permute.xlu0 %4643 }
 0x5c9   : > { %v4882_v28 = vmul.f32 %v4640_v41, %v14285_v61  ;;  %v4883_v49 = vmul.f32 %v4644_v58, %v14286_v6  ;;  %v14291_v61 = vld [vmem:[#allocation50_spill] sm:$0xff] }
 0x5cb   : > { %v4914_v52 = vsub.f32 %v4818_v31, %v4882_v28  ;;  %v4915_v55 = vsub.f32 %v4819_v23, %v4883_v49  ;;  %v14292_v49 = vld [vmem:[#allocation171_spill] sm:$0xff] }
 0x5cc   : > { %v4659_v43 = vpop.permute.xlu1 %4658  ;;  %v4663_v15 = vpop.permute.xlu0 %4662 }
 0x5cd   : > { %v4886_v19 = vmul.f32 %v4659_v43, %v14287_v38  ;;  %v4946_v24 = vadd.f32 %v4915_v55, %v4914_v52  ;;  %v4887_v35 = vmul.f32 %v4663_v15, %v14288_v17  ;;  %v14293_v38 = vld [vmem:[#allocation55_spill] sm:$0xff] }
 0x5cf   : > { %v4918_v13 = vsub.f32 %v4822_v3, %v4886_v19  ;;  %v4919_v53 = vsub.f32 %v4823_v16, %v4887_v35  ;;  %v14294_v35 = vld [vmem:[#allocation175_spill] sm:$0xff] }
 0x5d0   : > { %v4678_v39 = vpop.permute.xlu1 %4677  ;;  %v4682_v26 = vpop.permute.xlu0 %4681 }
 0x5d1   : > { %v4890_v63 = vmul.f32 %v4678_v39, %v14289_v18  ;;  %v4955_v62 = vadd.f32 %v4919_v53, %v4918_v13  ;;  %v4891_v40 = vmul.f32 %v4682_v26, %v14290_v10  ;;  %v14295_v26 = vld [vmem:[#allocation73_spill] sm:$0xff]  ;;  %v14296_v10 = vld [vmem:[#allocation142_spill] sm:$0xff] }
 0x5d3   : > { %v4922_v41 = vsub.f32 %v4826_v45, %v4890_v63  ;;  %v4923_v58 = vsub.f32 %v4827_v60, %v4891_v40 }
 0x5d4   : > { %v4648_v31 = vpop.permute.xlu1 %4647 }
 0x5d5   : > { %v4667_v23 = vpop.permute.xlu0 %4666  ;;  %v4884_v28 = vmul.f32 %v4648_v31, %v14291_v61  ;;  %v4964_v6 = vadd.f32 %v4923_v58, %v4922_v41  ;;  %v14297_v31 = vld [vmem:[#allocation204_spill] sm:$0xff] }
 0x5d6   : > { %v4888_v52 = vmul.f32 %v4667_v23, %v14292_v49 }
 0x5d7   : > { %v4916_v55 = vsub.f32 %v11767_v54, %v4884_v28 }
 0x5d8   : > { %v4920_v3 = vsub.f32 %v4824_v59, %v4888_v52  ;;  %v4697_v16 = vpop.permute.xlu1 %4696 }
 0x5d9   : > { %v4947_v43 = vadd.f32 %v4946_v24, %v4916_v55  ;;  %v4701_v15 = vpop.permute.xlu0 %4700  ;;  %v4894_v19 = vmul.f32 %v4697_v16, %v14293_v38  ;;  %v14299_v16 = vld [vmem:[#allocation56_spill] sm:$0xff] }
 0x5da   : > { %v4956_v17 = vadd.f32 %v4955_v62, %v4920_v3  ;;  %v4895_v13 = vmul.f32 %v4701_v15, %v14294_v35 }
 0x5db   : > { %v4926_v45 = vsub.f32 %v4830_v46, %v4894_v19  ;;  %v14298_v46 = vld [vmem:[#allocation260_spill] sm:$0xff] }
 0x5dc   : > { %v4927_v60 = vsub.f32 %v4831_v29, %v4895_v13  ;;  %v4686_v53 = vpop.permute.xlu1 %4685  ;;  %v14301_v13 = vsub.f32 %v11548_v32, %v11568_v57 }
 0x5dd   : > { %v4716_v39 = vpop.permute.xlu0 %4715  ;;  %v4892_v18 = vmul.f32 %v4686_v53, %v14295_v26  ;;  %v14302_v26 = vld [vmem:[#allocation308_spill] sm:$0xff] }
 0x5de   : > { %v4973_v63 = vadd.f32 %v4927_v60, %v4926_v45  ;;  %v4898_v40 = vmul.f32 %v4716_v39, %v14296_v10 }
 0x5df   : > { %v4924_v41 = vsub.f32 %v4828_v56, %v4892_v18  ;;  %v14300_v56 = vld [vmem:[#allocation215_spill] sm:$0xff]  ;;  %v14303_v18 = vld [vmem:[#allocation264_spill] sm:$0xff] }
 0x5e0   : > { %v4930_v54 = vsub.f32 %v4834_v21, %v4898_v40  ;;  %v4720_v59 = vpop.permute.xlu1 %4719 }
 0x5e1   : > { %v4965_v58 = vadd.f32 %v4964_v6, %v4924_v41  ;;  %v4582_v24 = vpop.permute.xlu0 %4581  ;;  %v4899_v23 = vmul.f32 %v4720_v59, %v14297_v31  ;;  %v14305_v41 = vld [vmem:[#allocation68_spill] sm:$0xff] }
 0x5e2   : > { %v4838_v45 = vmul.f32 %v4582_v24, %v14301_v13 }
 0x5e3   : > { %v4931_v61 = vsub.f32 %v4835_v4, %v4899_v23 }
 0x5e4   : > { %v4586_v62 = vpop.permute.xlu1 %4585 }
 0x5e5   : > { %v4982_v28 = vadd.f32 %v4931_v61, %v4930_v54  ;;  %v4652_v49 = vpop.permute.xlu0 %4651 }
 0x5e6   : > { %v4885_v29 = vmul.f32 %v4652_v49, %v14298_v46 }
 0x5e8   : > { %v4917_v52 = vsub.f32 %v11772_v7, %v4885_v29  ;;  %v4671_v55 = vpop.permute.xlu1 %4670 }
 0x5e9   : > { %v4705_v3 = vpop.permute.xlu0 %4704  ;;  %v4889_v15 = vmul.f32 %v4671_v55, %v14299_v16 }
 0x5ea   : > { %v4948_v38 = vadd.f32 %v4947_v43, %v4917_v52  ;;  %v4896_v21 = vmul.f32 %v4705_v3, %v14300_v56  ;;  %v14304_v43 = vsub.f32 %v14302_v26, %v14303_v18  ;;  %v14306_v52 = vld [vmem:[#allocation51_spill] sm:$0xff] }
 0x5eb   : > { %v4921_v6 = vsub.f32 %v11790_v22, %v4889_v15  ;;  %v14308_v15 = vsub.f32 %v11620_v42, %v11640_v36 }
 0x5ec   : > { %v4949_v19 = vrot.slane %v4948_v38, 4  ;;  %v4928_v35 = vsub.f32 %v11815_v5, %v4896_v21  ;;  %v4735_v4 = vpop.permute.xlu1 %4734  ;;  %v4839_v10 = vmul.f32 %v4586_v62, %v14304_v43  ;;  %v14307_v62 = vld [vmem:[#allocation176_spill] sm:$0xff] }
 0x5ed   : > { %v4957_v60 = vadd.f32 %v4956_v17, %v4921_v6  ;;  %v4739_v53 = vpop.permute.xlu0 %4738  ;;  %v4902_v7 = vmul.f32 %v4735_v4, %v11591_v11 }
 0x5ee   : > { %v4950_v39 = vadd.f32 %v4949_v19, %v4948_v38  ;;  %v4974_v40 = vadd.f32 %v4973_v63, %v4928_v35  ;;  %v4903_v22 = vmul.f32 %v4739_v53, %v14305_v41 }
 0x5ef   : > { %v4958_v54 = vrot.slane %v4957_v60, 4  ;;  %v4934_v59 = vsub.f32 %v4838_v45, %v4902_v7  ;;  %v14309_v45 = vsub.f32 %v11647_v51, %v11651_v1 }
 0x5f0   : > { %v4951_v5 = vrot.slane %v4950_v39, 2  ;;  %v4935_v31 = vsub.f32 %v4839_v10, %v4903_v22  ;;  %v4601_v23 = vpop.permute.xlu1 %4600 }
 0x5f1   : > { %v4959_v61 = vadd.f32 %v4958_v54, %v4957_v60  ;;  %v4605_v57 = vpop.permute.xlu0 %4604  ;;  %v4842_v38 = vmul.f32 %v4601_v23, %v14308_v15  ;;  %v14313_v23 = vld [vmem:[#allocation63_spill] sm:$0xff] }
 0x5f2   : > { %v4952_v32 = vadd.f32 %v4951_v5, %v4950_v39  ;;  %v4991_v17 = vadd.f32 %v4935_v31, %v4934_v59  ;;  %v4843_v60 = vmul.f32 %v4605_v57, %v14309_v45  ;;  %v14312_v31 = vld [vmem:[#allocation209_spill] sm:$0xff] }
 0x5f3   : > { %v4960_v24 = vrot.slane %v4959_v61, 2 }
 0x5f4   : > { %v4690_v49 = vpop.permute.xlu1 %4689  ;;  %v4953_v11 = vrot.slane %v4952_v32, 1 }
 0x5f5   : > { %v4961_v46 = vadd.f32 %v4960_v24, %v4959_v61  ;;  %v4724_v29 = vpop.permute.xlu0 %4723  ;;  %v4893_v55 = vmul.f32 %v4690_v49, %v14306_v52  ;;  %v14314_v61 = vsub.f32 %v14312_v31, %v14313_v23  ;;  %v14315_v24 = vld [vmem:[#allocation217_spill] sm:$0xff] }
 0x5f6   : > { %v4900_v63 = vmul.f32 %v4724_v29, %v14307_v62  ;;  %v4954_v6 = vadd.f32 %v4953_v11, %v4952_v32  ;;  %v14316_v11 = vsub.f32 %v11701_v0, %v11711_v14  ;;  %v14327_v31 = vld [vmem:[#allocation237_spill] sm:$0xff] }
 0x5f7   : > { %v4962_v3 = vrot.slane %v4961_v46, 1  ;;  %v4925_v16 = vsub.f32 %v11804_v30, %v4893_v55  ;;  %v14310_v30 = vld [vmem:[#allocation27_spill] sm:$0xff] }
 0x5f8   : > { %v4932_v56 = vsub.f32 %v11831_v44, %v4900_v63  ;;  %v4754_v21 = vpop.permute.xlu1 %4753 }
 0x5f9   : > { %v4963_v19 = vadd.f32 %v4962_v3, %v4961_v46  ;;  %v4966_v35 = vadd.f32 %v4965_v58, %v4925_v16  ;;  %v4758_v4 = vpop.permute.xlu0 %4757  ;;  %v4906_v13 = vmul.f32 %v4754_v21, %v11663_v2  ;;  %v14311_v2 = vld [vmem:[#allocation77_spill] sm:$0xff]  ;;  %v14317_v16 = vsub.f32 %v11718_v48, %v11720_v25 }
 0x5fa   : > { %v4983_v53 = vadd.f32 %v4982_v28, %v4932_v56  ;;  %v4907_v7 = vmul.f32 %v4758_v4, %v14310_v30  ;;  %v14318_v21 = vld [vmem:[#allocation265_spill] sm:$0xff]  ;;  %v14321_v30 = vld [vmem:[#allocation43_spill] sm:$0xff] }
 0x5fb   : > { %v5027_v39 = vsel %vm5026_vm8, %v4963_v19, %v4954_v6  ;;  %v4967_v26 = vrot.slane %v4966_v35, 4  ;;  %v4938_v36 = vsub.f32 %v4842_v38, %v4906_v13 }
 0x5fc   : > { %v4939_v42 = vsub.f32 %v4843_v60, %v4907_v7  ;;  %v4590_v18 = vpop.permute.xlu1 %4589  ;;  %v14320_v60 = vld [vmem:[#allocation212_spill] sm:$0xff] }
 0x5fd   : > { %v4968_v44 = vadd.f32 %v4967_v26, %v4966_v35  ;;  %v4620_v43 = vpop.permute.xlu0 %4619  ;;  %v4840_v57 = vmul.f32 %v4590_v18, %v14314_v61  ;;  %v14322_v7 = vsub.f32 %v14320_v60, %v14321_v30  ;;  %v14323_v26 = vld [vmem:[#allocation190_spill] sm:$0xff] }
 0x5fe   : > { %v5000_v10 = vadd.f32 %v4939_v42, %v4938_v36  ;;  %v4846_v46 = vmul.f32 %v4620_v43, %v14316_v11 }
 0x5ff   : > { %v4969_v41 = vrot.slane %v4968_v44, 2 }
 0x600   : > { %v4624_v58 = vpop.permute.xlu1 %4623 }
 0x601   : > { %v4970_v22 = vadd.f32 %v4969_v41, %v4968_v44  ;;  %v4709_v54 = vpop.permute.xlu0 %4708  ;;  %v4847_v15 = vmul.f32 %v4624_v58, %v14317_v16 }
 0x602   : > { %v4897_v59 = vmul.f32 %v4709_v54, %v14311_v2 }
 0x603   : > { %v4971_v5 = vrot.slane %v4970_v22, 1 }
 0x604   : > { %v4929_v51 = vsub.f32 %v11820_v47, %v4897_v59  ;;  %v4743_v1 = vpop.permute.xlu1 %4742  ;;  %v14324_v59 = vld [vmem:[#allocation88_spill] sm:$0xff] }
 0x605   : > { %v4972_v28 = vadd.f32 %v4971_v5, %v4970_v22  ;;  %v4773_v32 = vpop.permute.xlu0 %4772  ;;  %v4904_v49 = vmul.f32 %v4743_v1, %v14315_v24  ;;  %v14325_v5 = vld [vmem:[#allocation211_spill] sm:$0xff] }
 0x606   : > { %v4975_v29 = vadd.f32 %v4974_v40, %v4929_v51  ;;  %v4910_v52 = vmul.f32 %v4773_v32, %v11726_v50  ;;  %v14319_v50 = vld [vmem:[#allocation206_spill] sm:$0xff]  ;;  %v14326_v51 = vsub.f32 %v14324_v59, %v14325_v5 }
 0x607   : > { %v5029_v55 = vsel %vm5028_vm9, %v4972_v28, %v5027_v39  ;;  %v4936_v62 = vsub.f32 %v4840_v57, %v4904_v49 }
 0x608   : > { %v4976_v63 = vrot.slane %v4975_v29, 4  ;;  %v4942_v47 = vsub.f32 %v4846_v46, %v4910_v52  ;;  %v4777_v3 = vpop.permute.xlu1 %4776  ;;  %v14328_v46 = vld [vmem:[#allocation214_spill] sm:$0xff] }
 0x609   : > { %v4992_v38 = vadd.f32 %v4991_v17, %v4936_v62  ;;  %v4609_v56 = vpop.permute.xlu0 %4608  ;;  %v4911_v6 = vmul.f32 %v4777_v3, %v14318_v21 }
 0x60a   : > { %v4977_v19 = vadd.f32 %v4976_v63, %v4975_v29  ;;  %v4844_v39 = vmul.f32 %v4609_v56, %v14322_v7  ;;  %v14329_v29 = vld [vmem:[#allocation66_spill] sm:$0xff]  ;;  %v14331_v63 = vld [vmem:[#allocation240_spill] sm:$0xff]  ;;  %v14332_v56 = vsub.f32 %v14251_v12, %v11742_v8 }
 0x60b   : > { %v4943_v35 = vsub.f32 %v4847_v15, %v4911_v6  ;;  %v14330_v52 = vsub.f32 %v14328_v46, %v14329_v29 }
 0x60c   : > { %v4978_v14 = vrot.slane %v4977_v19, 2  ;;  %v4728_v0 = vpop.permute.xlu1 %4727 }
 0x60d   : > { %v5009_v40 = vadd.f32 %v4943_v35, %v4942_v47  ;;  %v4762_v4 = vpop.permute.xlu0 %4761  ;;  %v4901_v13 = vmul.f32 %v4728_v0, %v14319_v50 }
 0x60e   : > { %v4979_v45 = vadd.f32 %v4978_v14, %v4977_v19  ;;  %v4908_v48 = vmul.f32 %v4762_v4, %v14323_v26 }
 0x60f   : > { %v4933_v25 = vsub.f32 %v11836_v37, %v4901_v13 }
 0x610   : > { %v4980_v17 = vrot.slane %v4979_v45, 1  ;;  %v4940_v36 = vsub.f32 %v4844_v39, %v4908_v48  ;;  %v4594_v42 = vpop.permute.xlu1 %4593 }
 0x611   : > { %v4984_v18 = vadd.f32 %v4983_v53, %v4933_v25  ;;  %v4628_v44 = vpop.permute.xlu0 %4627  ;;  %v4841_v1 = vmul.f32 %v4594_v42, %v14326_v51 }
 0x612   : > { %v4981_v43 = vadd.f32 %v4980_v17, %v4979_v45  ;;  %v5001_v41 = vadd.f32 %v5000_v10, %v4940_v36  ;;  %v4848_v37 = vmul.f32 %v4628_v44, %v4311_v27 }
 0x613   : > { %v4985_v58 = vrot.slane %v4984_v18, 4 }
 0x614   : > { %v5031_v22 = vsel %vm5030_vm10, %v4981_v43, %v5029_v55  ;;  %v4747_v54 = vpop.permute.xlu1 %4746 }
 0x615   : > { %v4986_v2 = vadd.f32 %v4985_v58, %v4984_v18  ;;  %v4781_v28 = vpop.permute.xlu0 %4780  ;;  %v4905_v23 = vmul.f32 %v4747_v54, %v14327_v31 }
 0x616   : > { %v4912_v53 = vmul.f32 %v4781_v28, %v11749_v20 }
 0x617   : > { %v4987_v61 = vrot.slane %v4986_v2, 2  ;;  %v4937_v57 = vsub.f32 %v4841_v1, %v4905_v23 }
 0x618   : > { %v4944_v10 = vsub.f32 %v4848_v37, %v4912_v53  ;;  %v4613_v32 = vpop.permute.xlu1 %4612 }
 0x619   : > { %v4988_v24 = vadd.f32 %v4987_v61, %v4986_v2  ;;  %v4993_v49 = vadd.f32 %v4992_v38, %v4937_v57  ;;  %v4766_v11 = vpop.permute.xlu0 %4765  ;;  %v4845_v55 = vmul.f32 %v4613_v32, %v14330_v52 }
 0x61a   : > { %v5010_v62 = vadd.f32 %v5009_v40, %v4944_v10  ;;  %v4909_v47 = vmul.f32 %v4766_v11, %v14331_v63 }
 0x61b   : > { %v4989_v3 = vrot.slane %v4988_v24, 1  ;;  %v4994_v16 = vrot.slane %v4993_v49, 4 }
 0x61c   : > { %v4941_v33 = vsub.f32 %v4845_v55, %v4909_v47  ;;  %v4632_v34 = vpop.permute.xlu1 %4631 }
 0x61d   : > { %v4990_v20 = vadd.f32 %v4989_v3, %v4988_v24  ;;  %v4995_v27 = vadd.f32 %v4994_v16, %v4993_v49  ;;  %v4785_v15 = vpop.permute.xlu0 %4784  ;;  %v4849_v38 = vmul.f32 %v4632_v34, %v14332_v56 }
 0x61e   : > { %v5002_v21 = vadd.f32 %v5001_v41, %v4941_v33  ;;  %v4913_v6 = vmul.f32 %v4785_v15, %v11755_v9 }
 0x61f   : > { %v4996_v19 = vrot.slane %v4995_v27, 2  ;;  %v5033_v35 = vsel %vm5032_vm11, %v4990_v20, %v5031_v22 }
 0x620   : > { %v5003_v14 = vrot.slane %v5002_v21, 4  ;;  %v4945_v0 = vsub.f32 %v4849_v38, %v4913_v6 }
 0x621   : > { %v4997_v40 = vadd.f32 %v4996_v19, %v4995_v27 }
 0x622   : > { %v5004_v4 = vadd.f32 %v5003_v14, %v5002_v21  ;;  %v5011_v50 = vadd.f32 %v5010_v62, %v4945_v0 }
 0x623   : > { %v4998_v13 = vrot.slane %v4997_v40, 1 }
 0x624   : > { %v5005_v45 = vrot.slane %v5004_v4, 2  ;;  %v5012_v60 = vrot.slane %v5011_v50, 4 }
 0x625   : > { %v4999_v30 = vadd.f32 %v4998_v13, %v4997_v40 }
 0x626   : > { %v5006_v7 = vadd.f32 %v5005_v45, %v5004_v4  ;;  %v5013_v8 = vadd.f32 %v5012_v60, %v5011_v50 }
 0x627   : > { %v5035_v12 = vsel %vm5034_vm12, %v4999_v30, %v5033_v35 }
 0x628   : > { %v5007_v39 = vrot.slane %v5006_v7, 1  ;;  %v5014_v9 = vrot.slane %v5013_v8, 2 }
 0x62a   : > { %v5008_v26 = vadd.f32 %v5007_v39, %v5006_v7  ;;  %v5015_v48 = vadd.f32 %v5014_v9, %v5013_v8 }
 0x62c   : > { %v5016_v25 = vrot.slane %v5015_v48, 1  ;;  %v5037_v17 = vsel %vm5036_vm13, %v5008_v26, %v5035_v12 }
 0x62e   : > { %v5017_v36 = vadd.f32 %v5016_v25, %v5015_v48 }
 0x630   : > { %v5039_v42 = vsel %vm5038_vm14, %v5017_v36, %v5037_v17 }
 0x631   : > { %5041 = vst [vmem:[%s350_s14] sm:$0xff] %v5039_v42 }
 0x632   : > { %5439 = shalt.err (!%p5436_p0)
}
 0x633   : > { %s5440_s13 = scalar_lea.hbm %s11919_s16, 128  ;;  %s5444_s9 = scalar_lea.hbm %s11965_s5, 512 }
 0x634   : > { %p5441_p1 = scmp.ne.s32.totalorder %s11919_s16, %s5440_s13  ;;  %p5445_p7 = scmp.lt.s32.totalorder %s11919_s16, %s11965_s5 }
 0x635   : > { %p5446_p13 = scmp.lt.s32.totalorder %s5444_s9, %s5440_s13 }
 0x636   : > { %p5442_p5 = pnand %p5441_p1, %p5608_p9 }
 0x637   : > { %p5447_p8 = por %p5446_p13, %p5445_p7 }
 0x638   : > { %p5443_p6 = pneg %p5442_p5 }
 0x63a   : > { %p5448_p2 = pnand %p5447_p8, %p5443_p6 }
 0x63c   : > { %5451 = shalt.err (!%p5448_p2)
}
 0x63d   : > { %5256 = dma.vmem_to_hbm [thread:$0]  (%p5608_p9), %s5071_s7, 128, %s11919_s16, %s5056_s26  }
 0x63e PF: > { %p5273_p3 = scmp.ge.s32.totalorder %s5510_s23, 2  ;;  %s5082_s22 = sand.u32 1, %s5490_s18  }
 0x63f   : > { %s5083_s15 = scalar_lea.sflag [#allocation10], %s5082_s22 }
 0x640   : > { %p5269_p10 = pnand %p5273_p3, %p5615_p11 }
 0x642   : > { %p5270_p12 = pneg %p5269_p10 }
 0x644   : > { %5485 = dma.done.wait (%p5270_p12), %s5083_s15, 128  }
 0x645   : > { %5487 = vsyncadd (%p5270_p12), %s5083_s15, 4294967168  ;;  %s24_s23 = sadd.s32 1, %s5510_s23   ;;  %s14334_s6 = sld [smem:[#allocation20_spill]] }
 0x646   : > { %p21_p4 = scmp.ge.s32.totalorder %s24_s23, 6   ;;  %s14335_s21 = sld [smem:[#allocation18_spill]] }
 0x647   : > { %s14336_s22 = sld [smem:[#allocation19_spill]]  ;;  %s14337_s18 = smov %s5494_s19 }
 0x648   : > { %s14338_s19 = smov %s5498_s20  ;;  %23 = sbr.rel (!%p21_p4) target bundleno = 10 (0xa), region = 119 }
 0x64b   : > { %s14339_s20 = smov %s14334_s6 }
 0x64d   :  { %5088 = vsyncpa [#allocation9], 1 }
 0x64e   :  { %5090 = vsyncpa [#allocation9 + $0x1], 1 }
 0x64f   :  { %5091 = vsyncpa [#allocation12], 1 }
 0x650   :  { %5093 = vsyncpa [#allocation12 + $0x1], 1 }
 0x651   :  { %5094 = vsyncpa [#allocation10], 1 }
 0x652   :  { %5096 = vsyncpa [#allocation10 + $0x1], 1 }

</bundles_post_ra>
